<compile_context>
chip_gen: v6e
topology: v6e:2x2x1
jax: 0.10.0
libtpu: 0.0.40
codegen_flags: <defaults>
</compile_context>

<pallas_src>
import jax
import jax.numpy as jnp
from jax import lax
from jax.experimental import pallas as pl
from jax.experimental.pallas import tpu as pltpu

# ----------------------------- config (small) -----------------------------
B = 2                      # batch
C_IN = 3                   # image channels
IMG = 16                   # image size
PATCH = 8                  # patch size -> 2x2 = 4 patches (+1 cls = 5 tokens)
DV = 32                    # vision hidden
V_HEADS = 4
V_LAYERS = 2
V_FFN = 64

NUM_QUERY = 8              # blip2 num_query_tokens
DQ = 32                    # qformer hidden
Q_HEADS = 4
Q_LAYERS = 2
Q_FFN = 64

DL = 32                    # llama hidden
L_HEADS = 4
L_LAYERS = 2
L_FFN = 64
VOCAB = 128
ROPE_THETA = 10000.0

S_PREFIX, S_SUFFIX, S_DECODER = 4, 3, 5

DTYPE = jnp.float32

# ------------------- in-kernel math helpers (VMEM values) -------------------


def _layernorm(x, g, b, eps):
    mu = jnp.mean(x, axis=-1, keepdims=True)
    xc = x - mu
    var = jnp.mean(xc * xc, axis=-1, keepdims=True)
    return xc * lax.rsqrt(var + eps) * g + b


def _rmsnorm(x, w, eps):
    ms = jnp.mean(x * x, axis=-1, keepdims=True)
    return x * lax.rsqrt(ms + eps) * w


def _gelu_tanh(y):
    c = jnp.float32(0.7978845608028654)          # sqrt(2/pi)
    return 0.5 * y * (1.0 + jnp.tanh(c * (y + 0.044715 * y * y * y)))


def _softmax_rows(s):
    m = jnp.max(s, axis=-1, keepdims=True)
    p = jnp.exp(s - m)
    return p * pl.reciprocal(jnp.sum(p, axis=-1, keepdims=True), approx=True)


def _rotate_half(x):
    half = x.shape[-1] // 2
    return jnp.concatenate([-x[:, half:], x[:, :half]], axis=-1)


def _mha(q, k, v, num_heads, scale, bias=None):
    """q: (S, D), k/v: (T, D) — per-head attention, heads merged back to D."""
    D = q.shape[-1]
    dh = D // num_heads
    outs = []
    for h in range(num_heads):
        qh = q[:, h * dh:(h + 1) * dh] * scale
        kh = k[:, h * dh:(h + 1) * dh]
        vh = v[:, h * dh:(h + 1) * dh]
        s = lax.dot_general(qh, kh, (((1,), (1,)), ((), ())),
                            preferred_element_type=jnp.float32)
        if bias is not None:
            s = s + bias
        p = _softmax_rows(s)
        outs.append(jnp.dot(p, vh, preferred_element_type=jnp.float32))
    return jnp.concatenate(outs, axis=-1)


# ----------------------------- fused kernels -----------------------------


def _vision_kernel(x_ref, patch_w_ref, patch_b_ref, pos_ref,
                   ln1_g_ref, ln1_b_ref, qkv_w_ref, qkv_b_ref,
                   proj_w_ref, proj_b_ref, ln2_g_ref, ln2_b_ref,
                   fc1_w_ref, fc1_b_ref, fc2_w_ref, fc2_b_ref,
                   post_g_ref, post_b_ref, out_ref):
    # x_ref: (1, n_tok, C*P*P) — row 0 is zero (cls slot), rest are im2col patches.
    x = x_ref[0].astype(jnp.float32)
    h = (jnp.dot(x, patch_w_ref[...], preferred_element_type=jnp.float32)
         + patch_b_ref[...] + pos_ref[...])        # (n_tok, DV); cls folded in pos_ref
    scale = (DV // V_HEADS) ** -0.5
    for l in range(V_LAYERS):
        hn = _layernorm(h, ln1_g_ref[l], ln1_b_ref[l], 1e-6)
        qkv = (jnp.dot(hn, qkv_w_ref[l], preferred_element_type=jnp.float32)
               + qkv_b_ref[l])                     # fused (n_tok, 3*DV)
        q, k, v = qkv[:, :DV], qkv[:, DV:2 * DV], qkv[:, 2 * DV:]
        attn = _mha(q, k, v, V_HEADS, scale)
        h = h + (jnp.dot(attn, proj_w_ref[l], preferred_element_type=jnp.float32)
                 + proj_b_ref[l])
        hn = _layernorm(h, ln2_g_ref[l], ln2_b_ref[l], 1e-6)
        f = _gelu_tanh(jnp.dot(hn, fc1_w_ref[l], preferred_element_type=jnp.float32)
                       + fc1_b_ref[l])
        h = h + (jnp.dot(f, fc2_w_ref[l], preferred_element_type=jnp.float32)
                 + fc2_b_ref[l])
    out_ref[0] = _layernorm(h, post_g_ref[...], post_b_ref[...],
                            1e-6).astype(out_ref.dtype)


def _qformer_kernel(qtok_ref, img_ref, ln_g_ref, ln_b_ref,
                    sa_qkv_w_ref, sa_qkv_b_ref, ao_w_ref, ao_b_ref,
                    aln_g_ref, aln_b_ref, cq_w_ref, cq_b_ref,
                    ckv_w_ref, ckv_b_ref, co_w_ref, co_b_ref,
                    cln_g_ref, cln_b_ref, i_w_ref, i_b_ref,
                    o_w_ref, o_b_ref, oln_g_ref, oln_b_ref,
                    proj_w_ref, proj_b_ref, out_ref):
    img = img_ref[0].astype(jnp.float32)           # (Ti, DV)
    h = _layernorm(qtok_ref[0].astype(jnp.float32),
                   ln_g_ref[...], ln_b_ref[...], 1e-12)   # (NQ, DQ)
    scale = (DQ // Q_HEADS) ** -0.5
    for l in range(Q_LAYERS):
        # --- self attention (post-LN / BERT style), fused qkv GEMM ---
        qkv = (jnp.dot(h, sa_qkv_w_ref[l], preferred_element_type=jnp.float32)
               + sa_qkv_b_ref[l])
        q, k, v = qkv[:, :DQ], qkv[:, DQ:2 * DQ], qkv[:, 2 * DQ:]
        attn = _mha(q, k, v, Q_HEADS, scale)       # no mask (all-ones)
        attn = (jnp.dot(attn, ao_w_ref[l], preferred_element_type=jnp.float32)
                + ao_b_ref[l])
        h = _layernorm(attn + h, aln_g_ref[l], aln_b_ref[l], 1e-12)
        # --- cross attention to image embeds (fused k/v GEMM) ---
        cq = (jnp.dot(h, cq_w_ref[l], preferred_element_type=jnp.float32)
              + cq_b_ref[l])
        ckv = (jnp.dot(img, ckv_w_ref[l], preferred_element_type=jnp.float32)
               + ckv_b_ref[l])
        ck, cv = ckv[:, :DQ], ckv[:, DQ:]
        cattn = _mha(cq, ck, cv, Q_HEADS, scale)   # image mask is all-ones
        cattn = (jnp.dot(cattn, co_w_ref[l], preferred_element_type=jnp.float32)
                 + co_b_ref[l])
        h = _layernorm(cattn + h, cln_g_ref[l], cln_b_ref[l], 1e-12)
        # --- feed forward (query branch) ---
        f = _gelu_tanh(jnp.dot(h, i_w_ref[l], preferred_element_type=jnp.float32)
                       + i_b_ref[l])
        f = (jnp.dot(f, o_w_ref[l], preferred_element_type=jnp.float32)
             + o_b_ref[l])
        h = _layernorm(f + h, oln_g_ref[l], oln_b_ref[l], 1e-12)
    # language_projection fused into the epilogue
    out_ref[0] = (jnp.dot(h, proj_w_ref[...], preferred_element_type=jnp.float32)
                  + proj_b_ref[...]).astype(out_ref.dtype)


def _llama_kernel(emb_ref, mask_ref, cos_ref, sin_ref,
                  ln_in_ref, wqkv_ref, wo_ref, ln_post_ref,
                  wgu_ref, wd_ref, norm_ref, lm_head_ref, out_ref):
    S = emb_ref.shape[1]
    h = emb_ref[0].astype(jnp.float32)             # (S, DL)
    # causal + padding mask built in-kernel (no HBM bias materialization)
    key_ok = mask_ref[0] > 0.5                     # (1, S)
    row = lax.broadcasted_iota(jnp.int32, (S, S), 0)
    col = lax.broadcasted_iota(jnp.int32, (S, S), 1)
    allowed = jnp.logical_and(col <= row, key_ok)
    bias = jnp.where(allowed, 0.0, -1e9).astype(jnp.float32)
    cos = cos_ref[...]                             # (S, dh)
    sin = sin_ref[...]
    dh = DL // L_HEADS
    scale = dh ** -0.5
    for l in range(L_LAYERS):
        hn = _rmsnorm(h, ln_in_ref[l], 1e-6)
        qkv = jnp.dot(hn, wqkv_ref[l], preferred_element_type=jnp.float32)
        q, k, v = qkv[:, :DL], qkv[:, DL:2 * DL], qkv[:, 2 * DL:]
        outs = []
        for hd in range(L_HEADS):
            qh = q[:, hd * dh:(hd + 1) * dh]
            kh = k[:, hd * dh:(hd + 1) * dh]
            vh = v[:, hd * dh:(hd + 1) * dh]
            qh = qh * cos + _rotate_half(qh) * sin     # RoPE in-kernel
            kh = kh * cos + _rotate_half(kh) * sin
            s = lax.dot_general(qh * scale, kh, (((1,), (1,)), ((), ())),
                                preferred_element_type=jnp.float32) + bias
            p = _softmax_rows(s)
            outs.append(jnp.dot(p, vh, preferred_element_type=jnp.float32))
        attn = jnp.concatenate(outs, axis=-1)
        h = h + jnp.dot(attn, wo_ref[l], preferred_element_type=jnp.float32)
        hn = _rmsnorm(h, ln_post_ref[l], 1e-6)
        gu = jnp.dot(hn, wgu_ref[l], preferred_element_type=jnp.float32)
        g, u = gu[:, :L_FFN], gu[:, L_FFN:]
        m = g * jax.nn.sigmoid(g) * u                  # SwiGLU
        h = h + jnp.dot(m, wd_ref[l], preferred_element_type=jnp.float32)
    h = _rmsnorm(h, norm_ref[...], 1e-6)
    out_ref[0] = jnp.dot(h, lm_head_ref[...],
                         preferred_element_type=jnp.float32).astype(out_ref.dtype)


# ----------------------------- BlockSpec helpers -----------------------------


def _full_spec(arr):
    """Whole array in VMEM, same block for every grid step (weights)."""
    nd = arr.ndim
    return pl.BlockSpec(arr.shape, lambda b, _nd=nd: (0,) * _nd)


def _batch_spec(arr):
    """One batch element per grid step; full extent on remaining dims."""
    rest = arr.shape[1:]
    nz = len(rest)
    return pl.BlockSpec((1,) + rest, lambda b, _nz=nz: (b,) + (0,) * _nz)


_PARALLEL_BATCH = pltpu.CompilerParams(dimension_semantics=("parallel",))


# ----------------------------- parameter init -----------------------------


class KeyGen:
    def __init__(self, seed=0):
        self._key = jax.random.PRNGKey(seed)

    def __call__(self):
        self._key, sub = jax.random.split(self._key)
        return sub


def w_init(kg, shape, scale=0.02):
    return (jax.random.normal(kg(), shape, jnp.float32) * scale).astype(DTYPE)


def init_params(kg):
    n_tok = (IMG // PATCH) ** 2 + 1
    vision = dict(
        patch_w=w_init(kg, (C_IN * PATCH * PATCH, DV)),
        patch_b=jnp.zeros((1, DV), DTYPE),
        cls=w_init(kg, (1, DV)),
        pos=w_init(kg, (n_tok, DV)),
        ln1_g=jnp.ones((V_LAYERS, 1, DV), DTYPE),
        ln1_b=jnp.zeros((V_LAYERS, 1, DV), DTYPE),
        qkv_w=w_init(kg, (V_LAYERS, DV, 3 * DV)),
        qkv_b=jnp.zeros((V_LAYERS, 1, 3 * DV), DTYPE),
        proj_w=w_init(kg, (V_LAYERS, DV, DV)),
        proj_b=jnp.zeros((V_LAYERS, 1, DV), DTYPE),
        ln2_g=jnp.ones((V_LAYERS, 1, DV), DTYPE),
        ln2_b=jnp.zeros((V_LAYERS, 1, DV), DTYPE),
        fc1_w=w_init(kg, (V_LAYERS, DV, V_FFN)),
        fc1_b=jnp.zeros((V_LAYERS, 1, V_FFN), DTYPE),
        fc2_w=w_init(kg, (V_LAYERS, V_FFN, DV)),
        fc2_b=jnp.zeros((V_LAYERS, 1, DV), DTYPE),
        post_g=jnp.ones((1, DV), DTYPE),
        post_b=jnp.zeros((1, DV), DTYPE),
    )
    qformer = dict(
        ln_g=jnp.ones((1, DQ), DTYPE), ln_b=jnp.zeros((1, DQ), DTYPE),
        sa_qkv_w=w_init(kg, (Q_LAYERS, DQ, 3 * DQ)),
        sa_qkv_b=jnp.zeros((Q_LAYERS, 1, 3 * DQ), DTYPE),
        ao_w=w_init(kg, (Q_LAYERS, DQ, DQ)),
        ao_b=jnp.zeros((Q_LAYERS, 1, DQ), DTYPE),
        aln_g=jnp.ones((Q_LAYERS, 1, DQ), DTYPE),
        aln_b=jnp.zeros((Q_LAYERS, 1, DQ), DTYPE),
        cq_w=w_init(kg, (Q_LAYERS, DQ, DQ)),
        cq_b=jnp.zeros((Q_LAYERS, 1, DQ), DTYPE),
        ckv_w=w_init(kg, (Q_LAYERS, DV, 2 * DQ)),
        ckv_b=jnp.zeros((Q_LAYERS, 1, 2 * DQ), DTYPE),
        co_w=w_init(kg, (Q_LAYERS, DQ, DQ)),
        co_b=jnp.zeros((Q_LAYERS, 1, DQ), DTYPE),
        cln_g=jnp.ones((Q_LAYERS, 1, DQ), DTYPE),
        cln_b=jnp.zeros((Q_LAYERS, 1, DQ), DTYPE),
        i_w=w_init(kg, (Q_LAYERS, DQ, Q_FFN)),
        i_b=jnp.zeros((Q_LAYERS, 1, Q_FFN), DTYPE),
        o_w=w_init(kg, (Q_LAYERS, Q_FFN, DQ)),
        o_b=jnp.zeros((Q_LAYERS, 1, DQ), DTYPE),
        oln_g=jnp.ones((Q_LAYERS, 1, DQ), DTYPE),
        oln_b=jnp.zeros((Q_LAYERS, 1, DQ), DTYPE),
    )
    llama = dict(
        embed=w_init(kg, (VOCAB, DL)),
        ln_in=jnp.ones((L_LAYERS, 1, DL), DTYPE),
        wqkv=w_init(kg, (L_LAYERS, DL, 3 * DL)),
        wo=w_init(kg, (L_LAYERS, DL, DL)),
        ln_post=jnp.ones((L_LAYERS, 1, DL), DTYPE),
        wgu=w_init(kg, (L_LAYERS, DL, 2 * L_FFN)),
        wd=w_init(kg, (L_LAYERS, L_FFN, DL)),
        norm=jnp.ones((1, DL), DTYPE),
        lm_head=w_init(kg, (DL, VOCAB)),
    )
    return dict(
        vision=vision, qformer=qformer,
        # nn.Parameter(torch.zeros(...)) -> synthetic non-zero init
        query_tokens=w_init(kg, (1, NUM_QUERY, DQ)),
        proj_w=w_init(kg, (DQ, DL)),
        proj_b=jnp.zeros((1, DL), DTYPE),
        llama=llama,
    )


# ----------------------------- sub-model wrappers -----------------------------


def vision_forward(vp, pixel_values):
    """Blip2VisionModel.  pixel_values: (B, C, H, W) NCHW."""
    Bb = pixel_values.shape[0]
    nps = IMG // PATCH
    cpp = C_IN * PATCH * PATCH
    n_tok = nps * nps + 1
    # im2col: conv(stride == kernel == patch) -> matmul.  Prepend a zero row for
    # the cls token and fold (cls - patch_b) into row 0 of the position table so
    # the kernel does a single (n_tok, cpp) @ (cpp, DV) GEMM with one bias add.
    x = pixel_values.reshape(Bb, C_IN, nps, PATCH, nps, PATCH)
    patches = x.transpose(0, 2, 4, 1, 3, 5).reshape(Bb, nps * nps, cpp)
    patches = jnp.concatenate(
        [jnp.zeros((Bb, 1, cpp), DTYPE), patches], axis=1)            # (B, n_tok, cpp)
    pos_eff = jnp.concatenate(
        [vp["pos"][0:1] + vp["cls"] - vp["patch_b"], vp["pos"][1:]], axis=0)

    weights = [vp["patch_w"], vp["patch_b"], pos_eff,
               vp["ln1_g"], vp["ln1_b"], vp["qkv_w"], vp["qkv_b"],
               vp["proj_w"], vp["proj_b"], vp["ln2_g"], vp["ln2_b"],
               vp["fc1_w"], vp["fc1_b"], vp["fc2_w"], vp["fc2_b"],
               vp["post_g"], vp["post_b"]]
    return pl.pallas_call(
        _vision_kernel,
        grid=(Bb,),
        in_specs=[_batch_spec(patches)] + [_full_spec(w) for w in weights],
        out_specs=pl.BlockSpec((1, n_tok, DV), lambda b: (b, 0, 0)),
        out_shape=jax.ShapeDtypeStruct((Bb, n_tok, DV), DTYPE),
        compiler_params=_PARALLEL_BATCH,
    )(patches, *weights)


def qformer_forward(qp, query_tokens, image_embeds, proj_w, proj_b):
    """Blip2QFormerModel (query-only path) + language_projection."""
    Bb = image_embeds.shape[0]
    weights = [qp["ln_g"], qp["ln_b"], qp["sa_qkv_w"], qp["sa_qkv_b"],
               qp["ao_w"], qp["ao_b"], qp["aln_g"], qp["aln_b"],
               qp["cq_w"], qp["cq_b"], qp["ckv_w"], qp["ckv_b"],
               qp["co_w"], qp["co_b"], qp["cln_g"], qp["cln_b"],
               qp["i_w"], qp["i_b"], qp["o_w"], qp["o_b"],
               qp["oln_g"], qp["oln_b"], proj_w, proj_b]
    return pl.pallas_call(
        _qformer_kernel,
        grid=(Bb,),
        in_specs=[_full_spec(query_tokens), _batch_spec(image_embeds)]
                 + [_full_spec(w) for w in weights],
        out_specs=pl.BlockSpec((1, NUM_QUERY, DL), lambda b: (b, 0, 0)),
        out_shape=jax.ShapeDtypeStruct((Bb, NUM_QUERY, DL), DTYPE),
        compiler_params=_PARALLEL_BATCH,
    )(query_tokens, image_embeds, *weights)


def _rope_tables(S, dh, theta=ROPE_THETA):
    inv = 1.0 / (theta ** (jnp.arange(0, dh, 2, dtype=jnp.float32) / dh))
    freqs = jnp.arange(S, dtype=jnp.float32)[:, None] * inv[None, :]
    emb = jnp.concatenate([freqs, freqs], axis=-1)
    return jnp.cos(emb).astype(DTYPE), jnp.sin(emb).astype(DTYPE)


def llama_forward(lp, inputs_embeds, attention_mask):
    """LlamaForCausalLM (returns logits)."""
    Bb, S, D = inputs_embeds.shape
    dh = D // L_HEADS
    cos, sin = _rope_tables(S, dh)
    mask3 = attention_mask.astype(jnp.float32).reshape(Bb, 1, S)
    weights = [lp["ln_in"], lp["wqkv"], lp["wo"], lp["ln_post"],
               lp["wgu"], lp["wd"], lp["norm"], lp["lm_head"]]
    return pl.pallas_call(
        _llama_kernel,
        grid=(Bb,),
        in_specs=[_batch_spec(inputs_embeds), _batch_spec(mask3),
                  _full_spec(cos), _full_spec(sin)]
                 + [_full_spec(w) for w in weights],
        out_specs=pl.BlockSpec((1, S, VOCAB), lambda b: (b, 0, 0)),
        out_shape=jax.ShapeDtypeStruct((Bb, S, VOCAB), DTYPE),
        compiler_params=_PARALLEL_BATCH,
    )(inputs_embeds, mask3, cos, sin, *weights)


# ----------------------------- top-level forward -----------------------------


def minigpt4_forward(params, pixel_values, prefix_input_ids, suffix_input_ids,
                     decoder_input_ids, prefix_attention_mask=None,
                     suffix_attention_mask=None, decoder_attention_mask=None):
    Bb = pixel_values.shape[0]
    # vision tower (fused kernel)
    image_embeds = vision_forward(params["vision"], pixel_values)
    # image_attention_mask is always all-ones -> handled implicitly in-kernel.
    # q-former on learned query tokens + language_projection (fused kernel)
    language_model_inputs = qformer_forward(
        params["qformer"], params["query_tokens"], image_embeds,
        params["proj_w"], params["proj_b"])
    language_model_attention_mask = jnp.ones((Bb, NUM_QUERY), jnp.int32)

    # token embedding lookup (gather) -- plain-JAX glue
    embed = params["llama"]["embed"]
    prefix_inputs_embeds = jnp.take(embed, prefix_input_ids, axis=0)
    suffix_inputs_embeds = jnp.take(embed, suffix_input_ids, axis=0)
    decoder_input_embeds = jnp.take(embed, decoder_input_ids, axis=0)

    inputs_embeds = jnp.concatenate(
        [prefix_inputs_embeds, language_model_inputs,
         suffix_inputs_embeds, decoder_input_embeds], axis=1)

    if prefix_attention_mask is None:
        prefix_attention_mask = jnp.ones(prefix_inputs_embeds.shape[:-1], jnp.int32)
    if suffix_attention_mask is None:
        suffix_attention_mask = jnp.ones(suffix_inputs_embeds.shape[:-1], jnp.int32)
    if decoder_attention_mask is None:
        decoder_attention_mask = jnp.ones(decoder_input_embeds.shape[:-1], jnp.int32)

    attention_mask = jnp.concatenate(
        [prefix_attention_mask, language_model_attention_mask,
         suffix_attention_mask, decoder_attention_mask], axis=1)

    # llama decoder (fused kernel)
    return llama_forward(params["llama"], inputs_embeds, attention_mask)


# ----------------------------- main -----------------------------

if __name__ == "__main__":
    kg = KeyGen(seed=0)
    params = init_params(kg)

    key = jax.random.PRNGKey(0)
    k_pix, k_pre, k_suf, k_dec = jax.random.split(key, 4)
    pixel_values = jax.random.normal(k_pix, (B, C_IN, IMG, IMG), DTYPE)
    prefix_input_ids = jax.random.randint(k_pre, (B, S_PREFIX), 0, VOCAB)
    suffix_input_ids = jax.random.randint(k_suf, (B, S_SUFFIX), 0, VOCAB)
    decoder_input_ids = jax.random.randint(k_dec, (B, S_DECODER), 0, VOCAB)

    fwd = jax.jit(minigpt4_forward)
    logits = fwd(params, pixel_values, prefix_input_ids,
                 suffix_input_ids, decoder_input_ids)
    logits = jax.block_until_ready(logits)

    total_seq = S_PREFIX + NUM_QUERY + S_SUFFIX + S_DECODER
    assert logits.shape == (B, total_seq, VOCAB), logits.shape
    assert bool(jnp.all(jnp.isfinite(logits)))
    # TODO(synk): dropout layers are no-ops (eval mode); GELU uses tanh approx.
    print("KERNEL_OK")
</pallas_src>

<mosaic_0001>
module attributes {stable_mosaic.version = 11 : i64} {
  func.func @_vision_kernel(%arg0: i32, %arg1: memref<1x5x192xf32, #tpu.memory_space<vmem>>, %arg2: memref<192x32xf32, #tpu.memory_space<vmem>>, %arg3: memref<1x32xf32, #tpu.memory_space<vmem>>, %arg4: memref<5x32xf32, #tpu.memory_space<vmem>>, %arg5: memref<2x1x32xf32, #tpu.memory_space<vmem>>, %arg6: memref<2x1x32xf32, #tpu.memory_space<vmem>>, %arg7: memref<2x32x96xf32, #tpu.memory_space<vmem>>, %arg8: memref<2x1x96xf32, #tpu.memory_space<vmem>>, %arg9: memref<2x32x32xf32, #tpu.memory_space<vmem>>, %arg10: memref<2x1x32xf32, #tpu.memory_space<vmem>>, %arg11: memref<2x1x32xf32, #tpu.memory_space<vmem>>, %arg12: memref<2x1x32xf32, #tpu.memory_space<vmem>>, %arg13: memref<2x32x64xf32, #tpu.memory_space<vmem>>, %arg14: memref<2x1x64xf32, #tpu.memory_space<vmem>>, %arg15: memref<2x64x32xf32, #tpu.memory_space<vmem>>, %arg16: memref<2x1x32xf32, #tpu.memory_space<vmem>>, %arg17: memref<1x32xf32, #tpu.memory_space<vmem>>, %arg18: memref<1x32xf32, #tpu.memory_space<vmem>>, %arg19: memref<1x5x32xf32, #tpu.memory_space<vmem>>) attributes {dimension_semantics = [#tpu.dimension_semantics<parallel>], iteration_bounds = array<i64: 2>, scalar_prefetch = 0 : i64, scratch_operands = 0 : i64, tpu.core_type = #tpu.core_type<tc>, window_params = [{transform_indices = @transform_0, window_bounds = array<i64: 1, 5, 192>}, {pipeline_mode = #tpu.pipeline_mode<synchronous>, transform_indices = @transform_1, window_bounds = array<i64: 192, 32>}, {pipeline_mode = #tpu.pipeline_mode<synchronous>, transform_indices = @transform_2, window_bounds = array<i64: 1, 32>}, {pipeline_mode = #tpu.pipeline_mode<synchronous>, transform_indices = @transform_3, window_bounds = array<i64: 5, 32>}, {pipeline_mode = #tpu.pipeline_mode<synchronous>, transform_indices = @transform_4, window_bounds = array<i64: 2, 1, 32>}, {pipeline_mode = #tpu.pipeline_mode<synchronous>, transform_indices = @transform_5, window_bounds = array<i64: 2, 1, 32>}, {pipeline_mode = #tpu.pipeline_mode<synchronous>, transform_indices = @transform_6, window_bounds = array<i64: 2, 32, 96>}, {pipeline_mode = #tpu.pipeline_mode<synchronous>, transform_indices = @transform_7, window_bounds = array<i64: 2, 1, 96>}, {pipeline_mode = #tpu.pipeline_mode<synchronous>, transform_indices = @transform_8, window_bounds = array<i64: 2, 32, 32>}, {pipeline_mode = #tpu.pipeline_mode<synchronous>, transform_indices = @transform_9, window_bounds = array<i64: 2, 1, 32>}, {pipeline_mode = #tpu.pipeline_mode<synchronous>, transform_indices = @transform_10, window_bounds = array<i64: 2, 1, 32>}, {pipeline_mode = #tpu.pipeline_mode<synchronous>, transform_indices = @transform_11, window_bounds = array<i64: 2, 1, 32>}, {pipeline_mode = #tpu.pipeline_mode<synchronous>, transform_indices = @transform_12, window_bounds = array<i64: 2, 32, 64>}, {pipeline_mode = #tpu.pipeline_mode<synchronous>, transform_indices = @transform_13, window_bounds = array<i64: 2, 1, 64>}, {pipeline_mode = #tpu.pipeline_mode<synchronous>, transform_indices = @transform_14, window_bounds = array<i64: 2, 64, 32>}, {pipeline_mode = #tpu.pipeline_mode<synchronous>, transform_indices = @transform_15, window_bounds = array<i64: 2, 1, 32>}, {pipeline_mode = #tpu.pipeline_mode<synchronous>, transform_indices = @transform_16, window_bounds = array<i64: 1, 32>}, {pipeline_mode = #tpu.pipeline_mode<synchronous>, transform_indices = @transform_17, window_bounds = array<i64: 1, 32>}, {transform_indices = @transform_18, window_bounds = array<i64: 1, 5, 32>}]} {
    %c0 = arith.constant 0 : index
    %c0_0 = arith.constant 0 : index
    %c0_1 = arith.constant 0 : index
    %0 = vector.load %arg1[%c0, %c0_0, %c0_1] : memref<1x5x192xf32, #tpu.memory_space<vmem>>, vector<1x5x192xf32>
    %1 = vector.shape_cast %0 : vector<1x5x192xf32> to vector<5x192xf32>
    %c0_2 = arith.constant 0 : index
    %c0_3 = arith.constant 0 : index
    %2 = vector.load %arg2[%c0_2, %c0_3] : memref<192x32xf32, #tpu.memory_space<vmem>>, vector<192x32xf32>
    %cst = arith.constant dense<0.000000e+00> : vector<5x32xf32>
    %3 = tpu.matmul %1, %2, %cst {dimension_numbers = #tpu.dot_dimension_numbers<[1], [0], [0], [1], [0, 0, 1, 1], [], []>} : vector<5x192xf32>, vector<192x32xf32>, vector<5x32xf32> -> vector<5x32xf32>
    %c0_4 = arith.constant 0 : index
    %c0_5 = arith.constant 0 : index
    %4 = vector.load %arg3[%c0_4, %c0_5] : memref<1x32xf32, #tpu.memory_space<vmem>>, vector<1x32xf32>
    %5 = vector.broadcast %4 : vector<1x32xf32> to vector<5x32xf32>
    %6 = arith.addf %3, %5 : vector<5x32xf32>
    %c0_6 = arith.constant 0 : index
    %c0_7 = arith.constant 0 : index
    %7 = vector.load %arg4[%c0_6, %c0_7] : memref<5x32xf32, #tpu.memory_space<vmem>>, vector<5x32xf32>
    %8 = arith.addf %6, %7 : vector<5x32xf32>
    %c0_8 = arith.constant 0 : index
    %c0_9 = arith.constant 0 : index
    %c0_10 = arith.constant 0 : index
    %9 = vector.load %arg5[%c0_8, %c0_9, %c0_10] : memref<2x1x32xf32, #tpu.memory_space<vmem>>, vector<1x1x32xf32>
    %10 = vector.shape_cast %9 : vector<1x1x32xf32> to vector<1x32xf32>
    %c0_11 = arith.constant 0 : index
    %c0_12 = arith.constant 0 : index
    %c0_13 = arith.constant 0 : index
    %11 = vector.load %arg6[%c0_11, %c0_12, %c0_13] : memref<2x1x32xf32, #tpu.memory_space<vmem>>, vector<1x1x32xf32>
    %12 = vector.shape_cast %11 : vector<1x1x32xf32> to vector<1x32xf32>
    %cst_14 = arith.constant dense<0.000000e+00> : vector<5xf32>
    %13 = vector.multi_reduction <add>, %8, %cst_14 [1] : vector<5x32xf32> to vector<5xf32>
    %14 = vector.shape_cast %13 : vector<5xf32> to vector<5x1xf32>
    %cst_15 = arith.constant 3.200000e+01 : f32
    %15 = vector.broadcast %cst_15 : f32 to vector<5x1xf32>
    %16 = arith.divf %14, %15 : vector<5x1xf32>
    %17 = vector.broadcast %16 : vector<5x1xf32> to vector<5x32xf32>
    %18 = arith.subf %8, %17 : vector<5x32xf32>
    %19 = arith.mulf %18, %18 : vector<5x32xf32>
    %cst_16 = arith.constant dense<0.000000e+00> : vector<5xf32>
    %20 = vector.multi_reduction <add>, %19, %cst_16 [1] : vector<5x32xf32> to vector<5xf32>
    %21 = vector.shape_cast %20 : vector<5xf32> to vector<5x1xf32>
    %cst_17 = arith.constant 3.200000e+01 : f32
    %22 = vector.broadcast %cst_17 : f32 to vector<5x1xf32>
    %23 = arith.divf %21, %22 : vector<5x1xf32>
    %cst_18 = arith.constant 9.99999997E-7 : f32
    %24 = vector.broadcast %cst_18 : f32 to vector<5x1xf32>
    %25 = arith.addf %23, %24 : vector<5x1xf32>
    %26 = math.rsqrt %25 : vector<5x1xf32>
    %27 = vector.broadcast %26 : vector<5x1xf32> to vector<5x32xf32>
    %28 = arith.mulf %18, %27 : vector<5x32xf32>
    %29 = vector.broadcast %10 : vector<1x32xf32> to vector<5x32xf32>
    %30 = arith.mulf %28, %29 : vector<5x32xf32>
    %31 = vector.broadcast %12 : vector<1x32xf32> to vector<5x32xf32>
    %32 = arith.addf %30, %31 : vector<5x32xf32>
    %c0_19 = arith.constant 0 : index
    %c0_20 = arith.constant 0 : index
    %c0_21 = arith.constant 0 : index
    %33 = vector.load %arg7[%c0_19, %c0_20, %c0_21] : memref<2x32x96xf32, #tpu.memory_space<vmem>>, vector<1x32x96xf32>
    %34 = vector.shape_cast %33 : vector<1x32x96xf32> to vector<32x96xf32>
    %cst_22 = arith.constant dense<0.000000e+00> : vector<5x96xf32>
    %35 = tpu.matmul %32, %34, %cst_22 {dimension_numbers = #tpu.dot_dimension_numbers<[1], [0], [0], [1], [0, 0, 1, 1], [], []>} : vector<5x32xf32>, vector<32x96xf32>, vector<5x96xf32> -> vector<5x96xf32>
    %c0_23 = arith.constant 0 : index
    %c0_24 = arith.constant 0 : index
    %c0_25 = arith.constant 0 : index
    %36 = vector.load %arg8[%c0_23, %c0_24, %c0_25] : memref<2x1x96xf32, #tpu.memory_space<vmem>>, vector<1x1x96xf32>
    %37 = vector.shape_cast %36 : vector<1x1x96xf32> to vector<1x96xf32>
    %38 = vector.broadcast %37 : vector<1x96xf32> to vector<5x96xf32>
    %39 = arith.addf %35, %38 : vector<5x96xf32>
    %40 = vector.extract_strided_slice %39 {offsets = [0, 0], sizes = [5, 32], strides = [1, 1]} : vector<5x96xf32> to vector<5x32xf32>
    %41 = vector.extract_strided_slice %39 {offsets = [0, 32], sizes = [5, 32], strides = [1, 1]} : vector<5x96xf32> to vector<5x32xf32>
    %42 = vector.extract_strided_slice %39 {offsets = [0, 64], sizes = [5, 32], strides = [1, 1]} : vector<5x96xf32> to vector<5x32xf32>
    %43 = vector.extract_strided_slice %40 {offsets = [0, 0], sizes = [5, 8], strides = [1, 1]} : vector<5x32xf32> to vector<5x8xf32>
    %cst_26 = arith.constant 0.353553385 : f32
    %44 = vector.broadcast %cst_26 : f32 to vector<5x8xf32>
    %45 = arith.mulf %43, %44 : vector<5x8xf32>
    %46 = vector.extract_strided_slice %41 {offsets = [0, 0], sizes = [5, 8], strides = [1, 1]} : vector<5x32xf32> to vector<5x8xf32>
    %47 = vector.extract_strided_slice %42 {offsets = [0, 0], sizes = [5, 8], strides = [1, 1]} : vector<5x32xf32> to vector<5x8xf32>
    %cst_27 = arith.constant dense<0.000000e+00> : vector<5x5xf32>
    %48 = tpu.matmul %45, %46, %cst_27 {dimension_numbers = #tpu.dot_dimension_numbers<[1], [1], [0], [0], [0, 0, 1, 0], [], []>} : vector<5x8xf32>, vector<5x8xf32>, vector<5x5xf32> -> vector<5x5xf32>
    %cst_28 = arith.constant dense<0xFF800000> : vector<5xf32>
    %49 = vector.multi_reduction <maximumf>, %48, %cst_28 [1] : vector<5x5xf32> to vector<5xf32>
    %50 = vector.shape_cast %49 : vector<5xf32> to vector<5x1xf32>
    %51 = vector.broadcast %50 : vector<5x1xf32> to vector<5x5xf32>
    %52 = arith.subf %48, %51 : vector<5x5xf32>
    %53 = math.exp %52 : vector<5x5xf32>
    %cst_29 = arith.constant dense<0.000000e+00> : vector<5xf32>
    %54 = vector.multi_reduction <add>, %53, %cst_29 [1] : vector<5x5xf32> to vector<5xf32>
    %55 = vector.shape_cast %54 : vector<5xf32> to vector<5x1xf32>
    %56 = tpu.reciprocal %55 {approx = true} : vector<5x1xf32> -> vector<5x1xf32>
    %57 = vector.broadcast %56 : vector<5x1xf32> to vector<5x5xf32>
    %58 = arith.mulf %53, %57 : vector<5x5xf32>
    %cst_30 = arith.constant dense<0.000000e+00> : vector<5x8xf32>
    %59 = tpu.matmul %58, %47, %cst_30 {dimension_numbers = #tpu.dot_dimension_numbers<[1], [0], [0], [1], [0, 0, 1, 1], [], []>} : vector<5x5xf32>, vector<5x8xf32>, vector<5x8xf32> -> vector<5x8xf32>
    %60 = vector.extract_strided_slice %40 {offsets = [0, 8], sizes = [5, 8], strides = [1, 1]} : vector<5x32xf32> to vector<5x8xf32>
    %cst_31 = arith.constant 0.353553385 : f32
    %61 = vector.broadcast %cst_31 : f32 to vector<5x8xf32>
    %62 = arith.mulf %60, %61 : vector<5x8xf32>
    %63 = vector.extract_strided_slice %41 {offsets = [0, 8], sizes = [5, 8], strides = [1, 1]} : vector<5x32xf32> to vector<5x8xf32>
    %64 = vector.extract_strided_slice %42 {offsets = [0, 8], sizes = [5, 8], strides = [1, 1]} : vector<5x32xf32> to vector<5x8xf32>
    %cst_32 = arith.constant dense<0.000000e+00> : vector<5x5xf32>
    %65 = tpu.matmul %62, %63, %cst_32 {dimension_numbers = #tpu.dot_dimension_numbers<[1], [1], [0], [0], [0, 0, 1, 0], [], []>} : vector<5x8xf32>, vector<5x8xf32>, vector<5x5xf32> -> vector<5x5xf32>
    %cst_33 = arith.constant dense<0xFF800000> : vector<5xf32>
    %66 = vector.multi_reduction <maximumf>, %65, %cst_33 [1] : vector<5x5xf32> to vector<5xf32>
    %67 = vector.shape_cast %66 : vector<5xf32> to vector<5x1xf32>
    %68 = vector.broadcast %67 : vector<5x1xf32> to vector<5x5xf32>
    %69 = arith.subf %65, %68 : vector<5x5xf32>
    %70 = math.exp %69 : vector<5x5xf32>
    %cst_34 = arith.constant dense<0.000000e+00> : vector<5xf32>
    %71 = vector.multi_reduction <add>, %70, %cst_34 [1] : vector<5x5xf32> to vector<5xf32>
    %72 = vector.shape_cast %71 : vector<5xf32> to vector<5x1xf32>
    %73 = tpu.reciprocal %72 {approx = true} : vector<5x1xf32> -> vector<5x1xf32>
    %74 = vector.broadcast %73 : vector<5x1xf32> to vector<5x5xf32>
    %75 = arith.mulf %70, %74 : vector<5x5xf32>
    %cst_35 = arith.constant dense<0.000000e+00> : vector<5x8xf32>
    %76 = tpu.matmul %75, %64, %cst_35 {dimension_numbers = #tpu.dot_dimension_numbers<[1], [0], [0], [1], [0, 0, 1, 1], [], []>} : vector<5x5xf32>, vector<5x8xf32>, vector<5x8xf32> -> vector<5x8xf32>
    %77 = vector.extract_strided_slice %40 {offsets = [0, 16], sizes = [5, 8], strides = [1, 1]} : vector<5x32xf32> to vector<5x8xf32>
    %cst_36 = arith.constant 0.353553385 : f32
    %78 = vector.broadcast %cst_36 : f32 to vector<5x8xf32>
    %79 = arith.mulf %77, %78 : vector<5x8xf32>
    %80 = vector.extract_strided_slice %41 {offsets = [0, 16], sizes = [5, 8], strides = [1, 1]} : vector<5x32xf32> to vector<5x8xf32>
    %81 = vector.extract_strided_slice %42 {offsets = [0, 16], sizes = [5, 8], strides = [1, 1]} : vector<5x32xf32> to vector<5x8xf32>
    %cst_37 = arith.constant dense<0.000000e+00> : vector<5x5xf32>
    %82 = tpu.matmul %79, %80, %cst_37 {dimension_numbers = #tpu.dot_dimension_numbers<[1], [1], [0], [0], [0, 0, 1, 0], [], []>} : vector<5x8xf32>, vector<5x8xf32>, vector<5x5xf32> -> vector<5x5xf32>
    %cst_38 = arith.constant dense<0xFF800000> : vector<5xf32>
    %83 = vector.multi_reduction <maximumf>, %82, %cst_38 [1] : vector<5x5xf32> to vector<5xf32>
    %84 = vector.shape_cast %83 : vector<5xf32> to vector<5x1xf32>
    %85 = vector.broadcast %84 : vector<5x1xf32> to vector<5x5xf32>
    %86 = arith.subf %82, %85 : vector<5x5xf32>
    %87 = math.exp %86 : vector<5x5xf32>
    %cst_39 = arith.constant dense<0.000000e+00> : vector<5xf32>
    %88 = vector.multi_reduction <add>, %87, %cst_39 [1] : vector<5x5xf32> to vector<5xf32>
    %89 = vector.shape_cast %88 : vector<5xf32> to vector<5x1xf32>
    %90 = tpu.reciprocal %89 {approx = true} : vector<5x1xf32> -> vector<5x1xf32>
    %91 = vector.broadcast %90 : vector<5x1xf32> to vector<5x5xf32>
    %92 = arith.mulf %87, %91 : vector<5x5xf32>
    %cst_40 = arith.constant dense<0.000000e+00> : vector<5x8xf32>
    %93 = tpu.matmul %92, %81, %cst_40 {dimension_numbers = #tpu.dot_dimension_numbers<[1], [0], [0], [1], [0, 0, 1, 1], [], []>} : vector<5x5xf32>, vector<5x8xf32>, vector<5x8xf32> -> vector<5x8xf32>
    %94 = vector.extract_strided_slice %40 {offsets = [0, 24], sizes = [5, 8], strides = [1, 1]} : vector<5x32xf32> to vector<5x8xf32>
    %cst_41 = arith.constant 0.353553385 : f32
    %95 = vector.broadcast %cst_41 : f32 to vector<5x8xf32>
    %96 = arith.mulf %94, %95 : vector<5x8xf32>
    %97 = vector.extract_strided_slice %41 {offsets = [0, 24], sizes = [5, 8], strides = [1, 1]} : vector<5x32xf32> to vector<5x8xf32>
    %98 = vector.extract_strided_slice %42 {offsets = [0, 24], sizes = [5, 8], strides = [1, 1]} : vector<5x32xf32> to vector<5x8xf32>
    %cst_42 = arith.constant dense<0.000000e+00> : vector<5x5xf32>
    %99 = tpu.matmul %96, %97, %cst_42 {dimension_numbers = #tpu.dot_dimension_numbers<[1], [1], [0], [0], [0, 0, 1, 0], [], []>} : vector<5x8xf32>, vector<5x8xf32>, vector<5x5xf32> -> vector<5x5xf32>
    %cst_43 = arith.constant dense<0xFF800000> : vector<5xf32>
    %100 = vector.multi_reduction <maximumf>, %99, %cst_43 [1] : vector<5x5xf32> to vector<5xf32>
    %101 = vector.shape_cast %100 : vector<5xf32> to vector<5x1xf32>
    %102 = vector.broadcast %101 : vector<5x1xf32> to vector<5x5xf32>
    %103 = arith.subf %99, %102 : vector<5x5xf32>
    %104 = math.exp %103 : vector<5x5xf32>
    %cst_44 = arith.constant dense<0.000000e+00> : vector<5xf32>
    %105 = vector.multi_reduction <add>, %104, %cst_44 [1] : vector<5x5xf32> to vector<5xf32>
    %106 = vector.shape_cast %105 : vector<5xf32> to vector<5x1xf32>
    %107 = tpu.reciprocal %106 {approx = true} : vector<5x1xf32> -> vector<5x1xf32>
    %108 = vector.broadcast %107 : vector<5x1xf32> to vector<5x5xf32>
    %109 = arith.mulf %104, %108 : vector<5x5xf32>
    %cst_45 = arith.constant dense<0.000000e+00> : vector<5x8xf32>
    %110 = tpu.matmul %109, %98, %cst_45 {dimension_numbers = #tpu.dot_dimension_numbers<[1], [0], [0], [1], [0, 0, 1, 1], [], []>} : vector<5x5xf32>, vector<5x8xf32>, vector<5x8xf32> -> vector<5x8xf32>
    %111 = tpu.concatenate %59, %76, %93, %110 in 1 : vector<5x8xf32>, vector<5x8xf32>, vector<5x8xf32>, vector<5x8xf32> -> vector<5x32xf32>
    %c0_46 = arith.constant 0 : index
    %c0_47 = arith.constant 0 : index
    %c0_48 = arith.constant 0 : index
    %112 = vector.load %arg9[%c0_46, %c0_47, %c0_48] : memref<2x32x32xf32, #tpu.memory_space<vmem>>, vector<1x32x32xf32>
    %113 = vector.shape_cast %112 : vector<1x32x32xf32> to vector<32x32xf32>
    %cst_49 = arith.constant dense<0.000000e+00> : vector<5x32xf32>
    %114 = tpu.matmul %111, %113, %cst_49 {dimension_numbers = #tpu.dot_dimension_numbers<[1], [0], [0], [1], [0, 0, 1, 1], [], []>} : vector<5x32xf32>, vector<32x32xf32>, vector<5x32xf32> -> vector<5x32xf32>
    %c0_50 = arith.constant 0 : index
    %c0_51 = arith.constant 0 : index
    %c0_52 = arith.constant 0 : index
    %115 = vector.load %arg10[%c0_50, %c0_51, %c0_52] : memref<2x1x32xf32, #tpu.memory_space<vmem>>, vector<1x1x32xf32>
    %116 = vector.shape_cast %115 : vector<1x1x32xf32> to vector<1x32xf32>
    %117 = vector.broadcast %116 : vector<1x32xf32> to vector<5x32xf32>
    %118 = arith.addf %114, %117 : vector<5x32xf32>
    %119 = arith.addf %8, %118 : vector<5x32xf32>
    %c0_53 = arith.constant 0 : index
    %c0_54 = arith.constant 0 : index
    %c0_55 = arith.constant 0 : index
    %120 = vector.load %arg11[%c0_53, %c0_54, %c0_55] : memref<2x1x32xf32, #tpu.memory_space<vmem>>, vector<1x1x32xf32>
    %121 = vector.shape_cast %120 : vector<1x1x32xf32> to vector<1x32xf32>
    %c0_56 = arith.constant 0 : index
    %c0_57 = arith.constant 0 : index
    %c0_58 = arith.constant 0 : index
    %122 = vector.load %arg12[%c0_56, %c0_57, %c0_58] : memref<2x1x32xf32, #tpu.memory_space<vmem>>, vector<1x1x32xf32>
    %123 = vector.shape_cast %122 : vector<1x1x32xf32> to vector<1x32xf32>
    %cst_59 = arith.constant dense<0.000000e+00> : vector<5xf32>
    %124 = vector.multi_reduction <add>, %119, %cst_59 [1] : vector<5x32xf32> to vector<5xf32>
    %125 = vector.shape_cast %124 : vector<5xf32> to vector<5x1xf32>
    %cst_60 = arith.constant 3.200000e+01 : f32
    %126 = vector.broadcast %cst_60 : f32 to vector<5x1xf32>
    %127 = arith.divf %125, %126 : vector<5x1xf32>
    %128 = vector.broadcast %127 : vector<5x1xf32> to vector<5x32xf32>
    %129 = arith.subf %119, %128 : vector<5x32xf32>
    %130 = arith.mulf %129, %129 : vector<5x32xf32>
    %cst_61 = arith.constant dense<0.000000e+00> : vector<5xf32>
    %131 = vector.multi_reduction <add>, %130, %cst_61 [1] : vector<5x32xf32> to vector<5xf32>
    %132 = vector.shape_cast %131 : vector<5xf32> to vector<5x1xf32>
    %cst_62 = arith.constant 3.200000e+01 : f32
    %133 = vector.broadcast %cst_62 : f32 to vector<5x1xf32>
    %134 = arith.divf %132, %133 : vector<5x1xf32>
    %cst_63 = arith.constant 9.99999997E-7 : f32
    %135 = vector.broadcast %cst_63 : f32 to vector<5x1xf32>
    %136 = arith.addf %134, %135 : vector<5x1xf32>
    %137 = math.rsqrt %136 : vector<5x1xf32>
    %138 = vector.broadcast %137 : vector<5x1xf32> to vector<5x32xf32>
    %139 = arith.mulf %129, %138 : vector<5x32xf32>
    %140 = vector.broadcast %121 : vector<1x32xf32> to vector<5x32xf32>
    %141 = arith.mulf %139, %140 : vector<5x32xf32>
    %142 = vector.broadcast %123 : vector<1x32xf32> to vector<5x32xf32>
    %143 = arith.addf %141, %142 : vector<5x32xf32>
    %c0_64 = arith.constant 0 : index
    %c0_65 = arith.constant 0 : index
    %c0_66 = arith.constant 0 : index
    %144 = vector.load %arg13[%c0_64, %c0_65, %c0_66] : memref<2x32x64xf32, #tpu.memory_space<vmem>>, vector<1x32x64xf32>
    %145 = vector.shape_cast %144 : vector<1x32x64xf32> to vector<32x64xf32>
    %cst_67 = arith.constant dense<0.000000e+00> : vector<5x64xf32>
    %146 = tpu.matmul %143, %145, %cst_67 {dimension_numbers = #tpu.dot_dimension_numbers<[1], [0], [0], [1], [0, 0, 1, 1], [], []>} : vector<5x32xf32>, vector<32x64xf32>, vector<5x64xf32> -> vector<5x64xf32>
    %c0_68 = arith.constant 0 : index
    %c0_69 = arith.constant 0 : index
    %c0_70 = arith.constant 0 : index
    %147 = vector.load %arg14[%c0_68, %c0_69, %c0_70] : memref<2x1x64xf32, #tpu.memory_space<vmem>>, vector<1x1x64xf32>
    %148 = vector.shape_cast %147 : vector<1x1x64xf32> to vector<1x64xf32>
    %149 = vector.broadcast %148 : vector<1x64xf32> to vector<5x64xf32>
    %150 = arith.addf %146, %149 : vector<5x64xf32>
    %cst_71 = arith.constant 5.000000e-01 : f32
    %151 = vector.broadcast %cst_71 : f32 to vector<5x64xf32>
    %152 = arith.mulf %151, %150 : vector<5x64xf32>
    %cst_72 = arith.constant 4.471500e-02 : f32
    %153 = vector.broadcast %cst_72 : f32 to vector<5x64xf32>
    %154 = arith.mulf %153, %150 : vector<5x64xf32>
    %155 = arith.mulf %154, %150 : vector<5x64xf32>
    %156 = arith.mulf %155, %150 : vector<5x64xf32>
    %157 = arith.addf %150, %156 : vector<5x64xf32>
    %cst_73 = arith.constant 0.797884583 : f32
    %158 = vector.broadcast %cst_73 : f32 to vector<5x64xf32>
    %159 = arith.mulf %158, %157 : vector<5x64xf32>
    %160 = math.tanh %159 : vector<5x64xf32>
    %cst_74 = arith.constant 1.000000e+00 : f32
    %161 = vector.broadcast %cst_74 : f32 to vector<5x64xf32>
    %162 = arith.addf %161, %160 : vector<5x64xf32>
    %163 = arith.mulf %152, %162 : vector<5x64xf32>
    %c0_75 = arith.constant 0 : index
    %c0_76 = arith.constant 0 : index
    %c0_77 = arith.constant 0 : index
    %164 = vector.load %arg15[%c0_75, %c0_76, %c0_77] : memref<2x64x32xf32, #tpu.memory_space<vmem>>, vector<1x64x32xf32>
    %165 = vector.shape_cast %164 : vector<1x64x32xf32> to vector<64x32xf32>
    %cst_78 = arith.constant dense<0.000000e+00> : vector<5x32xf32>
    %166 = tpu.matmul %163, %165, %cst_78 {dimension_numbers = #tpu.dot_dimension_numbers<[1], [0], [0], [1], [0, 0, 1, 1], [], []>} : vector<5x64xf32>, vector<64x32xf32>, vector<5x32xf32> -> vector<5x32xf32>
    %c0_79 = arith.constant 0 : index
    %c0_80 = arith.constant 0 : index
    %c0_81 = arith.constant 0 : index
    %167 = vector.load %arg16[%c0_79, %c0_80, %c0_81] : memref<2x1x32xf32, #tpu.memory_space<vmem>>, vector<1x1x32xf32>
    %168 = vector.shape_cast %167 : vector<1x1x32xf32> to vector<1x32xf32>
    %169 = vector.broadcast %168 : vector<1x32xf32> to vector<5x32xf32>
    %170 = arith.addf %166, %169 : vector<5x32xf32>
    %171 = arith.addf %119, %170 : vector<5x32xf32>
    %c1 = arith.constant 1 : index
    %c0_82 = arith.constant 0 : index
    %c0_83 = arith.constant 0 : index
    %172 = vector.load %arg5[%c1, %c0_82, %c0_83] : memref<2x1x32xf32, #tpu.memory_space<vmem>>, vector<1x1x32xf32>
    %173 = vector.shape_cast %172 : vector<1x1x32xf32> to vector<1x32xf32>
    %c1_84 = arith.constant 1 : index
    %c0_85 = arith.constant 0 : index
    %c0_86 = arith.constant 0 : index
    %174 = vector.load %arg6[%c1_84, %c0_85, %c0_86] : memref<2x1x32xf32, #tpu.memory_space<vmem>>, vector<1x1x32xf32>
    %175 = vector.shape_cast %174 : vector<1x1x32xf32> to vector<1x32xf32>
    %cst_87 = arith.constant dense<0.000000e+00> : vector<5xf32>
    %176 = vector.multi_reduction <add>, %171, %cst_87 [1] : vector<5x32xf32> to vector<5xf32>
    %177 = vector.shape_cast %176 : vector<5xf32> to vector<5x1xf32>
    %cst_88 = arith.constant 3.200000e+01 : f32
    %178 = vector.broadcast %cst_88 : f32 to vector<5x1xf32>
    %179 = arith.divf %177, %178 : vector<5x1xf32>
    %180 = vector.broadcast %179 : vector<5x1xf32> to vector<5x32xf32>
    %181 = arith.subf %171, %180 : vector<5x32xf32>
    %182 = arith.mulf %181, %181 : vector<5x32xf32>
    %cst_89 = arith.constant dense<0.000000e+00> : vector<5xf32>
    %183 = vector.multi_reduction <add>, %182, %cst_89 [1] : vector<5x32xf32> to vector<5xf32>
    %184 = vector.shape_cast %183 : vector<5xf32> to vector<5x1xf32>
    %cst_90 = arith.constant 3.200000e+01 : f32
    %185 = vector.broadcast %cst_90 : f32 to vector<5x1xf32>
    %186 = arith.divf %184, %185 : vector<5x1xf32>
    %cst_91 = arith.constant 9.99999997E-7 : f32
    %187 = vector.broadcast %cst_91 : f32 to vector<5x1xf32>
    %188 = arith.addf %186, %187 : vector<5x1xf32>
    %189 = math.rsqrt %188 : vector<5x1xf32>
    %190 = vector.broadcast %189 : vector<5x1xf32> to vector<5x32xf32>
    %191 = arith.mulf %181, %190 : vector<5x32xf32>
    %192 = vector.broadcast %173 : vector<1x32xf32> to vector<5x32xf32>
    %193 = arith.mulf %191, %192 : vector<5x32xf32>
    %194 = vector.broadcast %175 : vector<1x32xf32> to vector<5x32xf32>
    %195 = arith.addf %193, %194 : vector<5x32xf32>
    %c1_92 = arith.constant 1 : index
    %c0_93 = arith.constant 0 : index
    %c0_94 = arith.constant 0 : index
    %196 = vector.load %arg7[%c1_92, %c0_93, %c0_94] : memref<2x32x96xf32, #tpu.memory_space<vmem>>, vector<1x32x96xf32>
    %197 = vector.shape_cast %196 : vector<1x32x96xf32> to vector<32x96xf32>
    %cst_95 = arith.constant dense<0.000000e+00> : vector<5x96xf32>
    %198 = tpu.matmul %195, %197, %cst_95 {dimension_numbers = #tpu.dot_dimension_numbers<[1], [0], [0], [1], [0, 0, 1, 1], [], []>} : vector<5x32xf32>, vector<32x96xf32>, vector<5x96xf32> -> vector<5x96xf32>
    %c1_96 = arith.constant 1 : index
    %c0_97 = arith.constant 0 : index
    %c0_98 = arith.constant 0 : index
    %199 = vector.load %arg8[%c1_96, %c0_97, %c0_98] : memref<2x1x96xf32, #tpu.memory_space<vmem>>, vector<1x1x96xf32>
    %200 = vector.shape_cast %199 : vector<1x1x96xf32> to vector<1x96xf32>
    %201 = vector.broadcast %200 : vector<1x96xf32> to vector<5x96xf32>
    %202 = arith.addf %198, %201 : vector<5x96xf32>
    %203 = vector.extract_strided_slice %202 {offsets = [0, 0], sizes = [5, 32], strides = [1, 1]} : vector<5x96xf32> to vector<5x32xf32>
    %204 = vector.extract_strided_slice %202 {offsets = [0, 32], sizes = [5, 32], strides = [1, 1]} : vector<5x96xf32> to vector<5x32xf32>
    %205 = vector.extract_strided_slice %202 {offsets = [0, 64], sizes = [5, 32], strides = [1, 1]} : vector<5x96xf32> to vector<5x32xf32>
    %206 = vector.extract_strided_slice %203 {offsets = [0, 0], sizes = [5, 8], strides = [1, 1]} : vector<5x32xf32> to vector<5x8xf32>
    %cst_99 = arith.constant 0.353553385 : f32
    %207 = vector.broadcast %cst_99 : f32 to vector<5x8xf32>
    %208 = arith.mulf %206, %207 : vector<5x8xf32>
    %209 = vector.extract_strided_slice %204 {offsets = [0, 0], sizes = [5, 8], strides = [1, 1]} : vector<5x32xf32> to vector<5x8xf32>
    %210 = vector.extract_strided_slice %205 {offsets = [0, 0], sizes = [5, 8], strides = [1, 1]} : vector<5x32xf32> to vector<5x8xf32>
    %cst_100 = arith.constant dense<0.000000e+00> : vector<5x5xf32>
    %211 = tpu.matmul %208, %209, %cst_100 {dimension_numbers = #tpu.dot_dimension_numbers<[1], [1], [0], [0], [0, 0, 1, 0], [], []>} : vector<5x8xf32>, vector<5x8xf32>, vector<5x5xf32> -> vector<5x5xf32>
    %cst_101 = arith.constant dense<0xFF800000> : vector<5xf32>
    %212 = vector.multi_reduction <maximumf>, %211, %cst_101 [1] : vector<5x5xf32> to vector<5xf32>
    %213 = vector.shape_cast %212 : vector<5xf32> to vector<5x1xf32>
    %214 = vector.broadcast %213 : vector<5x1xf32> to vector<5x5xf32>
    %215 = arith.subf %211, %214 : vector<5x5xf32>
    %216 = math.exp %215 : vector<5x5xf32>
    %cst_102 = arith.constant dense<0.000000e+00> : vector<5xf32>
    %217 = vector.multi_reduction <add>, %216, %cst_102 [1] : vector<5x5xf32> to vector<5xf32>
    %218 = vector.shape_cast %217 : vector<5xf32> to vector<5x1xf32>
    %219 = tpu.reciprocal %218 {approx = true} : vector<5x1xf32> -> vector<5x1xf32>
    %220 = vector.broadcast %219 : vector<5x1xf32> to vector<5x5xf32>
    %221 = arith.mulf %216, %220 : vector<5x5xf32>
    %cst_103 = arith.constant dense<0.000000e+00> : vector<5x8xf32>
    %222 = tpu.matmul %221, %210, %cst_103 {dimension_numbers = #tpu.dot_dimension_numbers<[1], [0], [0], [1], [0, 0, 1, 1], [], []>} : vector<5x5xf32>, vector<5x8xf32>, vector<5x8xf32> -> vector<5x8xf32>
    %223 = vector.extract_strided_slice %203 {offsets = [0, 8], sizes = [5, 8], strides = [1, 1]} : vector<5x32xf32> to vector<5x8xf32>
    %cst_104 = arith.constant 0.353553385 : f32
    %224 = vector.broadcast %cst_104 : f32 to vector<5x8xf32>
    %225 = arith.mulf %223, %224 : vector<5x8xf32>
    %226 = vector.extract_strided_slice %204 {offsets = [0, 8], sizes = [5, 8], strides = [1, 1]} : vector<5x32xf32> to vector<5x8xf32>
    %227 = vector.extract_strided_slice %205 {offsets = [0, 8], sizes = [5, 8], strides = [1, 1]} : vector<5x32xf32> to vector<5x8xf32>
    %cst_105 = arith.constant dense<0.000000e+00> : vector<5x5xf32>
    %228 = tpu.matmul %225, %226, %cst_105 {dimension_numbers = #tpu.dot_dimension_numbers<[1], [1], [0], [0], [0, 0, 1, 0], [], []>} : vector<5x8xf32>, vector<5x8xf32>, vector<5x5xf32> -> vector<5x5xf32>
    %cst_106 = arith.constant dense<0xFF800000> : vector<5xf32>
    %229 = vector.multi_reduction <maximumf>, %228, %cst_106 [1] : vector<5x5xf32> to vector<5xf32>
    %230 = vector.shape_cast %229 : vector<5xf32> to vector<5x1xf32>
    %231 = vector.broadcast %230 : vector<5x1xf32> to vector<5x5xf32>
    %232 = arith.subf %228, %231 : vector<5x5xf32>
    %233 = math.exp %232 : vector<5x5xf32>
    %cst_107 = arith.constant dense<0.000000e+00> : vector<5xf32>
    %234 = vector.multi_reduction <add>, %233, %cst_107 [1] : vector<5x5xf32> to vector<5xf32>
    %235 = vector.shape_cast %234 : vector<5xf32> to vector<5x1xf32>
    %236 = tpu.reciprocal %235 {approx = true} : vector<5x1xf32> -> vector<5x1xf32>
    %237 = vector.broadcast %236 : vector<5x1xf32> to vector<5x5xf32>
    %238 = arith.mulf %233, %237 : vector<5x5xf32>
    %cst_108 = arith.constant dense<0.000000e+00> : vector<5x8xf32>
    %239 = tpu.matmul %238, %227, %cst_108 {dimension_numbers = #tpu.dot_dimension_numbers<[1], [0], [0], [1], [0, 0, 1, 1], [], []>} : vector<5x5xf32>, vector<5x8xf32>, vector<5x8xf32> -> vector<5x8xf32>
    %240 = vector.extract_strided_slice %203 {offsets = [0, 16], sizes = [5, 8], strides = [1, 1]} : vector<5x32xf32> to vector<5x8xf32>
    %cst_109 = arith.constant 0.353553385 : f32
    %241 = vector.broadcast %cst_109 : f32 to vector<5x8xf32>
    %242 = arith.mulf %240, %241 : vector<5x8xf32>
    %243 = vector.extract_strided_slice %204 {offsets = [0, 16], sizes = [5, 8], strides = [1, 1]} : vector<5x32xf32> to vector<5x8xf32>
    %244 = vector.extract_strided_slice %205 {offsets = [0, 16], sizes = [5, 8], strides = [1, 1]} : vector<5x32xf32> to vector<5x8xf32>
    %cst_110 = arith.constant dense<0.000000e+00> : vector<5x5xf32>
    %245 = tpu.matmul %242, %243, %cst_110 {dimension_numbers = #tpu.dot_dimension_numbers<[1], [1], [0], [0], [0, 0, 1, 0], [], []>} : vector<5x8xf32>, vector<5x8xf32>, vector<5x5xf32> -> vector<5x5xf32>
    %cst_111 = arith.constant dense<0xFF800000> : vector<5xf32>
    %246 = vector.multi_reduction <maximumf>, %245, %cst_111 [1] : vector<5x5xf32> to vector<5xf32>
    %247 = vector.shape_cast %246 : vector<5xf32> to vector<5x1xf32>
    %248 = vector.broadcast %247 : vector<5x1xf32> to vector<5x5xf32>
    %249 = arith.subf %245, %248 : vector<5x5xf32>
    %250 = math.exp %249 : vector<5x5xf32>
    %cst_112 = arith.constant dense<0.000000e+00> : vector<5xf32>
    %251 = vector.multi_reduction <add>, %250, %cst_112 [1] : vector<5x5xf32> to vector<5xf32>
    %252 = vector.shape_cast %251 : vector<5xf32> to vector<5x1xf32>
    %253 = tpu.reciprocal %252 {approx = true} : vector<5x1xf32> -> vector<5x1xf32>
    %254 = vector.broadcast %253 : vector<5x1xf32> to vector<5x5xf32>
    %255 = arith.mulf %250, %254 : vector<5x5xf32>
    %cst_113 = arith.constant dense<0.000000e+00> : vector<5x8xf32>
    %256 = tpu.matmul %255, %244, %cst_113 {dimension_numbers = #tpu.dot_dimension_numbers<[1], [0], [0], [1], [0, 0, 1, 1], [], []>} : vector<5x5xf32>, vector<5x8xf32>, vector<5x8xf32> -> vector<5x8xf32>
    %257 = vector.extract_strided_slice %203 {offsets = [0, 24], sizes = [5, 8], strides = [1, 1]} : vector<5x32xf32> to vector<5x8xf32>
    %cst_114 = arith.constant 0.353553385 : f32
    %258 = vector.broadcast %cst_114 : f32 to vector<5x8xf32>
    %259 = arith.mulf %257, %258 : vector<5x8xf32>
    %260 = vector.extract_strided_slice %204 {offsets = [0, 24], sizes = [5, 8], strides = [1, 1]} : vector<5x32xf32> to vector<5x8xf32>
    %261 = vector.extract_strided_slice %205 {offsets = [0, 24], sizes = [5, 8], strides = [1, 1]} : vector<5x32xf32> to vector<5x8xf32>
    %cst_115 = arith.constant dense<0.000000e+00> : vector<5x5xf32>
    %262 = tpu.matmul %259, %260, %cst_115 {dimension_numbers = #tpu.dot_dimension_numbers<[1], [1], [0], [0], [0, 0, 1, 0], [], []>} : vector<5x8xf32>, vector<5x8xf32>, vector<5x5xf32> -> vector<5x5xf32>
    %cst_116 = arith.constant dense<0xFF800000> : vector<5xf32>
    %263 = vector.multi_reduction <maximumf>, %262, %cst_116 [1] : vector<5x5xf32> to vector<5xf32>
    %264 = vector.shape_cast %263 : vector<5xf32> to vector<5x1xf32>
    %265 = vector.broadcast %264 : vector<5x1xf32> to vector<5x5xf32>
    %266 = arith.subf %262, %265 : vector<5x5xf32>
    %267 = math.exp %266 : vector<5x5xf32>
    %cst_117 = arith.constant dense<0.000000e+00> : vector<5xf32>
    %268 = vector.multi_reduction <add>, %267, %cst_117 [1] : vector<5x5xf32> to vector<5xf32>
    %269 = vector.shape_cast %268 : vector<5xf32> to vector<5x1xf32>
    %270 = tpu.reciprocal %269 {approx = true} : vector<5x1xf32> -> vector<5x1xf32>
    %271 = vector.broadcast %270 : vector<5x1xf32> to vector<5x5xf32>
    %272 = arith.mulf %267, %271 : vector<5x5xf32>
    %cst_118 = arith.constant dense<0.000000e+00> : vector<5x8xf32>
    %273 = tpu.matmul %272, %261, %cst_118 {dimension_numbers = #tpu.dot_dimension_numbers<[1], [0], [0], [1], [0, 0, 1, 1], [], []>} : vector<5x5xf32>, vector<5x8xf32>, vector<5x8xf32> -> vector<5x8xf32>
    %274 = tpu.concatenate %222, %239, %256, %273 in 1 : vector<5x8xf32>, vector<5x8xf32>, vector<5x8xf32>, vector<5x8xf32> -> vector<5x32xf32>
    %c1_119 = arith.constant 1 : index
    %c0_120 = arith.constant 0 : index
    %c0_121 = arith.constant 0 : index
    %275 = vector.load %arg9[%c1_119, %c0_120, %c0_121] : memref<2x32x32xf32, #tpu.memory_space<vmem>>, vector<1x32x32xf32>
    %276 = vector.shape_cast %275 : vector<1x32x32xf32> to vector<32x32xf32>
    %cst_122 = arith.constant dense<0.000000e+00> : vector<5x32xf32>
    %277 = tpu.matmul %274, %276, %cst_122 {dimension_numbers = #tpu.dot_dimension_numbers<[1], [0], [0], [1], [0, 0, 1, 1], [], []>} : vector<5x32xf32>, vector<32x32xf32>, vector<5x32xf32> -> vector<5x32xf32>
    %c1_123 = arith.constant 1 : index
    %c0_124 = arith.constant 0 : index
    %c0_125 = arith.constant 0 : index
    %278 = vector.load %arg10[%c1_123, %c0_124, %c0_125] : memref<2x1x32xf32, #tpu.memory_space<vmem>>, vector<1x1x32xf32>
    %279 = vector.shape_cast %278 : vector<1x1x32xf32> to vector<1x32xf32>
    %280 = vector.broadcast %279 : vector<1x32xf32> to vector<5x32xf32>
    %281 = arith.addf %277, %280 : vector<5x32xf32>
    %282 = arith.addf %171, %281 : vector<5x32xf32>
    %c1_126 = arith.constant 1 : index
    %c0_127 = arith.constant 0 : index
    %c0_128 = arith.constant 0 : index
    %283 = vector.load %arg11[%c1_126, %c0_127, %c0_128] : memref<2x1x32xf32, #tpu.memory_space<vmem>>, vector<1x1x32xf32>
    %284 = vector.shape_cast %283 : vector<1x1x32xf32> to vector<1x32xf32>
    %c1_129 = arith.constant 1 : index
    %c0_130 = arith.constant 0 : index
    %c0_131 = arith.constant 0 : index
    %285 = vector.load %arg12[%c1_129, %c0_130, %c0_131] : memref<2x1x32xf32, #tpu.memory_space<vmem>>, vector<1x1x32xf32>
    %286 = vector.shape_cast %285 : vector<1x1x32xf32> to vector<1x32xf32>
    %cst_132 = arith.constant dense<0.000000e+00> : vector<5xf32>
    %287 = vector.multi_reduction <add>, %282, %cst_132 [1] : vector<5x32xf32> to vector<5xf32>
    %288 = vector.shape_cast %287 : vector<5xf32> to vector<5x1xf32>
    %cst_133 = arith.constant 3.200000e+01 : f32
    %289 = vector.broadcast %cst_133 : f32 to vector<5x1xf32>
    %290 = arith.divf %288, %289 : vector<5x1xf32>
    %291 = vector.broadcast %290 : vector<5x1xf32> to vector<5x32xf32>
    %292 = arith.subf %282, %291 : vector<5x32xf32>
    %293 = arith.mulf %292, %292 : vector<5x32xf32>
    %cst_134 = arith.constant dense<0.000000e+00> : vector<5xf32>
    %294 = vector.multi_reduction <add>, %293, %cst_134 [1] : vector<5x32xf32> to vector<5xf32>
    %295 = vector.shape_cast %294 : vector<5xf32> to vector<5x1xf32>
    %cst_135 = arith.constant 3.200000e+01 : f32
    %296 = vector.broadcast %cst_135 : f32 to vector<5x1xf32>
    %297 = arith.divf %295, %296 : vector<5x1xf32>
    %cst_136 = arith.constant 9.99999997E-7 : f32
    %298 = vector.broadcast %cst_136 : f32 to vector<5x1xf32>
    %299 = arith.addf %297, %298 : vector<5x1xf32>
    %300 = math.rsqrt %299 : vector<5x1xf32>
    %301 = vector.broadcast %300 : vector<5x1xf32> to vector<5x32xf32>
    %302 = arith.mulf %292, %301 : vector<5x32xf32>
    %303 = vector.broadcast %284 : vector<1x32xf32> to vector<5x32xf32>
    %304 = arith.mulf %302, %303 : vector<5x32xf32>
    %305 = vector.broadcast %286 : vector<1x32xf32> to vector<5x32xf32>
    %306 = arith.addf %304, %305 : vector<5x32xf32>
    %c1_137 = arith.constant 1 : index
    %c0_138 = arith.constant 0 : index
    %c0_139 = arith.constant 0 : index
    %307 = vector.load %arg13[%c1_137, %c0_138, %c0_139] : memref<2x32x64xf32, #tpu.memory_space<vmem>>, vector<1x32x64xf32>
    %308 = vector.shape_cast %307 : vector<1x32x64xf32> to vector<32x64xf32>
    %cst_140 = arith.constant dense<0.000000e+00> : vector<5x64xf32>
    %309 = tpu.matmul %306, %308, %cst_140 {dimension_numbers = #tpu.dot_dimension_numbers<[1], [0], [0], [1], [0, 0, 1, 1], [], []>} : vector<5x32xf32>, vector<32x64xf32>, vector<5x64xf32> -> vector<5x64xf32>
    %c1_141 = arith.constant 1 : index
    %c0_142 = arith.constant 0 : index
    %c0_143 = arith.constant 0 : index
    %310 = vector.load %arg14[%c1_141, %c0_142, %c0_143] : memref<2x1x64xf32, #tpu.memory_space<vmem>>, vector<1x1x64xf32>
    %311 = vector.shape_cast %310 : vector<1x1x64xf32> to vector<1x64xf32>
    %312 = vector.broadcast %311 : vector<1x64xf32> to vector<5x64xf32>
    %313 = arith.addf %309, %312 : vector<5x64xf32>
    %cst_144 = arith.constant 5.000000e-01 : f32
    %314 = vector.broadcast %cst_144 : f32 to vector<5x64xf32>
    %315 = arith.mulf %314, %313 : vector<5x64xf32>
    %cst_145 = arith.constant 4.471500e-02 : f32
    %316 = vector.broadcast %cst_145 : f32 to vector<5x64xf32>
    %317 = arith.mulf %316, %313 : vector<5x64xf32>
    %318 = arith.mulf %317, %313 : vector<5x64xf32>
    %319 = arith.mulf %318, %313 : vector<5x64xf32>
    %320 = arith.addf %313, %319 : vector<5x64xf32>
    %cst_146 = arith.constant 0.797884583 : f32
    %321 = vector.broadcast %cst_146 : f32 to vector<5x64xf32>
    %322 = arith.mulf %321, %320 : vector<5x64xf32>
    %323 = math.tanh %322 : vector<5x64xf32>
    %cst_147 = arith.constant 1.000000e+00 : f32
    %324 = vector.broadcast %cst_147 : f32 to vector<5x64xf32>
    %325 = arith.addf %324, %323 : vector<5x64xf32>
    %326 = arith.mulf %315, %325 : vector<5x64xf32>
    %c1_148 = arith.constant 1 : index
    %c0_149 = arith.constant 0 : index
    %c0_150 = arith.constant 0 : index
    %327 = vector.load %arg15[%c1_148, %c0_149, %c0_150] : memref<2x64x32xf32, #tpu.memory_space<vmem>>, vector<1x64x32xf32>
    %328 = vector.shape_cast %327 : vector<1x64x32xf32> to vector<64x32xf32>
    %cst_151 = arith.constant dense<0.000000e+00> : vector<5x32xf32>
    %329 = tpu.matmul %326, %328, %cst_151 {dimension_numbers = #tpu.dot_dimension_numbers<[1], [0], [0], [1], [0, 0, 1, 1], [], []>} : vector<5x64xf32>, vector<64x32xf32>, vector<5x32xf32> -> vector<5x32xf32>
    %c1_152 = arith.constant 1 : index
    %c0_153 = arith.constant 0 : index
    %c0_154 = arith.constant 0 : index
    %330 = vector.load %arg16[%c1_152, %c0_153, %c0_154] : memref<2x1x32xf32, #tpu.memory_space<vmem>>, vector<1x1x32xf32>
    %331 = vector.shape_cast %330 : vector<1x1x32xf32> to vector<1x32xf32>
    %332 = vector.broadcast %331 : vector<1x32xf32> to vector<5x32xf32>
    %333 = arith.addf %329, %332 : vector<5x32xf32>
    %334 = arith.addf %282, %333 : vector<5x32xf32>
    %c0_155 = arith.constant 0 : index
    %c0_156 = arith.constant 0 : index
    %335 = vector.load %arg17[%c0_155, %c0_156] : memref<1x32xf32, #tpu.memory_space<vmem>>, vector<1x32xf32>
    %c0_157 = arith.constant 0 : index
    %c0_158 = arith.constant 0 : index
    %336 = vector.load %arg18[%c0_157, %c0_158] : memref<1x32xf32, #tpu.memory_space<vmem>>, vector<1x32xf32>
    %cst_159 = arith.constant dense<0.000000e+00> : vector<5xf32>
    %337 = vector.multi_reduction <add>, %334, %cst_159 [1] : vector<5x32xf32> to vector<5xf32>
    %338 = vector.shape_cast %337 : vector<5xf32> to vector<5x1xf32>
    %cst_160 = arith.constant 3.200000e+01 : f32
    %339 = vector.broadcast %cst_160 : f32 to vector<5x1xf32>
    %340 = arith.divf %338, %339 : vector<5x1xf32>
    %341 = vector.broadcast %340 : vector<5x1xf32> to vector<5x32xf32>
    %342 = arith.subf %334, %341 : vector<5x32xf32>
    %343 = arith.mulf %342, %342 : vector<5x32xf32>
    %cst_161 = arith.constant dense<0.000000e+00> : vector<5xf32>
    %344 = vector.multi_reduction <add>, %343, %cst_161 [1] : vector<5x32xf32> to vector<5xf32>
    %345 = vector.shape_cast %344 : vector<5xf32> to vector<5x1xf32>
    %cst_162 = arith.constant 3.200000e+01 : f32
    %346 = vector.broadcast %cst_162 : f32 to vector<5x1xf32>
    %347 = arith.divf %345, %346 : vector<5x1xf32>
    %cst_163 = arith.constant 9.99999997E-7 : f32
    %348 = vector.broadcast %cst_163 : f32 to vector<5x1xf32>
    %349 = arith.addf %347, %348 : vector<5x1xf32>
    %350 = math.rsqrt %349 : vector<5x1xf32>
    %351 = vector.broadcast %350 : vector<5x1xf32> to vector<5x32xf32>
    %352 = arith.mulf %342, %351 : vector<5x32xf32>
    %353 = vector.broadcast %335 : vector<1x32xf32> to vector<5x32xf32>
    %354 = arith.mulf %352, %353 : vector<5x32xf32>
    %355 = vector.broadcast %336 : vector<1x32xf32> to vector<5x32xf32>
    %356 = arith.addf %354, %355 : vector<5x32xf32>
    %c0_164 = arith.constant 0 : index
    %c0_165 = arith.constant 0 : index
    %c0_166 = arith.constant 0 : index
    %357 = vector.load %arg19[%c0_164, %c0_165, %c0_166] : memref<1x5x32xf32, #tpu.memory_space<vmem>>, vector<1x5x32xf32>
    %358 = vector.shape_cast %357 : vector<1x5x32xf32> to vector<5x32xf32>
    %359 = vector.shape_cast %356 : vector<5x32xf32> to vector<1x5x32xf32>
    tpu.vector_store %arg19[%c0_164, %c0_165, %c0_166], %359 {strides = array<i32>} : memref<1x5x32xf32, #tpu.memory_space<vmem>>, vector<1x5x32xf32>,
    return
  }
  func.func @transform_0(%arg0: i32) -> (i32, i32, i32) {
    %c0_i32 = arith.constant 0 : i32
    %c0_i32_0 = arith.constant 0 : i32
    %c0_i32_1 = arith.constant 0 : i32
    return %arg0, %c0_i32, %c0_i32_0 : i32, i32, i32
  }
  func.func @transform_1(%arg0: i32) -> (i32, i32) {
    %c0_i32 = arith.constant 0 : i32
    %c0_i32_0 = arith.constant 0 : i32
    %c0_i32_1 = arith.constant 0 : i32
    return %c0_i32, %c0_i32_0 : i32, i32
  }
  func.func @transform_2(%arg0: i32) -> (i32, i32) {
    %c0_i32 = arith.constant 0 : i32
    %c0_i32_0 = arith.constant 0 : i32
    %c0_i32_1 = arith.constant 0 : i32
    return %c0_i32, %c0_i32_0 : i32, i32
  }
  func.func @transform_3(%arg0: i32) -> (i32, i32) {
    %c0_i32 = arith.constant 0 : i32
    %c0_i32_0 = arith.constant 0 : i32
    %c0_i32_1 = arith.constant 0 : i32
    return %c0_i32, %c0_i32_0 : i32, i32
  }
  func.func @transform_4(%arg0: i32) -> (i32, i32, i32) {
    %c0_i32 = arith.constant 0 : i32
    %c0_i32_0 = arith.constant 0 : i32
    %c0_i32_1 = arith.constant 0 : i32
    %c0_i32_2 = arith.constant 0 : i32
    return %c0_i32, %c0_i32_0, %c0_i32_1 : i32, i32, i32
  }
  func.func @transform_5(%arg0: i32) -> (i32, i32, i32) {
    %c0_i32 = arith.constant 0 : i32
    %c0_i32_0 = arith.constant 0 : i32
    %c0_i32_1 = arith.constant 0 : i32
    %c0_i32_2 = arith.constant 0 : i32
    return %c0_i32, %c0_i32_0, %c0_i32_1 : i32, i32, i32
  }
  func.func @transform_6(%arg0: i32) -> (i32, i32, i32) {
    %c0_i32 = arith.constant 0 : i32
    %c0_i32_0 = arith.constant 0 : i32
    %c0_i32_1 = arith.constant 0 : i32
    %c0_i32_2 = arith.constant 0 : i32
    return %c0_i32, %c0_i32_0, %c0_i32_1 : i32, i32, i32
  }
  func.func @transform_7(%arg0: i32) -> (i32, i32, i32) {
    %c0_i32 = arith.constant 0 : i32
    %c0_i32_0 = arith.constant 0 : i32
    %c0_i32_1 = arith.constant 0 : i32
    %c0_i32_2 = arith.constant 0 : i32
    return %c0_i32, %c0_i32_0, %c0_i32_1 : i32, i32, i32
  }
  func.func @transform_8(%arg0: i32) -> (i32, i32, i32) {
    %c0_i32 = arith.constant 0 : i32
    %c0_i32_0 = arith.constant 0 : i32
    %c0_i32_1 = arith.constant 0 : i32
    %c0_i32_2 = arith.constant 0 : i32
    return %c0_i32, %c0_i32_0, %c0_i32_1 : i32, i32, i32
  }
  func.func @transform_9(%arg0: i32) -> (i32, i32, i32) {
    %c0_i32 = arith.constant 0 : i32
    %c0_i32_0 = arith.constant 0 : i32
    %c0_i32_1 = arith.constant 0 : i32
    %c0_i32_2 = arith.constant 0 : i32
    return %c0_i32, %c0_i32_0, %c0_i32_1 : i32, i32, i32
  }
  func.func @transform_10(%arg0: i32) -> (i32, i32, i32) {
    %c0_i32 = arith.constant 0 : i32
    %c0_i32_0 = arith.constant 0 : i32
    %c0_i32_1 = arith.constant 0 : i32
    %c0_i32_2 = arith.constant 0 : i32
    return %c0_i32, %c0_i32_0, %c0_i32_1 : i32, i32, i32
  }
  func.func @transform_11(%arg0: i32) -> (i32, i32, i32) {
    %c0_i32 = arith.constant 0 : i32
    %c0_i32_0 = arith.constant 0 : i32
    %c0_i32_1 = arith.constant 0 : i32
    %c0_i32_2 = arith.constant 0 : i32
    return %c0_i32, %c0_i32_0, %c0_i32_1 : i32, i32, i32
  }
  func.func @transform_12(%arg0: i32) -> (i32, i32, i32) {
    %c0_i32 = arith.constant 0 : i32
    %c0_i32_0 = arith.constant 0 : i32
    %c0_i32_1 = arith.constant 0 : i32
    %c0_i32_2 = arith.constant 0 : i32
    return %c0_i32, %c0_i32_0, %c0_i32_1 : i32, i32, i32
  }
  func.func @transform_13(%arg0: i32) -> (i32, i32, i32) {
    %c0_i32 = arith.constant 0 : i32
    %c0_i32_0 = arith.constant 0 : i32
    %c0_i32_1 = arith.constant 0 : i32
    %c0_i32_2 = arith.constant 0 : i32
    return %c0_i32, %c0_i32_0, %c0_i32_1 : i32, i32, i32
  }
  func.func @transform_14(%arg0: i32) -> (i32, i32, i32) {
    %c0_i32 = arith.constant 0 : i32
    %c0_i32_0 = arith.constant 0 : i32
    %c0_i32_1 = arith.constant 0 : i32
    %c0_i32_2 = arith.constant 0 : i32
    return %c0_i32, %c0_i32_0, %c0_i32_1 : i32, i32, i32
  }
  func.func @transform_15(%arg0: i32) -> (i32, i32, i32) {
    %c0_i32 = arith.constant 0 : i32
    %c0_i32_0 = arith.constant 0 : i32
    %c0_i32_1 = arith.constant 0 : i32
    %c0_i32_2 = arith.constant 0 : i32
    return %c0_i32, %c0_i32_0, %c0_i32_1 : i32, i32, i32
  }
  func.func @transform_16(%arg0: i32) -> (i32, i32) {
    %c0_i32 = arith.constant 0 : i32
    %c0_i32_0 = arith.constant 0 : i32
    %c0_i32_1 = arith.constant 0 : i32
    return %c0_i32, %c0_i32_0 : i32, i32
  }
  func.func @transform_17(%arg0: i32) -> (i32, i32) {
    %c0_i32 = arith.constant 0 : i32
    %c0_i32_0 = arith.constant 0 : i32
    %c0_i32_1 = arith.constant 0 : i32
    return %c0_i32, %c0_i32_0 : i32, i32
  }
  func.func @transform_18(%arg0: i32) -> (i32, i32, i32) {
    %c0_i32 = arith.constant 0 : i32
    %c0_i32_0 = arith.constant 0 : i32
    %c0_i32_1 = arith.constant 0 : i32
    return %arg0, %c0_i32, %c0_i32_0 : i32, i32, i32
  }
}

module attributes {stable_mosaic.version = 11 : i64} {
  func.func @_qformer_kernel(%arg0: i32, %arg1: memref<1x8x32xf32, #tpu.memory_space<vmem>>, %arg2: memref<1x5x32xf32, #tpu.memory_space<vmem>>, %arg3: memref<1x32xf32, #tpu.memory_space<vmem>>, %arg4: memref<1x32xf32, #tpu.memory_space<vmem>>, %arg5: memref<2x32x96xf32, #tpu.memory_space<vmem>>, %arg6: memref<2x1x96xf32, #tpu.memory_space<vmem>>, %arg7: memref<2x32x32xf32, #tpu.memory_space<vmem>>, %arg8: memref<2x1x32xf32, #tpu.memory_space<vmem>>, %arg9: memref<2x1x32xf32, #tpu.memory_space<vmem>>, %arg10: memref<2x1x32xf32, #tpu.memory_space<vmem>>, %arg11: memref<2x32x32xf32, #tpu.memory_space<vmem>>, %arg12: memref<2x1x32xf32, #tpu.memory_space<vmem>>, %arg13: memref<2x32x64xf32, #tpu.memory_space<vmem>>, %arg14: memref<2x1x64xf32, #tpu.memory_space<vmem>>, %arg15: memref<2x32x32xf32, #tpu.memory_space<vmem>>, %arg16: memref<2x1x32xf32, #tpu.memory_space<vmem>>, %arg17: memref<2x1x32xf32, #tpu.memory_space<vmem>>, %arg18: memref<2x1x32xf32, #tpu.memory_space<vmem>>, %arg19: memref<2x32x64xf32, #tpu.memory_space<vmem>>, %arg20: memref<2x1x64xf32, #tpu.memory_space<vmem>>, %arg21: memref<2x64x32xf32, #tpu.memory_space<vmem>>, %arg22: memref<2x1x32xf32, #tpu.memory_space<vmem>>, %arg23: memref<2x1x32xf32, #tpu.memory_space<vmem>>, %arg24: memref<2x1x32xf32, #tpu.memory_space<vmem>>, %arg25: memref<32x32xf32, #tpu.memory_space<vmem>>, %arg26: memref<1x32xf32, #tpu.memory_space<vmem>>, %arg27: memref<1x8x32xf32, #tpu.memory_space<vmem>>) attributes {dimension_semantics = [#tpu.dimension_semantics<parallel>], iteration_bounds = array<i64: 2>, scalar_prefetch = 0 : i64, scratch_operands = 0 : i64, tpu.core_type = #tpu.core_type<tc>, window_params = [{pipeline_mode = #tpu.pipeline_mode<synchronous>, transform_indices = @transform_0, window_bounds = array<i64: 1, 8, 32>}, {transform_indices = @transform_1, window_bounds = array<i64: 1, 5, 32>}, {pipeline_mode = #tpu.pipeline_mode<synchronous>, transform_indices = @transform_2, window_bounds = array<i64: 1, 32>}, {pipeline_mode = #tpu.pipeline_mode<synchronous>, transform_indices = @transform_3, window_bounds = array<i64: 1, 32>}, {pipeline_mode = #tpu.pipeline_mode<synchronous>, transform_indices = @transform_4, window_bounds = array<i64: 2, 32, 96>}, {pipeline_mode = #tpu.pipeline_mode<synchronous>, transform_indices = @transform_5, window_bounds = array<i64: 2, 1, 96>}, {pipeline_mode = #tpu.pipeline_mode<synchronous>, transform_indices = @transform_6, window_bounds = array<i64: 2, 32, 32>}, {pipeline_mode = #tpu.pipeline_mode<synchronous>, transform_indices = @transform_7, window_bounds = array<i64: 2, 1, 32>}, {pipeline_mode = #tpu.pipeline_mode<synchronous>, transform_indices = @transform_8, window_bounds = array<i64: 2, 1, 32>}, {pipeline_mode = #tpu.pipeline_mode<synchronous>, transform_indices = @transform_9, window_bounds = array<i64: 2, 1, 32>}, {pipeline_mode = #tpu.pipeline_mode<synchronous>, transform_indices = @transform_10, window_bounds = array<i64: 2, 32, 32>}, {pipeline_mode = #tpu.pipeline_mode<synchronous>, transform_indices = @transform_11, window_bounds = array<i64: 2, 1, 32>}, {pipeline_mode = #tpu.pipeline_mode<synchronous>, transform_indices = @transform_12, window_bounds = array<i64: 2, 32, 64>}, {pipeline_mode = #tpu.pipeline_mode<synchronous>, transform_indices = @transform_13, window_bounds = array<i64: 2, 1, 64>}, {pipeline_mode = #tpu.pipeline_mode<synchronous>, transform_indices = @transform_14, window_bounds = array<i64: 2, 32, 32>}, {pipeline_mode = #tpu.pipeline_mode<synchronous>, transform_indices = @transform_15, window_bounds = array<i64: 2, 1, 32>}, {pipeline_mode = #tpu.pipeline_mode<synchronous>, transform_indices = @transform_16, window_bounds = array<i64: 2, 1, 32>}, {pipeline_mode = #tpu.pipeline_mode<synchronous>, transform_indices = @transform_17, window_bounds = array<i64: 2, 1, 32>}, {pipeline_mode = #tpu.pipeline_mode<synchronous>, transform_indices = @transform_18, window_bounds = array<i64: 2, 32, 64>}, {pipeline_mode = #tpu.pipeline_mode<synchronous>, transform_indices = @transform_19, window_bounds = array<i64: 2, 1, 64>}, {pipeline_mode = #tpu.pipeline_mode<synchronous>, transform_indices = @transform_20, window_bounds = array<i64: 2, 64, 32>}, {pipeline_mode = #tpu.pipeline_mode<synchronous>, transform_indices = @transform_21, window_bounds = array<i64: 2, 1, 32>}, {pipeline_mode = #tpu.pipeline_mode<synchronous>, transform_indices = @transform_22, window_bounds = array<i64: 2, 1, 32>}, {pipeline_mode = #tpu.pipeline_mode<synchronous>, transform_indices = @transform_23, window_bounds = array<i64: 2, 1, 32>}, {pipeline_mode = #tpu.pipeline_mode<synchronous>, transform_indices = @transform_24, window_bounds = array<i64: 32, 32>}, {pipeline_mode = #tpu.pipeline_mode<synchronous>, transform_indices = @transform_25, window_bounds = array<i64: 1, 32>}, {transform_indices = @transform_26, window_bounds = array<i64: 1, 8, 32>}]} {
    %c0 = arith.constant 0 : index
    %c0_0 = arith.constant 0 : index
    %c0_1 = arith.constant 0 : index
    %0 = vector.load %arg2[%c0, %c0_0, %c0_1] : memref<1x5x32xf32, #tpu.memory_space<vmem>>, vector<1x5x32xf32>
    %1 = vector.shape_cast %0 : vector<1x5x32xf32> to vector<5x32xf32>
    %c0_2 = arith.constant 0 : index
    %c0_3 = arith.constant 0 : index
    %c0_4 = arith.constant 0 : index
    %2 = vector.load %arg1[%c0_2, %c0_3, %c0_4] : memref<1x8x32xf32, #tpu.memory_space<vmem>>, vector<1x8x32xf32>
    %3 = vector.shape_cast %2 : vector<1x8x32xf32> to vector<8x32xf32>
    %c0_5 = arith.constant 0 : index
    %c0_6 = arith.constant 0 : index
    %4 = vector.load %arg3[%c0_5, %c0_6] : memref<1x32xf32, #tpu.memory_space<vmem>>, vector<1x32xf32>
    %c0_7 = arith.constant 0 : index
    %c0_8 = arith.constant 0 : index
    %5 = vector.load %arg4[%c0_7, %c0_8] : memref<1x32xf32, #tpu.memory_space<vmem>>, vector<1x32xf32>
    %cst = arith.constant dense<0.000000e+00> : vector<8xf32>
    %6 = vector.multi_reduction <add>, %3, %cst [1] : vector<8x32xf32> to vector<8xf32>
    %7 = vector.shape_cast %6 : vector<8xf32> to vector<8x1xf32>
    %cst_9 = arith.constant 3.200000e+01 : f32
    %8 = vector.broadcast %cst_9 : f32 to vector<8x1xf32>
    %9 = arith.divf %7, %8 : vector<8x1xf32>
    %10 = vector.broadcast %9 : vector<8x1xf32> to vector<8x32xf32>
    %11 = arith.subf %3, %10 : vector<8x32xf32>
    %12 = arith.mulf %11, %11 : vector<8x32xf32>
    %cst_10 = arith.constant dense<0.000000e+00> : vector<8xf32>
    %13 = vector.multi_reduction <add>, %12, %cst_10 [1] : vector<8x32xf32> to vector<8xf32>
    %14 = vector.shape_cast %13 : vector<8xf32> to vector<8x1xf32>
    %cst_11 = arith.constant 3.200000e+01 : f32
    %15 = vector.broadcast %cst_11 : f32 to vector<8x1xf32>
    %16 = arith.divf %14, %15 : vector<8x1xf32>
    %cst_12 = arith.constant 9.99999996E-13 : f32
    %17 = vector.broadcast %cst_12 : f32 to vector<8x1xf32>
    %18 = arith.addf %16, %17 : vector<8x1xf32>
    %19 = math.rsqrt %18 : vector<8x1xf32>
    %20 = vector.broadcast %19 : vector<8x1xf32> to vector<8x32xf32>
    %21 = arith.mulf %11, %20 : vector<8x32xf32>
    %22 = vector.broadcast %4 : vector<1x32xf32> to vector<8x32xf32>
    %23 = arith.mulf %21, %22 : vector<8x32xf32>
    %24 = vector.broadcast %5 : vector<1x32xf32> to vector<8x32xf32>
    %25 = arith.addf %23, %24 : vector<8x32xf32>
    %c0_13 = arith.constant 0 : index
    %c0_14 = arith.constant 0 : index
    %c0_15 = arith.constant 0 : index
    %26 = vector.load %arg5[%c0_13, %c0_14, %c0_15] : memref<2x32x96xf32, #tpu.memory_space<vmem>>, vector<1x32x96xf32>
    %27 = vector.shape_cast %26 : vector<1x32x96xf32> to vector<32x96xf32>
    %cst_16 = arith.constant dense<0.000000e+00> : vector<8x96xf32>
    %28 = tpu.matmul %25, %27, %cst_16 {dimension_numbers = #tpu.dot_dimension_numbers<[1], [0], [0], [1], [0, 0, 1, 1], [], []>} : vector<8x32xf32>, vector<32x96xf32>, vector<8x96xf32> -> vector<8x96xf32>
    %c0_17 = arith.constant 0 : index
    %c0_18 = arith.constant 0 : index
    %c0_19 = arith.constant 0 : index
    %29 = vector.load %arg6[%c0_17, %c0_18, %c0_19] : memref<2x1x96xf32, #tpu.memory_space<vmem>>, vector<1x1x96xf32>
    %30 = vector.shape_cast %29 : vector<1x1x96xf32> to vector<1x96xf32>
    %31 = vector.broadcast %30 : vector<1x96xf32> to vector<8x96xf32>
    %32 = arith.addf %28, %31 : vector<8x96xf32>
    %33 = vector.extract_strided_slice %32 {offsets = [0, 0], sizes = [8, 32], strides = [1, 1]} : vector<8x96xf32> to vector<8x32xf32>
    %34 = vector.extract_strided_slice %32 {offsets = [0, 32], sizes = [8, 32], strides = [1, 1]} : vector<8x96xf32> to vector<8x32xf32>
    %35 = vector.extract_strided_slice %32 {offsets = [0, 64], sizes = [8, 32], strides = [1, 1]} : vector<8x96xf32> to vector<8x32xf32>
    %36 = vector.extract_strided_slice %33 {offsets = [0, 0], sizes = [8, 8], strides = [1, 1]} : vector<8x32xf32> to vector<8x8xf32>
    %cst_20 = arith.constant 0.353553385 : f32
    %37 = vector.broadcast %cst_20 : f32 to vector<8x8xf32>
    %38 = arith.mulf %36, %37 : vector<8x8xf32>
    %39 = vector.extract_strided_slice %34 {offsets = [0, 0], sizes = [8, 8], strides = [1, 1]} : vector<8x32xf32> to vector<8x8xf32>
    %40 = vector.extract_strided_slice %35 {offsets = [0, 0], sizes = [8, 8], strides = [1, 1]} : vector<8x32xf32> to vector<8x8xf32>
    %cst_21 = arith.constant dense<0.000000e+00> : vector<8x8xf32>
    %41 = tpu.matmul %38, %39, %cst_21 {dimension_numbers = #tpu.dot_dimension_numbers<[1], [1], [0], [0], [0, 0, 1, 0], [], []>} : vector<8x8xf32>, vector<8x8xf32>, vector<8x8xf32> -> vector<8x8xf32>
    %cst_22 = arith.constant dense<0xFF800000> : vector<8xf32>
    %42 = vector.multi_reduction <maximumf>, %41, %cst_22 [1] : vector<8x8xf32> to vector<8xf32>
    %43 = vector.shape_cast %42 : vector<8xf32> to vector<8x1xf32>
    %44 = vector.broadcast %43 : vector<8x1xf32> to vector<8x8xf32>
    %45 = arith.subf %41, %44 : vector<8x8xf32>
    %46 = math.exp %45 : vector<8x8xf32>
    %cst_23 = arith.constant dense<0.000000e+00> : vector<8xf32>
    %47 = vector.multi_reduction <add>, %46, %cst_23 [1] : vector<8x8xf32> to vector<8xf32>
    %48 = vector.shape_cast %47 : vector<8xf32> to vector<8x1xf32>
    %49 = tpu.reciprocal %48 {approx = true} : vector<8x1xf32> -> vector<8x1xf32>
    %50 = vector.broadcast %49 : vector<8x1xf32> to vector<8x8xf32>
    %51 = arith.mulf %46, %50 : vector<8x8xf32>
    %cst_24 = arith.constant dense<0.000000e+00> : vector<8x8xf32>
    %52 = tpu.matmul %51, %40, %cst_24 {dimension_numbers = #tpu.dot_dimension_numbers<[1], [0], [0], [1], [0, 0, 1, 1], [], []>} : vector<8x8xf32>, vector<8x8xf32>, vector<8x8xf32> -> vector<8x8xf32>
    %53 = vector.extract_strided_slice %33 {offsets = [0, 8], sizes = [8, 8], strides = [1, 1]} : vector<8x32xf32> to vector<8x8xf32>
    %cst_25 = arith.constant 0.353553385 : f32
    %54 = vector.broadcast %cst_25 : f32 to vector<8x8xf32>
    %55 = arith.mulf %53, %54 : vector<8x8xf32>
    %56 = vector.extract_strided_slice %34 {offsets = [0, 8], sizes = [8, 8], strides = [1, 1]} : vector<8x32xf32> to vector<8x8xf32>
    %57 = vector.extract_strided_slice %35 {offsets = [0, 8], sizes = [8, 8], strides = [1, 1]} : vector<8x32xf32> to vector<8x8xf32>
    %cst_26 = arith.constant dense<0.000000e+00> : vector<8x8xf32>
    %58 = tpu.matmul %55, %56, %cst_26 {dimension_numbers = #tpu.dot_dimension_numbers<[1], [1], [0], [0], [0, 0, 1, 0], [], []>} : vector<8x8xf32>, vector<8x8xf32>, vector<8x8xf32> -> vector<8x8xf32>
    %cst_27 = arith.constant dense<0xFF800000> : vector<8xf32>
    %59 = vector.multi_reduction <maximumf>, %58, %cst_27 [1] : vector<8x8xf32> to vector<8xf32>
    %60 = vector.shape_cast %59 : vector<8xf32> to vector<8x1xf32>
    %61 = vector.broadcast %60 : vector<8x1xf32> to vector<8x8xf32>
    %62 = arith.subf %58, %61 : vector<8x8xf32>
    %63 = math.exp %62 : vector<8x8xf32>
    %cst_28 = arith.constant dense<0.000000e+00> : vector<8xf32>
    %64 = vector.multi_reduction <add>, %63, %cst_28 [1] : vector<8x8xf32> to vector<8xf32>
    %65 = vector.shape_cast %64 : vector<8xf32> to vector<8x1xf32>
    %66 = tpu.reciprocal %65 {approx = true} : vector<8x1xf32> -> vector<8x1xf32>
    %67 = vector.broadcast %66 : vector<8x1xf32> to vector<8x8xf32>
    %68 = arith.mulf %63, %67 : vector<8x8xf32>
    %cst_29 = arith.constant dense<0.000000e+00> : vector<8x8xf32>
    %69 = tpu.matmul %68, %57, %cst_29 {dimension_numbers = #tpu.dot_dimension_numbers<[1], [0], [0], [1], [0, 0, 1, 1], [], []>} : vector<8x8xf32>, vector<8x8xf32>, vector<8x8xf32> -> vector<8x8xf32>
    %70 = vector.extract_strided_slice %33 {offsets = [0, 16], sizes = [8, 8], strides = [1, 1]} : vector<8x32xf32> to vector<8x8xf32>
    %cst_30 = arith.constant 0.353553385 : f32
    %71 = vector.broadcast %cst_30 : f32 to vector<8x8xf32>
    %72 = arith.mulf %70, %71 : vector<8x8xf32>
    %73 = vector.extract_strided_slice %34 {offsets = [0, 16], sizes = [8, 8], strides = [1, 1]} : vector<8x32xf32> to vector<8x8xf32>
    %74 = vector.extract_strided_slice %35 {offsets = [0, 16], sizes = [8, 8], strides = [1, 1]} : vector<8x32xf32> to vector<8x8xf32>
    %cst_31 = arith.constant dense<0.000000e+00> : vector<8x8xf32>
    %75 = tpu.matmul %72, %73, %cst_31 {dimension_numbers = #tpu.dot_dimension_numbers<[1], [1], [0], [0], [0, 0, 1, 0], [], []>} : vector<8x8xf32>, vector<8x8xf32>, vector<8x8xf32> -> vector<8x8xf32>
    %cst_32 = arith.constant dense<0xFF800000> : vector<8xf32>
    %76 = vector.multi_reduction <maximumf>, %75, %cst_32 [1] : vector<8x8xf32> to vector<8xf32>
    %77 = vector.shape_cast %76 : vector<8xf32> to vector<8x1xf32>
    %78 = vector.broadcast %77 : vector<8x1xf32> to vector<8x8xf32>
    %79 = arith.subf %75, %78 : vector<8x8xf32>
    %80 = math.exp %79 : vector<8x8xf32>
    %cst_33 = arith.constant dense<0.000000e+00> : vector<8xf32>
    %81 = vector.multi_reduction <add>, %80, %cst_33 [1] : vector<8x8xf32> to vector<8xf32>
    %82 = vector.shape_cast %81 : vector<8xf32> to vector<8x1xf32>
    %83 = tpu.reciprocal %82 {approx = true} : vector<8x1xf32> -> vector<8x1xf32>
    %84 = vector.broadcast %83 : vector<8x1xf32> to vector<8x8xf32>
    %85 = arith.mulf %80, %84 : vector<8x8xf32>
    %cst_34 = arith.constant dense<0.000000e+00> : vector<8x8xf32>
    %86 = tpu.matmul %85, %74, %cst_34 {dimension_numbers = #tpu.dot_dimension_numbers<[1], [0], [0], [1], [0, 0, 1, 1], [], []>} : vector<8x8xf32>, vector<8x8xf32>, vector<8x8xf32> -> vector<8x8xf32>
    %87 = vector.extract_strided_slice %33 {offsets = [0, 24], sizes = [8, 8], strides = [1, 1]} : vector<8x32xf32> to vector<8x8xf32>
    %cst_35 = arith.constant 0.353553385 : f32
    %88 = vector.broadcast %cst_35 : f32 to vector<8x8xf32>
    %89 = arith.mulf %87, %88 : vector<8x8xf32>
    %90 = vector.extract_strided_slice %34 {offsets = [0, 24], sizes = [8, 8], strides = [1, 1]} : vector<8x32xf32> to vector<8x8xf32>
    %91 = vector.extract_strided_slice %35 {offsets = [0, 24], sizes = [8, 8], strides = [1, 1]} : vector<8x32xf32> to vector<8x8xf32>
    %cst_36 = arith.constant dense<0.000000e+00> : vector<8x8xf32>
    %92 = tpu.matmul %89, %90, %cst_36 {dimension_numbers = #tpu.dot_dimension_numbers<[1], [1], [0], [0], [0, 0, 1, 0], [], []>} : vector<8x8xf32>, vector<8x8xf32>, vector<8x8xf32> -> vector<8x8xf32>
    %cst_37 = arith.constant dense<0xFF800000> : vector<8xf32>
    %93 = vector.multi_reduction <maximumf>, %92, %cst_37 [1] : vector<8x8xf32> to vector<8xf32>
    %94 = vector.shape_cast %93 : vector<8xf32> to vector<8x1xf32>
    %95 = vector.broadcast %94 : vector<8x1xf32> to vector<8x8xf32>
    %96 = arith.subf %92, %95 : vector<8x8xf32>
    %97 = math.exp %96 : vector<8x8xf32>
    %cst_38 = arith.constant dense<0.000000e+00> : vector<8xf32>
    %98 = vector.multi_reduction <add>, %97, %cst_38 [1] : vector<8x8xf32> to vector<8xf32>
    %99 = vector.shape_cast %98 : vector<8xf32> to vector<8x1xf32>
    %100 = tpu.reciprocal %99 {approx = true} : vector<8x1xf32> -> vector<8x1xf32>
    %101 = vector.broadcast %100 : vector<8x1xf32> to vector<8x8xf32>
    %102 = arith.mulf %97, %101 : vector<8x8xf32>
    %cst_39 = arith.constant dense<0.000000e+00> : vector<8x8xf32>
    %103 = tpu.matmul %102, %91, %cst_39 {dimension_numbers = #tpu.dot_dimension_numbers<[1], [0], [0], [1], [0, 0, 1, 1], [], []>} : vector<8x8xf32>, vector<8x8xf32>, vector<8x8xf32> -> vector<8x8xf32>
    %104 = tpu.concatenate %52, %69, %86, %103 in 1 : vector<8x8xf32>, vector<8x8xf32>, vector<8x8xf32>, vector<8x8xf32> -> vector<8x32xf32>
    %c0_40 = arith.constant 0 : index
    %c0_41 = arith.constant 0 : index
    %c0_42 = arith.constant 0 : index
    %105 = vector.load %arg7[%c0_40, %c0_41, %c0_42] : memref<2x32x32xf32, #tpu.memory_space<vmem>>, vector<1x32x32xf32>
    %106 = vector.shape_cast %105 : vector<1x32x32xf32> to vector<32x32xf32>
    %cst_43 = arith.constant dense<0.000000e+00> : vector<8x32xf32>
    %107 = tpu.matmul %104, %106, %cst_43 {dimension_numbers = #tpu.dot_dimension_numbers<[1], [0], [0], [1], [0, 0, 1, 1], [], []>} : vector<8x32xf32>, vector<32x32xf32>, vector<8x32xf32> -> vector<8x32xf32>
    %c0_44 = arith.constant 0 : index
    %c0_45 = arith.constant 0 : index
    %c0_46 = arith.constant 0 : index
    %108 = vector.load %arg8[%c0_44, %c0_45, %c0_46] : memref<2x1x32xf32, #tpu.memory_space<vmem>>, vector<1x1x32xf32>
    %109 = vector.shape_cast %108 : vector<1x1x32xf32> to vector<1x32xf32>
    %110 = vector.broadcast %109 : vector<1x32xf32> to vector<8x32xf32>
    %111 = arith.addf %107, %110 : vector<8x32xf32>
    %112 = arith.addf %111, %25 : vector<8x32xf32>
    %c0_47 = arith.constant 0 : index
    %c0_48 = arith.constant 0 : index
    %c0_49 = arith.constant 0 : index
    %113 = vector.load %arg9[%c0_47, %c0_48, %c0_49] : memref<2x1x32xf32, #tpu.memory_space<vmem>>, vector<1x1x32xf32>
    %114 = vector.shape_cast %113 : vector<1x1x32xf32> to vector<1x32xf32>
    %c0_50 = arith.constant 0 : index
    %c0_51 = arith.constant 0 : index
    %c0_52 = arith.constant 0 : index
    %115 = vector.load %arg10[%c0_50, %c0_51, %c0_52] : memref<2x1x32xf32, #tpu.memory_space<vmem>>, vector<1x1x32xf32>
    %116 = vector.shape_cast %115 : vector<1x1x32xf32> to vector<1x32xf32>
    %cst_53 = arith.constant dense<0.000000e+00> : vector<8xf32>
    %117 = vector.multi_reduction <add>, %112, %cst_53 [1] : vector<8x32xf32> to vector<8xf32>
    %118 = vector.shape_cast %117 : vector<8xf32> to vector<8x1xf32>
    %cst_54 = arith.constant 3.200000e+01 : f32
    %119 = vector.broadcast %cst_54 : f32 to vector<8x1xf32>
    %120 = arith.divf %118, %119 : vector<8x1xf32>
    %121 = vector.broadcast %120 : vector<8x1xf32> to vector<8x32xf32>
    %122 = arith.subf %112, %121 : vector<8x32xf32>
    %123 = arith.mulf %122, %122 : vector<8x32xf32>
    %cst_55 = arith.constant dense<0.000000e+00> : vector<8xf32>
    %124 = vector.multi_reduction <add>, %123, %cst_55 [1] : vector<8x32xf32> to vector<8xf32>
    %125 = vector.shape_cast %124 : vector<8xf32> to vector<8x1xf32>
    %cst_56 = arith.constant 3.200000e+01 : f32
    %126 = vector.broadcast %cst_56 : f32 to vector<8x1xf32>
    %127 = arith.divf %125, %126 : vector<8x1xf32>
    %cst_57 = arith.constant 9.99999996E-13 : f32
    %128 = vector.broadcast %cst_57 : f32 to vector<8x1xf32>
    %129 = arith.addf %127, %128 : vector<8x1xf32>
    %130 = math.rsqrt %129 : vector<8x1xf32>
    %131 = vector.broadcast %130 : vector<8x1xf32> to vector<8x32xf32>
    %132 = arith.mulf %122, %131 : vector<8x32xf32>
    %133 = vector.broadcast %114 : vector<1x32xf32> to vector<8x32xf32>
    %134 = arith.mulf %132, %133 : vector<8x32xf32>
    %135 = vector.broadcast %116 : vector<1x32xf32> to vector<8x32xf32>
    %136 = arith.addf %134, %135 : vector<8x32xf32>
    %c0_58 = arith.constant 0 : index
    %c0_59 = arith.constant 0 : index
    %c0_60 = arith.constant 0 : index
    %137 = vector.load %arg11[%c0_58, %c0_59, %c0_60] : memref<2x32x32xf32, #tpu.memory_space<vmem>>, vector<1x32x32xf32>
    %138 = vector.shape_cast %137 : vector<1x32x32xf32> to vector<32x32xf32>
    %cst_61 = arith.constant dense<0.000000e+00> : vector<8x32xf32>
    %139 = tpu.matmul %136, %138, %cst_61 {dimension_numbers = #tpu.dot_dimension_numbers<[1], [0], [0], [1], [0, 0, 1, 1], [], []>} : vector<8x32xf32>, vector<32x32xf32>, vector<8x32xf32> -> vector<8x32xf32>
    %c0_62 = arith.constant 0 : index
    %c0_63 = arith.constant 0 : index
    %c0_64 = arith.constant 0 : index
    %140 = vector.load %arg12[%c0_62, %c0_63, %c0_64] : memref<2x1x32xf32, #tpu.memory_space<vmem>>, vector<1x1x32xf32>
    %141 = vector.shape_cast %140 : vector<1x1x32xf32> to vector<1x32xf32>
    %142 = vector.broadcast %141 : vector<1x32xf32> to vector<8x32xf32>
    %143 = arith.addf %139, %142 : vector<8x32xf32>
    %c0_65 = arith.constant 0 : index
    %c0_66 = arith.constant 0 : index
    %c0_67 = arith.constant 0 : index
    %144 = vector.load %arg13[%c0_65, %c0_66, %c0_67] : memref<2x32x64xf32, #tpu.memory_space<vmem>>, vector<1x32x64xf32>
    %145 = vector.shape_cast %144 : vector<1x32x64xf32> to vector<32x64xf32>
    %cst_68 = arith.constant dense<0.000000e+00> : vector<5x64xf32>
    %146 = tpu.matmul %1, %145, %cst_68 {dimension_numbers = #tpu.dot_dimension_numbers<[1], [0], [0], [1], [0, 0, 1, 1], [], []>} : vector<5x32xf32>, vector<32x64xf32>, vector<5x64xf32> -> vector<5x64xf32>
    %c0_69 = arith.constant 0 : index
    %c0_70 = arith.constant 0 : index
    %c0_71 = arith.constant 0 : index
    %147 = vector.load %arg14[%c0_69, %c0_70, %c0_71] : memref<2x1x64xf32, #tpu.memory_space<vmem>>, vector<1x1x64xf32>
    %148 = vector.shape_cast %147 : vector<1x1x64xf32> to vector<1x64xf32>
    %149 = vector.broadcast %148 : vector<1x64xf32> to vector<5x64xf32>
    %150 = arith.addf %146, %149 : vector<5x64xf32>
    %151 = vector.extract_strided_slice %150 {offsets = [0, 0], sizes = [5, 32], strides = [1, 1]} : vector<5x64xf32> to vector<5x32xf32>
    %152 = vector.extract_strided_slice %150 {offsets = [0, 32], sizes = [5, 32], strides = [1, 1]} : vector<5x64xf32> to vector<5x32xf32>
    %153 = vector.extract_strided_slice %143 {offsets = [0, 0], sizes = [8, 8], strides = [1, 1]} : vector<8x32xf32> to vector<8x8xf32>
    %cst_72 = arith.constant 0.353553385 : f32
    %154 = vector.broadcast %cst_72 : f32 to vector<8x8xf32>
    %155 = arith.mulf %153, %154 : vector<8x8xf32>
    %156 = vector.extract_strided_slice %151 {offsets = [0, 0], sizes = [5, 8], strides = [1, 1]} : vector<5x32xf32> to vector<5x8xf32>
    %157 = vector.extract_strided_slice %152 {offsets = [0, 0], sizes = [5, 8], strides = [1, 1]} : vector<5x32xf32> to vector<5x8xf32>
    %cst_73 = arith.constant dense<0.000000e+00> : vector<8x5xf32>
    %158 = tpu.matmul %155, %156, %cst_73 {dimension_numbers = #tpu.dot_dimension_numbers<[1], [1], [0], [0], [0, 0, 1, 0], [], []>} : vector<8x8xf32>, vector<5x8xf32>, vector<8x5xf32> -> vector<8x5xf32>
    %cst_74 = arith.constant dense<0xFF800000> : vector<8xf32>
    %159 = vector.multi_reduction <maximumf>, %158, %cst_74 [1] : vector<8x5xf32> to vector<8xf32>
    %160 = vector.shape_cast %159 : vector<8xf32> to vector<8x1xf32>
    %161 = vector.broadcast %160 : vector<8x1xf32> to vector<8x5xf32>
    %162 = arith.subf %158, %161 : vector<8x5xf32>
    %163 = math.exp %162 : vector<8x5xf32>
    %cst_75 = arith.constant dense<0.000000e+00> : vector<8xf32>
    %164 = vector.multi_reduction <add>, %163, %cst_75 [1] : vector<8x5xf32> to vector<8xf32>
    %165 = vector.shape_cast %164 : vector<8xf32> to vector<8x1xf32>
    %166 = tpu.reciprocal %165 {approx = true} : vector<8x1xf32> -> vector<8x1xf32>
    %167 = vector.broadcast %166 : vector<8x1xf32> to vector<8x5xf32>
    %168 = arith.mulf %163, %167 : vector<8x5xf32>
    %cst_76 = arith.constant dense<0.000000e+00> : vector<8x8xf32>
    %169 = tpu.matmul %168, %157, %cst_76 {dimension_numbers = #tpu.dot_dimension_numbers<[1], [0], [0], [1], [0, 0, 1, 1], [], []>} : vector<8x5xf32>, vector<5x8xf32>, vector<8x8xf32> -> vector<8x8xf32>
    %170 = vector.extract_strided_slice %143 {offsets = [0, 8], sizes = [8, 8], strides = [1, 1]} : vector<8x32xf32> to vector<8x8xf32>
    %cst_77 = arith.constant 0.353553385 : f32
    %171 = vector.broadcast %cst_77 : f32 to vector<8x8xf32>
    %172 = arith.mulf %170, %171 : vector<8x8xf32>
    %173 = vector.extract_strided_slice %151 {offsets = [0, 8], sizes = [5, 8], strides = [1, 1]} : vector<5x32xf32> to vector<5x8xf32>
    %174 = vector.extract_strided_slice %152 {offsets = [0, 8], sizes = [5, 8], strides = [1, 1]} : vector<5x32xf32> to vector<5x8xf32>
    %cst_78 = arith.constant dense<0.000000e+00> : vector<8x5xf32>
    %175 = tpu.matmul %172, %173, %cst_78 {dimension_numbers = #tpu.dot_dimension_numbers<[1], [1], [0], [0], [0, 0, 1, 0], [], []>} : vector<8x8xf32>, vector<5x8xf32>, vector<8x5xf32> -> vector<8x5xf32>
    %cst_79 = arith.constant dense<0xFF800000> : vector<8xf32>
    %176 = vector.multi_reduction <maximumf>, %175, %cst_79 [1] : vector<8x5xf32> to vector<8xf32>
    %177 = vector.shape_cast %176 : vector<8xf32> to vector<8x1xf32>
    %178 = vector.broadcast %177 : vector<8x1xf32> to vector<8x5xf32>
    %179 = arith.subf %175, %178 : vector<8x5xf32>
    %180 = math.exp %179 : vector<8x5xf32>
    %cst_80 = arith.constant dense<0.000000e+00> : vector<8xf32>
    %181 = vector.multi_reduction <add>, %180, %cst_80 [1] : vector<8x5xf32> to vector<8xf32>
    %182 = vector.shape_cast %181 : vector<8xf32> to vector<8x1xf32>
    %183 = tpu.reciprocal %182 {approx = true} : vector<8x1xf32> -> vector<8x1xf32>
    %184 = vector.broadcast %183 : vector<8x1xf32> to vector<8x5xf32>
    %185 = arith.mulf %180, %184 : vector<8x5xf32>
    %cst_81 = arith.constant dense<0.000000e+00> : vector<8x8xf32>
    %186 = tpu.matmul %185, %174, %cst_81 {dimension_numbers = #tpu.dot_dimension_numbers<[1], [0], [0], [1], [0, 0, 1, 1], [], []>} : vector<8x5xf32>, vector<5x8xf32>, vector<8x8xf32> -> vector<8x8xf32>
    %187 = vector.extract_strided_slice %143 {offsets = [0, 16], sizes = [8, 8], strides = [1, 1]} : vector<8x32xf32> to vector<8x8xf32>
    %cst_82 = arith.constant 0.353553385 : f32
    %188 = vector.broadcast %cst_82 : f32 to vector<8x8xf32>
    %189 = arith.mulf %187, %188 : vector<8x8xf32>
    %190 = vector.extract_strided_slice %151 {offsets = [0, 16], sizes = [5, 8], strides = [1, 1]} : vector<5x32xf32> to vector<5x8xf32>
    %191 = vector.extract_strided_slice %152 {offsets = [0, 16], sizes = [5, 8], strides = [1, 1]} : vector<5x32xf32> to vector<5x8xf32>
    %cst_83 = arith.constant dense<0.000000e+00> : vector<8x5xf32>
    %192 = tpu.matmul %189, %190, %cst_83 {dimension_numbers = #tpu.dot_dimension_numbers<[1], [1], [0], [0], [0, 0, 1, 0], [], []>} : vector<8x8xf32>, vector<5x8xf32>, vector<8x5xf32> -> vector<8x5xf32>
    %cst_84 = arith.constant dense<0xFF800000> : vector<8xf32>
    %193 = vector.multi_reduction <maximumf>, %192, %cst_84 [1] : vector<8x5xf32> to vector<8xf32>
    %194 = vector.shape_cast %193 : vector<8xf32> to vector<8x1xf32>
    %195 = vector.broadcast %194 : vector<8x1xf32> to vector<8x5xf32>
    %196 = arith.subf %192, %195 : vector<8x5xf32>
    %197 = math.exp %196 : vector<8x5xf32>
    %cst_85 = arith.constant dense<0.000000e+00> : vector<8xf32>
    %198 = vector.multi_reduction <add>, %197, %cst_85 [1] : vector<8x5xf32> to vector<8xf32>
    %199 = vector.shape_cast %198 : vector<8xf32> to vector<8x1xf32>
    %200 = tpu.reciprocal %199 {approx = true} : vector<8x1xf32> -> vector<8x1xf32>
    %201 = vector.broadcast %200 : vector<8x1xf32> to vector<8x5xf32>
    %202 = arith.mulf %197, %201 : vector<8x5xf32>
    %cst_86 = arith.constant dense<0.000000e+00> : vector<8x8xf32>
    %203 = tpu.matmul %202, %191, %cst_86 {dimension_numbers = #tpu.dot_dimension_numbers<[1], [0], [0], [1], [0, 0, 1, 1], [], []>} : vector<8x5xf32>, vector<5x8xf32>, vector<8x8xf32> -> vector<8x8xf32>
    %204 = vector.extract_strided_slice %143 {offsets = [0, 24], sizes = [8, 8], strides = [1, 1]} : vector<8x32xf32> to vector<8x8xf32>
    %cst_87 = arith.constant 0.353553385 : f32
    %205 = vector.broadcast %cst_87 : f32 to vector<8x8xf32>
    %206 = arith.mulf %204, %205 : vector<8x8xf32>
    %207 = vector.extract_strided_slice %151 {offsets = [0, 24], sizes = [5, 8], strides = [1, 1]} : vector<5x32xf32> to vector<5x8xf32>
    %208 = vector.extract_strided_slice %152 {offsets = [0, 24], sizes = [5, 8], strides = [1, 1]} : vector<5x32xf32> to vector<5x8xf32>
    %cst_88 = arith.constant dense<0.000000e+00> : vector<8x5xf32>
    %209 = tpu.matmul %206, %207, %cst_88 {dimension_numbers = #tpu.dot_dimension_numbers<[1], [1], [0], [0], [0, 0, 1, 0], [], []>} : vector<8x8xf32>, vector<5x8xf32>, vector<8x5xf32> -> vector<8x5xf32>
    %cst_89 = arith.constant dense<0xFF800000> : vector<8xf32>
    %210 = vector.multi_reduction <maximumf>, %209, %cst_89 [1] : vector<8x5xf32> to vector<8xf32>
    %211 = vector.shape_cast %210 : vector<8xf32> to vector<8x1xf32>
    %212 = vector.broadcast %211 : vector<8x1xf32> to vector<8x5xf32>
    %213 = arith.subf %209, %212 : vector<8x5xf32>
    %214 = math.exp %213 : vector<8x5xf32>
    %cst_90 = arith.constant dense<0.000000e+00> : vector<8xf32>
    %215 = vector.multi_reduction <add>, %214, %cst_90 [1] : vector<8x5xf32> to vector<8xf32>
    %216 = vector.shape_cast %215 : vector<8xf32> to vector<8x1xf32>
    %217 = tpu.reciprocal %216 {approx = true} : vector<8x1xf32> -> vector<8x1xf32>
    %218 = vector.broadcast %217 : vector<8x1xf32> to vector<8x5xf32>
    %219 = arith.mulf %214, %218 : vector<8x5xf32>
    %cst_91 = arith.constant dense<0.000000e+00> : vector<8x8xf32>
    %220 = tpu.matmul %219, %208, %cst_91 {dimension_numbers = #tpu.dot_dimension_numbers<[1], [0], [0], [1], [0, 0, 1, 1], [], []>} : vector<8x5xf32>, vector<5x8xf32>, vector<8x8xf32> -> vector<8x8xf32>
    %221 = tpu.concatenate %169, %186, %203, %220 in 1 : vector<8x8xf32>, vector<8x8xf32>, vector<8x8xf32>, vector<8x8xf32> -> vector<8x32xf32>
    %c0_92 = arith.constant 0 : index
    %c0_93 = arith.constant 0 : index
    %c0_94 = arith.constant 0 : index
    %222 = vector.load %arg15[%c0_92, %c0_93, %c0_94] : memref<2x32x32xf32, #tpu.memory_space<vmem>>, vector<1x32x32xf32>
    %223 = vector.shape_cast %222 : vector<1x32x32xf32> to vector<32x32xf32>
    %cst_95 = arith.constant dense<0.000000e+00> : vector<8x32xf32>
    %224 = tpu.matmul %221, %223, %cst_95 {dimension_numbers = #tpu.dot_dimension_numbers<[1], [0], [0], [1], [0, 0, 1, 1], [], []>} : vector<8x32xf32>, vector<32x32xf32>, vector<8x32xf32> -> vector<8x32xf32>
    %c0_96 = arith.constant 0 : index
    %c0_97 = arith.constant 0 : index
    %c0_98 = arith.constant 0 : index
    %225 = vector.load %arg16[%c0_96, %c0_97, %c0_98] : memref<2x1x32xf32, #tpu.memory_space<vmem>>, vector<1x1x32xf32>
    %226 = vector.shape_cast %225 : vector<1x1x32xf32> to vector<1x32xf32>
    %227 = vector.broadcast %226 : vector<1x32xf32> to vector<8x32xf32>
    %228 = arith.addf %224, %227 : vector<8x32xf32>
    %229 = arith.addf %228, %136 : vector<8x32xf32>
    %c0_99 = arith.constant 0 : index
    %c0_100 = arith.constant 0 : index
    %c0_101 = arith.constant 0 : index
    %230 = vector.load %arg17[%c0_99, %c0_100, %c0_101] : memref<2x1x32xf32, #tpu.memory_space<vmem>>, vector<1x1x32xf32>
    %231 = vector.shape_cast %230 : vector<1x1x32xf32> to vector<1x32xf32>
    %c0_102 = arith.constant 0 : index
    %c0_103 = arith.constant 0 : index
    %c0_104 = arith.constant 0 : index
    %232 = vector.load %arg18[%c0_102, %c0_103, %c0_104] : memref<2x1x32xf32, #tpu.memory_space<vmem>>, vector<1x1x32xf32>
    %233 = vector.shape_cast %232 : vector<1x1x32xf32> to vector<1x32xf32>
    %cst_105 = arith.constant dense<0.000000e+00> : vector<8xf32>
    %234 = vector.multi_reduction <add>, %229, %cst_105 [1] : vector<8x32xf32> to vector<8xf32>
    %235 = vector.shape_cast %234 : vector<8xf32> to vector<8x1xf32>
    %cst_106 = arith.constant 3.200000e+01 : f32
    %236 = vector.broadcast %cst_106 : f32 to vector<8x1xf32>
    %237 = arith.divf %235, %236 : vector<8x1xf32>
    %238 = vector.broadcast %237 : vector<8x1xf32> to vector<8x32xf32>
    %239 = arith.subf %229, %238 : vector<8x32xf32>
    %240 = arith.mulf %239, %239 : vector<8x32xf32>
    %cst_107 = arith.constant dense<0.000000e+00> : vector<8xf32>
    %241 = vector.multi_reduction <add>, %240, %cst_107 [1] : vector<8x32xf32> to vector<8xf32>
    %242 = vector.shape_cast %241 : vector<8xf32> to vector<8x1xf32>
    %cst_108 = arith.constant 3.200000e+01 : f32
    %243 = vector.broadcast %cst_108 : f32 to vector<8x1xf32>
    %244 = arith.divf %242, %243 : vector<8x1xf32>
    %cst_109 = arith.constant 9.99999996E-13 : f32
    %245 = vector.broadcast %cst_109 : f32 to vector<8x1xf32>
    %246 = arith.addf %244, %245 : vector<8x1xf32>
    %247 = math.rsqrt %246 : vector<8x1xf32>
    %248 = vector.broadcast %247 : vector<8x1xf32> to vector<8x32xf32>
    %249 = arith.mulf %239, %248 : vector<8x32xf32>
    %250 = vector.broadcast %231 : vector<1x32xf32> to vector<8x32xf32>
    %251 = arith.mulf %249, %250 : vector<8x32xf32>
    %252 = vector.broadcast %233 : vector<1x32xf32> to vector<8x32xf32>
    %253 = arith.addf %251, %252 : vector<8x32xf32>
    %c0_110 = arith.constant 0 : index
    %c0_111 = arith.constant 0 : index
    %c0_112 = arith.constant 0 : index
    %254 = vector.load %arg19[%c0_110, %c0_111, %c0_112] : memref<2x32x64xf32, #tpu.memory_space<vmem>>, vector<1x32x64xf32>
    %255 = vector.shape_cast %254 : vector<1x32x64xf32> to vector<32x64xf32>
    %cst_113 = arith.constant dense<0.000000e+00> : vector<8x64xf32>
    %256 = tpu.matmul %253, %255, %cst_113 {dimension_numbers = #tpu.dot_dimension_numbers<[1], [0], [0], [1], [0, 0, 1, 1], [], []>} : vector<8x32xf32>, vector<32x64xf32>, vector<8x64xf32> -> vector<8x64xf32>
    %c0_114 = arith.constant 0 : index
    %c0_115 = arith.constant 0 : index
    %c0_116 = arith.constant 0 : index
    %257 = vector.load %arg20[%c0_114, %c0_115, %c0_116] : memref<2x1x64xf32, #tpu.memory_space<vmem>>, vector<1x1x64xf32>
    %258 = vector.shape_cast %257 : vector<1x1x64xf32> to vector<1x64xf32>
    %259 = vector.broadcast %258 : vector<1x64xf32> to vector<8x64xf32>
    %260 = arith.addf %256, %259 : vector<8x64xf32>
    %cst_117 = arith.constant 5.000000e-01 : f32
    %261 = vector.broadcast %cst_117 : f32 to vector<8x64xf32>
    %262 = arith.mulf %261, %260 : vector<8x64xf32>
    %cst_118 = arith.constant 4.471500e-02 : f32
    %263 = vector.broadcast %cst_118 : f32 to vector<8x64xf32>
    %264 = arith.mulf %263, %260 : vector<8x64xf32>
    %265 = arith.mulf %264, %260 : vector<8x64xf32>
    %266 = arith.mulf %265, %260 : vector<8x64xf32>
    %267 = arith.addf %260, %266 : vector<8x64xf32>
    %cst_119 = arith.constant 0.797884583 : f32
    %268 = vector.broadcast %cst_119 : f32 to vector<8x64xf32>
    %269 = arith.mulf %268, %267 : vector<8x64xf32>
    %270 = math.tanh %269 : vector<8x64xf32>
    %cst_120 = arith.constant 1.000000e+00 : f32
    %271 = vector.broadcast %cst_120 : f32 to vector<8x64xf32>
    %272 = arith.addf %271, %270 : vector<8x64xf32>
    %273 = arith.mulf %262, %272 : vector<8x64xf32>
    %c0_121 = arith.constant 0 : index
    %c0_122 = arith.constant 0 : index
    %c0_123 = arith.constant 0 : index
    %274 = vector.load %arg21[%c0_121, %c0_122, %c0_123] : memref<2x64x32xf32, #tpu.memory_space<vmem>>, vector<1x64x32xf32>
    %275 = vector.shape_cast %274 : vector<1x64x32xf32> to vector<64x32xf32>
    %cst_124 = arith.constant dense<0.000000e+00> : vector<8x32xf32>
    %276 = tpu.matmul %273, %275, %cst_124 {dimension_numbers = #tpu.dot_dimension_numbers<[1], [0], [0], [1], [0, 0, 1, 1], [], []>} : vector<8x64xf32>, vector<64x32xf32>, vector<8x32xf32> -> vector<8x32xf32>
    %c0_125 = arith.constant 0 : index
    %c0_126 = arith.constant 0 : index
    %c0_127 = arith.constant 0 : index
    %277 = vector.load %arg22[%c0_125, %c0_126, %c0_127] : memref<2x1x32xf32, #tpu.memory_space<vmem>>, vector<1x1x32xf32>
    %278 = vector.shape_cast %277 : vector<1x1x32xf32> to vector<1x32xf32>
    %279 = vector.broadcast %278 : vector<1x32xf32> to vector<8x32xf32>
    %280 = arith.addf %276, %279 : vector<8x32xf32>
    %281 = arith.addf %280, %253 : vector<8x32xf32>
    %c0_128 = arith.constant 0 : index
    %c0_129 = arith.constant 0 : index
    %c0_130 = arith.constant 0 : index
    %282 = vector.load %arg23[%c0_128, %c0_129, %c0_130] : memref<2x1x32xf32, #tpu.memory_space<vmem>>, vector<1x1x32xf32>
    %283 = vector.shape_cast %282 : vector<1x1x32xf32> to vector<1x32xf32>
    %c0_131 = arith.constant 0 : index
    %c0_132 = arith.constant 0 : index
    %c0_133 = arith.constant 0 : index
    %284 = vector.load %arg24[%c0_131, %c0_132, %c0_133] : memref<2x1x32xf32, #tpu.memory_space<vmem>>, vector<1x1x32xf32>
    %285 = vector.shape_cast %284 : vector<1x1x32xf32> to vector<1x32xf32>
    %cst_134 = arith.constant dense<0.000000e+00> : vector<8xf32>
    %286 = vector.multi_reduction <add>, %281, %cst_134 [1] : vector<8x32xf32> to vector<8xf32>
    %287 = vector.shape_cast %286 : vector<8xf32> to vector<8x1xf32>
    %cst_135 = arith.constant 3.200000e+01 : f32
    %288 = vector.broadcast %cst_135 : f32 to vector<8x1xf32>
    %289 = arith.divf %287, %288 : vector<8x1xf32>
    %290 = vector.broadcast %289 : vector<8x1xf32> to vector<8x32xf32>
    %291 = arith.subf %281, %290 : vector<8x32xf32>
    %292 = arith.mulf %291, %291 : vector<8x32xf32>
    %cst_136 = arith.constant dense<0.000000e+00> : vector<8xf32>
    %293 = vector.multi_reduction <add>, %292, %cst_136 [1] : vector<8x32xf32> to vector<8xf32>
    %294 = vector.shape_cast %293 : vector<8xf32> to vector<8x1xf32>
    %cst_137 = arith.constant 3.200000e+01 : f32
    %295 = vector.broadcast %cst_137 : f32 to vector<8x1xf32>
    %296 = arith.divf %294, %295 : vector<8x1xf32>
    %cst_138 = arith.constant 9.99999996E-13 : f32
    %297 = vector.broadcast %cst_138 : f32 to vector<8x1xf32>
    %298 = arith.addf %296, %297 : vector<8x1xf32>
    %299 = math.rsqrt %298 : vector<8x1xf32>
    %300 = vector.broadcast %299 : vector<8x1xf32> to vector<8x32xf32>
    %301 = arith.mulf %291, %300 : vector<8x32xf32>
    %302 = vector.broadcast %283 : vector<1x32xf32> to vector<8x32xf32>
    %303 = arith.mulf %301, %302 : vector<8x32xf32>
    %304 = vector.broadcast %285 : vector<1x32xf32> to vector<8x32xf32>
    %305 = arith.addf %303, %304 : vector<8x32xf32>
    %c1 = arith.constant 1 : index
    %c0_139 = arith.constant 0 : index
    %c0_140 = arith.constant 0 : index
    %306 = vector.load %arg5[%c1, %c0_139, %c0_140] : memref<2x32x96xf32, #tpu.memory_space<vmem>>, vector<1x32x96xf32>
    %307 = vector.shape_cast %306 : vector<1x32x96xf32> to vector<32x96xf32>
    %cst_141 = arith.constant dense<0.000000e+00> : vector<8x96xf32>
    %308 = tpu.matmul %305, %307, %cst_141 {dimension_numbers = #tpu.dot_dimension_numbers<[1], [0], [0], [1], [0, 0, 1, 1], [], []>} : vector<8x32xf32>, vector<32x96xf32>, vector<8x96xf32> -> vector<8x96xf32>
    %c1_142 = arith.constant 1 : index
    %c0_143 = arith.constant 0 : index
    %c0_144 = arith.constant 0 : index
    %309 = vector.load %arg6[%c1_142, %c0_143, %c0_144] : memref<2x1x96xf32, #tpu.memory_space<vmem>>, vector<1x1x96xf32>
    %310 = vector.shape_cast %309 : vector<1x1x96xf32> to vector<1x96xf32>
    %311 = vector.broadcast %310 : vector<1x96xf32> to vector<8x96xf32>
    %312 = arith.addf %308, %311 : vector<8x96xf32>
    %313 = vector.extract_strided_slice %312 {offsets = [0, 0], sizes = [8, 32], strides = [1, 1]} : vector<8x96xf32> to vector<8x32xf32>
    %314 = vector.extract_strided_slice %312 {offsets = [0, 32], sizes = [8, 32], strides = [1, 1]} : vector<8x96xf32> to vector<8x32xf32>
    %315 = vector.extract_strided_slice %312 {offsets = [0, 64], sizes = [8, 32], strides = [1, 1]} : vector<8x96xf32> to vector<8x32xf32>
    %316 = vector.extract_strided_slice %313 {offsets = [0, 0], sizes = [8, 8], strides = [1, 1]} : vector<8x32xf32> to vector<8x8xf32>
    %cst_145 = arith.constant 0.353553385 : f32
    %317 = vector.broadcast %cst_145 : f32 to vector<8x8xf32>
    %318 = arith.mulf %316, %317 : vector<8x8xf32>
    %319 = vector.extract_strided_slice %314 {offsets = [0, 0], sizes = [8, 8], strides = [1, 1]} : vector<8x32xf32> to vector<8x8xf32>
    %320 = vector.extract_strided_slice %315 {offsets = [0, 0], sizes = [8, 8], strides = [1, 1]} : vector<8x32xf32> to vector<8x8xf32>
    %cst_146 = arith.constant dense<0.000000e+00> : vector<8x8xf32>
    %321 = tpu.matmul %318, %319, %cst_146 {dimension_numbers = #tpu.dot_dimension_numbers<[1], [1], [0], [0], [0, 0, 1, 0], [], []>} : vector<8x8xf32>, vector<8x8xf32>, vector<8x8xf32> -> vector<8x8xf32>
    %cst_147 = arith.constant dense<0xFF800000> : vector<8xf32>
    %322 = vector.multi_reduction <maximumf>, %321, %cst_147 [1] : vector<8x8xf32> to vector<8xf32>
    %323 = vector.shape_cast %322 : vector<8xf32> to vector<8x1xf32>
    %324 = vector.broadcast %323 : vector<8x1xf32> to vector<8x8xf32>
    %325 = arith.subf %321, %324 : vector<8x8xf32>
    %326 = math.exp %325 : vector<8x8xf32>
    %cst_148 = arith.constant dense<0.000000e+00> : vector<8xf32>
    %327 = vector.multi_reduction <add>, %326, %cst_148 [1] : vector<8x8xf32> to vector<8xf32>
    %328 = vector.shape_cast %327 : vector<8xf32> to vector<8x1xf32>
    %329 = tpu.reciprocal %328 {approx = true} : vector<8x1xf32> -> vector<8x1xf32>
    %330 = vector.broadcast %329 : vector<8x1xf32> to vector<8x8xf32>
    %331 = arith.mulf %326, %330 : vector<8x8xf32>
    %cst_149 = arith.constant dense<0.000000e+00> : vector<8x8xf32>
    %332 = tpu.matmul %331, %320, %cst_149 {dimension_numbers = #tpu.dot_dimension_numbers<[1], [0], [0], [1], [0, 0, 1, 1], [], []>} : vector<8x8xf32>, vector<8x8xf32>, vector<8x8xf32> -> vector<8x8xf32>
    %333 = vector.extract_strided_slice %313 {offsets = [0, 8], sizes = [8, 8], strides = [1, 1]} : vector<8x32xf32> to vector<8x8xf32>
    %cst_150 = arith.constant 0.353553385 : f32
    %334 = vector.broadcast %cst_150 : f32 to vector<8x8xf32>
    %335 = arith.mulf %333, %334 : vector<8x8xf32>
    %336 = vector.extract_strided_slice %314 {offsets = [0, 8], sizes = [8, 8], strides = [1, 1]} : vector<8x32xf32> to vector<8x8xf32>
    %337 = vector.extract_strided_slice %315 {offsets = [0, 8], sizes = [8, 8], strides = [1, 1]} : vector<8x32xf32> to vector<8x8xf32>
    %cst_151 = arith.constant dense<0.000000e+00> : vector<8x8xf32>
    %338 = tpu.matmul %335, %336, %cst_151 {dimension_numbers = #tpu.dot_dimension_numbers<[1], [1], [0], [0], [0, 0, 1, 0], [], []>} : vector<8x8xf32>, vector<8x8xf32>, vector<8x8xf32> -> vector<8x8xf32>
    %cst_152 = arith.constant dense<0xFF800000> : vector<8xf32>
    %339 = vector.multi_reduction <maximumf>, %338, %cst_152 [1] : vector<8x8xf32> to vector<8xf32>
    %340 = vector.shape_cast %339 : vector<8xf32> to vector<8x1xf32>
    %341 = vector.broadcast %340 : vector<8x1xf32> to vector<8x8xf32>
    %342 = arith.subf %338, %341 : vector<8x8xf32>
    %343 = math.exp %342 : vector<8x8xf32>
    %cst_153 = arith.constant dense<0.000000e+00> : vector<8xf32>
    %344 = vector.multi_reduction <add>, %343, %cst_153 [1] : vector<8x8xf32> to vector<8xf32>
    %345 = vector.shape_cast %344 : vector<8xf32> to vector<8x1xf32>
    %346 = tpu.reciprocal %345 {approx = true} : vector<8x1xf32> -> vector<8x1xf32>
    %347 = vector.broadcast %346 : vector<8x1xf32> to vector<8x8xf32>
    %348 = arith.mulf %343, %347 : vector<8x8xf32>
    %cst_154 = arith.constant dense<0.000000e+00> : vector<8x8xf32>
    %349 = tpu.matmul %348, %337, %cst_154 {dimension_numbers = #tpu.dot_dimension_numbers<[1], [0], [0], [1], [0, 0, 1, 1], [], []>} : vector<8x8xf32>, vector<8x8xf32>, vector<8x8xf32> -> vector<8x8xf32>
    %350 = vector.extract_strided_slice %313 {offsets = [0, 16], sizes = [8, 8], strides = [1, 1]} : vector<8x32xf32> to vector<8x8xf32>
    %cst_155 = arith.constant 0.353553385 : f32
    %351 = vector.broadcast %cst_155 : f32 to vector<8x8xf32>
    %352 = arith.mulf %350, %351 : vector<8x8xf32>
    %353 = vector.extract_strided_slice %314 {offsets = [0, 16], sizes = [8, 8], strides = [1, 1]} : vector<8x32xf32> to vector<8x8xf32>
    %354 = vector.extract_strided_slice %315 {offsets = [0, 16], sizes = [8, 8], strides = [1, 1]} : vector<8x32xf32> to vector<8x8xf32>
    %cst_156 = arith.constant dense<0.000000e+00> : vector<8x8xf32>
    %355 = tpu.matmul %352, %353, %cst_156 {dimension_numbers = #tpu.dot_dimension_numbers<[1], [1], [0], [0], [0, 0, 1, 0], [], []>} : vector<8x8xf32>, vector<8x8xf32>, vector<8x8xf32> -> vector<8x8xf32>
    %cst_157 = arith.constant dense<0xFF800000> : vector<8xf32>
    %356 = vector.multi_reduction <maximumf>, %355, %cst_157 [1] : vector<8x8xf32> to vector<8xf32>
    %357 = vector.shape_cast %356 : vector<8xf32> to vector<8x1xf32>
    %358 = vector.broadcast %357 : vector<8x1xf32> to vector<8x8xf32>
    %359 = arith.subf %355, %358 : vector<8x8xf32>
    %360 = math.exp %359 : vector<8x8xf32>
    %cst_158 = arith.constant dense<0.000000e+00> : vector<8xf32>
    %361 = vector.multi_reduction <add>, %360, %cst_158 [1] : vector<8x8xf32> to vector<8xf32>
    %362 = vector.shape_cast %361 : vector<8xf32> to vector<8x1xf32>
    %363 = tpu.reciprocal %362 {approx = true} : vector<8x1xf32> -> vector<8x1xf32>
    %364 = vector.broadcast %363 : vector<8x1xf32> to vector<8x8xf32>
    %365 = arith.mulf %360, %364 : vector<8x8xf32>
    %cst_159 = arith.constant dense<0.000000e+00> : vector<8x8xf32>
    %366 = tpu.matmul %365, %354, %cst_159 {dimension_numbers = #tpu.dot_dimension_numbers<[1], [0], [0], [1], [0, 0, 1, 1], [], []>} : vector<8x8xf32>, vector<8x8xf32>, vector<8x8xf32> -> vector<8x8xf32>
    %367 = vector.extract_strided_slice %313 {offsets = [0, 24], sizes = [8, 8], strides = [1, 1]} : vector<8x32xf32> to vector<8x8xf32>
    %cst_160 = arith.constant 0.353553385 : f32
    %368 = vector.broadcast %cst_160 : f32 to vector<8x8xf32>
    %369 = arith.mulf %367, %368 : vector<8x8xf32>
    %370 = vector.extract_strided_slice %314 {offsets = [0, 24], sizes = [8, 8], strides = [1, 1]} : vector<8x32xf32> to vector<8x8xf32>
    %371 = vector.extract_strided_slice %315 {offsets = [0, 24], sizes = [8, 8], strides = [1, 1]} : vector<8x32xf32> to vector<8x8xf32>
    %cst_161 = arith.constant dense<0.000000e+00> : vector<8x8xf32>
    %372 = tpu.matmul %369, %370, %cst_161 {dimension_numbers = #tpu.dot_dimension_numbers<[1], [1], [0], [0], [0, 0, 1, 0], [], []>} : vector<8x8xf32>, vector<8x8xf32>, vector<8x8xf32> -> vector<8x8xf32>
    %cst_162 = arith.constant dense<0xFF800000> : vector<8xf32>
    %373 = vector.multi_reduction <maximumf>, %372, %cst_162 [1] : vector<8x8xf32> to vector<8xf32>
    %374 = vector.shape_cast %373 : vector<8xf32> to vector<8x1xf32>
    %375 = vector.broadcast %374 : vector<8x1xf32> to vector<8x8xf32>
    %376 = arith.subf %372, %375 : vector<8x8xf32>
    %377 = math.exp %376 : vector<8x8xf32>
    %cst_163 = arith.constant dense<0.000000e+00> : vector<8xf32>
    %378 = vector.multi_reduction <add>, %377, %cst_163 [1] : vector<8x8xf32> to vector<8xf32>
    %379 = vector.shape_cast %378 : vector<8xf32> to vector<8x1xf32>
    %380 = tpu.reciprocal %379 {approx = true} : vector<8x1xf32> -> vector<8x1xf32>
    %381 = vector.broadcast %380 : vector<8x1xf32> to vector<8x8xf32>
    %382 = arith.mulf %377, %381 : vector<8x8xf32>
    %cst_164 = arith.constant dense<0.000000e+00> : vector<8x8xf32>
    %383 = tpu.matmul %382, %371, %cst_164 {dimension_numbers = #tpu.dot_dimension_numbers<[1], [0], [0], [1], [0, 0, 1, 1], [], []>} : vector<8x8xf32>, vector<8x8xf32>, vector<8x8xf32> -> vector<8x8xf32>
    %384 = tpu.concatenate %332, %349, %366, %383 in 1 : vector<8x8xf32>, vector<8x8xf32>, vector<8x8xf32>, vector<8x8xf32> -> vector<8x32xf32>
    %c1_165 = arith.constant 1 : index
    %c0_166 = arith.constant 0 : index
    %c0_167 = arith.constant 0 : index
    %385 = vector.load %arg7[%c1_165, %c0_166, %c0_167] : memref<2x32x32xf32, #tpu.memory_space<vmem>>, vector<1x32x32xf32>
    %386 = vector.shape_cast %385 : vector<1x32x32xf32> to vector<32x32xf32>
    %cst_168 = arith.constant dense<0.000000e+00> : vector<8x32xf32>
    %387 = tpu.matmul %384, %386, %cst_168 {dimension_numbers = #tpu.dot_dimension_numbers<[1], [0], [0], [1], [0, 0, 1, 1], [], []>} : vector<8x32xf32>, vector<32x32xf32>, vector<8x32xf32> -> vector<8x32xf32>
    %c1_169 = arith.constant 1 : index
    %c0_170 = arith.constant 0 : index
    %c0_171 = arith.constant 0 : index
    %388 = vector.load %arg8[%c1_169, %c0_170, %c0_171] : memref<2x1x32xf32, #tpu.memory_space<vmem>>, vector<1x1x32xf32>
    %389 = vector.shape_cast %388 : vector<1x1x32xf32> to vector<1x32xf32>
    %390 = vector.broadcast %389 : vector<1x32xf32> to vector<8x32xf32>
    %391 = arith.addf %387, %390 : vector<8x32xf32>
    %392 = arith.addf %391, %305 : vector<8x32xf32>
    %c1_172 = arith.constant 1 : index
    %c0_173 = arith.constant 0 : index
    %c0_174 = arith.constant 0 : index
    %393 = vector.load %arg9[%c1_172, %c0_173, %c0_174] : memref<2x1x32xf32, #tpu.memory_space<vmem>>, vector<1x1x32xf32>
    %394 = vector.shape_cast %393 : vector<1x1x32xf32> to vector<1x32xf32>
    %c1_175 = arith.constant 1 : index
    %c0_176 = arith.constant 0 : index
    %c0_177 = arith.constant 0 : index
    %395 = vector.load %arg10[%c1_175, %c0_176, %c0_177] : memref<2x1x32xf32, #tpu.memory_space<vmem>>, vector<1x1x32xf32>
    %396 = vector.shape_cast %395 : vector<1x1x32xf32> to vector<1x32xf32>
    %cst_178 = arith.constant dense<0.000000e+00> : vector<8xf32>
    %397 = vector.multi_reduction <add>, %392, %cst_178 [1] : vector<8x32xf32> to vector<8xf32>
    %398 = vector.shape_cast %397 : vector<8xf32> to vector<8x1xf32>
    %cst_179 = arith.constant 3.200000e+01 : f32
    %399 = vector.broadcast %cst_179 : f32 to vector<8x1xf32>
    %400 = arith.divf %398, %399 : vector<8x1xf32>
    %401 = vector.broadcast %400 : vector<8x1xf32> to vector<8x32xf32>
    %402 = arith.subf %392, %401 : vector<8x32xf32>
    %403 = arith.mulf %402, %402 : vector<8x32xf32>
    %cst_180 = arith.constant dense<0.000000e+00> : vector<8xf32>
    %404 = vector.multi_reduction <add>, %403, %cst_180 [1] : vector<8x32xf32> to vector<8xf32>
    %405 = vector.shape_cast %404 : vector<8xf32> to vector<8x1xf32>
    %cst_181 = arith.constant 3.200000e+01 : f32
    %406 = vector.broadcast %cst_181 : f32 to vector<8x1xf32>
    %407 = arith.divf %405, %406 : vector<8x1xf32>
    %cst_182 = arith.constant 9.99999996E-13 : f32
    %408 = vector.broadcast %cst_182 : f32 to vector<8x1xf32>
    %409 = arith.addf %407, %408 : vector<8x1xf32>
    %410 = math.rsqrt %409 : vector<8x1xf32>
    %411 = vector.broadcast %410 : vector<8x1xf32> to vector<8x32xf32>
    %412 = arith.mulf %402, %411 : vector<8x32xf32>
    %413 = vector.broadcast %394 : vector<1x32xf32> to vector<8x32xf32>
    %414 = arith.mulf %412, %413 : vector<8x32xf32>
    %415 = vector.broadcast %396 : vector<1x32xf32> to vector<8x32xf32>
    %416 = arith.addf %414, %415 : vector<8x32xf32>
    %c1_183 = arith.constant 1 : index
    %c0_184 = arith.constant 0 : index
    %c0_185 = arith.constant 0 : index
    %417 = vector.load %arg11[%c1_183, %c0_184, %c0_185] : memref<2x32x32xf32, #tpu.memory_space<vmem>>, vector<1x32x32xf32>
    %418 = vector.shape_cast %417 : vector<1x32x32xf32> to vector<32x32xf32>
    %cst_186 = arith.constant dense<0.000000e+00> : vector<8x32xf32>
    %419 = tpu.matmul %416, %418, %cst_186 {dimension_numbers = #tpu.dot_dimension_numbers<[1], [0], [0], [1], [0, 0, 1, 1], [], []>} : vector<8x32xf32>, vector<32x32xf32>, vector<8x32xf32> -> vector<8x32xf32>
    %c1_187 = arith.constant 1 : index
    %c0_188 = arith.constant 0 : index
    %c0_189 = arith.constant 0 : index
    %420 = vector.load %arg12[%c1_187, %c0_188, %c0_189] : memref<2x1x32xf32, #tpu.memory_space<vmem>>, vector<1x1x32xf32>
    %421 = vector.shape_cast %420 : vector<1x1x32xf32> to vector<1x32xf32>
    %422 = vector.broadcast %421 : vector<1x32xf32> to vector<8x32xf32>
    %423 = arith.addf %419, %422 : vector<8x32xf32>
    %c1_190 = arith.constant 1 : index
    %c0_191 = arith.constant 0 : index
    %c0_192 = arith.constant 0 : index
    %424 = vector.load %arg13[%c1_190, %c0_191, %c0_192] : memref<2x32x64xf32, #tpu.memory_space<vmem>>, vector<1x32x64xf32>
    %425 = vector.shape_cast %424 : vector<1x32x64xf32> to vector<32x64xf32>
    %cst_193 = arith.constant dense<0.000000e+00> : vector<5x64xf32>
    %426 = tpu.matmul %1, %425, %cst_193 {dimension_numbers = #tpu.dot_dimension_numbers<[1], [0], [0], [1], [0, 0, 1, 1], [], []>} : vector<5x32xf32>, vector<32x64xf32>, vector<5x64xf32> -> vector<5x64xf32>
    %c1_194 = arith.constant 1 : index
    %c0_195 = arith.constant 0 : index
    %c0_196 = arith.constant 0 : index
    %427 = vector.load %arg14[%c1_194, %c0_195, %c0_196] : memref<2x1x64xf32, #tpu.memory_space<vmem>>, vector<1x1x64xf32>
    %428 = vector.shape_cast %427 : vector<1x1x64xf32> to vector<1x64xf32>
    %429 = vector.broadcast %428 : vector<1x64xf32> to vector<5x64xf32>
    %430 = arith.addf %426, %429 : vector<5x64xf32>
    %431 = vector.extract_strided_slice %430 {offsets = [0, 0], sizes = [5, 32], strides = [1, 1]} : vector<5x64xf32> to vector<5x32xf32>
    %432 = vector.extract_strided_slice %430 {offsets = [0, 32], sizes = [5, 32], strides = [1, 1]} : vector<5x64xf32> to vector<5x32xf32>
    %433 = vector.extract_strided_slice %423 {offsets = [0, 0], sizes = [8, 8], strides = [1, 1]} : vector<8x32xf32> to vector<8x8xf32>
    %cst_197 = arith.constant 0.353553385 : f32
    %434 = vector.broadcast %cst_197 : f32 to vector<8x8xf32>
    %435 = arith.mulf %433, %434 : vector<8x8xf32>
    %436 = vector.extract_strided_slice %431 {offsets = [0, 0], sizes = [5, 8], strides = [1, 1]} : vector<5x32xf32> to vector<5x8xf32>
    %437 = vector.extract_strided_slice %432 {offsets = [0, 0], sizes = [5, 8], strides = [1, 1]} : vector<5x32xf32> to vector<5x8xf32>
    %cst_198 = arith.constant dense<0.000000e+00> : vector<8x5xf32>
    %438 = tpu.matmul %435, %436, %cst_198 {dimension_numbers = #tpu.dot_dimension_numbers<[1], [1], [0], [0], [0, 0, 1, 0], [], []>} : vector<8x8xf32>, vector<5x8xf32>, vector<8x5xf32> -> vector<8x5xf32>
    %cst_199 = arith.constant dense<0xFF800000> : vector<8xf32>
    %439 = vector.multi_reduction <maximumf>, %438, %cst_199 [1] : vector<8x5xf32> to vector<8xf32>
    %440 = vector.shape_cast %439 : vector<8xf32> to vector<8x1xf32>
    %441 = vector.broadcast %440 : vector<8x1xf32> to vector<8x5xf32>
    %442 = arith.subf %438, %441 : vector<8x5xf32>
    %443 = math.exp %442 : vector<8x5xf32>
    %cst_200 = arith.constant dense<0.000000e+00> : vector<8xf32>
    %444 = vector.multi_reduction <add>, %443, %cst_200 [1] : vector<8x5xf32> to vector<8xf32>
    %445 = vector.shape_cast %444 : vector<8xf32> to vector<8x1xf32>
    %446 = tpu.reciprocal %445 {approx = true} : vector<8x1xf32> -> vector<8x1xf32>
    %447 = vector.broadcast %446 : vector<8x1xf32> to vector<8x5xf32>
    %448 = arith.mulf %443, %447 : vector<8x5xf32>
    %cst_201 = arith.constant dense<0.000000e+00> : vector<8x8xf32>
    %449 = tpu.matmul %448, %437, %cst_201 {dimension_numbers = #tpu.dot_dimension_numbers<[1], [0], [0], [1], [0, 0, 1, 1], [], []>} : vector<8x5xf32>, vector<5x8xf32>, vector<8x8xf32> -> vector<8x8xf32>
    %450 = vector.extract_strided_slice %423 {offsets = [0, 8], sizes = [8, 8], strides = [1, 1]} : vector<8x32xf32> to vector<8x8xf32>
    %cst_202 = arith.constant 0.353553385 : f32
    %451 = vector.broadcast %cst_202 : f32 to vector<8x8xf32>
    %452 = arith.mulf %450, %451 : vector<8x8xf32>
    %453 = vector.extract_strided_slice %431 {offsets = [0, 8], sizes = [5, 8], strides = [1, 1]} : vector<5x32xf32> to vector<5x8xf32>
    %454 = vector.extract_strided_slice %432 {offsets = [0, 8], sizes = [5, 8], strides = [1, 1]} : vector<5x32xf32> to vector<5x8xf32>
    %cst_203 = arith.constant dense<0.000000e+00> : vector<8x5xf32>
    %455 = tpu.matmul %452, %453, %cst_203 {dimension_numbers = #tpu.dot_dimension_numbers<[1], [1], [0], [0], [0, 0, 1, 0], [], []>} : vector<8x8xf32>, vector<5x8xf32>, vector<8x5xf32> -> vector<8x5xf32>
    %cst_204 = arith.constant dense<0xFF800000> : vector<8xf32>
    %456 = vector.multi_reduction <maximumf>, %455, %cst_204 [1] : vector<8x5xf32> to vector<8xf32>
    %457 = vector.shape_cast %456 : vector<8xf32> to vector<8x1xf32>
    %458 = vector.broadcast %457 : vector<8x1xf32> to vector<8x5xf32>
    %459 = arith.subf %455, %458 : vector<8x5xf32>
    %460 = math.exp %459 : vector<8x5xf32>
    %cst_205 = arith.constant dense<0.000000e+00> : vector<8xf32>
    %461 = vector.multi_reduction <add>, %460, %cst_205 [1] : vector<8x5xf32> to vector<8xf32>
    %462 = vector.shape_cast %461 : vector<8xf32> to vector<8x1xf32>
    %463 = tpu.reciprocal %462 {approx = true} : vector<8x1xf32> -> vector<8x1xf32>
    %464 = vector.broadcast %463 : vector<8x1xf32> to vector<8x5xf32>
    %465 = arith.mulf %460, %464 : vector<8x5xf32>
    %cst_206 = arith.constant dense<0.000000e+00> : vector<8x8xf32>
    %466 = tpu.matmul %465, %454, %cst_206 {dimension_numbers = #tpu.dot_dimension_numbers<[1], [0], [0], [1], [0, 0, 1, 1], [], []>} : vector<8x5xf32>, vector<5x8xf32>, vector<8x8xf32> -> vector<8x8xf32>
    %467 = vector.extract_strided_slice %423 {offsets = [0, 16], sizes = [8, 8], strides = [1, 1]} : vector<8x32xf32> to vector<8x8xf32>
    %cst_207 = arith.constant 0.353553385 : f32
    %468 = vector.broadcast %cst_207 : f32 to vector<8x8xf32>
    %469 = arith.mulf %467, %468 : vector<8x8xf32>
    %470 = vector.extract_strided_slice %431 {offsets = [0, 16], sizes = [5, 8], strides = [1, 1]} : vector<5x32xf32> to vector<5x8xf32>
    %471 = vector.extract_strided_slice %432 {offsets = [0, 16], sizes = [5, 8], strides = [1, 1]} : vector<5x32xf32> to vector<5x8xf32>
    %cst_208 = arith.constant dense<0.000000e+00> : vector<8x5xf32>
    %472 = tpu.matmul %469, %470, %cst_208 {dimension_numbers = #tpu.dot_dimension_numbers<[1], [1], [0], [0], [0, 0, 1, 0], [], []>} : vector<8x8xf32>, vector<5x8xf32>, vector<8x5xf32> -> vector<8x5xf32>
    %cst_209 = arith.constant dense<0xFF800000> : vector<8xf32>
    %473 = vector.multi_reduction <maximumf>, %472, %cst_209 [1] : vector<8x5xf32> to vector<8xf32>
    %474 = vector.shape_cast %473 : vector<8xf32> to vector<8x1xf32>
    %475 = vector.broadcast %474 : vector<8x1xf32> to vector<8x5xf32>
    %476 = arith.subf %472, %475 : vector<8x5xf32>
    %477 = math.exp %476 : vector<8x5xf32>
    %cst_210 = arith.constant dense<0.000000e+00> : vector<8xf32>
    %478 = vector.multi_reduction <add>, %477, %cst_210 [1] : vector<8x5xf32> to vector<8xf32>
    %479 = vector.shape_cast %478 : vector<8xf32> to vector<8x1xf32>
    %480 = tpu.reciprocal %479 {approx = true} : vector<8x1xf32> -> vector<8x1xf32>
    %481 = vector.broadcast %480 : vector<8x1xf32> to vector<8x5xf32>
    %482 = arith.mulf %477, %481 : vector<8x5xf32>
    %cst_211 = arith.constant dense<0.000000e+00> : vector<8x8xf32>
    %483 = tpu.matmul %482, %471, %cst_211 {dimension_numbers = #tpu.dot_dimension_numbers<[1], [0], [0], [1], [0, 0, 1, 1], [], []>} : vector<8x5xf32>, vector<5x8xf32>, vector<8x8xf32> -> vector<8x8xf32>
    %484 = vector.extract_strided_slice %423 {offsets = [0, 24], sizes = [8, 8], strides = [1, 1]} : vector<8x32xf32> to vector<8x8xf32>
    %cst_212 = arith.constant 0.353553385 : f32
    %485 = vector.broadcast %cst_212 : f32 to vector<8x8xf32>
    %486 = arith.mulf %484, %485 : vector<8x8xf32>
    %487 = vector.extract_strided_slice %431 {offsets = [0, 24], sizes = [5, 8], strides = [1, 1]} : vector<5x32xf32> to vector<5x8xf32>
    %488 = vector.extract_strided_slice %432 {offsets = [0, 24], sizes = [5, 8], strides = [1, 1]} : vector<5x32xf32> to vector<5x8xf32>
    %cst_213 = arith.constant dense<0.000000e+00> : vector<8x5xf32>
    %489 = tpu.matmul %486, %487, %cst_213 {dimension_numbers = #tpu.dot_dimension_numbers<[1], [1], [0], [0], [0, 0, 1, 0], [], []>} : vector<8x8xf32>, vector<5x8xf32>, vector<8x5xf32> -> vector<8x5xf32>
    %cst_214 = arith.constant dense<0xFF800000> : vector<8xf32>
    %490 = vector.multi_reduction <maximumf>, %489, %cst_214 [1] : vector<8x5xf32> to vector<8xf32>
    %491 = vector.shape_cast %490 : vector<8xf32> to vector<8x1xf32>
    %492 = vector.broadcast %491 : vector<8x1xf32> to vector<8x5xf32>
    %493 = arith.subf %489, %492 : vector<8x5xf32>
    %494 = math.exp %493 : vector<8x5xf32>
    %cst_215 = arith.constant dense<0.000000e+00> : vector<8xf32>
    %495 = vector.multi_reduction <add>, %494, %cst_215 [1] : vector<8x5xf32> to vector<8xf32>
    %496 = vector.shape_cast %495 : vector<8xf32> to vector<8x1xf32>
    %497 = tpu.reciprocal %496 {approx = true} : vector<8x1xf32> -> vector<8x1xf32>
    %498 = vector.broadcast %497 : vector<8x1xf32> to vector<8x5xf32>
    %499 = arith.mulf %494, %498 : vector<8x5xf32>
    %cst_216 = arith.constant dense<0.000000e+00> : vector<8x8xf32>
    %500 = tpu.matmul %499, %488, %cst_216 {dimension_numbers = #tpu.dot_dimension_numbers<[1], [0], [0], [1], [0, 0, 1, 1], [], []>} : vector<8x5xf32>, vector<5x8xf32>, vector<8x8xf32> -> vector<8x8xf32>
    %501 = tpu.concatenate %449, %466, %483, %500 in 1 : vector<8x8xf32>, vector<8x8xf32>, vector<8x8xf32>, vector<8x8xf32> -> vector<8x32xf32>
    %c1_217 = arith.constant 1 : index
    %c0_218 = arith.constant 0 : index
    %c0_219 = arith.constant 0 : index
    %502 = vector.load %arg15[%c1_217, %c0_218, %c0_219] : memref<2x32x32xf32, #tpu.memory_space<vmem>>, vector<1x32x32xf32>
    %503 = vector.shape_cast %502 : vector<1x32x32xf32> to vector<32x32xf32>
    %cst_220 = arith.constant dense<0.000000e+00> : vector<8x32xf32>
    %504 = tpu.matmul %501, %503, %cst_220 {dimension_numbers = #tpu.dot_dimension_numbers<[1], [0], [0], [1], [0, 0, 1, 1], [], []>} : vector<8x32xf32>, vector<32x32xf32>, vector<8x32xf32> -> vector<8x32xf32>
    %c1_221 = arith.constant 1 : index
    %c0_222 = arith.constant 0 : index
    %c0_223 = arith.constant 0 : index
    %505 = vector.load %arg16[%c1_221, %c0_222, %c0_223] : memref<2x1x32xf32, #tpu.memory_space<vmem>>, vector<1x1x32xf32>
    %506 = vector.shape_cast %505 : vector<1x1x32xf32> to vector<1x32xf32>
    %507 = vector.broadcast %506 : vector<1x32xf32> to vector<8x32xf32>
    %508 = arith.addf %504, %507 : vector<8x32xf32>
    %509 = arith.addf %508, %416 : vector<8x32xf32>
    %c1_224 = arith.constant 1 : index
    %c0_225 = arith.constant 0 : index
    %c0_226 = arith.constant 0 : index
    %510 = vector.load %arg17[%c1_224, %c0_225, %c0_226] : memref<2x1x32xf32, #tpu.memory_space<vmem>>, vector<1x1x32xf32>
    %511 = vector.shape_cast %510 : vector<1x1x32xf32> to vector<1x32xf32>
    %c1_227 = arith.constant 1 : index
    %c0_228 = arith.constant 0 : index
    %c0_229 = arith.constant 0 : index
    %512 = vector.load %arg18[%c1_227, %c0_228, %c0_229] : memref<2x1x32xf32, #tpu.memory_space<vmem>>, vector<1x1x32xf32>
    %513 = vector.shape_cast %512 : vector<1x1x32xf32> to vector<1x32xf32>
    %cst_230 = arith.constant dense<0.000000e+00> : vector<8xf32>
    %514 = vector.multi_reduction <add>, %509, %cst_230 [1] : vector<8x32xf32> to vector<8xf32>
    %515 = vector.shape_cast %514 : vector<8xf32> to vector<8x1xf32>
    %cst_231 = arith.constant 3.200000e+01 : f32
    %516 = vector.broadcast %cst_231 : f32 to vector<8x1xf32>
    %517 = arith.divf %515, %516 : vector<8x1xf32>
    %518 = vector.broadcast %517 : vector<8x1xf32> to vector<8x32xf32>
    %519 = arith.subf %509, %518 : vector<8x32xf32>
    %520 = arith.mulf %519, %519 : vector<8x32xf32>
    %cst_232 = arith.constant dense<0.000000e+00> : vector<8xf32>
    %521 = vector.multi_reduction <add>, %520, %cst_232 [1] : vector<8x32xf32> to vector<8xf32>
    %522 = vector.shape_cast %521 : vector<8xf32> to vector<8x1xf32>
    %cst_233 = arith.constant 3.200000e+01 : f32
    %523 = vector.broadcast %cst_233 : f32 to vector<8x1xf32>
    %524 = arith.divf %522, %523 : vector<8x1xf32>
    %cst_234 = arith.constant 9.99999996E-13 : f32
    %525 = vector.broadcast %cst_234 : f32 to vector<8x1xf32>
    %526 = arith.addf %524, %525 : vector<8x1xf32>
    %527 = math.rsqrt %526 : vector<8x1xf32>
    %528 = vector.broadcast %527 : vector<8x1xf32> to vector<8x32xf32>
    %529 = arith.mulf %519, %528 : vector<8x32xf32>
    %530 = vector.broadcast %511 : vector<1x32xf32> to vector<8x32xf32>
    %531 = arith.mulf %529, %530 : vector<8x32xf32>
    %532 = vector.broadcast %513 : vector<1x32xf32> to vector<8x32xf32>
    %533 = arith.addf %531, %532 : vector<8x32xf32>
    %c1_235 = arith.constant 1 : index
    %c0_236 = arith.constant 0 : index
    %c0_237 = arith.constant 0 : index
    %534 = vector.load %arg19[%c1_235, %c0_236, %c0_237] : memref<2x32x64xf32, #tpu.memory_space<vmem>>, vector<1x32x64xf32>
    %535 = vector.shape_cast %534 : vector<1x32x64xf32> to vector<32x64xf32>
    %cst_238 = arith.constant dense<0.000000e+00> : vector<8x64xf32>
    %536 = tpu.matmul %533, %535, %cst_238 {dimension_numbers = #tpu.dot_dimension_numbers<[1], [0], [0], [1], [0, 0, 1, 1], [], []>} : vector<8x32xf32>, vector<32x64xf32>, vector<8x64xf32> -> vector<8x64xf32>
    %c1_239 = arith.constant 1 : index
    %c0_240 = arith.constant 0 : index
    %c0_241 = arith.constant 0 : index
    %537 = vector.load %arg20[%c1_239, %c0_240, %c0_241] : memref<2x1x64xf32, #tpu.memory_space<vmem>>, vector<1x1x64xf32>
    %538 = vector.shape_cast %537 : vector<1x1x64xf32> to vector<1x64xf32>
    %539 = vector.broadcast %538 : vector<1x64xf32> to vector<8x64xf32>
    %540 = arith.addf %536, %539 : vector<8x64xf32>
    %cst_242 = arith.constant 5.000000e-01 : f32
    %541 = vector.broadcast %cst_242 : f32 to vector<8x64xf32>
    %542 = arith.mulf %541, %540 : vector<8x64xf32>
    %cst_243 = arith.constant 4.471500e-02 : f32
    %543 = vector.broadcast %cst_243 : f32 to vector<8x64xf32>
    %544 = arith.mulf %543, %540 : vector<8x64xf32>
    %545 = arith.mulf %544, %540 : vector<8x64xf32>
    %546 = arith.mulf %545, %540 : vector<8x64xf32>
    %547 = arith.addf %540, %546 : vector<8x64xf32>
    %cst_244 = arith.constant 0.797884583 : f32
    %548 = vector.broadcast %cst_244 : f32 to vector<8x64xf32>
    %549 = arith.mulf %548, %547 : vector<8x64xf32>
    %550 = math.tanh %549 : vector<8x64xf32>
    %cst_245 = arith.constant 1.000000e+00 : f32
    %551 = vector.broadcast %cst_245 : f32 to vector<8x64xf32>
    %552 = arith.addf %551, %550 : vector<8x64xf32>
    %553 = arith.mulf %542, %552 : vector<8x64xf32>
    %c1_246 = arith.constant 1 : index
    %c0_247 = arith.constant 0 : index
    %c0_248 = arith.constant 0 : index
    %554 = vector.load %arg21[%c1_246, %c0_247, %c0_248] : memref<2x64x32xf32, #tpu.memory_space<vmem>>, vector<1x64x32xf32>
    %555 = vector.shape_cast %554 : vector<1x64x32xf32> to vector<64x32xf32>
    %cst_249 = arith.constant dense<0.000000e+00> : vector<8x32xf32>
    %556 = tpu.matmul %553, %555, %cst_249 {dimension_numbers = #tpu.dot_dimension_numbers<[1], [0], [0], [1], [0, 0, 1, 1], [], []>} : vector<8x64xf32>, vector<64x32xf32>, vector<8x32xf32> -> vector<8x32xf32>
    %c1_250 = arith.constant 1 : index
    %c0_251 = arith.constant 0 : index
    %c0_252 = arith.constant 0 : index
    %557 = vector.load %arg22[%c1_250, %c0_251, %c0_252] : memref<2x1x32xf32, #tpu.memory_space<vmem>>, vector<1x1x32xf32>
    %558 = vector.shape_cast %557 : vector<1x1x32xf32> to vector<1x32xf32>
    %559 = vector.broadcast %558 : vector<1x32xf32> to vector<8x32xf32>
    %560 = arith.addf %556, %559 : vector<8x32xf32>
    %561 = arith.addf %560, %533 : vector<8x32xf32>
    %c1_253 = arith.constant 1 : index
    %c0_254 = arith.constant 0 : index
    %c0_255 = arith.constant 0 : index
    %562 = vector.load %arg23[%c1_253, %c0_254, %c0_255] : memref<2x1x32xf32, #tpu.memory_space<vmem>>, vector<1x1x32xf32>
    %563 = vector.shape_cast %562 : vector<1x1x32xf32> to vector<1x32xf32>
    %c1_256 = arith.constant 1 : index
    %c0_257 = arith.constant 0 : index
    %c0_258 = arith.constant 0 : index
    %564 = vector.load %arg24[%c1_256, %c0_257, %c0_258] : memref<2x1x32xf32, #tpu.memory_space<vmem>>, vector<1x1x32xf32>
    %565 = vector.shape_cast %564 : vector<1x1x32xf32> to vector<1x32xf32>
    %cst_259 = arith.constant dense<0.000000e+00> : vector<8xf32>
    %566 = vector.multi_reduction <add>, %561, %cst_259 [1] : vector<8x32xf32> to vector<8xf32>
    %567 = vector.shape_cast %566 : vector<8xf32> to vector<8x1xf32>
    %cst_260 = arith.constant 3.200000e+01 : f32
    %568 = vector.broadcast %cst_260 : f32 to vector<8x1xf32>
    %569 = arith.divf %567, %568 : vector<8x1xf32>
    %570 = vector.broadcast %569 : vector<8x1xf32> to vector<8x32xf32>
    %571 = arith.subf %561, %570 : vector<8x32xf32>
    %572 = arith.mulf %571, %571 : vector<8x32xf32>
    %cst_261 = arith.constant dense<0.000000e+00> : vector<8xf32>
    %573 = vector.multi_reduction <add>, %572, %cst_261 [1] : vector<8x32xf32> to vector<8xf32>
    %574 = vector.shape_cast %573 : vector<8xf32> to vector<8x1xf32>
    %cst_262 = arith.constant 3.200000e+01 : f32
    %575 = vector.broadcast %cst_262 : f32 to vector<8x1xf32>
    %576 = arith.divf %574, %575 : vector<8x1xf32>
    %cst_263 = arith.constant 9.99999996E-13 : f32
    %577 = vector.broadcast %cst_263 : f32 to vector<8x1xf32>
    %578 = arith.addf %576, %577 : vector<8x1xf32>
    %579 = math.rsqrt %578 : vector<8x1xf32>
    %580 = vector.broadcast %579 : vector<8x1xf32> to vector<8x32xf32>
    %581 = arith.mulf %571, %580 : vector<8x32xf32>
    %582 = vector.broadcast %563 : vector<1x32xf32> to vector<8x32xf32>
    %583 = arith.mulf %581, %582 : vector<8x32xf32>
    %584 = vector.broadcast %565 : vector<1x32xf32> to vector<8x32xf32>
    %585 = arith.addf %583, %584 : vector<8x32xf32>
    %c0_264 = arith.constant 0 : index
    %c0_265 = arith.constant 0 : index
    %586 = vector.load %arg25[%c0_264, %c0_265] : memref<32x32xf32, #tpu.memory_space<vmem>>, vector<32x32xf32>
    %cst_266 = arith.constant dense<0.000000e+00> : vector<8x32xf32>
    %587 = tpu.matmul %585, %586, %cst_266 {dimension_numbers = #tpu.dot_dimension_numbers<[1], [0], [0], [1], [0, 0, 1, 1], [], []>} : vector<8x32xf32>, vector<32x32xf32>, vector<8x32xf32> -> vector<8x32xf32>
    %c0_267 = arith.constant 0 : index
    %c0_268 = arith.constant 0 : index
    %588 = vector.load %arg26[%c0_267, %c0_268] : memref<1x32xf32, #tpu.memory_space<vmem>>, vector<1x32xf32>
    %589 = vector.broadcast %588 : vector<1x32xf32> to vector<8x32xf32>
    %590 = arith.addf %587, %589 : vector<8x32xf32>
    %c0_269 = arith.constant 0 : index
    %c0_270 = arith.constant 0 : index
    %c0_271 = arith.constant 0 : index
    %591 = vector.load %arg27[%c0_269, %c0_270, %c0_271] : memref<1x8x32xf32, #tpu.memory_space<vmem>>, vector<1x8x32xf32>
    %592 = vector.shape_cast %591 : vector<1x8x32xf32> to vector<8x32xf32>
    %593 = vector.shape_cast %590 : vector<8x32xf32> to vector<1x8x32xf32>
    tpu.vector_store %arg27[%c0_269, %c0_270, %c0_271], %593 {strides = array<i32>} : memref<1x8x32xf32, #tpu.memory_space<vmem>>, vector<1x8x32xf32>,
    return
  }
  func.func @transform_0(%arg0: i32) -> (i32, i32, i32) {
    %c0_i32 = arith.constant 0 : i32
    %c0_i32_0 = arith.constant 0 : i32
    %c0_i32_1 = arith.constant 0 : i32
    %c0_i32_2 = arith.constant 0 : i32
    return %c0_i32, %c0_i32_0, %c0_i32_1 : i32, i32, i32
  }
  func.func @transform_1(%arg0: i32) -> (i32, i32, i32) {
    %c0_i32 = arith.constant 0 : i32
    %c0_i32_0 = arith.constant 0 : i32
    %c0_i32_1 = arith.constant 0 : i32
    return %arg0, %c0_i32, %c0_i32_0 : i32, i32, i32
  }
  func.func @transform_2(%arg0: i32) -> (i32, i32) {
    %c0_i32 = arith.constant 0 : i32
    %c0_i32_0 = arith.constant 0 : i32
    %c0_i32_1 = arith.constant 0 : i32
    return %c0_i32, %c0_i32_0 : i32, i32
  }
  func.func @transform_3(%arg0: i32) -> (i32, i32) {
    %c0_i32 = arith.constant 0 : i32
    %c0_i32_0 = arith.constant 0 : i32
    %c0_i32_1 = arith.constant 0 : i32
    return %c0_i32, %c0_i32_0 : i32, i32
  }
  func.func @transform_4(%arg0: i32) -> (i32, i32, i32) {
    %c0_i32 = arith.constant 0 : i32
    %c0_i32_0 = arith.constant 0 : i32
    %c0_i32_1 = arith.constant 0 : i32
    %c0_i32_2 = arith.constant 0 : i32
    return %c0_i32, %c0_i32_0, %c0_i32_1 : i32, i32, i32
  }
  func.func @transform_5(%arg0: i32) -> (i32, i32, i32) {
    %c0_i32 = arith.constant 0 : i32
    %c0_i32_0 = arith.constant 0 : i32
    %c0_i32_1 = arith.constant 0 : i32
    %c0_i32_2 = arith.constant 0 : i32
    return %c0_i32, %c0_i32_0, %c0_i32_1 : i32, i32, i32
  }
  func.func @transform_6(%arg0: i32) -> (i32, i32, i32) {
    %c0_i32 = arith.constant 0 : i32
    %c0_i32_0 = arith.constant 0 : i32
    %c0_i32_1 = arith.constant 0 : i32
    %c0_i32_2 = arith.constant 0 : i32
    return %c0_i32, %c0_i32_0, %c0_i32_1 : i32, i32, i32
  }
  func.func @transform_7(%arg0: i32) -> (i32, i32, i32) {
    %c0_i32 = arith.constant 0 : i32
    %c0_i32_0 = arith.constant 0 : i32
    %c0_i32_1 = arith.constant 0 : i32
    %c0_i32_2 = arith.constant 0 : i32
    return %c0_i32, %c0_i32_0, %c0_i32_1 : i32, i32, i32
  }
  func.func @transform_8(%arg0: i32) -> (i32, i32, i32) {
    %c0_i32 = arith.constant 0 : i32
    %c0_i32_0 = arith.constant 0 : i32
    %c0_i32_1 = arith.constant 0 : i32
    %c0_i32_2 = arith.constant 0 : i32
    return %c0_i32, %c0_i32_0, %c0_i32_1 : i32, i32, i32
  }
  func.func @transform_9(%arg0: i32) -> (i32, i32, i32) {
    %c0_i32 = arith.constant 0 : i32
    %c0_i32_0 = arith.constant 0 : i32
    %c0_i32_1 = arith.constant 0 : i32
    %c0_i32_2 = arith.constant 0 : i32
    return %c0_i32, %c0_i32_0, %c0_i32_1 : i32, i32, i32
  }
  func.func @transform_10(%arg0: i32) -> (i32, i32, i32) {
    %c0_i32 = arith.constant 0 : i32
    %c0_i32_0 = arith.constant 0 : i32
    %c0_i32_1 = arith.constant 0 : i32
    %c0_i32_2 = arith.constant 0 : i32
    return %c0_i32, %c0_i32_0, %c0_i32_1 : i32, i32, i32
  }
  func.func @transform_11(%arg0: i32) -> (i32, i32, i32) {
    %c0_i32 = arith.constant 0 : i32
    %c0_i32_0 = arith.constant 0 : i32
    %c0_i32_1 = arith.constant 0 : i32
    %c0_i32_2 = arith.constant 0 : i32
    return %c0_i32, %c0_i32_0, %c0_i32_1 : i32, i32, i32
  }
  func.func @transform_12(%arg0: i32) -> (i32, i32, i32) {
    %c0_i32 = arith.constant 0 : i32
    %c0_i32_0 = arith.constant 0 : i32
    %c0_i32_1 = arith.constant 0 : i32
    %c0_i32_2 = arith.constant 0 : i32
    return %c0_i32, %c0_i32_0, %c0_i32_1 : i32, i32, i32
  }
  func.func @transform_13(%arg0: i32) -> (i32, i32, i32) {
    %c0_i32 = arith.constant 0 : i32
    %c0_i32_0 = arith.constant 0 : i32
    %c0_i32_1 = arith.constant 0 : i32
    %c0_i32_2 = arith.constant 0 : i32
    return %c0_i32, %c0_i32_0, %c0_i32_1 : i32, i32, i32
  }
  func.func @transform_14(%arg0: i32) -> (i32, i32, i32) {
    %c0_i32 = arith.constant 0 : i32
    %c0_i32_0 = arith.constant 0 : i32
    %c0_i32_1 = arith.constant 0 : i32
    %c0_i32_2 = arith.constant 0 : i32
    return %c0_i32, %c0_i32_0, %c0_i32_1 : i32, i32, i32
  }
  func.func @transform_15(%arg0: i32) -> (i32, i32, i32) {
    %c0_i32 = arith.constant 0 : i32
    %c0_i32_0 = arith.constant 0 : i32
    %c0_i32_1 = arith.constant 0 : i32
    %c0_i32_2 = arith.constant 0 : i32
    return %c0_i32, %c0_i32_0, %c0_i32_1 : i32, i32, i32
  }
  func.func @transform_16(%arg0: i32) -> (i32, i32, i32) {
    %c0_i32 = arith.constant 0 : i32
    %c0_i32_0 = arith.constant 0 : i32
    %c0_i32_1 = arith.constant 0 : i32
    %c0_i32_2 = arith.constant 0 : i32
    return %c0_i32, %c0_i32_0, %c0_i32_1 : i32, i32, i32
  }
  func.func @transform_17(%arg0: i32) -> (i32, i32, i32) {
    %c0_i32 = arith.constant 0 : i32
    %c0_i32_0 = arith.constant 0 : i32
    %c0_i32_1 = arith.constant 0 : i32
    %c0_i32_2 = arith.constant 0 : i32
    return %c0_i32, %c0_i32_0, %c0_i32_1 : i32, i32, i32
  }
  func.func @transform_18(%arg0: i32) -> (i32, i32, i32) {
    %c0_i32 = arith.constant 0 : i32
    %c0_i32_0 = arith.constant 0 : i32
    %c0_i32_1 = arith.constant 0 : i32
    %c0_i32_2 = arith.constant 0 : i32
    return %c0_i32, %c0_i32_0, %c0_i32_1 : i32, i32, i32
  }
  func.func @transform_19(%arg0: i32) -> (i32, i32, i32) {
    %c0_i32 = arith.constant 0 : i32
    %c0_i32_0 = arith.constant 0 : i32
    %c0_i32_1 = arith.constant 0 : i32
    %c0_i32_2 = arith.constant 0 : i32
    return %c0_i32, %c0_i32_0, %c0_i32_1 : i32, i32, i32
  }
  func.func @transform_20(%arg0: i32) -> (i32, i32, i32) {
    %c0_i32 = arith.constant 0 : i32
    %c0_i32_0 = arith.constant 0 : i32
    %c0_i32_1 = arith.constant 0 : i32
    %c0_i32_2 = arith.constant 0 : i32
    return %c0_i32, %c0_i32_0, %c0_i32_1 : i32, i32, i32
  }
  func.func @transform_21(%arg0: i32) -> (i32, i32, i32) {
    %c0_i32 = arith.constant 0 : i32
    %c0_i32_0 = arith.constant 0 : i32
    %c0_i32_1 = arith.constant 0 : i32
    %c0_i32_2 = arith.constant 0 : i32
    return %c0_i32, %c0_i32_0, %c0_i32_1 : i32, i32, i32
  }
  func.func @transform_22(%arg0: i32) -> (i32, i32, i32) {
    %c0_i32 = arith.constant 0 : i32
    %c0_i32_0 = arith.constant 0 : i32
    %c0_i32_1 = arith.constant 0 : i32
    %c0_i32_2 = arith.constant 0 : i32
    return %c0_i32, %c0_i32_0, %c0_i32_1 : i32, i32, i32
  }
  func.func @transform_23(%arg0: i32) -> (i32, i32, i32) {
    %c0_i32 = arith.constant 0 : i32
    %c0_i32_0 = arith.constant 0 : i32
    %c0_i32_1 = arith.constant 0 : i32
    %c0_i32_2 = arith.constant 0 : i32
    return %c0_i32, %c0_i32_0, %c0_i32_1 : i32, i32, i32
  }
  func.func @transform_24(%arg0: i32) -> (i32, i32) {
    %c0_i32 = arith.constant 0 : i32
    %c0_i32_0 = arith.constant 0 : i32
    %c0_i32_1 = arith.constant 0 : i32
    return %c0_i32, %c0_i32_0 : i32, i32
  }
  func.func @transform_25(%arg0: i32) -> (i32, i32) {
    %c0_i32 = arith.constant 0 : i32
    %c0_i32_0 = arith.constant 0 : i32
    %c0_i32_1 = arith.constant 0 : i32
    return %c0_i32, %c0_i32_0 : i32, i32
  }
  func.func @transform_26(%arg0: i32) -> (i32, i32, i32) {
    %c0_i32 = arith.constant 0 : i32
    %c0_i32_0 = arith.constant 0 : i32
    %c0_i32_1 = arith.constant 0 : i32
    return %arg0, %c0_i32, %c0_i32_0 : i32, i32, i32
  }
}

module attributes {stable_mosaic.version = 11 : i64} {
  func.func @_llama_kernel(%arg0: i32, %arg1: memref<1x20x32xf32, #tpu.memory_space<vmem>>, %arg2: memref<1x1x20xf32, #tpu.memory_space<vmem>>, %arg3: memref<20x8xf32, #tpu.memory_space<vmem>>, %arg4: memref<20x8xf32, #tpu.memory_space<vmem>>, %arg5: memref<2x1x32xf32, #tpu.memory_space<vmem>>, %arg6: memref<2x32x96xf32, #tpu.memory_space<vmem>>, %arg7: memref<2x32x32xf32, #tpu.memory_space<vmem>>, %arg8: memref<2x1x32xf32, #tpu.memory_space<vmem>>, %arg9: memref<2x32x128xf32, #tpu.memory_space<vmem>>, %arg10: memref<2x64x32xf32, #tpu.memory_space<vmem>>, %arg11: memref<1x32xf32, #tpu.memory_space<vmem>>, %arg12: memref<32x128xf32, #tpu.memory_space<vmem>>, %arg13: memref<1x20x128xf32, #tpu.memory_space<vmem>>) attributes {dimension_semantics = [#tpu.dimension_semantics<parallel>], iteration_bounds = array<i64: 2>, scalar_prefetch = 0 : i64, scratch_operands = 0 : i64, tpu.core_type = #tpu.core_type<tc>, window_params = [{transform_indices = @transform_0, window_bounds = array<i64: 1, 20, 32>}, {transform_indices = @transform_1, window_bounds = array<i64: 1, 1, 20>}, {pipeline_mode = #tpu.pipeline_mode<synchronous>, transform_indices = @transform_2, window_bounds = array<i64: 20, 8>}, {pipeline_mode = #tpu.pipeline_mode<synchronous>, transform_indices = @transform_3, window_bounds = array<i64: 20, 8>}, {pipeline_mode = #tpu.pipeline_mode<synchronous>, transform_indices = @transform_4, window_bounds = array<i64: 2, 1, 32>}, {pipeline_mode = #tpu.pipeline_mode<synchronous>, transform_indices = @transform_5, window_bounds = array<i64: 2, 32, 96>}, {pipeline_mode = #tpu.pipeline_mode<synchronous>, transform_indices = @transform_6, window_bounds = array<i64: 2, 32, 32>}, {pipeline_mode = #tpu.pipeline_mode<synchronous>, transform_indices = @transform_7, window_bounds = array<i64: 2, 1, 32>}, {pipeline_mode = #tpu.pipeline_mode<synchronous>, transform_indices = @transform_8, window_bounds = array<i64: 2, 32, 128>}, {pipeline_mode = #tpu.pipeline_mode<synchronous>, transform_indices = @transform_9, window_bounds = array<i64: 2, 64, 32>}, {pipeline_mode = #tpu.pipeline_mode<synchronous>, transform_indices = @transform_10, window_bounds = array<i64: 1, 32>}, {pipeline_mode = #tpu.pipeline_mode<synchronous>, transform_indices = @transform_11, window_bounds = array<i64: 32, 128>}, {transform_indices = @transform_12, window_bounds = array<i64: 1, 20, 128>}]} {
    %c0 = arith.constant 0 : index
    %c0_0 = arith.constant 0 : index
    %c0_1 = arith.constant 0 : index
    %0 = vector.load %arg1[%c0, %c0_0, %c0_1] : memref<1x20x32xf32, #tpu.memory_space<vmem>>, vector<1x20x32xf32>
    %1 = vector.shape_cast %0 : vector<1x20x32xf32> to vector<20x32xf32>
    %c0_2 = arith.constant 0 : index
    %c0_3 = arith.constant 0 : index
    %c0_4 = arith.constant 0 : index
    %2 = vector.load %arg2[%c0_2, %c0_3, %c0_4] : memref<1x1x20xf32, #tpu.memory_space<vmem>>, vector<1x1x20xf32>
    %3 = vector.shape_cast %2 : vector<1x1x20xf32> to vector<1x20xf32>
    %cst = arith.constant 5.000000e-01 : f32
    %4 = vector.broadcast %cst : f32 to vector<1x20xf32>
    %5 = arith.cmpf ogt, %3, %4 : vector<1x20xf32>
    %6 = tpu.iota {dimensions = array<i32: 0>} : vector<20x20xi32>
    %7 = tpu.iota {dimensions = array<i32: 1>} : vector<20x20xi32>
    %8 = arith.cmpi sle, %7, %6 : vector<20x20xi32>
    %9 = vector.broadcast %5 : vector<1x20xi1> to vector<20x20xi1>
    %10 = arith.andi %8, %9 : vector<20x20xi1>
    %cst_5 = arith.constant 0.000000e+00 : f32
    %cst_6 = arith.constant -1.000000e+09 : f32
    %11 = vector.broadcast %cst_5 : f32 to vector<20x20xf32>
    %12 = vector.broadcast %cst_6 : f32 to vector<20x20xf32>
    %13 = arith.select %10, %11, %12 : vector<20x20xi1>, vector<20x20xf32>
    %c0_7 = arith.constant 0 : index
    %c0_8 = arith.constant 0 : index
    %14 = vector.load %arg3[%c0_7, %c0_8] : memref<20x8xf32, #tpu.memory_space<vmem>>, vector<20x8xf32>
    %c0_9 = arith.constant 0 : index
    %c0_10 = arith.constant 0 : index
    %15 = vector.load %arg4[%c0_9, %c0_10] : memref<20x8xf32, #tpu.memory_space<vmem>>, vector<20x8xf32>
    %c0_11 = arith.constant 0 : index
    %c0_12 = arith.constant 0 : index
    %c0_13 = arith.constant 0 : index
    %16 = vector.load %arg5[%c0_11, %c0_12, %c0_13] : memref<2x1x32xf32, #tpu.memory_space<vmem>>, vector<1x1x32xf32>
    %17 = vector.shape_cast %16 : vector<1x1x32xf32> to vector<1x32xf32>
    %18 = arith.mulf %1, %1 : vector<20x32xf32>
    %cst_14 = arith.constant dense<0.000000e+00> : vector<20xf32>
    %19 = vector.multi_reduction <add>, %18, %cst_14 [1] : vector<20x32xf32> to vector<20xf32>
    %20 = vector.shape_cast %19 : vector<20xf32> to vector<20x1xf32>
    %cst_15 = arith.constant 3.200000e+01 : f32
    %21 = vector.broadcast %cst_15 : f32 to vector<20x1xf32>
    %22 = arith.divf %20, %21 : vector<20x1xf32>
    %cst_16 = arith.constant 9.99999997E-7 : f32
    %23 = vector.broadcast %cst_16 : f32 to vector<20x1xf32>
    %24 = arith.addf %22, %23 : vector<20x1xf32>
    %25 = math.rsqrt %24 : vector<20x1xf32>
    %26 = vector.broadcast %25 : vector<20x1xf32> to vector<20x32xf32>
    %27 = arith.mulf %1, %26 : vector<20x32xf32>
    %28 = vector.broadcast %17 : vector<1x32xf32> to vector<20x32xf32>
    %29 = arith.mulf %27, %28 : vector<20x32xf32>
    %c0_17 = arith.constant 0 : index
    %c0_18 = arith.constant 0 : index
    %c0_19 = arith.constant 0 : index
    %30 = vector.load %arg6[%c0_17, %c0_18, %c0_19] : memref<2x32x96xf32, #tpu.memory_space<vmem>>, vector<1x32x96xf32>
    %31 = vector.shape_cast %30 : vector<1x32x96xf32> to vector<32x96xf32>
    %cst_20 = arith.constant dense<0.000000e+00> : vector<20x96xf32>
    %32 = tpu.matmul %29, %31, %cst_20 {dimension_numbers = #tpu.dot_dimension_numbers<[1], [0], [0], [1], [0, 0, 1, 1], [], []>} : vector<20x32xf32>, vector<32x96xf32>, vector<20x96xf32> -> vector<20x96xf32>
    %33 = vector.extract_strided_slice %32 {offsets = [0, 0], sizes = [20, 32], strides = [1, 1]} : vector<20x96xf32> to vector<20x32xf32>
    %34 = vector.extract_strided_slice %32 {offsets = [0, 32], sizes = [20, 32], strides = [1, 1]} : vector<20x96xf32> to vector<20x32xf32>
    %35 = vector.extract_strided_slice %32 {offsets = [0, 64], sizes = [20, 32], strides = [1, 1]} : vector<20x96xf32> to vector<20x32xf32>
    %36 = vector.extract_strided_slice %33 {offsets = [0, 0], sizes = [20, 8], strides = [1, 1]} : vector<20x32xf32> to vector<20x8xf32>
    %37 = vector.extract_strided_slice %34 {offsets = [0, 0], sizes = [20, 8], strides = [1, 1]} : vector<20x32xf32> to vector<20x8xf32>
    %38 = vector.extract_strided_slice %35 {offsets = [0, 0], sizes = [20, 8], strides = [1, 1]} : vector<20x32xf32> to vector<20x8xf32>
    %39 = arith.mulf %36, %14 : vector<20x8xf32>
    %40 = vector.extract_strided_slice %36 {offsets = [0, 4], sizes = [20, 4], strides = [1, 1]} : vector<20x8xf32> to vector<20x4xf32>
    %cst_21 = arith.constant 0.000000e+00 : f32
    %41 = vector.broadcast %cst_21 : f32 to vector<20x4xf32>
    %42 = arith.subf %41, %40 : vector<20x4xf32>
    %43 = vector.extract_strided_slice %36 {offsets = [0, 0], sizes = [20, 4], strides = [1, 1]} : vector<20x8xf32> to vector<20x4xf32>
    %44 = tpu.concatenate %42, %43 in 1 : vector<20x4xf32>, vector<20x4xf32> -> vector<20x8xf32>
    %45 = arith.mulf %44, %15 : vector<20x8xf32>
    %46 = arith.addf %39, %45 : vector<20x8xf32>
    %47 = arith.mulf %37, %14 : vector<20x8xf32>
    %48 = vector.extract_strided_slice %37 {offsets = [0, 4], sizes = [20, 4], strides = [1, 1]} : vector<20x8xf32> to vector<20x4xf32>
    %cst_22 = arith.constant 0.000000e+00 : f32
    %49 = vector.broadcast %cst_22 : f32 to vector<20x4xf32>
    %50 = arith.subf %49, %48 : vector<20x4xf32>
    %51 = vector.extract_strided_slice %37 {offsets = [0, 0], sizes = [20, 4], strides = [1, 1]} : vector<20x8xf32> to vector<20x4xf32>
    %52 = tpu.concatenate %50, %51 in 1 : vector<20x4xf32>, vector<20x4xf32> -> vector<20x8xf32>
    %53 = arith.mulf %52, %15 : vector<20x8xf32>
    %54 = arith.addf %47, %53 : vector<20x8xf32>
    %cst_23 = arith.constant 0.353553385 : f32
    %55 = vector.broadcast %cst_23 : f32 to vector<20x8xf32>
    %56 = arith.mulf %46, %55 : vector<20x8xf32>
    %cst_24 = arith.constant dense<0.000000e+00> : vector<20x20xf32>
    %57 = tpu.matmul %56, %54, %cst_24 {dimension_numbers = #tpu.dot_dimension_numbers<[1], [1], [0], [0], [0, 0, 1, 0], [], []>} : vector<20x8xf32>, vector<20x8xf32>, vector<20x20xf32> -> vector<20x20xf32>
    %58 = arith.addf %57, %13 : vector<20x20xf32>
    %cst_25 = arith.constant dense<0xFF800000> : vector<20xf32>
    %59 = vector.multi_reduction <maximumf>, %58, %cst_25 [1] : vector<20x20xf32> to vector<20xf32>
    %60 = vector.shape_cast %59 : vector<20xf32> to vector<20x1xf32>
    %61 = vector.broadcast %60 : vector<20x1xf32> to vector<20x20xf32>
    %62 = arith.subf %58, %61 : vector<20x20xf32>
    %63 = math.exp %62 : vector<20x20xf32>
    %cst_26 = arith.constant dense<0.000000e+00> : vector<20xf32>
    %64 = vector.multi_reduction <add>, %63, %cst_26 [1] : vector<20x20xf32> to vector<20xf32>
    %65 = vector.shape_cast %64 : vector<20xf32> to vector<20x1xf32>
    %66 = tpu.reciprocal %65 {approx = true} : vector<20x1xf32> -> vector<20x1xf32>
    %67 = vector.broadcast %66 : vector<20x1xf32> to vector<20x20xf32>
    %68 = arith.mulf %63, %67 : vector<20x20xf32>
    %cst_27 = arith.constant dense<0.000000e+00> : vector<20x8xf32>
    %69 = tpu.matmul %68, %38, %cst_27 {dimension_numbers = #tpu.dot_dimension_numbers<[1], [0], [0], [1], [0, 0, 1, 1], [], []>} : vector<20x20xf32>, vector<20x8xf32>, vector<20x8xf32> -> vector<20x8xf32>
    %70 = vector.extract_strided_slice %33 {offsets = [0, 8], sizes = [20, 8], strides = [1, 1]} : vector<20x32xf32> to vector<20x8xf32>
    %71 = vector.extract_strided_slice %34 {offsets = [0, 8], sizes = [20, 8], strides = [1, 1]} : vector<20x32xf32> to vector<20x8xf32>
    %72 = vector.extract_strided_slice %35 {offsets = [0, 8], sizes = [20, 8], strides = [1, 1]} : vector<20x32xf32> to vector<20x8xf32>
    %73 = arith.mulf %70, %14 : vector<20x8xf32>
    %74 = vector.extract_strided_slice %70 {offsets = [0, 4], sizes = [20, 4], strides = [1, 1]} : vector<20x8xf32> to vector<20x4xf32>
    %cst_28 = arith.constant 0.000000e+00 : f32
    %75 = vector.broadcast %cst_28 : f32 to vector<20x4xf32>
    %76 = arith.subf %75, %74 : vector<20x4xf32>
    %77 = vector.extract_strided_slice %70 {offsets = [0, 0], sizes = [20, 4], strides = [1, 1]} : vector<20x8xf32> to vector<20x4xf32>
    %78 = tpu.concatenate %76, %77 in 1 : vector<20x4xf32>, vector<20x4xf32> -> vector<20x8xf32>
    %79 = arith.mulf %78, %15 : vector<20x8xf32>
    %80 = arith.addf %73, %79 : vector<20x8xf32>
    %81 = arith.mulf %71, %14 : vector<20x8xf32>
    %82 = vector.extract_strided_slice %71 {offsets = [0, 4], sizes = [20, 4], strides = [1, 1]} : vector<20x8xf32> to vector<20x4xf32>
    %cst_29 = arith.constant 0.000000e+00 : f32
    %83 = vector.broadcast %cst_29 : f32 to vector<20x4xf32>
    %84 = arith.subf %83, %82 : vector<20x4xf32>
    %85 = vector.extract_strided_slice %71 {offsets = [0, 0], sizes = [20, 4], strides = [1, 1]} : vector<20x8xf32> to vector<20x4xf32>
    %86 = tpu.concatenate %84, %85 in 1 : vector<20x4xf32>, vector<20x4xf32> -> vector<20x8xf32>
    %87 = arith.mulf %86, %15 : vector<20x8xf32>
    %88 = arith.addf %81, %87 : vector<20x8xf32>
    %cst_30 = arith.constant 0.353553385 : f32
    %89 = vector.broadcast %cst_30 : f32 to vector<20x8xf32>
    %90 = arith.mulf %80, %89 : vector<20x8xf32>
    %cst_31 = arith.constant dense<0.000000e+00> : vector<20x20xf32>
    %91 = tpu.matmul %90, %88, %cst_31 {dimension_numbers = #tpu.dot_dimension_numbers<[1], [1], [0], [0], [0, 0, 1, 0], [], []>} : vector<20x8xf32>, vector<20x8xf32>, vector<20x20xf32> -> vector<20x20xf32>
    %92 = arith.addf %91, %13 : vector<20x20xf32>
    %cst_32 = arith.constant dense<0xFF800000> : vector<20xf32>
    %93 = vector.multi_reduction <maximumf>, %92, %cst_32 [1] : vector<20x20xf32> to vector<20xf32>
    %94 = vector.shape_cast %93 : vector<20xf32> to vector<20x1xf32>
    %95 = vector.broadcast %94 : vector<20x1xf32> to vector<20x20xf32>
    %96 = arith.subf %92, %95 : vector<20x20xf32>
    %97 = math.exp %96 : vector<20x20xf32>
    %cst_33 = arith.constant dense<0.000000e+00> : vector<20xf32>
    %98 = vector.multi_reduction <add>, %97, %cst_33 [1] : vector<20x20xf32> to vector<20xf32>
    %99 = vector.shape_cast %98 : vector<20xf32> to vector<20x1xf32>
    %100 = tpu.reciprocal %99 {approx = true} : vector<20x1xf32> -> vector<20x1xf32>
    %101 = vector.broadcast %100 : vector<20x1xf32> to vector<20x20xf32>
    %102 = arith.mulf %97, %101 : vector<20x20xf32>
    %cst_34 = arith.constant dense<0.000000e+00> : vector<20x8xf32>
    %103 = tpu.matmul %102, %72, %cst_34 {dimension_numbers = #tpu.dot_dimension_numbers<[1], [0], [0], [1], [0, 0, 1, 1], [], []>} : vector<20x20xf32>, vector<20x8xf32>, vector<20x8xf32> -> vector<20x8xf32>
    %104 = vector.extract_strided_slice %33 {offsets = [0, 16], sizes = [20, 8], strides = [1, 1]} : vector<20x32xf32> to vector<20x8xf32>
    %105 = vector.extract_strided_slice %34 {offsets = [0, 16], sizes = [20, 8], strides = [1, 1]} : vector<20x32xf32> to vector<20x8xf32>
    %106 = vector.extract_strided_slice %35 {offsets = [0, 16], sizes = [20, 8], strides = [1, 1]} : vector<20x32xf32> to vector<20x8xf32>
    %107 = arith.mulf %104, %14 : vector<20x8xf32>
    %108 = vector.extract_strided_slice %104 {offsets = [0, 4], sizes = [20, 4], strides = [1, 1]} : vector<20x8xf32> to vector<20x4xf32>
    %cst_35 = arith.constant 0.000000e+00 : f32
    %109 = vector.broadcast %cst_35 : f32 to vector<20x4xf32>
    %110 = arith.subf %109, %108 : vector<20x4xf32>
    %111 = vector.extract_strided_slice %104 {offsets = [0, 0], sizes = [20, 4], strides = [1, 1]} : vector<20x8xf32> to vector<20x4xf32>
    %112 = tpu.concatenate %110, %111 in 1 : vector<20x4xf32>, vector<20x4xf32> -> vector<20x8xf32>
    %113 = arith.mulf %112, %15 : vector<20x8xf32>
    %114 = arith.addf %107, %113 : vector<20x8xf32>
    %115 = arith.mulf %105, %14 : vector<20x8xf32>
    %116 = vector.extract_strided_slice %105 {offsets = [0, 4], sizes = [20, 4], strides = [1, 1]} : vector<20x8xf32> to vector<20x4xf32>
    %cst_36 = arith.constant 0.000000e+00 : f32
    %117 = vector.broadcast %cst_36 : f32 to vector<20x4xf32>
    %118 = arith.subf %117, %116 : vector<20x4xf32>
    %119 = vector.extract_strided_slice %105 {offsets = [0, 0], sizes = [20, 4], strides = [1, 1]} : vector<20x8xf32> to vector<20x4xf32>
    %120 = tpu.concatenate %118, %119 in 1 : vector<20x4xf32>, vector<20x4xf32> -> vector<20x8xf32>
    %121 = arith.mulf %120, %15 : vector<20x8xf32>
    %122 = arith.addf %115, %121 : vector<20x8xf32>
    %cst_37 = arith.constant 0.353553385 : f32
    %123 = vector.broadcast %cst_37 : f32 to vector<20x8xf32>
    %124 = arith.mulf %114, %123 : vector<20x8xf32>
    %cst_38 = arith.constant dense<0.000000e+00> : vector<20x20xf32>
    %125 = tpu.matmul %124, %122, %cst_38 {dimension_numbers = #tpu.dot_dimension_numbers<[1], [1], [0], [0], [0, 0, 1, 0], [], []>} : vector<20x8xf32>, vector<20x8xf32>, vector<20x20xf32> -> vector<20x20xf32>
    %126 = arith.addf %125, %13 : vector<20x20xf32>
    %cst_39 = arith.constant dense<0xFF800000> : vector<20xf32>
    %127 = vector.multi_reduction <maximumf>, %126, %cst_39 [1] : vector<20x20xf32> to vector<20xf32>
    %128 = vector.shape_cast %127 : vector<20xf32> to vector<20x1xf32>
    %129 = vector.broadcast %128 : vector<20x1xf32> to vector<20x20xf32>
    %130 = arith.subf %126, %129 : vector<20x20xf32>
    %131 = math.exp %130 : vector<20x20xf32>
    %cst_40 = arith.constant dense<0.000000e+00> : vector<20xf32>
    %132 = vector.multi_reduction <add>, %131, %cst_40 [1] : vector<20x20xf32> to vector<20xf32>
    %133 = vector.shape_cast %132 : vector<20xf32> to vector<20x1xf32>
    %134 = tpu.reciprocal %133 {approx = true} : vector<20x1xf32> -> vector<20x1xf32>
    %135 = vector.broadcast %134 : vector<20x1xf32> to vector<20x20xf32>
    %136 = arith.mulf %131, %135 : vector<20x20xf32>
    %cst_41 = arith.constant dense<0.000000e+00> : vector<20x8xf32>
    %137 = tpu.matmul %136, %106, %cst_41 {dimension_numbers = #tpu.dot_dimension_numbers<[1], [0], [0], [1], [0, 0, 1, 1], [], []>} : vector<20x20xf32>, vector<20x8xf32>, vector<20x8xf32> -> vector<20x8xf32>
    %138 = vector.extract_strided_slice %33 {offsets = [0, 24], sizes = [20, 8], strides = [1, 1]} : vector<20x32xf32> to vector<20x8xf32>
    %139 = vector.extract_strided_slice %34 {offsets = [0, 24], sizes = [20, 8], strides = [1, 1]} : vector<20x32xf32> to vector<20x8xf32>
    %140 = vector.extract_strided_slice %35 {offsets = [0, 24], sizes = [20, 8], strides = [1, 1]} : vector<20x32xf32> to vector<20x8xf32>
    %141 = arith.mulf %138, %14 : vector<20x8xf32>
    %142 = vector.extract_strided_slice %138 {offsets = [0, 4], sizes = [20, 4], strides = [1, 1]} : vector<20x8xf32> to vector<20x4xf32>
    %cst_42 = arith.constant 0.000000e+00 : f32
    %143 = vector.broadcast %cst_42 : f32 to vector<20x4xf32>
    %144 = arith.subf %143, %142 : vector<20x4xf32>
    %145 = vector.extract_strided_slice %138 {offsets = [0, 0], sizes = [20, 4], strides = [1, 1]} : vector<20x8xf32> to vector<20x4xf32>
    %146 = tpu.concatenate %144, %145 in 1 : vector<20x4xf32>, vector<20x4xf32> -> vector<20x8xf32>
    %147 = arith.mulf %146, %15 : vector<20x8xf32>
    %148 = arith.addf %141, %147 : vector<20x8xf32>
    %149 = arith.mulf %139, %14 : vector<20x8xf32>
    %150 = vector.extract_strided_slice %139 {offsets = [0, 4], sizes = [20, 4], strides = [1, 1]} : vector<20x8xf32> to vector<20x4xf32>
    %cst_43 = arith.constant 0.000000e+00 : f32
    %151 = vector.broadcast %cst_43 : f32 to vector<20x4xf32>
    %152 = arith.subf %151, %150 : vector<20x4xf32>
    %153 = vector.extract_strided_slice %139 {offsets = [0, 0], sizes = [20, 4], strides = [1, 1]} : vector<20x8xf32> to vector<20x4xf32>
    %154 = tpu.concatenate %152, %153 in 1 : vector<20x4xf32>, vector<20x4xf32> -> vector<20x8xf32>
    %155 = arith.mulf %154, %15 : vector<20x8xf32>
    %156 = arith.addf %149, %155 : vector<20x8xf32>
    %cst_44 = arith.constant 0.353553385 : f32
    %157 = vector.broadcast %cst_44 : f32 to vector<20x8xf32>
    %158 = arith.mulf %148, %157 : vector<20x8xf32>
    %cst_45 = arith.constant dense<0.000000e+00> : vector<20x20xf32>
    %159 = tpu.matmul %158, %156, %cst_45 {dimension_numbers = #tpu.dot_dimension_numbers<[1], [1], [0], [0], [0, 0, 1, 0], [], []>} : vector<20x8xf32>, vector<20x8xf32>, vector<20x20xf32> -> vector<20x20xf32>
    %160 = arith.addf %159, %13 : vector<20x20xf32>
    %cst_46 = arith.constant dense<0xFF800000> : vector<20xf32>
    %161 = vector.multi_reduction <maximumf>, %160, %cst_46 [1] : vector<20x20xf32> to vector<20xf32>
    %162 = vector.shape_cast %161 : vector<20xf32> to vector<20x1xf32>
    %163 = vector.broadcast %162 : vector<20x1xf32> to vector<20x20xf32>
    %164 = arith.subf %160, %163 : vector<20x20xf32>
    %165 = math.exp %164 : vector<20x20xf32>
    %cst_47 = arith.constant dense<0.000000e+00> : vector<20xf32>
    %166 = vector.multi_reduction <add>, %165, %cst_47 [1] : vector<20x20xf32> to vector<20xf32>
    %167 = vector.shape_cast %166 : vector<20xf32> to vector<20x1xf32>
    %168 = tpu.reciprocal %167 {approx = true} : vector<20x1xf32> -> vector<20x1xf32>
    %169 = vector.broadcast %168 : vector<20x1xf32> to vector<20x20xf32>
    %170 = arith.mulf %165, %169 : vector<20x20xf32>
    %cst_48 = arith.constant dense<0.000000e+00> : vector<20x8xf32>
    %171 = tpu.matmul %170, %140, %cst_48 {dimension_numbers = #tpu.dot_dimension_numbers<[1], [0], [0], [1], [0, 0, 1, 1], [], []>} : vector<20x20xf32>, vector<20x8xf32>, vector<20x8xf32> -> vector<20x8xf32>
    %172 = tpu.concatenate %69, %103, %137, %171 in 1 : vector<20x8xf32>, vector<20x8xf32>, vector<20x8xf32>, vector<20x8xf32> -> vector<20x32xf32>
    %c0_49 = arith.constant 0 : index
    %c0_50 = arith.constant 0 : index
    %c0_51 = arith.constant 0 : index
    %173 = vector.load %arg7[%c0_49, %c0_50, %c0_51] : memref<2x32x32xf32, #tpu.memory_space<vmem>>, vector<1x32x32xf32>
    %174 = vector.shape_cast %173 : vector<1x32x32xf32> to vector<32x32xf32>
    %cst_52 = arith.constant dense<0.000000e+00> : vector<20x32xf32>
    %175 = tpu.matmul %172, %174, %cst_52 {dimension_numbers = #tpu.dot_dimension_numbers<[1], [0], [0], [1], [0, 0, 1, 1], [], []>} : vector<20x32xf32>, vector<32x32xf32>, vector<20x32xf32> -> vector<20x32xf32>
    %176 = arith.addf %1, %175 : vector<20x32xf32>
    %c0_53 = arith.constant 0 : index
    %c0_54 = arith.constant 0 : index
    %c0_55 = arith.constant 0 : index
    %177 = vector.load %arg8[%c0_53, %c0_54, %c0_55] : memref<2x1x32xf32, #tpu.memory_space<vmem>>, vector<1x1x32xf32>
    %178 = vector.shape_cast %177 : vector<1x1x32xf32> to vector<1x32xf32>
    %179 = arith.mulf %176, %176 : vector<20x32xf32>
    %cst_56 = arith.constant dense<0.000000e+00> : vector<20xf32>
    %180 = vector.multi_reduction <add>, %179, %cst_56 [1] : vector<20x32xf32> to vector<20xf32>
    %181 = vector.shape_cast %180 : vector<20xf32> to vector<20x1xf32>
    %cst_57 = arith.constant 3.200000e+01 : f32
    %182 = vector.broadcast %cst_57 : f32 to vector<20x1xf32>
    %183 = arith.divf %181, %182 : vector<20x1xf32>
    %cst_58 = arith.constant 9.99999997E-7 : f32
    %184 = vector.broadcast %cst_58 : f32 to vector<20x1xf32>
    %185 = arith.addf %183, %184 : vector<20x1xf32>
    %186 = math.rsqrt %185 : vector<20x1xf32>
    %187 = vector.broadcast %186 : vector<20x1xf32> to vector<20x32xf32>
    %188 = arith.mulf %176, %187 : vector<20x32xf32>
    %189 = vector.broadcast %178 : vector<1x32xf32> to vector<20x32xf32>
    %190 = arith.mulf %188, %189 : vector<20x32xf32>
    %c0_59 = arith.constant 0 : index
    %c0_60 = arith.constant 0 : index
    %c0_61 = arith.constant 0 : index
    %191 = vector.load %arg9[%c0_59, %c0_60, %c0_61] : memref<2x32x128xf32, #tpu.memory_space<vmem>>, vector<1x32x128xf32>
    %192 = vector.shape_cast %191 : vector<1x32x128xf32> to vector<32x128xf32>
    %cst_62 = arith.constant dense<0.000000e+00> : vector<20x128xf32>
    %193 = tpu.matmul %190, %192, %cst_62 {dimension_numbers = #tpu.dot_dimension_numbers<[1], [0], [0], [1], [0, 0, 1, 1], [], []>} : vector<20x32xf32>, vector<32x128xf32>, vector<20x128xf32> -> vector<20x128xf32>
    %194 = vector.extract_strided_slice %193 {offsets = [0, 0], sizes = [20, 64], strides = [1, 1]} : vector<20x128xf32> to vector<20x64xf32>
    %195 = vector.extract_strided_slice %193 {offsets = [0, 64], sizes = [20, 64], strides = [1, 1]} : vector<20x128xf32> to vector<20x64xf32>
    %196 = arith.negf %194 : vector<20x64xf32>
    %197 = math.exp %196 : vector<20x64xf32>
    %cst_63 = arith.constant 1.000000e+00 : f32
    %198 = vector.broadcast %cst_63 : f32 to vector<20x64xf32>
    %199 = arith.addf %198, %197 : vector<20x64xf32>
    %200 = arith.divf %198, %199 : vector<20x64xf32>
    %201 = arith.mulf %194, %200 : vector<20x64xf32>
    %202 = arith.mulf %201, %195 : vector<20x64xf32>
    %c0_64 = arith.constant 0 : index
    %c0_65 = arith.constant 0 : index
    %c0_66 = arith.constant 0 : index
    %203 = vector.load %arg10[%c0_64, %c0_65, %c0_66] : memref<2x64x32xf32, #tpu.memory_space<vmem>>, vector<1x64x32xf32>
    %204 = vector.shape_cast %203 : vector<1x64x32xf32> to vector<64x32xf32>
    %cst_67 = arith.constant dense<0.000000e+00> : vector<20x32xf32>
    %205 = tpu.matmul %202, %204, %cst_67 {dimension_numbers = #tpu.dot_dimension_numbers<[1], [0], [0], [1], [0, 0, 1, 1], [], []>} : vector<20x64xf32>, vector<64x32xf32>, vector<20x32xf32> -> vector<20x32xf32>
    %206 = arith.addf %176, %205 : vector<20x32xf32>
    %c1 = arith.constant 1 : index
    %c0_68 = arith.constant 0 : index
    %c0_69 = arith.constant 0 : index
    %207 = vector.load %arg5[%c1, %c0_68, %c0_69] : memref<2x1x32xf32, #tpu.memory_space<vmem>>, vector<1x1x32xf32>
    %208 = vector.shape_cast %207 : vector<1x1x32xf32> to vector<1x32xf32>
    %209 = arith.mulf %206, %206 : vector<20x32xf32>
    %cst_70 = arith.constant dense<0.000000e+00> : vector<20xf32>
    %210 = vector.multi_reduction <add>, %209, %cst_70 [1] : vector<20x32xf32> to vector<20xf32>
    %211 = vector.shape_cast %210 : vector<20xf32> to vector<20x1xf32>
    %cst_71 = arith.constant 3.200000e+01 : f32
    %212 = vector.broadcast %cst_71 : f32 to vector<20x1xf32>
    %213 = arith.divf %211, %212 : vector<20x1xf32>
    %cst_72 = arith.constant 9.99999997E-7 : f32
    %214 = vector.broadcast %cst_72 : f32 to vector<20x1xf32>
    %215 = arith.addf %213, %214 : vector<20x1xf32>
    %216 = math.rsqrt %215 : vector<20x1xf32>
    %217 = vector.broadcast %216 : vector<20x1xf32> to vector<20x32xf32>
    %218 = arith.mulf %206, %217 : vector<20x32xf32>
    %219 = vector.broadcast %208 : vector<1x32xf32> to vector<20x32xf32>
    %220 = arith.mulf %218, %219 : vector<20x32xf32>
    %c1_73 = arith.constant 1 : index
    %c0_74 = arith.constant 0 : index
    %c0_75 = arith.constant 0 : index
    %221 = vector.load %arg6[%c1_73, %c0_74, %c0_75] : memref<2x32x96xf32, #tpu.memory_space<vmem>>, vector<1x32x96xf32>
    %222 = vector.shape_cast %221 : vector<1x32x96xf32> to vector<32x96xf32>
    %cst_76 = arith.constant dense<0.000000e+00> : vector<20x96xf32>
    %223 = tpu.matmul %220, %222, %cst_76 {dimension_numbers = #tpu.dot_dimension_numbers<[1], [0], [0], [1], [0, 0, 1, 1], [], []>} : vector<20x32xf32>, vector<32x96xf32>, vector<20x96xf32> -> vector<20x96xf32>
    %224 = vector.extract_strided_slice %223 {offsets = [0, 0], sizes = [20, 32], strides = [1, 1]} : vector<20x96xf32> to vector<20x32xf32>
    %225 = vector.extract_strided_slice %223 {offsets = [0, 32], sizes = [20, 32], strides = [1, 1]} : vector<20x96xf32> to vector<20x32xf32>
    %226 = vector.extract_strided_slice %223 {offsets = [0, 64], sizes = [20, 32], strides = [1, 1]} : vector<20x96xf32> to vector<20x32xf32>
    %227 = vector.extract_strided_slice %224 {offsets = [0, 0], sizes = [20, 8], strides = [1, 1]} : vector<20x32xf32> to vector<20x8xf32>
    %228 = vector.extract_strided_slice %225 {offsets = [0, 0], sizes = [20, 8], strides = [1, 1]} : vector<20x32xf32> to vector<20x8xf32>
    %229 = vector.extract_strided_slice %226 {offsets = [0, 0], sizes = [20, 8], strides = [1, 1]} : vector<20x32xf32> to vector<20x8xf32>
    %230 = arith.mulf %227, %14 : vector<20x8xf32>
    %231 = vector.extract_strided_slice %227 {offsets = [0, 4], sizes = [20, 4], strides = [1, 1]} : vector<20x8xf32> to vector<20x4xf32>
    %cst_77 = arith.constant 0.000000e+00 : f32
    %232 = vector.broadcast %cst_77 : f32 to vector<20x4xf32>
    %233 = arith.subf %232, %231 : vector<20x4xf32>
    %234 = vector.extract_strided_slice %227 {offsets = [0, 0], sizes = [20, 4], strides = [1, 1]} : vector<20x8xf32> to vector<20x4xf32>
    %235 = tpu.concatenate %233, %234 in 1 : vector<20x4xf32>, vector<20x4xf32> -> vector<20x8xf32>
    %236 = arith.mulf %235, %15 : vector<20x8xf32>
    %237 = arith.addf %230, %236 : vector<20x8xf32>
    %238 = arith.mulf %228, %14 : vector<20x8xf32>
    %239 = vector.extract_strided_slice %228 {offsets = [0, 4], sizes = [20, 4], strides = [1, 1]} : vector<20x8xf32> to vector<20x4xf32>
    %cst_78 = arith.constant 0.000000e+00 : f32
    %240 = vector.broadcast %cst_78 : f32 to vector<20x4xf32>
    %241 = arith.subf %240, %239 : vector<20x4xf32>
    %242 = vector.extract_strided_slice %228 {offsets = [0, 0], sizes = [20, 4], strides = [1, 1]} : vector<20x8xf32> to vector<20x4xf32>
    %243 = tpu.concatenate %241, %242 in 1 : vector<20x4xf32>, vector<20x4xf32> -> vector<20x8xf32>
    %244 = arith.mulf %243, %15 : vector<20x8xf32>
    %245 = arith.addf %238, %244 : vector<20x8xf32>
    %cst_79 = arith.constant 0.353553385 : f32
    %246 = vector.broadcast %cst_79 : f32 to vector<20x8xf32>
    %247 = arith.mulf %237, %246 : vector<20x8xf32>
    %cst_80 = arith.constant dense<0.000000e+00> : vector<20x20xf32>
    %248 = tpu.matmul %247, %245, %cst_80 {dimension_numbers = #tpu.dot_dimension_numbers<[1], [1], [0], [0], [0, 0, 1, 0], [], []>} : vector<20x8xf32>, vector<20x8xf32>, vector<20x20xf32> -> vector<20x20xf32>
    %249 = arith.addf %248, %13 : vector<20x20xf32>
    %cst_81 = arith.constant dense<0xFF800000> : vector<20xf32>
    %250 = vector.multi_reduction <maximumf>, %249, %cst_81 [1] : vector<20x20xf32> to vector<20xf32>
    %251 = vector.shape_cast %250 : vector<20xf32> to vector<20x1xf32>
    %252 = vector.broadcast %251 : vector<20x1xf32> to vector<20x20xf32>
    %253 = arith.subf %249, %252 : vector<20x20xf32>
    %254 = math.exp %253 : vector<20x20xf32>
    %cst_82 = arith.constant dense<0.000000e+00> : vector<20xf32>
    %255 = vector.multi_reduction <add>, %254, %cst_82 [1] : vector<20x20xf32> to vector<20xf32>
    %256 = vector.shape_cast %255 : vector<20xf32> to vector<20x1xf32>
    %257 = tpu.reciprocal %256 {approx = true} : vector<20x1xf32> -> vector<20x1xf32>
    %258 = vector.broadcast %257 : vector<20x1xf32> to vector<20x20xf32>
    %259 = arith.mulf %254, %258 : vector<20x20xf32>
    %cst_83 = arith.constant dense<0.000000e+00> : vector<20x8xf32>
    %260 = tpu.matmul %259, %229, %cst_83 {dimension_numbers = #tpu.dot_dimension_numbers<[1], [0], [0], [1], [0, 0, 1, 1], [], []>} : vector<20x20xf32>, vector<20x8xf32>, vector<20x8xf32> -> vector<20x8xf32>
    %261 = vector.extract_strided_slice %224 {offsets = [0, 8], sizes = [20, 8], strides = [1, 1]} : vector<20x32xf32> to vector<20x8xf32>
    %262 = vector.extract_strided_slice %225 {offsets = [0, 8], sizes = [20, 8], strides = [1, 1]} : vector<20x32xf32> to vector<20x8xf32>
    %263 = vector.extract_strided_slice %226 {offsets = [0, 8], sizes = [20, 8], strides = [1, 1]} : vector<20x32xf32> to vector<20x8xf32>
    %264 = arith.mulf %261, %14 : vector<20x8xf32>
    %265 = vector.extract_strided_slice %261 {offsets = [0, 4], sizes = [20, 4], strides = [1, 1]} : vector<20x8xf32> to vector<20x4xf32>
    %cst_84 = arith.constant 0.000000e+00 : f32
    %266 = vector.broadcast %cst_84 : f32 to vector<20x4xf32>
    %267 = arith.subf %266, %265 : vector<20x4xf32>
    %268 = vector.extract_strided_slice %261 {offsets = [0, 0], sizes = [20, 4], strides = [1, 1]} : vector<20x8xf32> to vector<20x4xf32>
    %269 = tpu.concatenate %267, %268 in 1 : vector<20x4xf32>, vector<20x4xf32> -> vector<20x8xf32>
    %270 = arith.mulf %269, %15 : vector<20x8xf32>
    %271 = arith.addf %264, %270 : vector<20x8xf32>
    %272 = arith.mulf %262, %14 : vector<20x8xf32>
    %273 = vector.extract_strided_slice %262 {offsets = [0, 4], sizes = [20, 4], strides = [1, 1]} : vector<20x8xf32> to vector<20x4xf32>
    %cst_85 = arith.constant 0.000000e+00 : f32
    %274 = vector.broadcast %cst_85 : f32 to vector<20x4xf32>
    %275 = arith.subf %274, %273 : vector<20x4xf32>
    %276 = vector.extract_strided_slice %262 {offsets = [0, 0], sizes = [20, 4], strides = [1, 1]} : vector<20x8xf32> to vector<20x4xf32>
    %277 = tpu.concatenate %275, %276 in 1 : vector<20x4xf32>, vector<20x4xf32> -> vector<20x8xf32>
    %278 = arith.mulf %277, %15 : vector<20x8xf32>
    %279 = arith.addf %272, %278 : vector<20x8xf32>
    %cst_86 = arith.constant 0.353553385 : f32
    %280 = vector.broadcast %cst_86 : f32 to vector<20x8xf32>
    %281 = arith.mulf %271, %280 : vector<20x8xf32>
    %cst_87 = arith.constant dense<0.000000e+00> : vector<20x20xf32>
    %282 = tpu.matmul %281, %279, %cst_87 {dimension_numbers = #tpu.dot_dimension_numbers<[1], [1], [0], [0], [0, 0, 1, 0], [], []>} : vector<20x8xf32>, vector<20x8xf32>, vector<20x20xf32> -> vector<20x20xf32>
    %283 = arith.addf %282, %13 : vector<20x20xf32>
    %cst_88 = arith.constant dense<0xFF800000> : vector<20xf32>
    %284 = vector.multi_reduction <maximumf>, %283, %cst_88 [1] : vector<20x20xf32> to vector<20xf32>
    %285 = vector.shape_cast %284 : vector<20xf32> to vector<20x1xf32>
    %286 = vector.broadcast %285 : vector<20x1xf32> to vector<20x20xf32>
    %287 = arith.subf %283, %286 : vector<20x20xf32>
    %288 = math.exp %287 : vector<20x20xf32>
    %cst_89 = arith.constant dense<0.000000e+00> : vector<20xf32>
    %289 = vector.multi_reduction <add>, %288, %cst_89 [1] : vector<20x20xf32> to vector<20xf32>
    %290 = vector.shape_cast %289 : vector<20xf32> to vector<20x1xf32>
    %291 = tpu.reciprocal %290 {approx = true} : vector<20x1xf32> -> vector<20x1xf32>
    %292 = vector.broadcast %291 : vector<20x1xf32> to vector<20x20xf32>
    %293 = arith.mulf %288, %292 : vector<20x20xf32>
    %cst_90 = arith.constant dense<0.000000e+00> : vector<20x8xf32>
    %294 = tpu.matmul %293, %263, %cst_90 {dimension_numbers = #tpu.dot_dimension_numbers<[1], [0], [0], [1], [0, 0, 1, 1], [], []>} : vector<20x20xf32>, vector<20x8xf32>, vector<20x8xf32> -> vector<20x8xf32>
    %295 = vector.extract_strided_slice %224 {offsets = [0, 16], sizes = [20, 8], strides = [1, 1]} : vector<20x32xf32> to vector<20x8xf32>
    %296 = vector.extract_strided_slice %225 {offsets = [0, 16], sizes = [20, 8], strides = [1, 1]} : vector<20x32xf32> to vector<20x8xf32>
    %297 = vector.extract_strided_slice %226 {offsets = [0, 16], sizes = [20, 8], strides = [1, 1]} : vector<20x32xf32> to vector<20x8xf32>
    %298 = arith.mulf %295, %14 : vector<20x8xf32>
    %299 = vector.extract_strided_slice %295 {offsets = [0, 4], sizes = [20, 4], strides = [1, 1]} : vector<20x8xf32> to vector<20x4xf32>
    %cst_91 = arith.constant 0.000000e+00 : f32
    %300 = vector.broadcast %cst_91 : f32 to vector<20x4xf32>
    %301 = arith.subf %300, %299 : vector<20x4xf32>
    %302 = vector.extract_strided_slice %295 {offsets = [0, 0], sizes = [20, 4], strides = [1, 1]} : vector<20x8xf32> to vector<20x4xf32>
    %303 = tpu.concatenate %301, %302 in 1 : vector<20x4xf32>, vector<20x4xf32> -> vector<20x8xf32>
    %304 = arith.mulf %303, %15 : vector<20x8xf32>
    %305 = arith.addf %298, %304 : vector<20x8xf32>
    %306 = arith.mulf %296, %14 : vector<20x8xf32>
    %307 = vector.extract_strided_slice %296 {offsets = [0, 4], sizes = [20, 4], strides = [1, 1]} : vector<20x8xf32> to vector<20x4xf32>
    %cst_92 = arith.constant 0.000000e+00 : f32
    %308 = vector.broadcast %cst_92 : f32 to vector<20x4xf32>
    %309 = arith.subf %308, %307 : vector<20x4xf32>
    %310 = vector.extract_strided_slice %296 {offsets = [0, 0], sizes = [20, 4], strides = [1, 1]} : vector<20x8xf32> to vector<20x4xf32>
    %311 = tpu.concatenate %309, %310 in 1 : vector<20x4xf32>, vector<20x4xf32> -> vector<20x8xf32>
    %312 = arith.mulf %311, %15 : vector<20x8xf32>
    %313 = arith.addf %306, %312 : vector<20x8xf32>
    %cst_93 = arith.constant 0.353553385 : f32
    %314 = vector.broadcast %cst_93 : f32 to vector<20x8xf32>
    %315 = arith.mulf %305, %314 : vector<20x8xf32>
    %cst_94 = arith.constant dense<0.000000e+00> : vector<20x20xf32>
    %316 = tpu.matmul %315, %313, %cst_94 {dimension_numbers = #tpu.dot_dimension_numbers<[1], [1], [0], [0], [0, 0, 1, 0], [], []>} : vector<20x8xf32>, vector<20x8xf32>, vector<20x20xf32> -> vector<20x20xf32>
    %317 = arith.addf %316, %13 : vector<20x20xf32>
    %cst_95 = arith.constant dense<0xFF800000> : vector<20xf32>
    %318 = vector.multi_reduction <maximumf>, %317, %cst_95 [1] : vector<20x20xf32> to vector<20xf32>
    %319 = vector.shape_cast %318 : vector<20xf32> to vector<20x1xf32>
    %320 = vector.broadcast %319 : vector<20x1xf32> to vector<20x20xf32>
    %321 = arith.subf %317, %320 : vector<20x20xf32>
    %322 = math.exp %321 : vector<20x20xf32>
    %cst_96 = arith.constant dense<0.000000e+00> : vector<20xf32>
    %323 = vector.multi_reduction <add>, %322, %cst_96 [1] : vector<20x20xf32> to vector<20xf32>
    %324 = vector.shape_cast %323 : vector<20xf32> to vector<20x1xf32>
    %325 = tpu.reciprocal %324 {approx = true} : vector<20x1xf32> -> vector<20x1xf32>
    %326 = vector.broadcast %325 : vector<20x1xf32> to vector<20x20xf32>
    %327 = arith.mulf %322, %326 : vector<20x20xf32>
    %cst_97 = arith.constant dense<0.000000e+00> : vector<20x8xf32>
    %328 = tpu.matmul %327, %297, %cst_97 {dimension_numbers = #tpu.dot_dimension_numbers<[1], [0], [0], [1], [0, 0, 1, 1], [], []>} : vector<20x20xf32>, vector<20x8xf32>, vector<20x8xf32> -> vector<20x8xf32>
    %329 = vector.extract_strided_slice %224 {offsets = [0, 24], sizes = [20, 8], strides = [1, 1]} : vector<20x32xf32> to vector<20x8xf32>
    %330 = vector.extract_strided_slice %225 {offsets = [0, 24], sizes = [20, 8], strides = [1, 1]} : vector<20x32xf32> to vector<20x8xf32>
    %331 = vector.extract_strided_slice %226 {offsets = [0, 24], sizes = [20, 8], strides = [1, 1]} : vector<20x32xf32> to vector<20x8xf32>
    %332 = arith.mulf %329, %14 : vector<20x8xf32>
    %333 = vector.extract_strided_slice %329 {offsets = [0, 4], sizes = [20, 4], strides = [1, 1]} : vector<20x8xf32> to vector<20x4xf32>
    %cst_98 = arith.constant 0.000000e+00 : f32
    %334 = vector.broadcast %cst_98 : f32 to vector<20x4xf32>
    %335 = arith.subf %334, %333 : vector<20x4xf32>
    %336 = vector.extract_strided_slice %329 {offsets = [0, 0], sizes = [20, 4], strides = [1, 1]} : vector<20x8xf32> to vector<20x4xf32>
    %337 = tpu.concatenate %335, %336 in 1 : vector<20x4xf32>, vector<20x4xf32> -> vector<20x8xf32>
    %338 = arith.mulf %337, %15 : vector<20x8xf32>
    %339 = arith.addf %332, %338 : vector<20x8xf32>
    %340 = arith.mulf %330, %14 : vector<20x8xf32>
    %341 = vector.extract_strided_slice %330 {offsets = [0, 4], sizes = [20, 4], strides = [1, 1]} : vector<20x8xf32> to vector<20x4xf32>
    %cst_99 = arith.constant 0.000000e+00 : f32
    %342 = vector.broadcast %cst_99 : f32 to vector<20x4xf32>
    %343 = arith.subf %342, %341 : vector<20x4xf32>
    %344 = vector.extract_strided_slice %330 {offsets = [0, 0], sizes = [20, 4], strides = [1, 1]} : vector<20x8xf32> to vector<20x4xf32>
    %345 = tpu.concatenate %343, %344 in 1 : vector<20x4xf32>, vector<20x4xf32> -> vector<20x8xf32>
    %346 = arith.mulf %345, %15 : vector<20x8xf32>
    %347 = arith.addf %340, %346 : vector<20x8xf32>
    %cst_100 = arith.constant 0.353553385 : f32
    %348 = vector.broadcast %cst_100 : f32 to vector<20x8xf32>
    %349 = arith.mulf %339, %348 : vector<20x8xf32>
    %cst_101 = arith.constant dense<0.000000e+00> : vector<20x20xf32>
    %350 = tpu.matmul %349, %347, %cst_101 {dimension_numbers = #tpu.dot_dimension_numbers<[1], [1], [0], [0], [0, 0, 1, 0], [], []>} : vector<20x8xf32>, vector<20x8xf32>, vector<20x20xf32> -> vector<20x20xf32>
    %351 = arith.addf %350, %13 : vector<20x20xf32>
    %cst_102 = arith.constant dense<0xFF800000> : vector<20xf32>
    %352 = vector.multi_reduction <maximumf>, %351, %cst_102 [1] : vector<20x20xf32> to vector<20xf32>
    %353 = vector.shape_cast %352 : vector<20xf32> to vector<20x1xf32>
    %354 = vector.broadcast %353 : vector<20x1xf32> to vector<20x20xf32>
    %355 = arith.subf %351, %354 : vector<20x20xf32>
    %356 = math.exp %355 : vector<20x20xf32>
    %cst_103 = arith.constant dense<0.000000e+00> : vector<20xf32>
    %357 = vector.multi_reduction <add>, %356, %cst_103 [1] : vector<20x20xf32> to vector<20xf32>
    %358 = vector.shape_cast %357 : vector<20xf32> to vector<20x1xf32>
    %359 = tpu.reciprocal %358 {approx = true} : vector<20x1xf32> -> vector<20x1xf32>
    %360 = vector.broadcast %359 : vector<20x1xf32> to vector<20x20xf32>
    %361 = arith.mulf %356, %360 : vector<20x20xf32>
    %cst_104 = arith.constant dense<0.000000e+00> : vector<20x8xf32>
    %362 = tpu.matmul %361, %331, %cst_104 {dimension_numbers = #tpu.dot_dimension_numbers<[1], [0], [0], [1], [0, 0, 1, 1], [], []>} : vector<20x20xf32>, vector<20x8xf32>, vector<20x8xf32> -> vector<20x8xf32>
    %363 = tpu.concatenate %260, %294, %328, %362 in 1 : vector<20x8xf32>, vector<20x8xf32>, vector<20x8xf32>, vector<20x8xf32> -> vector<20x32xf32>
    %c1_105 = arith.constant 1 : index
    %c0_106 = arith.constant 0 : index
    %c0_107 = arith.constant 0 : index
    %364 = vector.load %arg7[%c1_105, %c0_106, %c0_107] : memref<2x32x32xf32, #tpu.memory_space<vmem>>, vector<1x32x32xf32>
    %365 = vector.shape_cast %364 : vector<1x32x32xf32> to vector<32x32xf32>
    %cst_108 = arith.constant dense<0.000000e+00> : vector<20x32xf32>
    %366 = tpu.matmul %363, %365, %cst_108 {dimension_numbers = #tpu.dot_dimension_numbers<[1], [0], [0], [1], [0, 0, 1, 1], [], []>} : vector<20x32xf32>, vector<32x32xf32>, vector<20x32xf32> -> vector<20x32xf32>
    %367 = arith.addf %206, %366 : vector<20x32xf32>
    %c1_109 = arith.constant 1 : index
    %c0_110 = arith.constant 0 : index
    %c0_111 = arith.constant 0 : index
    %368 = vector.load %arg8[%c1_109, %c0_110, %c0_111] : memref<2x1x32xf32, #tpu.memory_space<vmem>>, vector<1x1x32xf32>
    %369 = vector.shape_cast %368 : vector<1x1x32xf32> to vector<1x32xf32>
    %370 = arith.mulf %367, %367 : vector<20x32xf32>
    %cst_112 = arith.constant dense<0.000000e+00> : vector<20xf32>
    %371 = vector.multi_reduction <add>, %370, %cst_112 [1] : vector<20x32xf32> to vector<20xf32>
    %372 = vector.shape_cast %371 : vector<20xf32> to vector<20x1xf32>
    %cst_113 = arith.constant 3.200000e+01 : f32
    %373 = vector.broadcast %cst_113 : f32 to vector<20x1xf32>
    %374 = arith.divf %372, %373 : vector<20x1xf32>
    %cst_114 = arith.constant 9.99999997E-7 : f32
    %375 = vector.broadcast %cst_114 : f32 to vector<20x1xf32>
    %376 = arith.addf %374, %375 : vector<20x1xf32>
    %377 = math.rsqrt %376 : vector<20x1xf32>
    %378 = vector.broadcast %377 : vector<20x1xf32> to vector<20x32xf32>
    %379 = arith.mulf %367, %378 : vector<20x32xf32>
    %380 = vector.broadcast %369 : vector<1x32xf32> to vector<20x32xf32>
    %381 = arith.mulf %379, %380 : vector<20x32xf32>
    %c1_115 = arith.constant 1 : index
    %c0_116 = arith.constant 0 : index
    %c0_117 = arith.constant 0 : index
    %382 = vector.load %arg9[%c1_115, %c0_116, %c0_117] : memref<2x32x128xf32, #tpu.memory_space<vmem>>, vector<1x32x128xf32>
    %383 = vector.shape_cast %382 : vector<1x32x128xf32> to vector<32x128xf32>
    %cst_118 = arith.constant dense<0.000000e+00> : vector<20x128xf32>
    %384 = tpu.matmul %381, %383, %cst_118 {dimension_numbers = #tpu.dot_dimension_numbers<[1], [0], [0], [1], [0, 0, 1, 1], [], []>} : vector<20x32xf32>, vector<32x128xf32>, vector<20x128xf32> -> vector<20x128xf32>
    %385 = vector.extract_strided_slice %384 {offsets = [0, 0], sizes = [20, 64], strides = [1, 1]} : vector<20x128xf32> to vector<20x64xf32>
    %386 = vector.extract_strided_slice %384 {offsets = [0, 64], sizes = [20, 64], strides = [1, 1]} : vector<20x128xf32> to vector<20x64xf32>
    %387 = arith.negf %385 : vector<20x64xf32>
    %388 = math.exp %387 : vector<20x64xf32>
    %cst_119 = arith.constant 1.000000e+00 : f32
    %389 = vector.broadcast %cst_119 : f32 to vector<20x64xf32>
    %390 = arith.addf %389, %388 : vector<20x64xf32>
    %391 = arith.divf %389, %390 : vector<20x64xf32>
    %392 = arith.mulf %385, %391 : vector<20x64xf32>
    %393 = arith.mulf %392, %386 : vector<20x64xf32>
    %c1_120 = arith.constant 1 : index
    %c0_121 = arith.constant 0 : index
    %c0_122 = arith.constant 0 : index
    %394 = vector.load %arg10[%c1_120, %c0_121, %c0_122] : memref<2x64x32xf32, #tpu.memory_space<vmem>>, vector<1x64x32xf32>
    %395 = vector.shape_cast %394 : vector<1x64x32xf32> to vector<64x32xf32>
    %cst_123 = arith.constant dense<0.000000e+00> : vector<20x32xf32>
    %396 = tpu.matmul %393, %395, %cst_123 {dimension_numbers = #tpu.dot_dimension_numbers<[1], [0], [0], [1], [0, 0, 1, 1], [], []>} : vector<20x64xf32>, vector<64x32xf32>, vector<20x32xf32> -> vector<20x32xf32>
    %397 = arith.addf %367, %396 : vector<20x32xf32>
    %c0_124 = arith.constant 0 : index
    %c0_125 = arith.constant 0 : index
    %398 = vector.load %arg11[%c0_124, %c0_125] : memref<1x32xf32, #tpu.memory_space<vmem>>, vector<1x32xf32>
    %399 = arith.mulf %397, %397 : vector<20x32xf32>
    %cst_126 = arith.constant dense<0.000000e+00> : vector<20xf32>
    %400 = vector.multi_reduction <add>, %399, %cst_126 [1] : vector<20x32xf32> to vector<20xf32>
    %401 = vector.shape_cast %400 : vector<20xf32> to vector<20x1xf32>
    %cst_127 = arith.constant 3.200000e+01 : f32
    %402 = vector.broadcast %cst_127 : f32 to vector<20x1xf32>
    %403 = arith.divf %401, %402 : vector<20x1xf32>
    %cst_128 = arith.constant 9.99999997E-7 : f32
    %404 = vector.broadcast %cst_128 : f32 to vector<20x1xf32>
    %405 = arith.addf %403, %404 : vector<20x1xf32>
    %406 = math.rsqrt %405 : vector<20x1xf32>
    %407 = vector.broadcast %406 : vector<20x1xf32> to vector<20x32xf32>
    %408 = arith.mulf %397, %407 : vector<20x32xf32>
    %409 = vector.broadcast %398 : vector<1x32xf32> to vector<20x32xf32>
    %410 = arith.mulf %408, %409 : vector<20x32xf32>
    %c0_129 = arith.constant 0 : index
    %c0_130 = arith.constant 0 : index
    %411 = vector.load %arg12[%c0_129, %c0_130] : memref<32x128xf32, #tpu.memory_space<vmem>>, vector<32x128xf32>
    %cst_131 = arith.constant dense<0.000000e+00> : vector<20x128xf32>
    %412 = tpu.matmul %410, %411, %cst_131 {dimension_numbers = #tpu.dot_dimension_numbers<[1], [0], [0], [1], [0, 0, 1, 1], [], []>} : vector<20x32xf32>, vector<32x128xf32>, vector<20x128xf32> -> vector<20x128xf32>
    %c0_132 = arith.constant 0 : index
    %c0_133 = arith.constant 0 : index
    %c0_134 = arith.constant 0 : index
    %413 = vector.load %arg13[%c0_132, %c0_133, %c0_134] : memref<1x20x128xf32, #tpu.memory_space<vmem>>, vector<1x20x128xf32>
    %414 = vector.shape_cast %413 : vector<1x20x128xf32> to vector<20x128xf32>
    %415 = vector.shape_cast %412 : vector<20x128xf32> to vector<1x20x128xf32>
    tpu.vector_store %arg13[%c0_132, %c0_133, %c0_134], %415 {strides = array<i32>} : memref<1x20x128xf32, #tpu.memory_space<vmem>>, vector<1x20x128xf32>,
    return
  }
  func.func @transform_0(%arg0: i32) -> (i32, i32, i32) {
    %c0_i32 = arith.constant 0 : i32
    %c0_i32_0 = arith.constant 0 : i32
    %c0_i32_1 = arith.constant 0 : i32
    return %arg0, %c0_i32, %c0_i32_0 : i32, i32, i32
  }
  func.func @transform_1(%arg0: i32) -> (i32, i32, i32) {
    %c0_i32 = arith.constant 0 : i32
    %c0_i32_0 = arith.constant 0 : i32
    %c0_i32_1 = arith.constant 0 : i32
    return %arg0, %c0_i32, %c0_i32_0 : i32, i32, i32
  }
  func.func @transform_2(%arg0: i32) -> (i32, i32) {
    %c0_i32 = arith.constant 0 : i32
    %c0_i32_0 = arith.constant 0 : i32
    %c0_i32_1 = arith.constant 0 : i32
    return %c0_i32, %c0_i32_0 : i32, i32
  }
  func.func @transform_3(%arg0: i32) -> (i32, i32) {
    %c0_i32 = arith.constant 0 : i32
    %c0_i32_0 = arith.constant 0 : i32
    %c0_i32_1 = arith.constant 0 : i32
    return %c0_i32, %c0_i32_0 : i32, i32
  }
  func.func @transform_4(%arg0: i32) -> (i32, i32, i32) {
    %c0_i32 = arith.constant 0 : i32
    %c0_i32_0 = arith.constant 0 : i32
    %c0_i32_1 = arith.constant 0 : i32
    %c0_i32_2 = arith.constant 0 : i32
    return %c0_i32, %c0_i32_0, %c0_i32_1 : i32, i32, i32
  }
  func.func @transform_5(%arg0: i32) -> (i32, i32, i32) {
    %c0_i32 = arith.constant 0 : i32
    %c0_i32_0 = arith.constant 0 : i32
    %c0_i32_1 = arith.constant 0 : i32
    %c0_i32_2 = arith.constant 0 : i32
    return %c0_i32, %c0_i32_0, %c0_i32_1 : i32, i32, i32
  }
  func.func @transform_6(%arg0: i32) -> (i32, i32, i32) {
    %c0_i32 = arith.constant 0 : i32
    %c0_i32_0 = arith.constant 0 : i32
    %c0_i32_1 = arith.constant 0 : i32
    %c0_i32_2 = arith.constant 0 : i32
    return %c0_i32, %c0_i32_0, %c0_i32_1 : i32, i32, i32
  }
  func.func @transform_7(%arg0: i32) -> (i32, i32, i32) {
    %c0_i32 = arith.constant 0 : i32
    %c0_i32_0 = arith.constant 0 : i32
    %c0_i32_1 = arith.constant 0 : i32
    %c0_i32_2 = arith.constant 0 : i32
    return %c0_i32, %c0_i32_0, %c0_i32_1 : i32, i32, i32
  }
  func.func @transform_8(%arg0: i32) -> (i32, i32, i32) {
    %c0_i32 = arith.constant 0 : i32
    %c0_i32_0 = arith.constant 0 : i32
    %c0_i32_1 = arith.constant 0 : i32
    %c0_i32_2 = arith.constant 0 : i32
    return %c0_i32, %c0_i32_0, %c0_i32_1 : i32, i32, i32
  }
  func.func @transform_9(%arg0: i32) -> (i32, i32, i32) {
    %c0_i32 = arith.constant 0 : i32
    %c0_i32_0 = arith.constant 0 : i32
    %c0_i32_1 = arith.constant 0 : i32
    %c0_i32_2 = arith.constant 0 : i32
    return %c0_i32, %c0_i32_0, %c0_i32_1 : i32, i32, i32
  }
  func.func @transform_10(%arg0: i32) -> (i32, i32) {
    %c0_i32 = arith.constant 0 : i32
    %c0_i32_0 = arith.constant 0 : i32
    %c0_i32_1 = arith.constant 0 : i32
    return %c0_i32, %c0_i32_0 : i32, i32
  }
  func.func @transform_11(%arg0: i32) -> (i32, i32) {
    %c0_i32 = arith.constant 0 : i32
    %c0_i32_0 = arith.constant 0 : i32
    %c0_i32_1 = arith.constant 0 : i32
    return %c0_i32, %c0_i32_0 : i32, i32
  }
  func.func @transform_12(%arg0: i32) -> (i32, i32, i32) {
    %c0_i32 = arith.constant 0 : i32
    %c0_i32_0 = arith.constant 0 : i32
    %c0_i32_1 = arith.constant 0 : i32
    return %arg0, %c0_i32, %c0_i32_0 : i32, i32, i32
  }
}

</mosaic_0001>

<bundles_post_ra>
// kernel: minigpt4_forward.3
= control target key start
LH: loop header
LB: loop body
LE: loop exit
PB: predicated region body
PF: predicated region fallthrough
CT: control target
= control target key end

     0   :  { %s3517_s27 = smov 0   ;;  %s4075_s0 = inlined_call_operand.vmem [shape: f32[2,5,192], index: 0, kind: input, shape index: {}]   ;;  %s4076_s1 = inlined_call_operand.vmem [shape: f32[192,32], index: 1, kind: input, shape index: {}]   ;;  %s4077_s2 = inlined_call_operand.vmem [shape: f32[1,32], index: 2, kind: input, shape index: {}]   ;;  %s4078_s3 = inlined_call_operand.vmem [shape: f32[5,32], index: 3, kind: input, shape index: {}]   ;;  %s4079_s4 = inlined_call_operand.vmem [shape: f32[2,1,32], index: 4, kind: input, shape index: {}]   ;;  %s4080_s5 = inlined_call_operand.vmem [shape: f32[2,1,32], index: 5, kind: input, shape index: {}]   ;;  %s4081_s6 = inlined_call_operand.vmem [shape: f32[2,32,96], index: 6, kind: input, shape index: {}]   ;;  %s4082_s7 = inlined_call_operand.vmem [shape: f32[2,1,96], index: 7, kind: input, shape index: {}]   ;;  %s4083_s8 = inlined_call_operand.vmem [shape: f32[2,32,32], index: 8, kind: input, shape index: {}]   ;;  %s4084_s9 = inlined_call_operand.vmem [shape: f32[2,1,32], index: 9, kind: input, shape index: {}]   ;;  %s4085_s10 = inlined_call_operand.vmem [shape: f32[2,1,32], index: 10, kind: input, shape index: {}]   ;;  %s4086_s11 = inlined_call_operand.vmem [shape: f32[2,1,32], index: 11, kind: input, shape index: {}]   ;;  %s4087_s12 = inlined_call_operand.vmem [shape: f32[2,32,64], index: 12, kind: input, shape index: {}]   ;;  %s4088_s13 = inlined_call_operand.vmem [shape: f32[2,1,64], index: 13, kind: input, shape index: {}]   ;;  %s4089_s14 = inlined_call_operand.vmem [shape: f32[2,64,32], index: 14, kind: input, shape index: {}]   ;;  %s4090_s15 = inlined_call_operand.vmem [shape: f32[2,1,32], index: 15, kind: input, shape index: {}]   ;;  %s4091_s16 = inlined_call_operand.vmem [shape: f32[1,32], index: 16, kind: input, shape index: {}]   ;;  %s4092_s17 = inlined_call_operand.vmem [shape: f32[1,32], index: 17, kind: input, shape index: {}]   ;;  %s4093_s18 = inlined_call_operand.vmem [shape: f32[2,5,32], index: 18, kind: output, shape index: {}]  }
   0x1   :  { %4105 = sst [smem:[#allocation2_spill]] %s4075_s0 }
   0x2   :  { %4106 = sst [smem:[#allocation3_spill]] %s4076_s1 }
   0x3   :  { %4107 = sst [smem:[#allocation4_spill]] %s4077_s2 }
   0x4 LB: > { %s2965_s28 = sadd.s32 4294967295, %s3404_s27   ;;  %p2969_p0 = scmp.ge.s32.totalorder %s3404_s27, 1  ;;  %s3404_s27 = sphi %s3517_s27, %s28_s27  }
   0x5   : > { %p512_p1 = scmp.lt.s32.totalorder %s3404_s27, 3 }
   0x7   : > { %p513_p2 = pnand %p2969_p0, %p512_p1 }
   0x8   : > { %s4108_s0 = sld [smem:[#allocation3_spill]] (!%p513_p2)  ;;  %p565_p3 = scmp.lt.s32.totalorder (!%p513_p2), %s2965_s28, 1 }
   0x9   : > { %516 = sbr.rel (%p513_p2) target bundleno = 6833 (0x1ab1), region = 92  ;;  %s4109_s26 = sld [smem:[#allocation2_spill]] (!%p513_p2) }
   0xa   : > { %s4110_s25 = sld [smem:[#allocation4_spill]] (!%p513_p2)  ;;  %s4100_s1 = smov (!%p513_p2), 64  }
   0xb   : > { %s3409_s20 = smov (!%p513_p2), 96   ;;  %s3410_s21 = smov (!%p513_p2), 88  }
   0xc   : > { %s4095_s2 = smov (!%p513_p2), 56   ;;  %s3413_s23 = smov (!%p513_p2), 80  }
   0xd   : > { %s4102_s24 = smov (!%p513_p2), 112   ;;  %s4101_s30 = smov (!%p513_p2), 104  }
   0xe   : > { %v591_v0 = vld [vmem:[%s4108_s0 + $0x78] sm:$0xff]  ;;  %v3406_v1 = vmov 0.0   ;;  %v590_v2 = vld [vmem:[%s4108_s0 + $0x70] sm:$0xff]  ;;  %s4122_s28 = smov (!%p565_p3, %s2965_s28), 1  ;;  %v589_v3 = vld [vmem:[%s4108_s0 + $0x68] sm:$0xff]  ;;  %vm607_vm0 = vcmask 523264  }
   0xf   : > { %611 = vmatprep.subr.mxu0 %v3406_v1  ;;  %3144 = vmatprep.subr.mxu1 %v3406_v1  ;;  %s3063_s22 = sshll.u32 %s4122_s28, 4  ;;  %v588_v4 = vld [vmem:[%s4108_s0 + $0x60] sm:$0xff]  ;;  %v587_v5 = vld [vmem:[%s4108_s0 + $0x58] sm:$0xff]  ;;  %v586_v7 = vld [vmem:[%s4108_s0 + $0x50] sm:$0xff]  ;;  %vm685_vm1 = vcmask 258048   ;;  %vm3407_vm2 = vmmov 0  }
  0x10   : > { %612 = vmatpush1.msra.mxu0 %v591_v0  ;;  %s3547_s29 = scalar_lea.vmem %s4109_s26, %s3063_s22  ;;  %v585_v8 = vld [vmem:[%s4108_s0 + $0x48] sm:$0xff]  ;;  %v584_v9 = vld [vmem:[%s4108_s0 + $0x40] sm:$0xff]  ;;  %v583_v10 = vld [vmem:[%s4108_s0 + $0x38] sm:$0xff]  ;;  %3152 = vmatprep.mubr.msk.f32.mxu1 %vm3407_vm2, %v3406_v1  ;;  %vm725_vm3 = vcmask 261120   ;;  %vm803_vm4 = vcmask 64512   ;;  %vm897_vm5 = vcmask 1044480  }
  0x11   : > { %613 = vmatprep.subr.mxu0 %v3406_v1  ;;  %v575_v6 = vld [vmem:[%s3547_s29 + $0x8] sm:$0x1f]  ;;  %v582_v11 = vld [vmem:[%s4108_s0 + $0x30] sm:$0xff]  ;;  %v580_v13 = vld [vmem:[%s4108_s0 + $0x20] sm:$0xff]  ;;  %vm879_vm6 = vcmask 36864   ;;  %s3411_s22 = smov 120  }
  0x12   : > { %614 = vmatpush1.msra.mxu0 %v590_v2  ;;  %2974 = vmatprep.mubr.msk.f32.mxu0 %vm607_vm0, %v575_v6  ;;  %v581_v12 = vld [vmem:[%s4108_s0 + $0x28] sm:$0xff]  ;;  %v579_v14 = vld [vmem:[%s4108_s0 + $0x18] sm:$0xff]  ;;  %v578_v15 = vld [vmem:[%s4108_s0 + $0x10] sm:$0xff]  ;;  %vm893_vm7 = vcmask 39936   ;;  %s4104_s26 = smov 72   ;;  %s4097_s19 = smov 8  }
  0x13   : > { %615 = vmatprep.subr.mxu0 %v3406_v1  ;;  %v577_v16 = vld [vmem:[%s4108_s0 + $0x8] sm:$0xff]  ;;  %v576_v17 = vld [vmem:[%s4108_s0] sm:$0xff]  ;;  %v599_v18 = vld [vmem:[%s4108_s0 + $0xb8] sm:$0xff]  ;;  %vm1481_vm8 = vcmask 130048   ;;  %vm1483_vm9 = vcmask 195584  }
  0x14   : > { %616 = vmatpush1.msra.mxu0 %v589_v3  ;;  %v598_v19 = vld [vmem:[%s4108_s0 + $0xb0] sm:$0xff]  ;;  %v597_v20 = vld [vmem:[%s4108_s0 + $0xa8] sm:$0xff]  ;;  %v596_v21 = vld [vmem:[%s4108_s0 + $0xa0] sm:$0xff] }
  0x15   : > { %617 = vmatprep.subr.mxu0 %v3406_v1  ;;  %v595_v22 = vld [vmem:[%s4108_s0 + $0x98] sm:$0xff]  ;;  %v594_v23 = vld [vmem:[%s4108_s0 + $0x90] sm:$0xff]  ;;  %v593_v24 = vld [vmem:[%s4108_s0 + $0x88] sm:$0xff] }
  0x16   : > { %618 = vmatpush1.msra.mxu0 %v588_v4  ;;  %v592_v25 = vld [vmem:[%s4108_s0 + $0x80] sm:$0xff]  ;;  %v717_v39 = vld [vmem:[%s4081_s6 + $0x18] sm:$0xff]  ;;  %v716_v40 = vld [vmem:[%s4081_s6 + $0x10] sm:$0xff] }
  0x17   : > { %619 = vmatprep.subr.mxu0 %v3406_v1  ;;  %v574_v26 = vld [vmem:[%s3547_s29] sm:$0x1f]  ;;  %3145 = vmatpush3.msra.mxu1 %v717_v39  ;;  %v715_v41 = vld [vmem:[%s4081_s6 + $0x8] sm:$0xff]  ;;  %s4098_s29 = smov 40  }
  0x18   : > { %620 = vmatpush1.msra.mxu0 %v587_v5  ;;  %v2973_v27 = vld [vmem:[%s4110_s25] ss:$0 sm:$0xff]  ;;  %3146 = vmatprep.subr.mxu1 %v3406_v1  ;;  %s4099_s25 = smov 48  }
  0x19   : > { %621 = vmatprep.subr.mxu0 %v3406_v1  ;;  %v681_v29 = vld [vmem:[%s4078_s3] sm:$0x1f]  ;;  %3147 = vmatpush3.msra.mxu1 %v716_v40 }
  0x1a   : > { %622 = vmatpush1.msra.mxu0 %v586_v7  ;;  %3148 = vmatprep.subr.mxu1 %v3406_v1  ;;  %v714_v42 = vld [vmem:[%s4081_s6] sm:$0xff] }
  0x1b   : > { %623 = vmatprep.subr.mxu0 %v3406_v1  ;;  %3149 = vmatpush3.msra.mxu1 %v715_v41  ;;  %v2975_v47 = vld [vmem:[%s4079_s4] ss:$0 sm:$0xff] }
  0x1c   : > { %624 = vmatpush1.msra.mxu0 %v585_v8  ;;  %3150 = vmatprep.subr.mxu1 %v3406_v1  ;;  %v2976_v49 = vld [vmem:[%s4080_s5] ss:$0 sm:$0xff] }
  0x1d   : > { %625 = vmatprep.subr.mxu0 %v3406_v1  ;;  %3151 = vmatpush3.msra.mxu1 %v714_v42  ;;  %v2977_v52 = vld [vmem:[%s4082_s7] ss:$0 sm:$0xff] }
  0x1e   : > { %626 = vmatpush1.msra.mxu0 %v584_v9  ;;  %3155 = vmatprep.subr.mxu1 %v3406_v1 }
  0x1f   : > { %627 = vmatprep.subr.mxu0 %v3406_v1 }
  0x20   : > { %628 = vmatpush1.msra.mxu0 %v583_v10 }
  0x21   : > { %629 = vmatprep.subr.mxu0 %v3406_v1 }
  0x22   : > { %630 = vmatpush1.msra.mxu0 %v582_v11 }
  0x23   : > { %631 = vmatprep.subr.mxu0 %v3406_v1 }
  0x24   : > { %632 = vmatpush1.msra.mxu0 %v581_v12 }
  0x25   : > { %633 = vmatprep.subr.mxu0 %v3406_v1 }
  0x26   : > { %634 = vmatpush1.msra.mxu0 %v580_v13 }
  0x27   : > { %635 = vmatprep.subr.mxu0 %v3406_v1 }
  0x28   : > { %636 = vmatpush1.msra.mxu0 %v579_v14 }
  0x29   : > { %637 = vmatprep.subr.mxu0 %v3406_v1 }
  0x2a   : > { %638 = vmatpush1.msra.mxu0 %v578_v15 }
  0x2b   : > { %639 = vmatprep.subr.mxu0 %v3406_v1 }
  0x2c   : > { %640 = vmatpush1.msra.mxu0 %v577_v16 }
  0x2d   : > { %641 = vmatprep.subr.mxu0 %v3406_v1 }
  0x2e   : > { %642 = vmatpush1.msra.mxu0 %v576_v17 }
  0x2f   : > { %659 = vmatprep.subr.mxu0 %v3406_v1 }
  0x30   : > { %660 = vmatpush2.msra.mxu0 %v599_v18 }
  0x31   : > { %661 = vmatprep.subr.mxu0 %v3406_v1 }
  0x32   : > { %662 = vmatpush2.msra.mxu0 %v598_v19 }
  0x33   : > { %663 = vmatprep.subr.mxu0 %v3406_v1 }
  0x34   : > { %664 = vmatpush2.msra.mxu0 %v597_v20 }
  0x35   : > { %665 = vmatprep.subr.mxu0 %v3406_v1 }
  0x36   : > { %666 = vmatpush2.msra.mxu0 %v596_v21 }
  0x37   : > { %667 = vmatprep.subr.mxu0 %v3406_v1 }
  0x38   : > { %668 = vmatpush2.msra.mxu0 %v595_v22 }
  0x39   : > { %669 = vmatprep.subr.mxu0 %v3406_v1 }
  0x3a   : > { %670 = vmatpush2.msra.mxu0 %v594_v23 }
  0x3b   : > { %671 = vmatprep.subr.mxu0 %v3406_v1 }
  0x3c   : > { %672 = vmatpush2.msra.mxu0 %v593_v24 }
  0x3d   : > { %673 = vmatprep.subr.mxu0 %v3406_v1 }
  0x3e   : > { %674 = vmatpush2.msra.mxu0 %v592_v25 }
  0x3f   : > { %676 = vmatmul.mubr.f32.vlgmr.msra.gmra.mxu0 %v574_v26  ;;  %3236 = vmatprep.subr.mxu0 %v3406_v1 }
  0x40   : > { %3244 = vmatprep.mubr.msk.f32.mxu0 %vm3407_vm2, %v3406_v1 }
  0xff   : > { %v677_v28 = vpop.f32.mrf.mxu0 }
 0x100   : > { %v678_v30 = vadd.f32 %v2973_v27, %v677_v28 }
 0x101   : > { %v679_v31 = vpop.f32.mrf.mxu0 }
 0x102   : > { %v3640_v32 = vadd.f32 %v681_v29, %v678_v30 }
 0x104   : > { %v686_v33 = vsel %vm685_vm1, %v3640_v32, 0.0 }
 0x105   : > { %687 = vadd.xlane.f32.xlu0 %v686_v33 }
 0x18e   : > { %v688_v34 = vpop.xlane.xlu0 %687 }
 0x18f   : > { %v690_v35 = vmul.f32 0.03125, %v688_v34 }
 0x191   : > { %v691_v36 = vsub.f32 %v3640_v32, %v690_v35 }
 0x193   : > { %v692_v37 = vmul.f32 %v691_v36, %v691_v36 }
 0x195   : > { %v693_v38 = vsel %vm685_vm1, %v692_v37, 0.0 }
 0x196   : > { %694 = vadd.xlane.f32.xlu0 %v693_v38 }
 0x21f   : > { %v695_v43 = vpop.xlane.xlu0 %694 }
 0x220   : > { %v696_v44 = vmul.f32 0.03125, %v695_v43 }
 0x222   : > { %v697_v45 = vadd.f32 1e-06, %v696_v44 }
 0x224   : > { %3352 = vrsqrt.f32 %v697_v45 }
 0x231   : > { %v3353_v46 = vpop.eup %3352 }
 0x232   : > { %v699_v48 = vmul.f32 %v3353_v46, %v691_v36 }
 0x234   : > { %v706_v50 = vmul.f32 %v2975_v47, %v699_v48 }
 0x236   : > { %v713_v51 = vadd.f32 %v2976_v49, %v706_v50 }
 0x238   : > { %3153 = vmatmul.mubr.msk.f32.vlgmr.msra.gmra.mxu1 %vm725_vm3, %v713_v51 }
 0x239   : > { %3157 = vmatprep.mubr.msk.f32.mxu1 %vm3407_vm2, %v3406_v1 }
 0x2f8   : > { %v795_v53 = vpop.f32.mrf.mxu1 }
 0x2f9   : > { %v3678_v54 = vadd.f32 %v2977_v52, %v795_v53 }
 0x2fa   : > { %v3154_v55 = vpop.f32.mrf.mxu1 }
 0x2fb   : > { %891 = vrot.lane.b32.xlu0 %v3678_v54, %s4100_s1  ;;  %801 = vrot.lane.b32.xlu1 %v3678_v54, %s3409_s20  ;;  %v3686_v57 = vmul.f32 0.35355338, %v3678_v54  ;;  %s4111_s1 = smov 72  }
 0x36d   : > { %v802_v56 = vpop.permute.xlu1 %801  ;;  %v892_v58 = vpop.permute.xlu0 %891 }
 0x36e   : > { %3156 = vmatpush3.xpose.msk.msra.mxu1 %vm803_vm4, %v802_v56  ;;  %v1488_v56 = vld [vmem:[%s4083_s8 + $0x18] sm:$0xff] }
 0x36f   : > { %3160 = vmatprep.subr.mxu1 %v3406_v1 }
 0x371   : > { %3158 = vmatmul.mubr.msk.f32.vlgmr.msra.gmra.mxu1 %vm803_vm4, %v3686_v57 }
 0x372   : > { %3161 = vmatpush3.msk.msra.mxu1 %vm897_vm5, %v892_v58  ;;  %3162 = vmatprep.mubr.msk.f32.mxu1 %vm3407_vm2, %v3406_v1  ;;  %v1486_v58 = vld [vmem:[%s4083_s8 + $0x8] sm:$0xff] }
 0x373   : > { %3165 = vmatprep.subr.mxu1 %v3406_v1 }
 0x431   : > { %v875_v59 = vpop.f32.mrf.mxu1 }
 0x432   : > { %v880_v60 = vsel %vm879_vm6, %v875_v59, -inf }
 0x433   : > { %881 = vmax.xlane.f32.xlu1 %v880_v60  ;;  %v3159_v61 = vpop.f32.mrf.mxu1 }
 0x4bc   : > { %v882_v62 = vpop.xlane.xlu1 %881 }
 0x4bd   : > { %v883_v63 = vsub.f32 %v875_v59, %v882_v62  ;;  %v1485_v59 = vld [vmem:[%s4083_s8] sm:$0xff] }
 0x4bf   : > { %v884_v0 = vmul.f32 1.442695, %v883_v63 }
 0x4c1   : > { %3354 = vpow2.f32 %v884_v0 }
 0x4ce   : > { %v3355_v2 = vpop.eup %3354 }
 0x4cf   : > { %v886_v3 = vsel %vm879_vm6, %v3355_v2, 0.0 }
 0x4d0   : > { %887 = vadd.xlane.f32.xlu0 %v886_v3 }
 0x4e6   : > { %972 = vrot.lane.b32.xlu0 %v3678_v54, %s3410_s21 }
 0x4ea   : > { %970 = vrot.lane.b32.xlu0 %v3686_v57, %s3411_s22 }
 0x559   : > { %v888_v4 = vpop.xlane.xlu0 %887 }
 0x55a   : > { %3356 = vrcp.f32 %v888_v4 }
 0x55d   : > { %v973_v6 = vpop.permute.xlu0 %972 }
 0x561   : > { %v971_v8 = vpop.permute.xlu0 %970 }
 0x567   : > { %v3357_v5 = vpop.eup %3356 }
 0x568   : > { %v890_v7 = vmul.f32 %v3357_v5, %v3355_v2  ;;  %v2995_v5 = vld [vmem:[%s4084_s9] ss:$0 sm:$0xff] }
 0x56a   : > { %3163 = vmatmul.mubr.msk.f32.vlgmr.msra.gmra.mxu1 %vm893_vm7, %v890_v7 }
 0x56b   : > { %3166 = vmatpush3.xpose.msk.msra.mxu1 %vm803_vm4, %v973_v6  ;;  %3167 = vmatprep.mubr.msk.f32.mxu1 %vm3407_vm2, %v3406_v1 }
 0x56c   : > { %3170 = vmatprep.subr.mxu1 %v3406_v1 }
 0x56e   : > { %3168 = vmatmul.mubr.msk.f32.vlgmr.msra.gmra.mxu1 %vm803_vm4, %v971_v8 }
 0x56f   : > { %3172 = vmatprep.mubr.msk.f32.mxu1 %vm3407_vm2, %v3406_v1 }
 0x62a   : > { %v3709_v9 = vpop.f32.mrf.mxu1 }
 0x62c   : > { %v3164_v10 = vpop.f32.mrf.mxu1 }
 0x62e   : > { %v1044_v11 = vpop.f32.mrf.mxu1 }
 0x62f   : > { %v1048_v12 = vsel %vm879_vm6, %v1044_v11, -inf }
 0x630   : > { %1049 = vmax.xlane.f32.xlu1 %v1048_v12  ;;  %v3169_v13 = vpop.f32.mrf.mxu1 }
 0x641   : > { %1059 = vrot.lane.b32.xlu1 %v3678_v54, %s4095_s2  ;;  %s4096_s2 = smov 16  }
 0x645   : > { %1138 = vrot.lane.b32.xlu1 %v3678_v54, %s3413_s23 }
 0x649   : > { %1136 = vrot.lane.b32.xlu1 %v3686_v57, %s4102_s24  ;;  %s4112_s24 = smov 112  }
 0x6b9   : > { %v1050_v14 = vpop.xlane.xlu1 %1049 }
 0x6ba   : > { %v1051_v15 = vsub.f32 %v1044_v11, %v1050_v14 }
 0x6bc   : > { %v1052_v16 = vmul.f32 1.442695, %v1051_v15 }
 0x6bd   : > { %v1060_v17 = vpop.permute.xlu1 %1059 }
 0x6be   : > { %3358 = vpow2.f32 %v1052_v16  ;;  %3171 = vmatpush3.msk.msra.mxu1 %vm897_vm5, %v1060_v17  ;;  %v1602_v16 = vld [vmem:[%s4087_s12 + $0x18] sm:$0xff]  ;;  %v1600_v17 = vld [vmem:[%s4087_s12 + $0x8] sm:$0xff] }
 0x6bf   : > { %3175 = vmatprep.subr.mxu1 %v3406_v1 }
 0x6c1   : > { %v1139_v22 = vpop.permute.xlu1 %1138 }
 0x6c5   : > { %v1137_v24 = vpop.permute.xlu1 %1136 }
 0x6cb   : > { %v3359_v18 = vpop.eup %3358 }
 0x6cc   : > { %v1054_v19 = vsel %vm879_vm6, %v3359_v18, 0.0 }
 0x6cd   : > { %1055 = vadd.xlane.f32.xlu0 %v1054_v19 }
 0x6e3   : > { %1225 = vrot.lane.b32.xlu0 %v3678_v54, %s4099_s25  ;;  %s4103_s25 = smov 24  }
 0x756   : > { %v1056_v20 = vpop.xlane.xlu0 %1055 }
 0x757   : > { %3360 = vrcp.f32 %v1056_v20 }
 0x75a   : > { %v1226_v25 = vpop.permute.xlu0 %1225 }
 0x764   : > { %v3361_v21 = vpop.eup %3360 }
 0x765   : > { %v1058_v23 = vmul.f32 %v3361_v21, %v3359_v18  ;;  %v1599_v18 = vld [vmem:[%s4087_s12] sm:$0xff] }
 0x767   : > { %3173 = vmatmul.mubr.msk.f32.vlgmr.msra.gmra.mxu1 %vm893_vm7, %v1058_v23  ;;  %v2997_v23 = vld [vmem:[%s4085_s10] ss:$0 sm:$0xff] }
 0x768   : > { %3176 = vmatpush3.xpose.msk.msra.mxu1 %vm803_vm4, %v1139_v22  ;;  %3177 = vmatprep.mubr.msk.f32.mxu1 %vm3407_vm2, %v3406_v1 }
 0x769   : > { %3180 = vmatprep.subr.mxu1 %v3406_v1 }
 0x76b   : > { %3178 = vmatmul.mubr.msk.f32.vlgmr.msra.gmra.mxu1 %vm803_vm4, %v1137_v24 }
 0x76c   : > { %3181 = vmatpush3.msk.msra.mxu1 %vm897_vm5, %v1226_v25  ;;  %3182 = vmatprep.mubr.msk.f32.mxu1 %vm3407_vm2, %v3406_v1  ;;  %v2998_v25 = vld [vmem:[%s4086_s11] ss:$0 sm:$0xff] }
 0x76d   : > { %3185 = vmatprep.subr.mxu1 %v3406_v1 }
 0x827   : > { %v1132_v26 = vpop.f32.mrf.mxu1 }
 0x829   : > { %v3174_v27 = vpop.f32.mrf.mxu1 }
 0x82b   : > { %v1210_v28 = vpop.f32.mrf.mxu1 }
 0x82c   : > { %v1214_v29 = vsel %vm879_vm6, %v1210_v28, -inf }
 0x82d   : > { %1215 = vmax.xlane.f32.xlu1 %v1214_v29  ;;  %v3179_v30 = vpop.f32.mrf.mxu1  ;;  %v1698_v29 = vld [vmem:[%s4089_s14 + $0x30] sm:$0xff] }
 0x82e   : > { %v1697_v30 = vld [vmem:[%s4089_s14 + $0x28] sm:$0xff] }
 0x8b6   : > { %v1216_v31 = vpop.xlane.xlu1 %1215 }
 0x8b7   : > { %v1217_v33 = vsub.f32 %v1210_v28, %v1216_v31  ;;  %v1699_v28 = vld [vmem:[%s4089_s14 + $0x38] sm:$0xff]  ;;  %v1696_v31 = vld [vmem:[%s4089_s14 + $0x20] sm:$0xff] }
 0x8b9   : > { %v1218_v34 = vmul.f32 1.442695, %v1217_v33  ;;  %v1695_v33 = vld [vmem:[%s4089_s14 + $0x18] sm:$0xff] }
 0x8bb   : > { %3362 = vpow2.f32 %v1218_v34  ;;  %v1694_v34 = vld [vmem:[%s4089_s14 + $0x10] sm:$0xff] }
 0x8c8   : > { %v3363_v35 = vpop.eup %3362 }
 0x8c9   : > { %v1220_v36 = vsel %vm879_vm6, %v3363_v35, 0.0 }
 0x8ca   : > { %1221 = vadd.xlane.f32.xlu0 %v1220_v36  ;;  %v1692_v36 = vld [vmem:[%s4089_s14] sm:$0xff] }
 0x8e0   : > { %1304 = vrot.lane.b32.xlu0 %v3678_v54, %s4104_s26 }
 0x8e4   : > { %1302 = vrot.lane.b32.xlu0 %v3686_v57, %s4101_s30  ;;  %v1487_v57 = vld [vmem:[%s4083_s8 + $0x10] sm:$0xff]  ;;  %s4113_s30 = smov 104  }
 0x953   : > { %v1222_v37 = vpop.xlane.xlu0 %1221 }
 0x954   : > { %3364 = vrcp.f32 %v1222_v37  ;;  %v2999_v37 = vld [vmem:[%s4088_s13] ss:$0 sm:$0xff] }
 0x957   : > { %v1305_v39 = vpop.permute.xlu0 %1304 }
 0x95b   : > { %v1303_v41 = vpop.permute.xlu0 %1302 }
 0x961   : > { %v3365_v38 = vpop.eup %3364 }
 0x962   : > { %v1224_v40 = vmul.f32 %v3365_v38, %v3363_v35  ;;  %v1693_v35 = vld [vmem:[%s4089_s14 + $0x8] sm:$0xff] }
 0x964   : > { %3183 = vmatmul.mubr.msk.f32.vlgmr.msra.gmra.mxu1 %vm893_vm7, %v1224_v40 }
 0x965   : > { %3186 = vmatpush3.xpose.msk.msra.mxu1 %vm803_vm4, %v1305_v39  ;;  %3187 = vmatprep.mubr.msk.f32.mxu1 %vm3407_vm2, %v3406_v1 }
 0x966   : > { %3190 = vmatprep.subr.mxu1 %v3406_v1 }
 0x968   : > { %3188 = vmatmul.mubr.msk.f32.vlgmr.msra.gmra.mxu1 %vm803_vm4, %v1303_v41 }
 0x969   : > { %3192 = vmatprep.mubr.msk.f32.mxu1 %vm3407_vm2, %v3406_v1 }
 0xa24   : > { %v1298_v42 = vpop.f32.mrf.mxu1 }
 0xa26   : > { %v3184_v43 = vpop.f32.mrf.mxu1 }
 0xa28   : > { %v1376_v44 = vpop.f32.mrf.mxu1 }
 0xa29   : > { %v1380_v45 = vsel %vm879_vm6, %v1376_v44, -inf }
 0xa2a   : > { %1381 = vmax.xlane.f32.xlu1 %v1380_v45  ;;  %v3189_v46 = vpop.f32.mrf.mxu1 }
 0xa3b   : > { %1391 = vrot.lane.b32.xlu1 %v3678_v54, %s4098_s29 }
 0xa3f   : > { %1469 = vrot.lane.b32.xlu1 %v1132_v26, %s4097_s19 }
 0xa43   : > { %1473 = vrot.lane.b32.xlu1 %v1298_v42, %s4096_s2 }
 0xab3   : > { %v1382_v47 = vpop.xlane.xlu1 %1381 }
 0xab4   : > { %v1383_v48 = vsub.f32 %v1376_v44, %v1382_v47 }
 0xab6   : > { %v1384_v49 = vmul.f32 1.442695, %v1383_v48 }
 0xab7   : > { %v1392_v50 = vpop.permute.xlu1 %1391 }
 0xab8   : > { %3366 = vpow2.f32 %v1384_v49  ;;  %3191 = vmatpush3.msk.msra.mxu1 %vm897_vm5, %v1392_v50  ;;  %v3001_v50 = vld [vmem:[%s4090_s15] ss:$0 sm:$0xff] }
 0xab9   : > { %3195 = vmatprep.subr.mxu1 %v3406_v1 }
 0xabb   : > { %v1470_v62 = vpop.permute.xlu1 %1469 }
 0xabc   : > { %v1480_v0 = vsel %vm803_vm4, %v3709_v9, %v1470_v62  ;;  %v3009_v62 = vld [vmem:[%s4081_s6 + $0x30] sm:$0xff] }
 0xabf   : > { %v1474_v63 = vpop.permute.xlu1 %1473 }
 0xac0   : > { %v1482_v2 = vsel %vm1481_vm8, %v1480_v0, %v1474_v63  ;;  %v3008_v63 = vld [vmem:[%s4081_s6 + $0x28] sm:$0xff]  ;;  %v3007_v0 = vld [vmem:[%s4081_s6 + $0x20] sm:$0xff] }
 0xac5   : > { %v3367_v51 = vpop.eup %3366 }
 0xac6   : > { %v1386_v52 = vsel %vm879_vm6, %v3367_v51, 0.0 }
 0xac7   : > { %1387 = vadd.xlane.f32.xlu0 %v1386_v52 }
 0xb50   : > { %v1388_v53 = vpop.xlane.xlu0 %1387 }
 0xb51   : > { %3368 = vrcp.f32 %v1388_v53 }
 0xb5e   : > { %v3369_v54 = vpop.eup %3368 }
 0xb5f   : > { %v1390_v55 = vmul.f32 %v3369_v54, %v3367_v51 }
 0xb61   : > { %3193 = vmatmul.mubr.msk.f32.vlgmr.msra.gmra.mxu1 %vm893_vm7, %v1390_v55 }
 0xb62   : > { %3203 = vmatprep.mubr.msk.f32.mxu1 %vm3407_vm2, %v3406_v1  ;;  %3196 = vmatpush3.msra.mxu1 %v1488_v56 }
 0xb63   : > { %3197 = vmatprep.subr.mxu1 %v3406_v1 }
 0xb64   : > { %3198 = vmatpush3.msra.mxu1 %v1487_v57 }
 0xb65   : > { %3199 = vmatprep.subr.mxu1 %v3406_v1 }
 0xb66   : > { %3200 = vmatpush3.msra.mxu1 %v1486_v58 }
 0xb67   : > { %3201 = vmatprep.subr.mxu1 %v3406_v1 }
 0xb68   : > { %3202 = vmatpush3.msra.mxu1 %v1485_v59 }
 0xb69   : > { %3206 = vmatprep.subr.mxu1 %v3406_v1 }
 0xc21   : > { %v1464_v60 = vpop.f32.mrf.mxu1 }
 0xc22   : > { %1477 = vrot.lane.b32.xlu1 %v1464_v60, %s4103_s25 }
 0xc23   : > { %v3194_v61 = vpop.f32.mrf.mxu1 }
 0xc24   : > { %v3010_v61 = vld [vmem:[%s4081_s6 + $0x38] sm:$0xff] }
 0xc25   : > { %3237 = vmatpush3.msra.mxu0 %v3010_v61 }
 0xc26   : > { %3238 = vmatprep.subr.mxu0 %v3406_v1 }
 0xc27   : > { %3239 = vmatpush3.msra.mxu0 %v3009_v62 }
 0xc28   : > { %3240 = vmatprep.subr.mxu0 %v3406_v1 }
 0xc29   : > { %3241 = vmatpush3.msra.mxu0 %v3008_v63 }
 0xc2a   : > { %3242 = vmatprep.subr.mxu0 %v3406_v1 }
 0xc2b   : > { %3243 = vmatpush3.msra.mxu0 %v3007_v0 }
 0xc2c   : > { %3247 = vmatprep.subr.mxu0 %v3406_v1 }
 0xc94   : > { %v1478_v3 = vpop.permute.xlu1 %1477 }
 0xc95   : > { %v1484_v4 = vsel %vm1483_vm9, %v1482_v2, %v1478_v3 }
 0xc96   : > { %3204 = vmatmul.mubr.msk.f32.vlgmr.msra.gmra.mxu1 %vm725_vm3, %v1484_v4 }
 0xc97   : > { %3214 = vmatprep.mubr.msk.f32.mxu1 %vm3407_vm2, %v3406_v1  ;;  %3207 = vmatpush3.msra.mxu1 %v1602_v16 }
 0xc98   : > { %3208 = vmatprep.subr.mxu1 %v3406_v1 }
 0xd56   : > { %v1565_v6 = vpop.f32.mrf.mxu1 }
 0xd57   : > { %v1566_v7 = vadd.f32 %v2995_v5, %v1565_v6  ;;  %v3005_v6 = vld [vmem:[%s4079_s4 + $0x1] ss:$0 sm:$0xff] }
 0xd58   : > { %v3205_v8 = vpop.f32.mrf.mxu1 }
 0xd59   : > { %v3786_v10 = vadd.f32 %v1566_v7, %v3640_v32  ;;  %v1601_v32 = vld [vmem:[%s4087_s12 + $0x10] sm:$0xff]  ;;  %v3006_v8 = vld [vmem:[%s4080_s5 + $0x1] ss:$0 sm:$0xff] }
 0xd5a   : > { %3209 = vmatpush3.msra.mxu1 %v1601_v32 }
 0xd5b   : > { %v1572_v9 = vsel %vm685_vm1, %v3786_v10, 0.0  ;;  %3210 = vmatprep.subr.mxu1 %v3406_v1 }
 0xd5c   : > { %1573 = vadd.xlane.f32.xlu0 %v1572_v9  ;;  %3211 = vmatpush3.msra.mxu1 %v1600_v17 }
 0xd5d   : > { %3212 = vmatprep.subr.mxu1 %v3406_v1 }
 0xd5e   : > { %3213 = vmatpush3.msra.mxu1 %v1599_v18 }
 0xd5f   : > { %3217 = vmatprep.subr.mxu1 %v3406_v1 }
 0xde5   : > { %v1574_v11 = vpop.xlane.xlu0 %1573 }
 0xde6   : > { %v1575_v12 = vmul.f32 0.03125, %v1574_v11  ;;  %v3012_v11 = vld [vmem:[%s4082_s7 + $0x1] ss:$0 sm:$0xff] }
 0xde8   : > { %v1576_v13 = vsub.f32 %v3786_v10, %v1575_v12 }
 0xdea   : > { %v1577_v14 = vmul.f32 %v1576_v13, %v1576_v13 }
 0xdec   : > { %v1578_v15 = vsel %vm685_vm1, %v1577_v14, 0.0 }
 0xded   : > { %1579 = vadd.xlane.f32.xlu1 %v1578_v15 }
 0xe76   : > { %v1580_v19 = vpop.xlane.xlu1 %1579 }
 0xe77   : > { %v1581_v20 = vmul.f32 0.03125, %v1580_v19 }
 0xe79   : > { %v1582_v21 = vadd.f32 1e-06, %v1581_v20 }
 0xe7b   : > { %3370 = vrsqrt.f32 %v1582_v21 }
 0xe88   : > { %v3371_v22 = vpop.eup %3370 }
 0xe89   : > { %v1584_v24 = vmul.f32 %v3371_v22, %v1576_v13 }
 0xe8b   : > { %v1591_v26 = vmul.f32 %v2997_v23, %v1584_v24 }
 0xe8d   : > { %v1598_v27 = vadd.f32 %v2998_v25, %v1591_v26 }
 0xe8f   : > { %3215 = vmatmul.mubr.msk.f32.vlgmr.msra.gmra.mxu1 %vm725_vm3, %v1598_v27 }
 0xe90   : > { %3233 = vmatprep.mubr.msk.f32.mxu1 %vm3407_vm2, %v3406_v1  ;;  %3218 = vmatpush3.msra.mxu1 %v1699_v28 }
 0xe91   : > { %3219 = vmatprep.subr.mxu1 %v3406_v1 }
 0xe92   : > { %3220 = vmatpush3.msra.mxu1 %v1698_v29 }
 0xe93   : > { %3221 = vmatprep.subr.mxu1 %v3406_v1 }
 0xe94   : > { %3222 = vmatpush3.msra.mxu1 %v1697_v30 }
 0xe95   : > { %3223 = vmatprep.subr.mxu1 %v3406_v1 }
 0xe96   : > { %3224 = vmatpush3.msra.mxu1 %v1696_v31 }
 0xe97   : > { %3225 = vmatprep.subr.mxu1 %v3406_v1 }
 0xe98   : > { %3226 = vmatpush3.msra.mxu1 %v1695_v33 }
 0xe99   : > { %3227 = vmatprep.subr.mxu1 %v3406_v1 }
 0xe9a   : > { %3228 = vmatpush3.msra.mxu1 %v1694_v34 }
 0xe9b   : > { %3229 = vmatprep.subr.mxu1 %v3406_v1 }
 0xe9c   : > { %3230 = vmatpush3.msra.mxu1 %v1693_v35 }
 0xe9d   : > { %3231 = vmatprep.subr.mxu1 %v3406_v1 }
 0xe9e   : > { %3232 = vmatpush3.msra.mxu1 %v1692_v36 }
 0xe9f   : > { %3252 = vmatprep.subr.mxu1 %v3406_v1 }
 0xf4f   : > { %v1679_v38 = vpop.f32.mrf.mxu1 }
 0xf50   : > { %v1680_v39 = vadd.f32 %v2999_v37, %v1679_v38 }
 0xf51   : > { %v3216_v40 = vpop.f32.mrf.mxu1 }
 0xf52   : > { %v1684_v41 = vmul.f32 0.044715, %v1680_v39  ;;  %v1683_v47 = vmul.f32 0.5, %v1680_v39 }
 0xf54   : > { %v1685_v42 = vmul.f32 %v1684_v41, %v1680_v39 }
 0xf56   : > { %v1686_v43 = vmul.f32 %v1685_v42, %v1680_v39 }
 0xf58   : > { %v1687_v44 = vadd.f32 %v1686_v43, %v1680_v39 }
 0xf5a   : > { %v1688_v45 = vmul.f32 0.7978846, %v1687_v44 }
 0xf5c   : > { %3372 = vtanh.f32 %v1688_v45 }
 0xf69   : > { %v3373_v46 = vpop.eup %3372 }
 0xf6a   : > { %v1690_v48 = vadd.f32 1.0, %v3373_v46 }
 0xf6c   : > { %v1691_v49 = vmul.f32 %v1690_v48, %v1683_v47 }
 0xf6e   : > { %3234 = vmatmul.mubr.msk.f32.vlgmr.msra.gmra.mxu1 %vm607_vm0, %v1691_v49 }
 0xf6f   : > { %3254 = vmatprep.mubr.msk.f32.mxu1 %vm3407_vm2, %v3406_v1 }
0x102e   : > { %v1776_v51 = vpop.f32.mrf.mxu1 }
0x102f   : > { %v1777_v52 = vadd.f32 %v3001_v50, %v1776_v51 }
0x1030   : > { %v3235_v53 = vpop.f32.mrf.mxu1 }
0x1031   : > { %v3859_v54 = vadd.f32 %v1777_v52, %v3786_v10 }
0x1033   : > { %v1785_v55 = vsel %vm685_vm1, %v3859_v54, 0.0 }
0x1034   : > { %1786 = vadd.xlane.f32.xlu0 %v1785_v55 }
0x10bd   : > { %v1787_v56 = vpop.xlane.xlu0 %1786 }
0x10be   : > { %v1788_v57 = vmul.f32 0.03125, %v1787_v56 }
0x10c0   : > { %v1789_v58 = vsub.f32 %v3859_v54, %v1788_v57 }
0x10c2   : > { %v1790_v59 = vmul.f32 %v1789_v58, %v1789_v58 }
0x10c4   : > { %v1791_v60 = vsel %vm685_vm1, %v1790_v59, 0.0 }
0x10c5   : > { %1792 = vadd.xlane.f32.xlu0 %v1791_v60 }
0x114e   : > { %v1793_v2 = vpop.xlane.xlu0 %1792 }
0x114f   : > { %v1794_v3 = vmul.f32 0.03125, %v1793_v2 }
0x1151   : > { %v1795_v4 = vadd.f32 1e-06, %v1794_v3 }
0x1153   : > { %3374 = vrsqrt.f32 %v1795_v4 }
0x1160   : > { %v3375_v5 = vpop.eup %3374 }
0x1161   : > { %v1797_v7 = vmul.f32 %v3375_v5, %v1789_v58 }
0x1163   : > { %v1804_v10 = vmul.f32 %v3005_v6, %v1797_v7 }
0x1165   : > { %v1811_v9 = vadd.f32 %v3006_v8, %v1804_v10  ;;  %v3033_v10 = vld [vmem:[%s4083_s8 + $0x38] sm:$0xff] }
0x1167   : > { %3245 = vmatmul.mubr.msk.f32.vlgmr.msra.gmra.mxu0 %vm725_vm3, %v1811_v9 }
0x1168   : > { %3249 = vmatprep.mubr.msk.f32.mxu0 %vm3407_vm2, %v3406_v1 }
0x1227   : > { %v1894_v12 = vpop.f32.mrf.mxu0 }
0x1228   : > { %v3893_v13 = vadd.f32 %v3012_v11, %v1894_v12  ;;  %v3032_v11 = vld [vmem:[%s4083_s8 + $0x30] sm:$0xff]  ;;  %v3031_v12 = vld [vmem:[%s4083_s8 + $0x28] sm:$0xff] }
0x1229   : > { %v3246_v14 = vpop.f32.mrf.mxu0 }
0x122a   : > { %1900 = vrot.lane.b32.xlu0 %v3893_v13, %s3409_s20  ;;  %v1898_v15 = vmul.f32 0.35355338, %v3893_v13  ;;  %s4114_s20 = smov 64   ;;  %v3030_v14 = vld [vmem:[%s4083_s8 + $0x20] sm:$0xff] }
0x122c   : > { %2065 = vrot.lane.b32.xlu1 %v1898_v15, %s3411_s22  ;;  %s4116_s22 = smov 40  }
0x122e   : > { %2067 = vrot.lane.b32.xlu0 %v3893_v13, %s3410_s21  ;;  %s4115_s21 = smov 48  }
0x1232   : > { %2233 = vrot.lane.b32.xlu0 %v3893_v13, %s3413_s23  ;;  %s4117_s23 = smov 56  }
0x1236   : > { %2399 = vrot.lane.b32.xlu0 %v3893_v13, %s4111_s1 }
0x123a   : > { %2231 = vrot.lane.b32.xlu0 %v1898_v15, %s4112_s24 }
0x123e   : > { %2397 = vrot.lane.b32.xlu0 %v1898_v15, %s4113_s30 }
0x129c   : > { %v1901_v16 = vpop.permute.xlu0 %1900 }
0x129d   : > { %3248 = vmatpush3.xpose.msk.msra.mxu0 %vm803_vm4, %v1901_v16 }
0x129e   : > { %3257 = vmatprep.subr.mxu0 %v3406_v1  ;;  %v2066_v17 = vpop.permute.xlu1 %2065 }
0x12a0   : > { %v2068_v32 = vpop.permute.xlu0 %2067  ;;  %3250 = vmatmul.mubr.msk.f32.vlgmr.msra.gmra.mxu0 %vm803_vm4, %v1898_v15 }
0x12a1   : > { %3258 = vmatpush3.xpose.msk.msra.mxu0 %vm803_vm4, %v2068_v32  ;;  %3259 = vmatprep.mubr.msk.f32.mxu0 %vm3407_vm2, %v3406_v1 }
0x12a2   : > { %3267 = vmatprep.subr.mxu0 %v3406_v1 }
0x12a4   : > { %v2234_v18 = vpop.permute.xlu0 %2233  ;;  %3260 = vmatmul.mubr.msk.f32.vlgmr.msra.gmra.mxu0 %vm803_vm4, %v2066_v17 }
0x12a5   : > { %3268 = vmatpush3.xpose.msk.msra.mxu0 %vm803_vm4, %v2234_v18  ;;  %3269 = vmatprep.mubr.msk.f32.mxu0 %vm3407_vm2, %v3406_v1 }
0x12a6   : > { %3277 = vmatprep.subr.mxu0 %v3406_v1 }
0x12a8   : > { %v2400_v19 = vpop.permute.xlu0 %2399 }
0x12ac   : > { %v2232_v20 = vpop.permute.xlu0 %2231 }
0x12ad   : > { %3270 = vmatmul.mubr.msk.f32.vlgmr.msra.gmra.mxu0 %vm803_vm4, %v2232_v20 }
0x12ae   : > { %3278 = vmatpush3.xpose.msk.msra.mxu0 %vm803_vm4, %v2400_v19  ;;  %3279 = vmatprep.mubr.msk.f32.mxu0 %vm3407_vm2, %v3406_v1 }
0x12af   : > { %3287 = vmatprep.subr.mxu0 %v3406_v1 }
0x12b0   : > { %v2398_v21 = vpop.permute.xlu0 %2397 }
0x12b1   : > { %3280 = vmatmul.mubr.msk.f32.vlgmr.msra.gmra.mxu0 %vm803_vm4, %v2398_v21 }
0x12b2   : > { %3295 = vmatprep.mubr.msk.f32.mxu0 %vm3407_vm2, %v3406_v1  ;;  %3288 = vmatpush3.msra.mxu0 %v3033_v10 }
0x12b3   : > { %3289 = vmatprep.subr.mxu0 %v3406_v1 }
0x12b4   : > { %3290 = vmatpush3.msra.mxu0 %v3032_v11 }
0x12b5   : > { %3291 = vmatprep.subr.mxu0 %v3406_v1 }
0x12b6   : > { %3292 = vmatpush3.msra.mxu0 %v3031_v12 }
0x12b7   : > { %3293 = vmatprep.subr.mxu0 %v3406_v1 }
0x12b8   : > { %3294 = vmatpush3.msra.mxu0 %v3030_v14 }
0x12b9   : > { %3309 = vmatprep.subr.mxu0 %v3406_v1 }
0x1360   : > { %v1973_v22 = vpop.f32.mrf.mxu0 }
0x1361   : > { %v1977_v23 = vsel %vm879_vm6, %v1973_v22, -inf }
0x1362   : > { %1978 = vmax.xlane.f32.xlu1 %v1977_v23  ;;  %v3251_v24 = vpop.f32.mrf.mxu0 }
0x1364   : > { %v2139_v25 = vpop.f32.mrf.mxu0 }
0x1365   : > { %v2143_v26 = vsel %vm879_vm6, %v2139_v25, -inf }
0x1366   : > { %2144 = vmax.xlane.f32.xlu0 %v2143_v26  ;;  %v3261_v27 = vpop.f32.mrf.mxu0  ;;  %v3035_v26 = vld [vmem:[%s4084_s9 + $0x1] ss:$0 sm:$0xff] }
0x136d   : > { %v2305_v28 = vpop.f32.mrf.mxu0 }
0x136e   : > { %v2309_v29 = vsel %vm879_vm6, %v2305_v28, -inf }
0x136f   : > { %2310 = vmax.xlane.f32.xlu0 %v2309_v29  ;;  %v3271_v30 = vpop.f32.mrf.mxu0 }
0x1371   : > { %v2471_v31 = vpop.f32.mrf.mxu0 }
0x1372   : > { %v2475_v33 = vsel %vm879_vm6, %v2471_v31, -inf }
0x1373   : > { %1988 = vrot.lane.b32.xlu1 %v3893_v13, %s4114_s20  ;;  %2476 = vmax.xlane.f32.xlu0 %v2475_v33  ;;  %v3281_v34 = vpop.f32.mrf.mxu0  ;;  %s4118_s20 = smov 8  }
0x13eb   : > { %v1979_v35 = vpop.xlane.xlu1 %1978 }
0x13ec   : > { %v1980_v36 = vsub.f32 %v1973_v22, %v1979_v35 }
0x13ee   : > { %v1981_v37 = vmul.f32 1.442695, %v1980_v36 }
0x13ef   : > { %v1989_v38 = vpop.permute.xlu1 %1988  ;;  %v2145_v39 = vpop.xlane.xlu0 %2144 }
0x13f0   : > { %3376 = vpow2.f32 %v1981_v37  ;;  %v2146_v40 = vsub.f32 %v2139_v25, %v2145_v39  ;;  %3253 = vmatpush3.msk.msra.mxu1 %vm897_vm5, %v1989_v38  ;;  %v3044_v38 = vld [vmem:[%s4087_s12 + $0x38] sm:$0xff]  ;;  %v3042_v39 = vld [vmem:[%s4087_s12 + $0x28] sm:$0xff] }
0x13f1   : > { %3262 = vmatprep.subr.mxu1 %v3406_v1 }
0x13f2   : > { %v2147_v41 = vmul.f32 1.442695, %v2146_v40  ;;  %v3041_v40 = vld [vmem:[%s4087_s12 + $0x20] sm:$0xff] }
0x13f4   : > { %3378 = vpow2.f32 %v2147_v41 }
0x13f8   : > { %v2311_v42 = vpop.xlane.xlu0 %2310 }
0x13f9   : > { %v2312_v43 = vsub.f32 %v2305_v28, %v2311_v42 }
0x13fb   : > { %v2313_v44 = vmul.f32 1.442695, %v2312_v43 }
0x13fc   : > { %v2477_v45 = vpop.xlane.xlu0 %2476 }
0x13fd   : > { %v3377_v46 = vpop.eup %3376  ;;  %3380 = vpow2.f32 %v2313_v44  ;;  %v2478_v47 = vsub.f32 %v2471_v31, %v2477_v45  ;;  %v3039_v45 = vld [vmem:[%s4085_s10 + $0x1] ss:$0 sm:$0xff] }
0x13fe   : > { %v1983_v48 = vsel %vm879_vm6, %v3377_v46, 0.0 }
0x13ff   : > { %v2479_v49 = vmul.f32 1.442695, %v2478_v47  ;;  %1984 = vadd.xlane.f32.xlu1 %v1983_v48  ;;  %v3040_v47 = vld [vmem:[%s4086_s11 + $0x1] ss:$0 sm:$0xff] }
0x1401   : > { %v3379_v50 = vpop.eup %3378  ;;  %3382 = vpow2.f32 %v2479_v49 }
0x1402   : > { %v2149_v51 = vsel %vm879_vm6, %v3379_v50, 0.0 }
0x1403   : > { %2150 = vadd.xlane.f32.xlu0 %v2149_v51  ;;  %v3054_v51 = vld [vmem:[%s4089_s14 + $0x70] sm:$0xff] }
0x140a   : > { %v3381_v52 = vpop.eup %3380 }
0x140b   : > { %v2315_v53 = vsel %vm879_vm6, %v3381_v52, 0.0 }
0x140c   : > { %2316 = vadd.xlane.f32.xlu1 %v2315_v53  ;;  %v3052_v53 = vld [vmem:[%s4089_s14 + $0x60] sm:$0xff] }
0x140e   : > { %v3383_v55 = vpop.eup %3382 }
0x140f   : > { %v2481_v56 = vsel %vm879_vm6, %v3383_v55, 0.0 }
0x1410   : > { %2482 = vadd.xlane.f32.xlu0 %v2481_v56  ;;  %v3050_v56 = vld [vmem:[%s4089_s14 + $0x50] sm:$0xff] }
0x141d   : > { %2320 = vrot.lane.b32.xlu1 %v3893_v13, %s4115_s21  ;;  %s4119_s21 = smov 16  }
0x1421   : > { %2486 = vrot.lane.b32.xlu1 %v3893_v13, %s4116_s22  ;;  %s4120_s22 = smov 24  }
0x1426   : > { %2154 = vrot.lane.b32.xlu0 %v3893_v13, %s4117_s23  ;;  %s2972_s23 = sshll.u32 %s4122_s28, 3 }
0x1427   : > { %s573_s25 = scalar_lea.vmem %s4093_s18, %s2972_s23 }
0x1488   : > { %v1985_v57 = vpop.xlane.xlu1 %1984 }
0x1489   : > { %3384 = vrcp.f32 %v1985_v57  ;;  %v3049_v57 = vld [vmem:[%s4089_s14 + $0x48] sm:$0xff] }
0x148c   : > { %v2151_v58 = vpop.xlane.xlu0 %2150 }
0x148d   : > { %3386 = vrcp.f32 %v2151_v58  ;;  %v3048_v58 = vld [vmem:[%s4089_s14 + $0x40] sm:$0xff] }
0x1495   : > { %v2317_v59 = vpop.xlane.xlu1 %2316 }
0x1496   : > { %v3385_v60 = vpop.eup %3384  ;;  %3388 = vrcp.f32 %v2317_v59  ;;  %v3046_v59 = vld [vmem:[%s4088_s13 + $0x1] ss:$0 sm:$0xff] }
0x1497   : > { %v1987_v61 = vmul.f32 %v3385_v60, %v3377_v46 }
0x1499   : > { %3255 = vmatmul.mubr.msk.f32.vlgmr.msra.gmra.mxu1 %vm893_vm7, %v1987_v61  ;;  %v2483_v62 = vpop.xlane.xlu0 %2482  ;;  %v2321_v3 = vpop.permute.xlu1 %2320 }
0x149a   : > { %v3387_v63 = vpop.eup %3386  ;;  %3390 = vrcp.f32 %v2483_v62  ;;  %3264 = vmatprep.mubr.msk.f32.mxu1 %vm3407_vm2, %v3406_v1 }
0x149b   : > { %v2153_v2 = vmul.f32 %v3387_v63, %v3379_v50  ;;  %v3055_v50 = vld [vmem:[%s4089_s14 + $0x78] sm:$0xff] }
0x149d   : > { %v2155_v0 = vpop.permute.xlu0 %2154  ;;  %v2487_v6 = vpop.permute.xlu1 %2486 }
0x149e   : > { %3263 = vmatpush3.msk.msra.mxu1 %vm897_vm5, %v2155_v0 }
0x149f   : > { %3265 = vmatmul.mubr.msk.f32.vlgmr.msra.gmra.mxu1 %vm893_vm7, %v2153_v2  ;;  %3272 = vmatprep.subr.mxu1 %v3406_v1 }
0x14a0   : > { %3273 = vmatpush3.msk.msra.mxu1 %vm897_vm5, %v2321_v3  ;;  %3274 = vmatprep.mubr.msk.f32.mxu1 %vm3407_vm2, %v3406_v1 }
0x14a1   : > { %3282 = vmatprep.subr.mxu1 %v3406_v1 }
0x14a3   : > { %v3389_v4 = vpop.eup %3388 }
0x14a4   : > { %v2319_v5 = vmul.f32 %v3389_v4, %v3381_v52  ;;  %v3053_v52 = vld [vmem:[%s4089_s14 + $0x68] sm:$0xff] }
0x14a6   : > { %3275 = vmatmul.mubr.msk.f32.vlgmr.msra.gmra.mxu1 %vm893_vm7, %v2319_v5 }
0x14a7   : > { %v3391_v7 = vpop.eup %3390  ;;  %3283 = vmatpush3.msk.msra.mxu1 %vm897_vm5, %v2487_v6  ;;  %3284 = vmatprep.mubr.msk.f32.mxu1 %vm3407_vm2, %v3406_v1 }
0x14a8   : > { %v2485_v8 = vmul.f32 %v3391_v7, %v3383_v55  ;;  %3298 = vmatprep.subr.mxu1 %v3406_v1  ;;  %v3051_v55 = vld [vmem:[%s4089_s14 + $0x58] sm:$0xff] }
0x14aa   : > { %3285 = vmatmul.mubr.msk.f32.vlgmr.msra.gmra.mxu1 %vm893_vm7, %v2485_v8 }
0x14ab   : > { %3306 = vmatprep.mubr.msk.f32.mxu1 %vm3407_vm2, %v3406_v1  ;;  %3299 = vmatpush3.msra.mxu1 %v3044_v38 }
0x14ac   : > { %3300 = vmatprep.subr.mxu1 %v3406_v1 }
0x1559   : > { %v2061_v9 = vpop.f32.mrf.mxu1 }
0x155b   : > { %v3256_v13 = vpop.f32.mrf.mxu1 }
0x155f   : > { %v2227_v15 = vpop.f32.mrf.mxu1 }
0x1560   : > { %2564 = vrot.lane.b32.xlu1 %v2227_v15, %s4118_s20 }
0x1561   : > { %v3266_v16 = vpop.f32.mrf.mxu1 }
0x1566   : > { %v2393_v32 = vpop.f32.mrf.mxu1 }
0x1567   : > { %2568 = vrot.lane.b32.xlu0 %v2393_v32, %s4119_s21 }
0x1568   : > { %v3276_v17 = vpop.f32.mrf.mxu1 }
0x156a   : > { %v2559_v18 = vpop.f32.mrf.mxu1 }
0x156b   : > { %2572 = vrot.lane.b32.xlu1 %v2559_v18, %s4120_s22 }
0x156c   : > { %v3286_v19 = vpop.f32.mrf.mxu1 }
0x15d2   : > { %v2565_v20 = vpop.permute.xlu1 %2564 }
0x15d3   : > { %v2575_v22 = vsel %vm803_vm4, %v2061_v9, %v2565_v20 }
0x15d9   : > { %v2569_v21 = vpop.permute.xlu0 %2568 }
0x15da   : > { %v2576_v23 = vsel %vm1481_vm8, %v2575_v22, %v2569_v21  ;;  %v3059_v22 = vld [vmem:[%s4091_s16] ss:$0 sm:$0xff] }
0x15dd   : > { %v2573_v24 = vpop.permute.xlu1 %2572 }
0x15de   : > { %v2577_v25 = vsel %vm1483_vm9, %v2576_v23, %v2573_v24  ;;  %v3060_v24 = vld [vmem:[%s4092_s17] ss:$0 sm:$0xff] }
0x15df   : > { %3296 = vmatmul.mubr.msk.f32.vlgmr.msra.gmra.mxu0 %vm725_vm3, %v2577_v25 }
0x15e0   : > { %3325 = vmatprep.mubr.msk.f32.mxu0 %vm3407_vm2, %v3406_v1  ;;  %3310 = vmatpush3.msra.mxu0 %v3055_v50 }
0x15e1   : > { %3311 = vmatprep.subr.mxu0 %v3406_v1 }
0x15e2   : > { %3312 = vmatpush3.msra.mxu0 %v3054_v51 }
0x15e3   : > { %3313 = vmatprep.subr.mxu0 %v3406_v1 }
0x15e4   : > { %3314 = vmatpush3.msra.mxu0 %v3053_v52 }
0x15e5   : > { %3315 = vmatprep.subr.mxu0 %v3406_v1 }
0x15e6   : > { %3316 = vmatpush3.msra.mxu0 %v3052_v53 }
0x15e7   : > { %3317 = vmatprep.subr.mxu0 %v3406_v1 }
0x15e8   : > { %3318 = vmatpush3.msra.mxu0 %v3051_v55 }
0x15e9   : > { %3319 = vmatprep.subr.mxu0 %v3406_v1 }
0x15ea   : > { %3320 = vmatpush3.msra.mxu0 %v3050_v56 }
0x15eb   : > { %3321 = vmatprep.subr.mxu0 %v3406_v1 }
0x15ec   : > { %3322 = vmatpush3.msra.mxu0 %v3049_v57 }
0x15ed   : > { %3323 = vmatprep.subr.mxu0 %v3406_v1 }
0x15ee   : > { %3324 = vmatpush3.msra.mxu0 %v3048_v58 }
0x169f   : > { %v2660_v27 = vpop.f32.mrf.mxu0 }
0x16a0   : > { %v2661_v28 = vadd.f32 %v3035_v26, %v2660_v27 }
0x16a1   : > { %v3297_v29 = vpop.f32.mrf.mxu0 }
0x16a2   : > { %v3992_v30 = vadd.f32 %v2661_v28, %v3859_v54  ;;  %v3043_v54 = vld [vmem:[%s4087_s12 + $0x30] sm:$0xff] }
0x16a3   : > { %3301 = vmatpush3.msra.mxu1 %v3043_v54 }
0x16a4   : > { %v2669_v31 = vsel %vm685_vm1, %v3992_v30, 0.0  ;;  %3302 = vmatprep.subr.mxu1 %v3406_v1 }
0x16a5   : > { %2670 = vadd.xlane.f32.xlu0 %v2669_v31  ;;  %3303 = vmatpush3.msra.mxu1 %v3042_v39 }
0x16a6   : > { %3304 = vmatprep.subr.mxu1 %v3406_v1  ;;  %v3057_v1 = vld [vmem:[%s4090_s15 + $0x1] ss:$0 sm:$0xff] }
0x16a7   : > { %3305 = vmatpush3.msra.mxu1 %v3041_v40 }
0x172e   : > { %v2671_v33 = vpop.xlane.xlu0 %2670 }
0x172f   : > { %v2672_v34 = vmul.f32 0.03125, %v2671_v33 }
0x1731   : > { %v2673_v35 = vsub.f32 %v3992_v30, %v2672_v34 }
0x1733   : > { %v2674_v36 = vmul.f32 %v2673_v35, %v2673_v35 }
0x1735   : > { %v2675_v37 = vsel %vm685_vm1, %v2674_v36, 0.0 }
0x1736   : > { %2676 = vadd.xlane.f32.xlu1 %v2675_v37 }
0x17bf   : > { %v2677_v41 = vpop.xlane.xlu1 %2676 }
0x17c0   : > { %v2678_v42 = vmul.f32 0.03125, %v2677_v41 }
0x17c2   : > { %v2679_v43 = vadd.f32 1e-06, %v2678_v42 }
0x17c4   : > { %3392 = vrsqrt.f32 %v2679_v43 }
0x17d1   : > { %v3393_v44 = vpop.eup %3392 }
0x17d2   : > { %v2681_v46 = vmul.f32 %v3393_v44, %v2673_v35 }
0x17d4   : > { %v2688_v48 = vmul.f32 %v3039_v45, %v2681_v46 }
0x17d6   : > { %v2695_v49 = vadd.f32 %v3040_v47, %v2688_v48 }
0x17d8   : > { %3307 = vmatmul.mubr.msk.f32.vlgmr.msra.gmra.mxu1 %vm725_vm3, %v2695_v49 }
0x1898   : > { %v2778_v60 = vpop.f32.mrf.mxu1 }
0x1899   : > { %v2779_v61 = vadd.f32 %v3046_v59, %v2778_v60 }
0x189a   : > { %v3308_v62 = vpop.f32.mrf.mxu1 }
0x189b   : > { %v2783_v63 = vmul.f32 0.044715, %v2779_v61  ;;  %v2782_v6 = vmul.f32 0.5, %v2779_v61 }
0x189d   : > { %v2784_v0 = vmul.f32 %v2783_v63, %v2779_v61 }
0x189f   : > { %v2785_v2 = vmul.f32 %v2784_v0, %v2779_v61 }
0x18a1   : > { %v2786_v3 = vadd.f32 %v2785_v2, %v2779_v61 }
0x18a3   : > { %v2787_v4 = vmul.f32 0.7978846, %v2786_v3 }
0x18a5   : > { %3394 = vtanh.f32 %v2787_v4 }
0x18b2   : > { %v3395_v5 = vpop.eup %3394 }
0x18b3   : > { %v2789_v7 = vadd.f32 1.0, %v3395_v5 }
0x18b5   : > { %v2790_v8 = vmul.f32 %v2789_v7, %v2782_v6 }
0x18b7   : > { %3326 = vmatmul.mubr.msk.f32.vlgmr.msra.gmra.mxu0 %vm607_vm0, %v2790_v8 }
0x1977   : > { %v2877_v10 = vpop.f32.mrf.mxu0 }
0x1978   : > { %v2878_v9 = vadd.f32 %v3057_v1, %v2877_v10 }
0x1979   : > { %v3327_v11 = vpop.f32.mrf.mxu0 }
0x197a   : > { %v2881_v12 = vadd.f32 %v2878_v9, %v3992_v30 }
0x197c   : > { %v2884_v13 = vsel %vm685_vm1, %v2881_v12, 0.0 }
0x197d   : > { %2885 = vadd.xlane.f32.xlu0 %v2884_v13 }
0x1a06   : > { %v2886_v14 = vpop.xlane.xlu0 %2885 }
0x1a07   : > { %v2887_v15 = vmul.f32 0.03125, %v2886_v14 }
0x1a09   : > { %v2888_v16 = vsub.f32 %v2881_v12, %v2887_v15 }
0x1a0b   : > { %v2889_v32 = vmul.f32 %v2888_v16, %v2888_v16 }
0x1a0d   : > { %v2890_v17 = vsel %vm685_vm1, %v2889_v32, 0.0 }
0x1a0e   : > { %2891 = vadd.xlane.f32.xlu0 %v2890_v17 }
0x1a97   : > { %v2892_v18 = vpop.xlane.xlu0 %2891 }
0x1a98   : > { %v2893_v19 = vmul.f32 0.03125, %v2892_v18 }
0x1a9a   : > { %v2894_v20 = vadd.f32 1e-06, %v2893_v19 }
0x1a9c   : > { %3396 = vrsqrt.f32 %v2894_v20 }
0x1aa9   : > { %v3397_v21 = vpop.eup %3396 }
0x1aaa   : > { %v2896_v23 = vmul.f32 %v3397_v21, %v2888_v16 }
0x1aac   : > { %v2903_v25 = vmul.f32 %v3059_v22, %v2896_v23 }
0x1aae   : > { %v2910_v26 = vadd.f32 %v3060_v24, %v2903_v25 }
0x1ab0   : > { %2911 = vst.msk [vmem:[%s573_s25] sm:$0x1f] %vm685_vm1, %v2910_v26 }
0x1ab1 PF: > { %s28_s27 = sadd.s32 1, %s3404_s27  }
0x1ab2   : > { %p25_p4 = scmp.ge.s32.totalorder %s28_s27, 4  }
0x1ab4   :  { %27 = sbr.rel (!%p25_p4) target bundleno = 4 (0x4), region = 134 }

// kernel: minigpt4_forward.4
= control target key start
LH: loop header
LB: loop body
LE: loop exit
PB: predicated region body
PF: predicated region fallthrough
CT: control target
= control target key end

     0   :  { %s5978_s27 = smov 0   ;;  %s6743_s0 = inlined_call_operand.vmem [shape: f32[1,8,32], index: 0, kind: input, shape index: {}]   ;;  %s6744_s1 = inlined_call_operand.vmem [shape: f32[2,5,32], index: 1, kind: input, shape index: {}]   ;;  %s6745_s2 = inlined_call_operand.vmem [shape: f32[1,32], index: 2, kind: input, shape index: {}]   ;;  %s6746_s3 = inlined_call_operand.vmem [shape: f32[1,32], index: 3, kind: input, shape index: {}]   ;;  %s6747_s4 = inlined_call_operand.vmem [shape: f32[2,32,96], index: 4, kind: input, shape index: {}]   ;;  %s6748_s5 = inlined_call_operand.vmem [shape: f32[2,1,96], index: 5, kind: input, shape index: {}]   ;;  %s6749_s6 = inlined_call_operand.vmem [shape: f32[2,32,32], index: 6, kind: input, shape index: {}]   ;;  %s6750_s7 = inlined_call_operand.vmem [shape: f32[2,1,32], index: 7, kind: input, shape index: {}]   ;;  %s6751_s8 = inlined_call_operand.vmem [shape: f32[2,1,32], index: 8, kind: input, shape index: {}]   ;;  %s6752_s9 = inlined_call_operand.vmem [shape: f32[2,1,32], index: 9, kind: input, shape index: {}]   ;;  %s6753_s10 = inlined_call_operand.vmem [shape: f32[2,32,32], index: 10, kind: input, shape index: {}]   ;;  %s6754_s11 = inlined_call_operand.vmem [shape: f32[2,1,32], index: 11, kind: input, shape index: {}]   ;;  %s6755_s12 = inlined_call_operand.vmem [shape: f32[2,32,64], index: 12, kind: input, shape index: {}]   ;;  %s6756_s13 = inlined_call_operand.vmem [shape: f32[2,1,64], index: 13, kind: input, shape index: {}]   ;;  %s6757_s14 = inlined_call_operand.vmem [shape: f32[2,32,32], index: 14, kind: input, shape index: {}]   ;;  %s6758_s15 = inlined_call_operand.vmem [shape: f32[2,1,32], index: 15, kind: input, shape index: {}]   ;;  %s6759_s16 = inlined_call_operand.vmem [shape: f32[2,1,32], index: 16, kind: input, shape index: {}]   ;;  %s6760_s17 = inlined_call_operand.vmem [shape: f32[2,1,32], index: 17, kind: input, shape index: {}]   ;;  %s6761_s18 = inlined_call_operand.vmem [shape: f32[2,32,64], index: 18, kind: input, shape index: {}]   ;;  %s6762_s19 = inlined_call_operand.vmem [shape: f32[2,1,64], index: 19, kind: input, shape index: {}]   ;;  %s6763_s20 = inlined_call_operand.vmem [shape: f32[2,64,32], index: 20, kind: input, shape index: {}]   ;;  %s6764_s21 = inlined_call_operand.vmem [shape: f32[2,1,32], index: 21, kind: input, shape index: {}]   ;;  %s6765_s22 = inlined_call_operand.vmem [shape: f32[2,1,32], index: 22, kind: input, shape index: {}]   ;;  %s6766_s23 = inlined_call_operand.vmem [shape: f32[2,1,32], index: 23, kind: input, shape index: {}]   ;;  %s6767_s24 = inlined_call_operand.vmem [shape: f32[32,32], index: 24, kind: input, shape index: {}]   ;;  %s6768_s25 = inlined_call_operand.vmem [shape: f32[1,32], index: 25, kind: input, shape index: {}]   ;;  %s6769_s26 = inlined_call_operand.vmem [shape: f32[2,8,32], index: 26, kind: output, shape index: {}]  }
   0x1   :  { %6809 = sst [smem:[#allocation4_spill]] %s6743_s0 }
   0x2   :  { %6810 = sst [smem:[#allocation5_spill]] %s6744_s1 }
   0x3   :  { %6811 = sst [smem:[#allocation6_spill]] %s6745_s2 }
   0x4   :  { %6812 = sst [smem:[#allocation7_spill]] %s6746_s3 }
   0x5   :  { %6813 = sst [smem:[#allocation8_spill]] %s6747_s4 }
   0x6   :  { %6814 = sst [smem:[#allocation9_spill]] %s6748_s5 }
   0x7   :  { %6815 = sst [smem:[#allocation10_spill]] %s6749_s6 }
   0x8   :  { %6816 = sst [smem:[#allocation11_spill]] %s6750_s7 }
   0x9   :  { %6817 = sst [smem:[#allocation12_spill]] %s6751_s8 }
   0xa   :  { %6818 = sst [smem:[#allocation13_spill]] %s6752_s9 }
   0xb   :  { %6819 = sst [smem:[#allocation14_spill]] %s6753_s10 }
   0xc   :  { %6820 = sst [smem:[#allocation15_spill]] %s6754_s11 }
   0xd   :  { %6821 = sst [smem:[#allocation16_spill]] %s6756_s13 }
   0xe   :  { %6822 = sst [smem:[#allocation17_spill]] %s6757_s14 }
   0xf   :  { %6823 = sst [smem:[#allocation18_spill]] %s6758_s15 }
  0x10   :  { %6824 = sst [smem:[#allocation19_spill]] %s6767_s24 }
  0x11   :  { %6825 = sst [smem:[#allocation20_spill]] %s6768_s25 }
  0x12   :  { %6826 = sst [smem:[#allocation21_spill]] %s6769_s26 }
  0x13 LB: > { %6827 = sst [smem:[#allocation2_spill]] %s5825_s27  ;;  %s5071_s3 = sadd.s32 4294967295, %s5825_s27   ;;  %s5825_s27 = sphi %s5978_s27, %s36_s27  }
  0x14   : > { %p5075_p0 = scmp.ge.s32.totalorder %s5825_s27, 1  ;;  %p711_p1 = scmp.lt.s32.totalorder %s5825_s27, 3 }
  0x16   : > { %p712_p2 = pnand %p5075_p0, %p711_p1 }
  0x18   : > { %715 = sbr.rel (%p712_p2) target bundleno = 9169 (0x23d1), region = 124 }
  0x1d   : > { %s6828_s8 = sld [smem:[#allocation4_spill]]  ;;  %vm791_vm0 = vcmask 261120   ;;  %v5827_v8 = vmov 0.0   ;;  %vm5828_vm1 = vmmov 0   ;;  %s6778_s5 = smov 64   ;;  %vm908_vm2 = vcmask 64512  }
  0x1e   : > { %s6829_s0 = sld [smem:[#allocation8_spill]]  ;;  %5372 = vmatprep.subr.mxu0 %v5827_v8  ;;  %5380 = vmatprep.mubr.msk.f32.mxu0 %vm5828_vm1, %v5827_v8  ;;  %s6783_s10 = smov 96   ;;  %vm1579_vm3 = vcmask 130048   ;;  %vm1581_vm4 = vcmask 195584   ;;  %vm1942_vm5 = vcmask 39936   ;;  %vm1959_vm6 = vcmask 1044480  }
  0x1f   : > { %5383 = vmatprep.subr.mxu1 %v5827_v8  ;;  %5385 = vmatprep.mubr.msk.f32.mxu1 %vm5828_vm1, %v5827_v8  ;;  %s6830_s28 = sld [smem:[#allocation6_spill]]  ;;  %s6787_s6 = smov 88   ;;  %vm2767_vm7 = vcmask 523264  }
  0x20   : > { %s6831_s29 = sld [smem:[#allocation7_spill]]  ;;  %s6785_s1 = smov 80  }
  0x21   : > { %s6832_s2 = sld [smem:[#allocation9_spill]]  ;;  %s6799_s7 = smov 120  }
  0x22   : > { %s6795_s4 = smov 104   ;;  %s6780_s9 = smov 56  }
  0x23   : > { %v788_v0 = vld [vmem:[%s6828_s8] sm:$0xff]  ;;  %s6781_s8 = smov 72   ;;  %s6777_s30 = smov 40  }
  0x24   : > { %v792_v1 = vsel %vm791_vm0, %v788_v0, 0.0  ;;  %v823_v7 = vld [vmem:[%s6829_s0 + $0x18] sm:$0xff]  ;;  %v822_v9 = vld [vmem:[%s6829_s0 + $0x10] sm:$0xff]  ;;  %v821_v10 = vld [vmem:[%s6829_s0 + $0x8] sm:$0xff]  ;;  %p779_p3 = scmp.lt.s32.totalorder %s5071_s3, 1  ;;  %s6837_s27 = sld [smem:[#allocation14_spill]] }
  0x25   : > { %793 = vadd.xlane.f32.xlu0 %v792_v1  ;;  %5373 = vmatpush3.msra.mxu0 %v823_v7  ;;  %v820_v11 = vld [vmem:[%s6829_s0] sm:$0xff]  ;;  %s6841_s13 = sld [smem:[#allocation16_spill]]  ;;  %s6851_s25 = smov 8  }
  0x26   : > { %5374 = vmatprep.subr.mxu0 %v5827_v8  ;;  %v5078_v16 = vld [vmem:[%s6830_s28] ss:$0 sm:$0xff]  ;;  %s6797_s28 = smov 112   ;;  %s6873_s3 = smov (!%p779_p3, %s5071_s3), 1 }
  0x27   : > { %5375 = vmatpush3.msra.mxu0 %v822_v9  ;;  %v5079_v18 = vld [vmem:[%s6831_s29] ss:$0 sm:$0xff]  ;;  %s6779_s29 = smov 48   ;;  %6835 = sst [smem:[#allocation3_spill]] %s6873_s3 }
  0x28   : > { %5376 = vmatprep.subr.mxu0 %v5827_v8  ;;  %v5080_v21 = vld [vmem:[%s6832_s2] ss:$0 sm:$0xff]  ;;  %s6845_s11 = sld [smem:[#allocation15_spill]]  ;;  %s6852_s24 = smov 16  }
  0x29   : > { %5377 = vmatpush3.msra.mxu0 %v821_v10  ;;  %s6850_s14 = sld [smem:[#allocation17_spill]] }
  0x2a   : > { %5378 = vmatprep.subr.mxu0 %v5827_v8  ;;  %s6838_s26 = smov %s6837_s27  ;;  %s6854_s15 = sld [smem:[#allocation18_spill]] }
  0x2b   : > { %5379 = vmatpush3.msra.mxu0 %v820_v11 }
  0x2c   : > { %5403 = vmatprep.subr.mxu0 %v5827_v8 }
  0xae   : > { %v794_v2 = vpop.xlane.xlu0 %793 }
  0xaf   : > { %v796_v3 = vmul.f32 0.03125, %v794_v2 }
  0xb1   : > { %v797_v4 = vsub.f32 %v788_v0, %v796_v3 }
  0xb3   : > { %v798_v5 = vmul.f32 %v797_v4, %v797_v4 }
  0xb5   : > { %v799_v6 = vsel %vm791_vm0, %v798_v5, 0.0 }
  0xb6   : > { %800 = vadd.xlane.f32.xlu0 %v799_v6 }
 0x13f   : > { %v801_v12 = vpop.xlane.xlu0 %800 }
 0x140   : > { %v802_v13 = vmul.f32 0.03125, %v801_v12 }
 0x142   : > { %v803_v14 = vadd.f32 1e-12, %v802_v13 }
 0x144   : > { %5737 = vrsqrt.f32 %v803_v14 }
 0x151   : > { %v5738_v15 = vpop.eup %5737 }
 0x152   : > { %v805_v17 = vmul.f32 %v5738_v15, %v797_v4 }
 0x154   : > { %v812_v19 = vmul.f32 %v5078_v16, %v805_v17 }
 0x156   : > { %v6019_v20 = vadd.f32 %v5079_v18, %v812_v19 }
 0x158   : > { %5381 = vmatmul.mubr.msk.f32.vlgmr.msra.gmra.mxu0 %vm791_vm0, %v6019_v20 }
 0x159   : > { %5405 = vmatprep.mubr.msk.f32.mxu0 %vm5828_vm1, %v5827_v8 }
 0x218   : > { %v900_v22 = vpop.f32.mrf.mxu0 }
 0x219   : > { %v6028_v23 = vadd.f32 %v5080_v21, %v900_v22 }
 0x21a   : > { %v5382_v24 = vpop.f32.mrf.mxu0 }
 0x21b   : > { %995 = vrot.lane.b32.xlu0 %v6028_v23, %s6778_s5  ;;  %906 = vrot.lane.b32.xlu1 %v6028_v23, %s6783_s10  ;;  %v904_v26 = vmul.f32 0.35355338, %v6028_v23  ;;  %s6791_s10 = smov 16   ;;  %s6839_s5 = sld [smem:[#allocation12_spill]] }
 0x21f   : > { %1073 = vrot.lane.b32.xlu0 %v6028_v23, %s6787_s6  ;;  %s6802_s6 = sshll.u32 %s6873_s3, 3  ;;  %s6856_s3 = smov 48  }
 0x28d   : > { %v907_v25 = vpop.permute.xlu1 %906  ;;  %v996_v27 = vpop.permute.xlu0 %995 }
 0x28e   : > { %5384 = vmatpush3.xpose.msk.msra.mxu1 %vm908_vm2, %v907_v25 }
 0x28f   : > { %5388 = vmatprep.subr.mxu1 %v5827_v8 }
 0x291   : > { %5386 = vmatmul.mubr.msk.f32.vlgmr.msra.gmra.mxu1 %vm908_vm2, %v904_v26  ;;  %v1074_v37 = vpop.permute.xlu0 %1073 }
 0x292   : > { %5389 = vmatpush3.msra.mxu1 %v996_v27  ;;  %5390 = vmatprep.mubr.msk.f32.mxu1 %vm5828_vm1, %v5827_v8 }
 0x293   : > { %5393 = vmatprep.subr.mxu1 %v5827_v8 }
 0x351   : > { %v980_v28 = vpop.f32.mrf.mxu1 }
 0x352   : > { %v984_v29 = vsel %vm908_vm2, %v980_v28, -inf }
 0x353   : > { %985 = vmax.xlane.f32.xlu1 %v984_v29  ;;  %v5387_v30 = vpop.f32.mrf.mxu1 }
 0x364   : > { %1238 = vrot.lane.b32.xlu1 %v6028_v23, %s6785_s1  ;;  %s6789_s1 = smov 24  }
 0x3dc   : > { %v986_v31 = vpop.xlane.xlu1 %985 }
 0x3dd   : > { %v987_v32 = vsub.f32 %v980_v28, %v986_v31 }
 0x3df   : > { %v988_v33 = vmul.f32 1.442695, %v987_v32 }
 0x3e0   : > { %v1239_v34 = vpop.permute.xlu1 %1238 }
 0x3e1   : > { %5739 = vpow2.f32 %v988_v33  ;;  %5404 = vmatpush3.xpose.msk.msra.mxu0 %vm908_vm2, %v1239_v34 }
 0x3e2   : > { %5413 = vmatprep.subr.mxu0 %v5827_v8 }
 0x3ee   : > { %v5740_v35 = vpop.eup %5739 }
 0x3ef   : > { %v990_v36 = vsel %vm908_vm2, %v5740_v35, 0.0 }
 0x3f0   : > { %991 = vadd.xlane.f32.xlu0 %v990_v36 }
 0x406   : > { %1071 = vrot.lane.b32.xlu0 %v904_v26, %s6799_s7 }
 0x40a   : > { %1236 = vrot.lane.b32.xlu0 %v904_v26, %s6797_s28  ;;  %s6836_s28 = sld [smem:[#allocation5_spill]] }
 0x40e   : > { %1403 = vrot.lane.b32.xlu0 %v6028_v23, %s6781_s8  ;;  %s6793_s8 = smov 8  }
 0x410   : > { %s782_s7 = scalar_lea.vmem %s6836_s28, %s6802_s6  ;;  %s6846_s28 = smov 88  }
 0x412   : > { %1401 = vrot.lane.b32.xlu0 %v904_v26, %s6795_s4  ;;  %s6848_s4 = smov 96  }
 0x479   : > { %v992_v38 = vpop.xlane.xlu0 %991 }
 0x47a   : > { %5741 = vrcp.f32 %v992_v38 }
 0x47d   : > { %v1072_v39 = vpop.permute.xlu0 %1071 }
 0x481   : > { %v1237_v40 = vpop.permute.xlu0 %1236 }
 0x482   : > { %5406 = vmatmul.mubr.msk.f32.vlgmr.msra.gmra.mxu0 %vm908_vm2, %v1237_v40 }
 0x483   : > { %5415 = vmatprep.mubr.msk.f32.mxu0 %vm5828_vm1, %v5827_v8 }
 0x485   : > { %v1404_v41 = vpop.permute.xlu0 %1403 }
 0x486   : > { %5414 = vmatpush3.xpose.msk.msra.mxu0 %vm908_vm2, %v1404_v41 }
 0x487   : > { %v5742_v42 = vpop.eup %5741  ;;  %5423 = vmatprep.subr.mxu0 %v5827_v8 }
 0x488   : > { %v994_v43 = vmul.f32 %v5742_v42, %v5740_v35 }
 0x489   : > { %v1402_v44 = vpop.permute.xlu0 %1401 }
 0x48a   : > { %5391 = vmatmul.mubr.msk.f32.vlgmr.msra.gmra.mxu1 %vm908_vm2, %v994_v43  ;;  %5416 = vmatmul.mubr.msk.f32.vlgmr.msra.gmra.mxu0 %vm908_vm2, %v1402_v44 }
 0x48b   : > { %5394 = vmatpush3.xpose.msk.msra.mxu1 %vm908_vm2, %v1074_v37  ;;  %5395 = vmatprep.mubr.msk.f32.mxu1 %vm5828_vm1, %v5827_v8 }
 0x48c   : > { %5398 = vmatprep.subr.mxu1 %v5827_v8  ;;  %5431 = vmatprep.mubr.msk.f32.mxu0 %vm5828_vm1, %v5827_v8 }
 0x48e   : > { %5396 = vmatmul.mubr.msk.f32.vlgmr.msra.gmra.mxu1 %vm908_vm2, %v1072_v39 }
 0x48f   : > { %5400 = vmatprep.mubr.msk.f32.mxu1 %vm5828_vm1, %v5827_v8 }
 0x542   : > { %v1310_v45 = vpop.f32.mrf.mxu0 }
 0x543   : > { %v1314_v46 = vsel %vm908_vm2, %v1310_v45, -inf }
 0x544   : > { %1315 = vmax.xlane.f32.xlu1 %v1314_v46  ;;  %v5407_v47 = vpop.f32.mrf.mxu0 }
 0x54a   : > { %v6071_v48 = vpop.f32.mrf.mxu1  ;;  %v1475_v49 = vpop.f32.mrf.mxu0 }
 0x54b   : > { %v1479_v55 = vsel %vm908_vm2, %v1475_v49, -inf }
 0x54c   : > { %v5392_v50 = vpop.f32.mrf.mxu1  ;;  %v5417_v51 = vpop.f32.mrf.mxu0 }
 0x54d   : > { %v1781_v50 = vld [vmem:[%s6755_s12] sm:$0xff] }
 0x54e   : > { %v1145_v52 = vpop.f32.mrf.mxu1  ;;  %v6155_v51 = vld [vmem:[%s782_s7] sm:$0x1f]  ;;  %s6840_s7 = sld [smem:[#allocation13_spill]] }
 0x54f   : > { %v1149_v53 = vsel %vm908_vm2, %v1145_v52, -inf }
 0x550   : > { %1150 = vmax.xlane.f32.xlu0 %v1149_v53  ;;  %v5397_v54 = vpop.f32.mrf.mxu1  ;;  %v1699_v53 = vld [vmem:[%s6838_s26 + $0x10] sm:$0xff] }
 0x551   : > { %v1698_v54 = vld [vmem:[%s6838_s26 + $0x8] sm:$0xff] }
 0x554   : > { %1480 = vmax.xlane.f32.xlu0 %v1479_v55  ;;  %v1697_v55 = vld [vmem:[%s6838_s26] sm:$0xff]  ;;  %s6860_s26 = sld [smem:[#allocation12_spill]] }
 0x5cd   : > { %v1316_v56 = vpop.xlane.xlu1 %1315 }
 0x5ce   : > { %v1317_v57 = vsub.f32 %v1310_v45, %v1316_v56 }
 0x5d0   : > { %v1318_v58 = vmul.f32 1.442695, %v1317_v57 }
 0x5d2   : > { %5743 = vpow2.f32 %v1318_v58 }
 0x5d9   : > { %v1151_v59 = vpop.xlane.xlu0 %1150 }
 0x5da   : > { %v1152_v60 = vsub.f32 %v1145_v52, %v1151_v59  ;;  %v1700_v52 = vld [vmem:[%s6837_s27 + $0x18] sm:$0xff]  ;;  %s6843_s27 = smov 112  }
 0x5dc   : > { %v1153_v61 = vmul.f32 1.442695, %v1152_v60  ;;  %v5096_v60 = vld [vmem:[%s6839_s5] ss:$0 sm:$0xff]  ;;  %s6870_s5 = sld [smem:[#allocation21_spill]] }
 0x5dd   : > { %v1481_v62 = vpop.xlane.xlu0 %1480 }
 0x5de   : > { %5745 = vpow2.f32 %v1153_v61  ;;  %v1482_v63 = vsub.f32 %v1475_v49, %v1481_v62  ;;  %v1782_v49 = vld [vmem:[%s6755_s12 + $0x8] sm:$0xff]  ;;  %v5097_v62 = vld [vmem:[%s6840_s7] ss:$0 sm:$0xff] }
 0x5df   : > { %v5744_v0 = vpop.eup %5743 }
 0x5e0   : > { %v1483_v1 = vmul.f32 1.442695, %v1482_v63  ;;  %v1320_v2 = vsel %vm908_vm2, %v5744_v0, 0.0 }
 0x5e1   : > { %1321 = vadd.xlane.f32.xlu0 %v1320_v2 }
 0x5e2   : > { %5747 = vpow2.f32 %v1483_v1  ;;  %v5100_v1 = vld [vmem:[%s6841_s13] ss:$0 sm:$0xff]  ;;  %s6855_s13 = smov 56  }
 0x5eb   : > { %v5746_v3 = vpop.eup %5745 }
 0x5ec   : > { %v1155_v4 = vsel %vm908_vm2, %v5746_v3, 0.0 }
 0x5ed   : > { %1156 = vadd.xlane.f32.xlu0 %v1155_v4 }
 0x5ef   : > { %v5748_v5 = vpop.eup %5747 }
 0x5f0   : > { %v1485_v6 = vsel %vm908_vm2, %v5748_v5, 0.0 }
 0x5f1   : > { %1486 = vadd.xlane.f32.xlu1 %v1485_v6  ;;  %v5098_v6 = vld [vmem:[%s6845_s11] ss:$0 sm:$0xff]  ;;  %s6853_s11 = smov 24  }
 0x602   : > { %1325 = vrot.lane.b32.xlu1 %v6028_v23, %s6779_s29  ;;  %s6833_s29 = sld [smem:[#allocation10_spill]] }
 0x603   : > { %1160 = vrot.lane.b32.xlu0 %v6028_v23, %s6780_s9  ;;  %s6842_s9 = smov 120  }
 0x606   : > { %1490 = vrot.lane.b32.xlu1 %v6028_v23, %s6777_s30  ;;  %s6834_s30 = sld [smem:[#allocation11_spill]] }
 0x608   : > { %v1586_v21 = vld [vmem:[%s6833_s29 + $0x18] sm:$0xff]  ;;  %v1585_v22 = vld [vmem:[%s6833_s29 + $0x10] sm:$0xff]  ;;  %v1584_v23 = vld [vmem:[%s6833_s29 + $0x8] sm:$0xff] }
 0x609   : > { %5424 = vmatpush3.msra.mxu0 %v1586_v21  ;;  %v1583_v24 = vld [vmem:[%s6833_s29] sm:$0xff] }
 0x60a   : > { %5425 = vmatprep.subr.mxu0 %v5827_v8 }
 0x60b   : > { %5426 = vmatpush3.msra.mxu0 %v1585_v22 }
 0x60c   : > { %5427 = vmatprep.subr.mxu0 %v5827_v8  ;;  %v5094_v37 = vld [vmem:[%s6834_s30] ss:$0 sm:$0xff] }
 0x60d   : > { %5428 = vmatpush3.msra.mxu0 %v1584_v23 }
 0x60e   : > { %5429 = vmatprep.subr.mxu0 %v5827_v8 }
 0x60f   : > { %5430 = vmatpush3.msra.mxu0 %v1583_v24 }
 0x610   : > { %5445 = vmatprep.subr.mxu0 %v5827_v8 }
 0x66a   : > { %v1322_v7 = vpop.xlane.xlu0 %1321 }
 0x676   : > { %v1157_v9 = vpop.xlane.xlu0 %1156 }
 0x677   : > { %5749 = vrcp.f32 %v1157_v9 }
 0x678   : > { %5751 = vrcp.f32 %v1322_v7 }
 0x67a   : > { %v1487_v10 = vpop.xlane.xlu1 %1486  ;;  %v1161_v11 = vpop.permute.xlu0 %1160 }
 0x67b   : > { %5399 = vmatpush3.msra.mxu1 %v1161_v11  ;;  %5753 = vrcp.f32 %v1487_v10 }
 0x67c   : > { %5408 = vmatprep.subr.mxu1 %v5827_v8 }
 0x67e   : > { %v1326_v13 = vpop.permute.xlu1 %1325 }
 0x682   : > { %v1491_v18 = vpop.permute.xlu1 %1490 }
 0x684   : > { %v5750_v12 = vpop.eup %5749 }
 0x685   : > { %v1159_v14 = vmul.f32 %v5750_v12, %v5746_v3  ;;  %v5752_v15 = vpop.eup %5751 }
 0x686   : > { %v1324_v16 = vmul.f32 %v5752_v15, %v5744_v0 }
 0x687   : > { %5401 = vmatmul.mubr.msk.f32.vlgmr.msra.gmra.mxu1 %vm908_vm2, %v1159_v14 }
 0x688   : > { %5409 = vmatpush3.msra.mxu1 %v1326_v13  ;;  %5410 = vmatprep.mubr.msk.f32.mxu1 %vm5828_vm1, %v5827_v8  ;;  %v5754_v17 = vpop.eup %5753 }
 0x689   : > { %5418 = vmatprep.subr.mxu1 %v5827_v8  ;;  %v1489_v19 = vmul.f32 %v5754_v17, %v5748_v5 }
 0x68b   : > { %5411 = vmatmul.mubr.msk.f32.vlgmr.msra.gmra.mxu1 %vm908_vm2, %v1324_v16 }
 0x68c   : > { %5419 = vmatpush3.msra.mxu1 %v1491_v18  ;;  %5420 = vmatprep.mubr.msk.f32.mxu1 %vm5828_vm1, %v5827_v8 }
 0x68d   : > { %5434 = vmatprep.subr.mxu1 %v5827_v8 }
 0x68f   : > { %5421 = vmatmul.mubr.msk.f32.vlgmr.msra.gmra.mxu1 %vm908_vm2, %v1489_v19 }
 0x690   : > { %5442 = vmatprep.mubr.msk.f32.mxu1 %vm5828_vm1, %v5827_v8  ;;  %5435 = vmatpush3.msra.mxu1 %v1700_v52 }
 0x691   : > { %5436 = vmatprep.subr.mxu1 %v5827_v8 }
 0x692   : > { %5437 = vmatpush3.msra.mxu1 %v1699_v53 }
 0x693   : > { %5438 = vmatprep.subr.mxu1 %v5827_v8 }
 0x694   : > { %5439 = vmatpush3.msra.mxu1 %v1698_v54 }
 0x695   : > { %5440 = vmatprep.subr.mxu1 %v5827_v8 }
 0x696   : > { %5441 = vmatpush3.msra.mxu1 %v1697_v55 }
 0x697   : > { %5456 = vmatprep.subr.mxu1 %v5827_v8 }
 0x747   : > { %v1232_v25 = vpop.f32.mrf.mxu1 }
 0x748   : > { %1567 = vrot.lane.b32.xlu1 %v1232_v25, %s6793_s8  ;;  %s6849_s8 = smov 72  }
 0x749   : > { %v5402_v26 = vpop.f32.mrf.mxu1 }
 0x74b   : > { %v1397_v27 = vpop.f32.mrf.mxu1 }
 0x74c   : > { %1571 = vrot.lane.b32.xlu0 %v1397_v27, %s6791_s10  ;;  %s6844_s10 = smov 104  }
 0x74d   : > { %v5412_v28 = vpop.f32.mrf.mxu1 }
 0x74f   : > { %v1562_v29 = vpop.f32.mrf.mxu1 }
 0x750   : > { %1575 = vrot.lane.b32.xlu1 %v1562_v29, %s6789_s1  ;;  %s6847_s1 = smov 80  }
 0x751   : > { %v5422_v30 = vpop.f32.mrf.mxu1 }
 0x7ba   : > { %v1568_v31 = vpop.permute.xlu1 %1567 }
 0x7bb   : > { %v1578_v33 = vsel %vm908_vm2, %v6071_v48, %v1568_v31  ;;  %v1784_v48 = vld [vmem:[%s6755_s12 + $0x18] sm:$0xff] }
 0x7be   : > { %v1572_v32 = vpop.permute.xlu0 %1571 }
 0x7bf   : > { %v1580_v34 = vsel %vm1579_vm3, %v1578_v33, %v1572_v32 }
 0x7c2   : > { %v1576_v35 = vpop.permute.xlu1 %1575 }
 0x7c3   : > { %v1582_v36 = vsel %vm1581_vm4, %v1580_v34, %v1576_v35 }
 0x7c4   : > { %5432 = vmatmul.mubr.msk.f32.vlgmr.msra.gmra.mxu0 %vm791_vm0, %v1582_v36 }
 0x7c5   : > { %5453 = vmatprep.mubr.msk.f32.mxu0 %vm5828_vm1, %v5827_v8  ;;  %5446 = vmatpush3.msra.mxu0 %v1784_v48 }
 0x7c6   : > { %5447 = vmatprep.subr.mxu0 %v5827_v8 }
 0x884   : > { %v1663_v38 = vpop.f32.mrf.mxu0 }
 0x885   : > { %v1664_v39 = vadd.f32 %v5094_v37, %v1663_v38 }
 0x886   : > { %v5433_v40 = vpop.f32.mrf.mxu0 }
 0x887   : > { %v1667_v41 = vadd.f32 %v1664_v39, %v6019_v20  ;;  %v1783_v20 = vld [vmem:[%s6755_s12 + $0x10] sm:$0xff] }
 0x888   : > { %5448 = vmatpush3.msra.mxu0 %v1783_v20 }
 0x889   : > { %v1670_v42 = vsel %vm791_vm0, %v1667_v41, 0.0  ;;  %5449 = vmatprep.subr.mxu0 %v5827_v8 }
 0x88a   : > { %1671 = vadd.xlane.f32.xlu0 %v1670_v42  ;;  %5450 = vmatpush3.msra.mxu0 %v1782_v49 }
 0x88b   : > { %5451 = vmatprep.subr.mxu0 %v5827_v8 }
 0x88c   : > { %5452 = vmatpush3.msra.mxu0 %v1781_v50 }
 0x88d   : > { %5454 = vmatmul.mubr.msk.f32.vlgmr.msra.gmra.mxu0 %vm791_vm0, %v6155_v51  ;;  %5466 = vmatprep.subr.mxu0 %v5827_v8 }
 0x88e   : > { %5468 = vmatprep.mubr.msk.f32.mxu0 %vm5828_vm1, %v5827_v8 }
 0x913   : > { %v1672_v43 = vpop.xlane.xlu0 %1671 }
 0x914   : > { %v1673_v44 = vmul.f32 0.03125, %v1672_v43 }
 0x916   : > { %v1674_v45 = vsub.f32 %v1667_v41, %v1673_v44 }
 0x918   : > { %v1675_v46 = vmul.f32 %v1674_v45, %v1674_v45 }
 0x91a   : > { %v1676_v47 = vsel %vm791_vm0, %v1675_v46, 0.0 }
 0x91b   : > { %1677 = vadd.xlane.f32.xlu1 %v1676_v47 }
 0x94d   : > { %v1861_v2 = vpop.f32.mrf.mxu0 }
 0x94e   : > { %v6193_v3 = vadd.f32 %v5100_v1, %v1861_v2 }
 0x94f   : > { %v5455_v4 = vpop.f32.mrf.mxu0 }
 0x950   : > { %2034 = vrot.lane.b32.xlu0 %v6193_v3, %s6842_s9  ;;  %v2547_v4 = vld [vmem:[%s6850_s14 + $0x10] sm:$0xff] }
 0x954   : > { %2200 = vrot.lane.b32.xlu0 %v6193_v3, %s6843_s27 }
 0x958   : > { %2366 = vrot.lane.b32.xlu0 %v6193_v3, %s6844_s10 }
 0x9a4   : > { %v1678_v56 = vpop.xlane.xlu1 %1677 }
 0x9a5   : > { %v1679_v57 = vmul.f32 0.03125, %v1678_v56 }
 0x9a7   : > { %v1680_v58 = vadd.f32 1e-12, %v1679_v57 }
 0x9a9   : > { %5755 = vrsqrt.f32 %v1680_v58 }
 0x9b6   : > { %v5756_v59 = vpop.eup %5755 }
 0x9b7   : > { %v1682_v61 = vmul.f32 %v5756_v59, %v1674_v45 }
 0x9b9   : > { %v1689_v63 = vmul.f32 %v5096_v60, %v1682_v61 }
 0x9bb   : > { %v6184_v0 = vadd.f32 %v5097_v62, %v1689_v63 }
 0x9bd   : > { %5443 = vmatmul.mubr.msk.f32.vlgmr.msra.gmra.mxu1 %vm791_vm0, %v6184_v0 }
 0x9be   : > { %5458 = vmatprep.mubr.msk.f32.mxu1 %vm5828_vm1, %v5827_v8  ;;  %5457 = vmatpush3.xpose.msk.msra.mxu1 %vm908_vm2, %v6193_v3 }
 0x9bf   : > { %5461 = vmatprep.subr.mxu1 %v5827_v8 }
 0x9c2   : > { %v2035_v5 = vpop.permute.xlu0 %2034 }
 0x9c3   : > { %5467 = vmatpush3.xpose.msk.msra.mxu0 %vm908_vm2, %v2035_v5 }
 0x9c4   : > { %5476 = vmatprep.subr.mxu0 %v5827_v8 }
 0x9c6   : > { %v2201_v12 = vpop.permute.xlu0 %2200 }
 0x9ca   : > { %v2367_v15 = vpop.permute.xlu0 %2366 }
 0xa7d   : > { %v1777_v7 = vpop.f32.mrf.mxu1 }
 0xa7e   : > { %v1778_v9 = vadd.f32 %v5098_v6, %v1777_v7  ;;  %v2546_v6 = vld [vmem:[%s6850_s14 + $0x8] sm:$0xff] }
 0xa7f   : > { %v5444_v10 = vpop.f32.mrf.mxu1 }
 0xa80   : > { %v1865_v11 = vmul.f32 0.35355338, %v1778_v9 }
 0xa82   : > { %2032 = vrot.lane.b32.xlu1 %v1865_v11, %s6842_s9  ;;  %5459 = vmatmul.mubr.msk.f32.vlgmr.msra.gmra.mxu1 %vm908_vm2, %v1865_v11 }
 0xa83   : > { %5463 = vmatprep.mubr.msk.f32.mxu1 %vm5828_vm1, %v5827_v8 }
 0xa86   : > { %2198 = vrot.lane.b32.xlu1 %v1865_v11, %s6843_s27 }
 0xa8a   : > { %2364 = vrot.lane.b32.xlu1 %v1865_v11, %s6844_s10 }
 0xaf4   : > { %v2033_v13 = vpop.permute.xlu1 %2032 }
 0xaf5   : > { %5469 = vmatmul.mubr.msk.f32.vlgmr.msra.gmra.mxu0 %vm908_vm2, %v2033_v13  ;;  %v2545_v13 = vld [vmem:[%s6850_s14] sm:$0xff] }
 0xaf6   : > { %5477 = vmatpush3.xpose.msk.msra.mxu0 %vm908_vm2, %v2201_v12  ;;  %5478 = vmatprep.mubr.msk.f32.mxu0 %vm5828_vm1, %v5827_v8 }
 0xaf7   : > { %5486 = vmatprep.subr.mxu0 %v5827_v8 }
 0xaf8   : > { %v2199_v14 = vpop.permute.xlu1 %2198 }
 0xaf9   : > { %5479 = vmatmul.mubr.msk.f32.vlgmr.msra.gmra.mxu0 %vm908_vm2, %v2199_v14 }
 0xafa   : > { %5487 = vmatpush3.xpose.msk.msra.mxu0 %vm908_vm2, %v2367_v15  ;;  %5488 = vmatprep.mubr.msk.f32.mxu0 %vm5828_vm1, %v5827_v8 }
 0xafb   : > { %5496 = vmatprep.subr.mxu0 %v5827_v8 }
 0xafc   : > { %v2365_v16 = vpop.permute.xlu1 %2364 }
 0xafd   : > { %5489 = vmatmul.mubr.msk.f32.vlgmr.msra.gmra.mxu0 %vm908_vm2, %v2365_v16 }
 0xafe   : > { %5504 = vmatprep.mubr.msk.f32.mxu0 %vm5828_vm1, %v5827_v8 }
 0xb42   : > { %v1938_v17 = vpop.f32.mrf.mxu1 }
 0xb43   : > { %v1943_v18 = vsel %vm1942_vm5, %v1938_v17, -inf }
 0xb44   : > { %1944 = vmax.xlane.f32.xlu0 %v1943_v18  ;;  %v5460_v19 = vpop.f32.mrf.mxu1 }
 0xbb5   : > { %v2106_v21 = vpop.f32.mrf.mxu0 }
 0xbb6   : > { %v2110_v22 = vsel %vm1942_vm5, %v2106_v21, -inf }
 0xbb7   : > { %2111 = vmax.xlane.f32.xlu1 %v2110_v22  ;;  %v5470_v23 = vpop.f32.mrf.mxu0 }
 0xbb8   : > { %v5118_v23 = vld [vmem:[%s6854_s15] ss:$0 sm:$0xff]  ;;  %s6858_s15 = smov 40  }
 0xbb9   : > { %v2272_v24 = vpop.f32.mrf.mxu0 }
 0xbba   : > { %v2276_v25 = vsel %vm1942_vm5, %v2272_v24, -inf }
 0xbbb   : > { %2277 = vmax.xlane.f32.xlu0 %v2276_v25  ;;  %v5480_v26 = vpop.f32.mrf.mxu0 }
 0xbbd   : > { %v2438_v27 = vpop.f32.mrf.mxu0 }
 0xbbe   : > { %v2442_v28 = vsel %vm1942_vm5, %v2438_v27, -inf }
 0xbbf   : > { %2443 = vmax.xlane.f32.xlu0 %v2442_v28  ;;  %v5490_v29 = vpop.f32.mrf.mxu0 }
 0xbcd   : > { %v1945_v30 = vpop.xlane.xlu0 %1944 }
 0xbce   : > { %v1946_v31 = vsub.f32 %v1938_v17, %v1945_v30 }
 0xbd0   : > { %v1947_v32 = vmul.f32 1.442695, %v1946_v31 }
 0xbd2   : > { %5757 = vpow2.f32 %v1947_v32 }
 0xbdf   : > { %v5758_v33 = vpop.eup %5757 }
 0xbe0   : > { %v1949_v34 = vsel %vm1942_vm5, %v5758_v33, 0.0 }
 0xbe1   : > { %1950 = vadd.xlane.f32.xlu0 %v1949_v34  ;;  %v2662_v34 = vld [vmem:[%s6761_s18 + $0x18] sm:$0xff] }
 0xc40   : > { %v2112_v35 = vpop.xlane.xlu1 %2111 }
 0xc41   : > { %v2113_v36 = vsub.f32 %v2106_v21, %v2112_v35  ;;  %v2661_v35 = vld [vmem:[%s6761_s18 + $0x10] sm:$0xff] }
 0xc43   : > { %v2114_v37 = vmul.f32 1.442695, %v2113_v36  ;;  %v2659_v36 = vld [vmem:[%s6761_s18] sm:$0xff] }
 0xc44   : > { %v2278_v38 = vpop.xlane.xlu0 %2277 }
 0xc45   : > { %5759 = vpow2.f32 %v2114_v37  ;;  %v2279_v39 = vsub.f32 %v2272_v24, %v2278_v38 }
 0xc47   : > { %v2280_v40 = vmul.f32 1.442695, %v2279_v39 }
 0xc48   : > { %v2444_v45 = vpop.xlane.xlu0 %2443 }
 0xc49   : > { %5761 = vpow2.f32 %v2280_v40  ;;  %v2445_v46 = vsub.f32 %v2438_v27, %v2444_v45 }
 0xc4b   : > { %v2446_v47 = vmul.f32 1.442695, %v2445_v46  ;;  %v2759_v46 = vld [vmem:[%s6763_s20 + $0x38] sm:$0xff] }
 0xc4d   : > { %5763 = vpow2.f32 %v2446_v47  ;;  %v2758_v47 = vld [vmem:[%s6763_s20 + $0x30] sm:$0xff] }
 0xc52   : > { %v5760_v41 = vpop.eup %5759 }
 0xc53   : > { %v2116_v42 = vsel %vm1942_vm5, %v5760_v41, 0.0 }
 0xc54   : > { %2117 = vadd.xlane.f32.xlu1 %v2116_v42 }
 0xc56   : > { %v5762_v43 = vpop.eup %5761 }
 0xc57   : > { %v2282_v44 = vsel %vm1942_vm5, %v5762_v43, 0.0 }
 0xc58   : > { %2283 = vadd.xlane.f32.xlu0 %v2282_v44 }
 0xc5a   : > { %v5764_v48 = vpop.eup %5763 }
 0xc5b   : > { %v2448_v20 = vsel %vm1942_vm5, %v5764_v48, 0.0 }
 0xc65   : > { %2121 = vrot.lane.b32.xlu1 %v6193_v3, %s6846_s28 }
 0xc69   : > { %2287 = vrot.lane.b32.xlu1 %v6193_v3, %s6847_s1 }
 0xc6a   : > { %v1951_v49 = vpop.xlane.xlu0 %1950 }
 0xc6b   : > { %5765 = vrcp.f32 %v1951_v49  ;;  %v2755_v49 = vld [vmem:[%s6763_s20 + $0x18] sm:$0xff] }
 0xc6e   : > { %1954 = vrot.lane.b32.xlu0 %v6193_v3, %s6848_s4 }
 0xc78   : > { %v5766_v53 = vpop.eup %5765 }
 0xc79   : > { %v1953_v55 = vmul.f32 %v5766_v53, %v5758_v33  ;;  %v2752_v53 = vld [vmem:[%s6763_s20] sm:$0xff] }
 0xc8d   : > { %2449 = vadd.xlane.f32.xlu1 %v2448_v20  ;;  %v2756_v20 = vld [vmem:[%s6763_s20 + $0x20] sm:$0xff] }
 0xc9e   : > { %2453 = vrot.lane.b32.xlu1 %v6193_v3, %s6849_s8  ;;  %v2548_v3 = vld [vmem:[%s6850_s14 + $0x18] sm:$0xff]  ;;  %s6857_s14 = smov 64  }
 0xc9f   : > { %5497 = vmatpush3.msra.mxu0 %v2548_v3 }
 0xca0   : > { %5498 = vmatprep.subr.mxu0 %v5827_v8 }
 0xca1   : > { %5499 = vmatpush3.msra.mxu0 %v2547_v4  ;;  %v5124_v4 = vld [vmem:[%s6764_s21] ss:$0 sm:$0xff] }
 0xca2   : > { %5500 = vmatprep.subr.mxu0 %v5827_v8 }
 0xca3   : > { %5501 = vmatpush3.msra.mxu0 %v2546_v6 }
 0xca4   : > { %5502 = vmatprep.subr.mxu0 %v5827_v8 }
 0xca5   : > { %5503 = vmatpush3.msra.mxu0 %v2545_v13 }
 0xca6   : > { %5518 = vmatprep.subr.mxu0 %v5827_v8 }
 0xcdd   : > { %v2118_v50 = vpop.xlane.xlu1 %2117 }
 0xcde   : > { %5767 = vrcp.f32 %v2118_v50  ;;  %v2754_v50 = vld [vmem:[%s6763_s20 + $0x10] sm:$0xff] }
 0xce1   : > { %v2284_v52 = vpop.xlane.xlu0 %2283  ;;  %v2122_v56 = vpop.permute.xlu1 %2121 }
 0xce2   : > { %5769 = vrcp.f32 %v2284_v52  ;;  %v2753_v52 = vld [vmem:[%s6763_s20 + $0x8] sm:$0xff] }
 0xce5   : > { %v1955_v54 = vpop.permute.xlu0 %1954  ;;  %v2288_v59 = vpop.permute.xlu1 %2287 }
 0xce6   : > { %5462 = vmatpush3.msk.msra.mxu1 %vm1959_vm6, %v1955_v54  ;;  %v5122_v54 = vld [vmem:[%s6762_s19] ss:$0 sm:$0xff] }
 0xce7   : > { %5464 = vmatmul.mubr.msk.f32.vlgmr.msra.gmra.mxu1 %vm1942_vm5, %v1953_v55  ;;  %5471 = vmatprep.subr.mxu1 %v5827_v8 }
 0xce8   : > { %5472 = vmatpush3.msk.msra.mxu1 %vm1959_vm6, %v2122_v56  ;;  %5473 = vmatprep.mubr.msk.f32.mxu1 %vm5828_vm1, %v5827_v8 }
 0xce9   : > { %5481 = vmatprep.subr.mxu1 %v5827_v8 }
 0xceb   : > { %v5768_v57 = vpop.eup %5767 }
 0xcec   : > { %v2120_v58 = vmul.f32 %v5768_v57, %v5760_v41  ;;  %v5120_v41 = vld [vmem:[%s6759_s16] ss:$0 sm:$0xff] }
 0xcee   : > { %5474 = vmatmul.mubr.msk.f32.vlgmr.msra.gmra.mxu1 %vm1942_vm5, %v2120_v58 }
 0xcef   : > { %v5770_v60 = vpop.eup %5769  ;;  %5482 = vmatpush3.msk.msra.mxu1 %vm1959_vm6, %v2288_v59  ;;  %5483 = vmatprep.mubr.msk.f32.mxu1 %vm5828_vm1, %v5827_v8 }
 0xcf0   : > { %v2286_v61 = vmul.f32 %v5770_v60, %v5762_v43  ;;  %5491 = vmatprep.subr.mxu1 %v5827_v8  ;;  %v5121_v43 = vld [vmem:[%s6760_s17] ss:$0 sm:$0xff] }
 0xcf2   : > { %5484 = vmatmul.mubr.msk.f32.vlgmr.msra.gmra.mxu1 %vm1942_vm5, %v2286_v61 }
 0xcf3   : > { %5493 = vmatprep.mubr.msk.f32.mxu1 %vm5828_vm1, %v5827_v8 }
 0xd16   : > { %v2450_v62 = vpop.xlane.xlu1 %2449 }
 0xd17   : > { %5771 = vrcp.f32 %v2450_v62 }
 0xd1a   : > { %v2454_v63 = vpop.permute.xlu1 %2453 }
 0xd1b   : > { %5492 = vmatpush3.msk.msra.mxu1 %vm1959_vm6, %v2454_v63 }
 0xd1c   : > { %5507 = vmatprep.subr.mxu1 %v5827_v8 }
 0xd24   : > { %v5772_v1 = vpop.eup %5771 }
 0xd25   : > { %v2452_v2 = vmul.f32 %v5772_v1, %v5764_v48  ;;  %v2757_v48 = vld [vmem:[%s6763_s20 + $0x28] sm:$0xff] }
 0xd27   : > { %5494 = vmatmul.mubr.msk.f32.vlgmr.msra.gmra.mxu1 %vm1942_vm5, %v2452_v2 }
 0xd28   : > { %5515 = vmatprep.mubr.msk.f32.mxu1 %vm5828_vm1, %v5827_v8  ;;  %5508 = vmatpush3.msra.mxu1 %v2662_v34 }
 0xd29   : > { %5509 = vmatprep.subr.mxu1 %v5827_v8 }
 0xd2a   : > { %5510 = vmatpush3.msra.mxu1 %v2661_v35 }
 0xd2b   : > { %5511 = vmatprep.subr.mxu1 %v5827_v8 }
 0xda7   : > { %v2028_v5 = vpop.f32.mrf.mxu1 }
 0xda9   : > { %v5465_v7 = vpop.f32.mrf.mxu1 }
 0xdae   : > { %v2194_v9 = vpop.f32.mrf.mxu1 }
 0xdaf   : > { %2531 = vrot.lane.b32.xlu0 %v2194_v9, %s6851_s25 }
 0xdb0   : > { %v5475_v10 = vpop.f32.mrf.mxu1 }
 0xdb2   : > { %v2360_v11 = vpop.f32.mrf.mxu1 }
 0xdb3   : > { %2535 = vrot.lane.b32.xlu1 %v2360_v11, %s6852_s24 }
 0xdb4   : > { %v5485_v12 = vpop.f32.mrf.mxu1 }
 0xde7   : > { %v2526_v14 = vpop.f32.mrf.mxu1 }
 0xde8   : > { %2539 = vrot.lane.b32.xlu0 %v2526_v14, %s6853_s11 }
 0xde9   : > { %v5495_v15 = vpop.f32.mrf.mxu1 }
 0xe21   : > { %v2532_v16 = vpop.permute.xlu0 %2531 }
 0xe22   : > { %v2542_v18 = vsel %vm908_vm2, %v2028_v5, %v2532_v16  ;;  %v5131_v16 = vld [vmem:[%s6829_s0 + $0x38] sm:$0xff] }
 0xe25   : > { %v2536_v17 = vpop.permute.xlu1 %2535 }
 0xe26   : > { %v2543_v19 = vsel %vm1579_vm3, %v2542_v18, %v2536_v17  ;;  %v5130_v17 = vld [vmem:[%s6829_s0 + $0x30] sm:$0xff]  ;;  %v5129_v18 = vld [vmem:[%s6829_s0 + $0x28] sm:$0xff] }
 0xe5a   : > { %v2540_v21 = vpop.permute.xlu0 %2539 }
 0xe5b   : > { %v2544_v22 = vsel %vm1581_vm4, %v2543_v19, %v2540_v21  ;;  %v5128_v19 = vld [vmem:[%s6829_s0 + $0x20] sm:$0xff] }
 0xe5c   : > { %5505 = vmatmul.mubr.msk.f32.vlgmr.msra.gmra.mxu0 %vm791_vm0, %v2544_v22 }
 0xe5d   : > { %5534 = vmatprep.mubr.msk.f32.mxu0 %vm5828_vm1, %v5827_v8  ;;  %5519 = vmatpush3.msra.mxu0 %v2759_v46 }
 0xe5e   : > { %5520 = vmatprep.subr.mxu0 %v5827_v8 }
 0xe5f   : > { %5521 = vmatpush3.msra.mxu0 %v2758_v47 }
 0xe60   : > { %5522 = vmatprep.subr.mxu0 %v5827_v8 }
 0xe61   : > { %5523 = vmatpush3.msra.mxu0 %v2757_v48 }
 0xe62   : > { %5524 = vmatprep.subr.mxu0 %v5827_v8 }
 0xe63   : > { %5525 = vmatpush3.msra.mxu0 %v2756_v20 }
 0xe64   : > { %5526 = vmatprep.subr.mxu0 %v5827_v8 }
 0xe65   : > { %5527 = vmatpush3.msra.mxu0 %v2755_v49 }
 0xe66   : > { %5528 = vmatprep.subr.mxu0 %v5827_v8 }
 0xe67   : > { %5529 = vmatpush3.msra.mxu0 %v2754_v50 }
 0xe68   : > { %5530 = vmatprep.subr.mxu0 %v5827_v8 }
 0xe69   : > { %5531 = vmatpush3.msra.mxu0 %v2753_v52 }
 0xe6a   : > { %5532 = vmatprep.subr.mxu0 %v5827_v8 }
 0xe6b   : > { %5533 = vmatpush3.msra.mxu0 %v2752_v53 }
 0xe6c   : > { %5558 = vmatprep.subr.mxu0 %v5827_v8 }
 0xf1c   : > { %v2625_v24 = vpop.f32.mrf.mxu0 }
 0xf1d   : > { %v2626_v25 = vadd.f32 %v5118_v23, %v2625_v24 }
 0xf1e   : > { %v5506_v26 = vpop.f32.mrf.mxu0 }
 0xf1f   : > { %v2629_v27 = vadd.f32 %v2626_v25, %v6184_v0  ;;  %v2660_v0 = vld [vmem:[%s6761_s18 + $0x8] sm:$0xff]  ;;  %v5126_v25 = vld [vmem:[%s6765_s22] ss:$0 sm:$0xff] }
 0xf20   : > { %5512 = vmatpush3.msra.mxu1 %v2660_v0 }
 0xf21   : > { %v2632_v28 = vsel %vm791_vm0, %v2629_v27, 0.0  ;;  %5513 = vmatprep.subr.mxu1 %v5827_v8 }
 0xf22   : > { %2633 = vadd.xlane.f32.xlu1 %v2632_v28  ;;  %5514 = vmatpush3.msra.mxu1 %v2659_v36 }
 0xf23   : > { %5537 = vmatprep.subr.mxu1 %v5827_v8 }
 0xfab   : > { %v2634_v29 = vpop.xlane.xlu1 %2633 }
 0xfac   : > { %v2635_v30 = vmul.f32 0.03125, %v2634_v29 }
 0xfae   : > { %v2636_v31 = vsub.f32 %v2629_v27, %v2635_v30  ;;  %v5127_v27 = vld [vmem:[%s6766_s23] ss:$0 sm:$0xff]  ;;  %v5133_v30 = vld [vmem:[%s6832_s2 + $0x1] ss:$0 sm:$0xff]  ;;  %s6862_s2 = sld [smem:[#allocation16_spill]] }
 0xfb0   : > { %v2637_v32 = vmul.f32 %v2636_v31, %v2636_v31 }
 0xfb2   : > { %v2638_v33 = vsel %vm791_vm0, %v2637_v32, 0.0 }
 0xfb3   : > { %2639 = vadd.xlane.f32.xlu0 %v2638_v33 }
0x103c   : > { %v2640_v37 = vpop.xlane.xlu0 %2639 }
0x103d   : > { %v2641_v38 = vmul.f32 0.03125, %v2640_v37 }
0x103f   : > { %v2642_v39 = vadd.f32 1e-12, %v2641_v38 }
0x1041   : > { %5773 = vrsqrt.f32 %v2642_v39 }
0x104e   : > { %v5774_v40 = vpop.eup %5773 }
0x104f   : > { %v2644_v42 = vmul.f32 %v5774_v40, %v2636_v31 }
0x1051   : > { %v2651_v44 = vmul.f32 %v5120_v41, %v2644_v42 }
0x1053   : > { %v2658_v45 = vadd.f32 %v5121_v43, %v2651_v44 }
0x1055   : > { %5516 = vmatmul.mubr.msk.f32.vlgmr.msra.gmra.mxu1 %vm791_vm0, %v2658_v45 }
0x1056   : > { %5545 = vmatprep.mubr.msk.f32.mxu1 %vm5828_vm1, %v5827_v8  ;;  %5538 = vmatpush3.msra.mxu1 %v5131_v16 }
0x1057   : > { %5539 = vmatprep.subr.mxu1 %v5827_v8 }
0x1058   : > { %5540 = vmatpush3.msra.mxu1 %v5130_v17 }
0x1059   : > { %5541 = vmatprep.subr.mxu1 %v5827_v8 }
0x105a   : > { %5542 = vmatpush3.msra.mxu1 %v5129_v18 }
0x105b   : > { %5543 = vmatprep.subr.mxu1 %v5827_v8 }
0x105c   : > { %5544 = vmatpush3.msra.mxu1 %v5128_v19 }
0x105d   : > { %5548 = vmatprep.subr.mxu1 %v5827_v8 }
0x1115   : > { %v2739_v55 = vpop.f32.mrf.mxu1 }
0x1116   : > { %v2740_v56 = vadd.f32 %v5122_v54, %v2739_v55 }
0x1117   : > { %v5517_v57 = vpop.f32.mrf.mxu1 }
0x1118   : > { %v2744_v58 = vmul.f32 0.044715, %v2740_v56  ;;  %v2743_v1 = vmul.f32 0.5, %v2740_v56 }
0x111a   : > { %v2745_v59 = vmul.f32 %v2744_v58, %v2740_v56 }
0x111c   : > { %v2746_v60 = vmul.f32 %v2745_v59, %v2740_v56 }
0x111e   : > { %v2747_v61 = vadd.f32 %v2746_v60, %v2740_v56 }
0x1120   : > { %v2748_v62 = vmul.f32 0.7978846, %v2747_v61 }
0x1122   : > { %5775 = vtanh.f32 %v2748_v62 }
0x112f   : > { %v5776_v63 = vpop.eup %5775 }
0x1130   : > { %v2750_v2 = vadd.f32 1.0, %v5776_v63 }
0x1132   : > { %v2751_v3 = vmul.f32 %v2750_v2, %v2743_v1 }
0x1134   : > { %5535 = vmatmul.mubr.msk.f32.vlgmr.msra.gmra.mxu0 %vm2767_vm7, %v2751_v3 }
0x1135   : > { %5560 = vmatprep.mubr.msk.f32.mxu0 %vm5828_vm1, %v5827_v8 }
0x11f4   : > { %v2837_v5 = vpop.f32.mrf.mxu0 }
0x11f5   : > { %v2838_v6 = vadd.f32 %v5124_v4, %v2837_v5 }
0x11f6   : > { %v5536_v7 = vpop.f32.mrf.mxu0 }
0x11f7   : > { %v2841_v9 = vadd.f32 %v2838_v6, %v2658_v45 }
0x11f9   : > { %v2844_v10 = vsel %vm791_vm0, %v2841_v9, 0.0 }
0x11fa   : > { %2845 = vadd.xlane.f32.xlu0 %v2844_v10 }
0x1283   : > { %v2846_v11 = vpop.xlane.xlu0 %2845 }
0x1284   : > { %v2847_v12 = vmul.f32 0.03125, %v2846_v11 }
0x1286   : > { %v2848_v13 = vsub.f32 %v2841_v9, %v2847_v12 }
0x1288   : > { %v2849_v14 = vmul.f32 %v2848_v13, %v2848_v13 }
0x128a   : > { %v2850_v15 = vsel %vm791_vm0, %v2849_v14, 0.0 }
0x128b   : > { %2851 = vadd.xlane.f32.xlu0 %v2850_v15 }
0x1314   : > { %v2852_v21 = vpop.xlane.xlu0 %2851 }
0x1315   : > { %v2853_v22 = vmul.f32 0.03125, %v2852_v21 }
0x1317   : > { %v2854_v23 = vadd.f32 1e-12, %v2853_v22 }
0x1319   : > { %5777 = vrsqrt.f32 %v2854_v23 }
0x1326   : > { %v5778_v24 = vpop.eup %5777 }
0x1327   : > { %v2856_v26 = vmul.f32 %v5778_v24, %v2848_v13 }
0x1329   : > { %v2863_v28 = vmul.f32 %v5126_v25, %v2856_v26 }
0x132b   : > { %v6385_v29 = vadd.f32 %v5127_v27, %v2863_v28  ;;  %v5150_v28 = vld [vmem:[%s6833_s29 + $0x38] sm:$0xff] }
0x132d   : > { %5546 = vmatmul.mubr.msk.f32.vlgmr.msra.gmra.mxu1 %vm791_vm0, %v6385_v29 }
0x132e   : > { %5550 = vmatprep.mubr.msk.f32.mxu1 %vm5828_vm1, %v5827_v8 }
0x13ed   : > { %v2953_v31 = vpop.f32.mrf.mxu1 }
0x13ee   : > { %v6394_v32 = vadd.f32 %v5133_v30, %v2953_v31  ;;  %v5149_v30 = vld [vmem:[%s6833_s29 + $0x30] sm:$0xff]  ;;  %v5148_v31 = vld [vmem:[%s6833_s29 + $0x28] sm:$0xff] }
0x13ef   : > { %v5547_v33 = vpop.f32.mrf.mxu1 }
0x13f0   : > { %3125 = vrot.lane.b32.xlu0 %v6394_v32, %s6846_s28  ;;  %2959 = vrot.lane.b32.xlu1 %v6394_v32, %s6848_s4  ;;  %v2957_v34 = vmul.f32 0.35355338, %v6394_v32 }
0x13f4   : > { %3455 = vrot.lane.b32.xlu0 %v6394_v32, %s6849_s8  ;;  %3290 = vrot.lane.b32.xlu1 %v6394_v32, %s6847_s1 }
0x13f8   : > { %3123 = vrot.lane.b32.xlu1 %v2957_v34, %s6842_s9 }
0x13fc   : > { %3288 = vrot.lane.b32.xlu1 %v2957_v34, %s6843_s27 }
0x1400   : > { %3453 = vrot.lane.b32.xlu1 %v2957_v34, %s6844_s10 }
0x1462   : > { %v3126_v35 = vpop.permute.xlu0 %3125  ;;  %v2960_v0 = vpop.permute.xlu1 %2959 }
0x1463   : > { %5549 = vmatpush3.xpose.msk.msra.mxu1 %vm908_vm2, %v2960_v0  ;;  %5559 = vmatpush3.xpose.msk.msra.mxu0 %vm908_vm2, %v3126_v35 }
0x1464   : > { %5568 = vmatprep.subr.mxu0 %v5827_v8  ;;  %5553 = vmatprep.subr.mxu1 %v5827_v8 }
0x1466   : > { %v3291_v36 = vpop.permute.xlu1 %3290  ;;  %5551 = vmatmul.mubr.msk.f32.vlgmr.msra.gmra.mxu1 %vm908_vm2, %v2957_v34  ;;  %v3456_v39 = vpop.permute.xlu0 %3455 }
0x1467   : > { %5555 = vmatprep.mubr.msk.f32.mxu1 %vm5828_vm1, %v5827_v8 }
0x146a   : > { %v3124_v37 = vpop.permute.xlu1 %3123 }
0x146b   : > { %5561 = vmatmul.mubr.msk.f32.vlgmr.msra.gmra.mxu0 %vm908_vm2, %v3124_v37  ;;  %v5147_v37 = vld [vmem:[%s6833_s29 + $0x20] sm:$0xff] }
0x146c   : > { %5569 = vmatpush3.xpose.msk.msra.mxu0 %vm908_vm2, %v3291_v36  ;;  %5570 = vmatprep.mubr.msk.f32.mxu0 %vm5828_vm1, %v5827_v8 }
0x146d   : > { %5578 = vmatprep.subr.mxu0 %v5827_v8 }
0x146e   : > { %v3289_v38 = vpop.permute.xlu1 %3288 }
0x146f   : > { %5571 = vmatmul.mubr.msk.f32.vlgmr.msra.gmra.mxu0 %vm908_vm2, %v3289_v38 }
0x1470   : > { %5579 = vmatpush3.xpose.msk.msra.mxu0 %vm908_vm2, %v3456_v39  ;;  %5580 = vmatprep.mubr.msk.f32.mxu0 %vm5828_vm1, %v5827_v8 }
0x1471   : > { %5588 = vmatprep.subr.mxu0 %v5827_v8 }
0x1472   : > { %v3454_v40 = vpop.permute.xlu1 %3453 }
0x1473   : > { %5581 = vmatmul.mubr.msk.f32.vlgmr.msra.gmra.mxu0 %vm908_vm2, %v3454_v40 }
0x1474   : > { %5596 = vmatprep.mubr.msk.f32.mxu0 %vm5828_vm1, %v5827_v8  ;;  %5589 = vmatpush3.msra.mxu0 %v5150_v28 }
0x1475   : > { %5590 = vmatprep.subr.mxu0 %v5827_v8 }
0x1476   : > { %5591 = vmatpush3.msra.mxu0 %v5149_v30 }
0x1477   : > { %5592 = vmatprep.subr.mxu0 %v5827_v8 }
0x1478   : > { %5593 = vmatpush3.msra.mxu0 %v5148_v31 }
0x1479   : > { %5594 = vmatprep.subr.mxu0 %v5827_v8 }
0x147a   : > { %5595 = vmatpush3.msra.mxu0 %v5147_v37 }
0x147b   : > { %5610 = vmatprep.subr.mxu0 %v5827_v8 }
0x1526   : > { %v3032_v41 = vpop.f32.mrf.mxu1 }
0x1527   : > { %v3036_v42 = vsel %vm908_vm2, %v3032_v41, -inf }
0x1528   : > { %3037 = vmax.xlane.f32.xlu0 %v3036_v42  ;;  %v5552_v43 = vpop.f32.mrf.mxu1 }
0x152b   : > { %v3197_v44 = vpop.f32.mrf.mxu0 }
0x152c   : > { %v3201_v45 = vsel %vm908_vm2, %v3197_v44, -inf }
0x152d   : > { %3202 = vmax.xlane.f32.xlu1 %v3201_v45  ;;  %v5562_v46 = vpop.f32.mrf.mxu0 }
0x152e   : > { %v5152_v46 = vld [vmem:[%s6834_s30 + $0x1] ss:$0 sm:$0xff] }
0x152f   : > { %v3362_v47 = vpop.f32.mrf.mxu0 }
0x1530   : > { %v3366_v48 = vsel %vm908_vm2, %v3362_v47, -inf }
0x1531   : > { %3367 = vmax.xlane.f32.xlu0 %v3366_v48  ;;  %v5572_v20 = vpop.f32.mrf.mxu0 }
0x1533   : > { %v3527_v49 = vpop.f32.mrf.mxu0 }
0x1534   : > { %v3531_v50 = vsel %vm908_vm2, %v3527_v49, -inf }
0x1535   : > { %3532 = vmax.xlane.f32.xlu0 %v3531_v50  ;;  %v5582_v52 = vpop.f32.mrf.mxu0 }
0x15b1   : > { %v3038_v53 = vpop.xlane.xlu0 %3037 }
0x15b2   : > { %v3039_v54 = vsub.f32 %v3032_v41, %v3038_v53 }
0x15b4   : > { %v3040_v55 = vmul.f32 1.442695, %v3039_v54 }
0x15b6   : > { %5779 = vpow2.f32 %v3040_v55  ;;  %v3203_v56 = vpop.xlane.xlu1 %3202 }
0x15b7   : > { %v3204_v57 = vsub.f32 %v3197_v44, %v3203_v56 }
0x15b9   : > { %v3205_v58 = vmul.f32 1.442695, %v3204_v57  ;;  %v5168_v57 = vld [vmem:[%s6755_s12 + $0x38] sm:$0xff] }
0x15ba   : > { %v3368_v59 = vpop.xlane.xlu0 %3367 }
0x15bb   : > { %5781 = vpow2.f32 %v3205_v58  ;;  %v3369_v60 = vsub.f32 %v3362_v47, %v3368_v59  ;;  %v5167_v58 = vld [vmem:[%s6755_s12 + $0x30] sm:$0xff] }
0x15bd   : > { %v3370_v61 = vmul.f32 1.442695, %v3369_v60  ;;  %v5166_v60 = vld [vmem:[%s6755_s12 + $0x28] sm:$0xff] }
0x15be   : > { %v3533_v5 = vpop.xlane.xlu0 %3532 }
0x15bf   : > { %5783 = vpow2.f32 %v3370_v61  ;;  %v3534_v6 = vsub.f32 %v3527_v49, %v3533_v5  ;;  %v5156_v5 = vld [vmem:[%s6860_s26 + $0x1] ss:$0 sm:$0xff]  ;;  %s6863_s26 = sld [smem:[#allocation15_spill]] }
0x15c1   : > { %v3535_v7 = vmul.f32 1.442695, %v3534_v6 }
0x15c3   : > { %v5780_v62 = vpop.eup %5779  ;;  %5785 = vpow2.f32 %v3535_v7 }
0x15c4   : > { %v3042_v63 = vsel %vm908_vm2, %v5780_v62, 0.0 }
0x15c5   : > { %3043 = vadd.xlane.f32.xlu0 %v3042_v63 }
0x15c8   : > { %v5782_v1 = vpop.eup %5781 }
0x15c9   : > { %v3207_v2 = vsel %vm908_vm2, %v5782_v1, 0.0 }
0x15ca   : > { %3208 = vadd.xlane.f32.xlu1 %v3207_v2 }
0x15cc   : > { %v5784_v3 = vpop.eup %5783 }
0x15cd   : > { %v3372_v4 = vsel %vm908_vm2, %v5784_v3, 0.0 }
0x15ce   : > { %3373 = vadd.xlane.f32.xlu0 %v3372_v4 }
0x15d0   : > { %v5786_v9 = vpop.eup %5785 }
0x15d1   : > { %v3537_v10 = vsel %vm908_vm2, %v5786_v9, 0.0 }
0x15db   : > { %3212 = vrot.lane.b32.xlu1 %v6394_v32, %s6855_s13  ;;  %s6866_s13 = sld [smem:[#allocation19_spill]] }
0x15df   : > { %3377 = vrot.lane.b32.xlu1 %v6394_v32, %s6856_s3  ;;  %s6861_s3 = sld [smem:[#allocation13_spill]] }
0x15e4   : > { %3047 = vrot.lane.b32.xlu0 %v6394_v32, %s6857_s14  ;;  %s6859_s14 = sld [smem:[#allocation14_spill]] }
0x15ea   : > { %v5160_v59 = vld [vmem:[%s6859_s14 + $0x30] sm:$0xff]  ;;  %v5159_v61 = vld [vmem:[%s6859_s14 + $0x28] sm:$0xff]  ;;  %v5158_v63 = vld [vmem:[%s6859_s14 + $0x20] sm:$0xff] }
0x1603   : > { %3538 = vadd.xlane.f32.xlu1 %v3537_v10  ;;  %v5170_v10 = vld [vmem:[%s6862_s2 + $0x1] ss:$0 sm:$0xff]  ;;  %s6867_s2 = sld [smem:[#allocation3_spill]] }
0x1614   : > { %3542 = vrot.lane.b32.xlu1 %v6394_v32, %s6858_s15 }
0x164e   : > { %v3044_v11 = vpop.xlane.xlu0 %3043 }
0x164f   : > { %5787 = vrcp.f32 %v3044_v11 }
0x1653   : > { %v3209_v12 = vpop.xlane.xlu1 %3208 }
0x1654   : > { %5789 = vrcp.f32 %v3209_v12 }
0x1657   : > { %v3374_v13 = vpop.xlane.xlu0 %3373  ;;  %v3213_v17 = vpop.permute.xlu1 %3212 }
0x1658   : > { %5791 = vrcp.f32 %v3374_v13 }
0x165b   : > { %v3048_v14 = vpop.permute.xlu0 %3047  ;;  %v3378_v21 = vpop.permute.xlu1 %3377 }
0x165c   : > { %v5788_v15 = vpop.eup %5787  ;;  %5554 = vmatpush3.msra.mxu1 %v3048_v14 }
0x165d   : > { %5563 = vmatprep.subr.mxu1 %v5827_v8  ;;  %v3046_v16 = vmul.f32 %v5788_v15, %v5780_v62  ;;  %v5165_v62 = vld [vmem:[%s6755_s12 + $0x20] sm:$0xff] }
0x165e   : > { %v5163_v15 = vld [vmem:[%s6863_s26 + $0x1] ss:$0 sm:$0xff] }
0x165f   : > { %5556 = vmatmul.mubr.msk.f32.vlgmr.msra.gmra.mxu1 %vm908_vm2, %v3046_v16 }
0x1660   : > { %5564 = vmatpush3.msra.mxu1 %v3213_v17  ;;  %5565 = vmatprep.mubr.msk.f32.mxu1 %vm5828_vm1, %v5827_v8 }
0x1661   : > { %v5790_v18 = vpop.eup %5789  ;;  %5573 = vmatprep.subr.mxu1 %v5827_v8 }
0x1662   : > { %v3211_v19 = vmul.f32 %v5790_v18, %v5782_v1 }
0x1664   : > { %5566 = vmatmul.mubr.msk.f32.vlgmr.msra.gmra.mxu1 %vm908_vm2, %v3211_v19 }
0x1665   : > { %v5792_v22 = vpop.eup %5791  ;;  %5574 = vmatpush3.msra.mxu1 %v3378_v21  ;;  %5575 = vmatprep.mubr.msk.f32.mxu1 %vm5828_vm1, %v5827_v8 }
0x1666   : > { %v3376_v23 = vmul.f32 %v5792_v22, %v5784_v3  ;;  %5583 = vmatprep.subr.mxu1 %v5827_v8 }
0x1668   : > { %5576 = vmatmul.mubr.msk.f32.vlgmr.msra.gmra.mxu1 %vm908_vm2, %v3376_v23 }
0x1669   : > { %5585 = vmatprep.mubr.msk.f32.mxu1 %vm5828_vm1, %v5827_v8 }
0x168c   : > { %v3539_v24 = vpop.xlane.xlu1 %3538 }
0x168d   : > { %5793 = vrcp.f32 %v3539_v24 }
0x1690   : > { %v3543_v25 = vpop.permute.xlu1 %3542 }
0x1691   : > { %5584 = vmatpush3.msra.mxu1 %v3543_v25 }
0x1692   : > { %5599 = vmatprep.subr.mxu1 %v5827_v8 }
0x169a   : > { %v5794_v26 = vpop.eup %5793 }
0x169b   : > { %v3541_v27 = vmul.f32 %v5794_v26, %v5786_v9 }
0x169d   : > { %5586 = vmatmul.mubr.msk.f32.vlgmr.msra.gmra.mxu1 %vm908_vm2, %v3541_v27 }
0x169e   : > { %5607 = vmatprep.mubr.msk.f32.mxu1 %vm5828_vm1, %v5827_v8 }
0x171f   : > { %v3119_v32 = vpop.f32.mrf.mxu1 }
0x1721   : > { %v5557_v33 = vpop.f32.mrf.mxu1 }
0x1724   : > { %v3284_v34 = vpop.f32.mrf.mxu1 }
0x1725   : > { %3619 = vrot.lane.b32.xlu0 %v3284_v34, %s6851_s25 }
0x1726   : > { %v5567_v35 = vpop.f32.mrf.mxu1 }
0x1728   : > { %v3449_v0 = vpop.f32.mrf.mxu1 }
0x1729   : > { %3623 = vrot.lane.b32.xlu1 %v3449_v0, %s6852_s24 }
0x172a   : > { %v5577_v36 = vpop.f32.mrf.mxu1 }
0x175d   : > { %v3614_v38 = vpop.f32.mrf.mxu1 }
0x175e   : > { %3627 = vrot.lane.b32.xlu0 %v3614_v38, %s6853_s11 }
0x175f   : > { %v5587_v39 = vpop.f32.mrf.mxu1 }
0x1797   : > { %v3620_v40 = vpop.permute.xlu0 %3619 }
0x1798   : > { %v3630_v42 = vsel %vm908_vm2, %v3119_v32, %v3620_v40 }
0x179b   : > { %v3624_v41 = vpop.permute.xlu1 %3623 }
0x179c   : > { %v3631_v43 = vsel %vm1579_vm3, %v3630_v42, %v3624_v41 }
0x17d0   : > { %v3628_v44 = vpop.permute.xlu0 %3627 }
0x17d1   : > { %v3632_v45 = vsel %vm1581_vm4, %v3631_v43, %v3628_v44 }
0x17d2   : > { %5597 = vmatmul.mubr.msk.f32.vlgmr.msra.gmra.mxu0 %vm791_vm0, %v3632_v45 }
0x17d3   : > { %5618 = vmatprep.mubr.msk.f32.mxu0 %vm5828_vm1, %v5827_v8  ;;  %5611 = vmatpush3.msra.mxu0 %v5168_v57 }
0x17d4   : > { %5612 = vmatprep.subr.mxu0 %v5827_v8 }
0x17d5   : > { %5613 = vmatpush3.msra.mxu0 %v5167_v58 }
0x17d6   : > { %5614 = vmatprep.subr.mxu0 %v5827_v8 }
0x17d7   : > { %5615 = vmatpush3.msra.mxu0 %v5166_v60 }
0x17d8   : > { %5616 = vmatprep.subr.mxu0 %v5827_v8 }
0x17d9   : > { %5617 = vmatpush3.msra.mxu0 %v5165_v62 }
0x17da   : > { %5619 = vmatmul.mubr.msk.f32.vlgmr.msra.gmra.mxu0 %vm791_vm0, %v6155_v51  ;;  %5631 = vmatprep.subr.mxu0 %v5827_v8  ;;  %v5157_v51 = vld [vmem:[%s6861_s3 + $0x1] ss:$0 sm:$0xff]  ;;  %s6865_s3 = sld [smem:[#allocation18_spill]] }
0x17db   : > { %5633 = vmatprep.mubr.msk.f32.mxu0 %vm5828_vm1, %v5827_v8 }
0x1892   : > { %v3715_v47 = vpop.f32.mrf.mxu0 }
0x1893   : > { %v3716_v48 = vadd.f32 %v5152_v46, %v3715_v47 }
0x1894   : > { %v5598_v20 = vpop.f32.mrf.mxu0 }
0x1895   : > { %v3719_v49 = vadd.f32 %v3716_v48, %v6385_v29  ;;  %v5161_v29 = vld [vmem:[%s6859_s14 + $0x38] sm:$0xff] }
0x1896   : > { %5600 = vmatpush3.msra.mxu1 %v5161_v29 }
0x1897   : > { %v3724_v50 = vsel %vm791_vm0, %v3719_v49, 0.0  ;;  %5601 = vmatprep.subr.mxu1 %v5827_v8 }
0x1898   : > { %3725 = vadd.xlane.f32.xlu1 %v3724_v50  ;;  %5602 = vmatpush3.msra.mxu1 %v5160_v59 }
0x1899   : > { %5603 = vmatprep.subr.mxu1 %v5827_v8 }
0x189a   : > { %5604 = vmatpush3.msra.mxu1 %v5159_v61  ;;  %v3916_v11 = vpop.f32.mrf.mxu0 }
0x189b   : > { %5605 = vmatprep.subr.mxu1 %v5827_v8  ;;  %v6542_v12 = vadd.f32 %v5170_v10, %v3916_v11 }
0x189c   : > { %5606 = vmatpush3.msra.mxu1 %v5158_v63  ;;  %v5620_v13 = vpop.f32.mrf.mxu0 }
0x189d   : > { %5621 = vmatprep.subr.mxu1 %v5827_v8 }
0x1921   : > { %v3726_v52 = vpop.xlane.xlu1 %3725 }
0x1922   : > { %v3727_v53 = vmul.f32 0.03125, %v3726_v52 }
0x1924   : > { %v3728_v54 = vsub.f32 %v3719_v49, %v3727_v53 }
0x1926   : > { %v3729_v55 = vmul.f32 %v3728_v54, %v3728_v54 }
0x1928   : > { %v3730_v56 = vsel %vm791_vm0, %v3729_v55, 0.0 }
0x1929   : > { %3731 = vadd.xlane.f32.xlu0 %v3730_v56 }
0x193f   : > { %4087 = vrot.lane.b32.xlu0 %v6542_v12, %s6842_s9 }
0x19b2   : > { %v3732_v1 = vpop.xlane.xlu0 %3731 }
0x19b3   : > { %v3733_v2 = vmul.f32 0.03125, %v3732_v1 }
0x19b5   : > { %v3734_v3 = vadd.f32 1e-12, %v3733_v2 }
0x19b6   : > { %v4088_v14 = vpop.permute.xlu0 %4087 }
0x19b7   : > { %5795 = vrsqrt.f32 %v3734_v3  ;;  %5632 = vmatpush3.xpose.msk.msra.mxu0 %vm908_vm2, %v4088_v14 }
0x19b8   : > { %5641 = vmatprep.subr.mxu0 %v5827_v8 }
0x19c4   : > { %v5796_v4 = vpop.eup %5795 }
0x19c5   : > { %v3736_v6 = vmul.f32 %v5796_v4, %v3728_v54 }
0x19c7   : > { %v3743_v7 = vmul.f32 %v5156_v5, %v3736_v6 }
0x19c9   : > { %v6533_v9 = vadd.f32 %v5157_v51, %v3743_v7 }
0x19cb   : > { %5608 = vmatmul.mubr.msk.f32.vlgmr.msra.gmra.mxu1 %vm791_vm0, %v6533_v9 }
0x19cc   : > { %5623 = vmatprep.mubr.msk.f32.mxu1 %vm5828_vm1, %v5827_v8  ;;  %5622 = vmatpush3.xpose.msk.msra.mxu1 %vm908_vm2, %v6542_v12 }
0x19cd   : > { %5626 = vmatprep.subr.mxu1 %v5827_v8 }
0x1a8b   : > { %v3833_v16 = vpop.f32.mrf.mxu1 }
0x1a8c   : > { %v3834_v17 = vadd.f32 %v5163_v15, %v3833_v16 }
0x1a8d   : > { %v5609_v18 = vpop.f32.mrf.mxu1 }
0x1a8e   : > { %v3920_v19 = vmul.f32 0.35355338, %v3834_v17 }
0x1a90   : > { %4085 = vrot.lane.b32.xlu1 %v3920_v19, %s6842_s9  ;;  %4251 = vrot.lane.b32.xlu0 %v3920_v19, %s6843_s27 }
0x1a91   : > { %5624 = vmatmul.mubr.msk.f32.vlgmr.msra.gmra.mxu1 %vm908_vm2, %v3920_v19 }
0x1a92   : > { %5628 = vmatprep.mubr.msk.f32.mxu1 %vm5828_vm1, %v5827_v8 }
0x1a94   : > { %4253 = vrot.lane.b32.xlu1 %v6542_v12, %s6843_s27  ;;  %4417 = vrot.lane.b32.xlu0 %v3920_v19, %s6844_s10 }
0x1a98   : > { %4419 = vrot.lane.b32.xlu1 %v6542_v12, %s6844_s10  ;;  %s6864_s10 = sld [smem:[#allocation17_spill]] }
0x1a9e   : > { %v5191_v13 = vld [vmem:[%s6864_s10 + $0x38] sm:$0xff]  ;;  %v5190_v14 = vld [vmem:[%s6864_s10 + $0x30] sm:$0xff]  ;;  %v5189_v15 = vld [vmem:[%s6864_s10 + $0x28] sm:$0xff] }
0x1a9f   : > { %v5188_v16 = vld [vmem:[%s6864_s10 + $0x20] sm:$0xff] }
0x1b02   : > { %v4086_v21 = vpop.permute.xlu1 %4085  ;;  %v4252_v23 = vpop.permute.xlu0 %4251 }
0x1b03   : > { %5634 = vmatmul.mubr.msk.f32.vlgmr.msra.gmra.mxu0 %vm908_vm2, %v4086_v21 }
0x1b04   : > { %5643 = vmatprep.mubr.msk.f32.mxu0 %vm5828_vm1, %v5827_v8 }
0x1b06   : > { %v4254_v22 = vpop.permute.xlu1 %4253  ;;  %v4418_v25 = vpop.permute.xlu0 %4417 }
0x1b07   : > { %5642 = vmatpush3.xpose.msk.msra.mxu0 %vm908_vm2, %v4254_v22 }
0x1b08   : > { %5651 = vmatprep.subr.mxu0 %v5827_v8 }
0x1b0a   : > { %v4420_v24 = vpop.permute.xlu1 %4419  ;;  %5644 = vmatmul.mubr.msk.f32.vlgmr.msra.gmra.mxu0 %vm908_vm2, %v4252_v23 }
0x1b0b   : > { %5652 = vmatpush3.xpose.msk.msra.mxu0 %vm908_vm2, %v4420_v24  ;;  %5653 = vmatprep.mubr.msk.f32.mxu0 %vm5828_vm1, %v5827_v8 }
0x1b0c   : > { %5661 = vmatprep.subr.mxu0 %v5827_v8 }
0x1b0e   : > { %5654 = vmatmul.mubr.msk.f32.vlgmr.msra.gmra.mxu0 %vm908_vm2, %v4418_v25 }
0x1b0f   : > { %5669 = vmatprep.mubr.msk.f32.mxu0 %vm5828_vm1, %v5827_v8  ;;  %5662 = vmatpush3.msra.mxu0 %v5191_v13 }
0x1b10   : > { %5663 = vmatprep.subr.mxu0 %v5827_v8 }
0x1b11   : > { %5664 = vmatpush3.msra.mxu0 %v5190_v14 }
0x1b12   : > { %5665 = vmatprep.subr.mxu0 %v5827_v8 }
0x1b13   : > { %5666 = vmatpush3.msra.mxu0 %v5189_v15 }
0x1b14   : > { %5667 = vmatprep.subr.mxu0 %v5827_v8 }
0x1b15   : > { %5668 = vmatpush3.msra.mxu0 %v5188_v16 }
0x1b16   : > { %5683 = vmatprep.subr.mxu0 %v5827_v8 }
0x1b51   : > { %v3993_v26 = vpop.f32.mrf.mxu1 }
0x1b52   : > { %v3997_v27 = vsel %vm1942_vm5, %v3993_v26, -inf }
0x1b53   : > { %3998 = vmax.xlane.f32.xlu1 %v3997_v27  ;;  %v5625_v28 = vpop.f32.mrf.mxu1 }
0x1b64   : > { %4008 = vrot.lane.b32.xlu1 %v6542_v12, %s6848_s4 }
0x1bc3   : > { %v4159_v30 = vpop.f32.mrf.mxu0 }
0x1bc4   : > { %v4163_v31 = vsel %vm1942_vm5, %v4159_v30, -inf }
0x1bc5   : > { %4164 = vmax.xlane.f32.xlu0 %v4163_v31  ;;  %v5635_v32 = vpop.f32.mrf.mxu0  ;;  %v5193_v31 = vld [vmem:[%s6865_s3 + $0x1] ss:$0 sm:$0xff] }
0x1bca   : > { %v4325_v33 = vpop.f32.mrf.mxu0 }
0x1bcb   : > { %v4329_v34 = vsel %vm1942_vm5, %v4325_v33, -inf }
0x1bcc   : > { %4330 = vmax.xlane.f32.xlu0 %v4329_v34  ;;  %v5645_v35 = vpop.f32.mrf.mxu0 }
0x1bce   : > { %v4491_v0 = vpop.f32.mrf.mxu0 }
0x1bcf   : > { %v4495_v36 = vsel %vm1942_vm5, %v4491_v0, -inf }
0x1bd0   : > { %4496 = vmax.xlane.f32.xlu0 %v4495_v36  ;;  %v5655_v37 = vpop.f32.mrf.mxu0 }
0x1bdc   : > { %v3999_v38 = vpop.xlane.xlu1 %3998 }
0x1bdd   : > { %v4000_v39 = vsub.f32 %v3993_v26, %v3999_v38 }
0x1bdf   : > { %v4001_v40 = vmul.f32 1.442695, %v4000_v39 }
0x1be0   : > { %v4009_v41 = vpop.permute.xlu1 %4008 }
0x1be1   : > { %5797 = vpow2.f32 %v4001_v40  ;;  %5627 = vmatpush3.msk.msra.mxu1 %vm1959_vm6, %v4009_v41  ;;  %v5202_v41 = vld [vmem:[%s6761_s18 + $0x38] sm:$0xff] }
0x1be2   : > { %5636 = vmatprep.subr.mxu1 %v5827_v8 }
0x1bee   : > { %v5798_v42 = vpop.eup %5797 }
0x1bef   : > { %v4003_v43 = vsel %vm1942_vm5, %v5798_v42, 0.0 }
0x1bf0   : > { %4004 = vadd.xlane.f32.xlu1 %v4003_v43  ;;  %v5199_v43 = vld [vmem:[%s6761_s18 + $0x20] sm:$0xff] }
0x1c4e   : > { %v4165_v44 = vpop.xlane.xlu0 %4164 }
0x1c4f   : > { %v4166_v45 = vsub.f32 %v4159_v30, %v4165_v44 }
0x1c51   : > { %v4167_v46 = vmul.f32 1.442695, %v4166_v45 }
0x1c53   : > { %5799 = vpow2.f32 %v4167_v46 }
0x1c55   : > { %v4331_v47 = vpop.xlane.xlu0 %4330 }
0x1c56   : > { %v4332_v48 = vsub.f32 %v4325_v33, %v4331_v47 }
0x1c58   : > { %v4333_v20 = vmul.f32 1.442695, %v4332_v48  ;;  %v5197_v48 = vld [vmem:[%s6759_s16 + $0x1] ss:$0 sm:$0xff] }
0x1c59   : > { %v4497_v49 = vpop.xlane.xlu0 %4496 }
0x1c5a   : > { %5801 = vpow2.f32 %v4333_v20  ;;  %v4498_v50 = vsub.f32 %v4491_v0, %v4497_v49  ;;  %v5198_v49 = vld [vmem:[%s6760_s17 + $0x1] ss:$0 sm:$0xff] }
0x1c5c   : > { %v4499_v52 = vmul.f32 1.442695, %v4498_v50 }
0x1c5e   : > { %5803 = vpow2.f32 %v4499_v52 }
0x1c60   : > { %v5800_v53 = vpop.eup %5799 }
0x1c61   : > { %v4169_v54 = vsel %vm1942_vm5, %v5800_v53, 0.0 }
0x1c62   : > { %4170 = vadd.xlane.f32.xlu0 %v4169_v54  ;;  %v5212_v54 = vld [vmem:[%s6763_s20 + $0x70] sm:$0xff] }
0x1c67   : > { %v5802_v55 = vpop.eup %5801 }
0x1c68   : > { %v4335_v56 = vsel %vm1942_vm5, %v5802_v55, 0.0 }
0x1c69   : > { %4336 = vadd.xlane.f32.xlu1 %v4335_v56  ;;  %v5210_v56 = vld [vmem:[%s6763_s20 + $0x60] sm:$0xff] }
0x1c6b   : > { %v5804_v57 = vpop.eup %5803 }
0x1c6c   : > { %v4501_v29 = vsel %vm1942_vm5, %v5804_v57, 0.0 }
0x1c6d   : > { %4502 = vadd.xlane.f32.xlu0 %v4501_v29  ;;  %v5208_v29 = vld [vmem:[%s6763_s20 + $0x50] sm:$0xff] }
0x1c79   : > { %v4005_v58 = vpop.xlane.xlu1 %4004 }
0x1c7a   : > { %5805 = vrcp.f32 %v4005_v58  ;;  %4340 = vrot.lane.b32.xlu1 %v6542_v12, %s6847_s1  ;;  %v5207_v58 = vld [vmem:[%s6763_s20 + $0x48] sm:$0xff]  ;;  %s6869_s1 = sshll.u32 %s6867_s2, 3 }
0x1c7e   : > { %4506 = vrot.lane.b32.xlu1 %v6542_v12, %s6849_s8 }
0x1c83   : > { %4174 = vrot.lane.b32.xlu0 %v6542_v12, %s6846_s28  ;;  %s6868_s28 = sld [smem:[#allocation20_spill]] }
0x1c87   : > { %v5806_v59 = vpop.eup %5805 }
0x1c88   : > { %v4007_v60 = vmul.f32 %v5806_v59, %v5798_v42  ;;  %v5201_v42 = vld [vmem:[%s6761_s18 + $0x30] sm:$0xff]  ;;  %v5206_v59 = vld [vmem:[%s6763_s20 + $0x40] sm:$0xff] }
0x1c8a   : > { %5629 = vmatmul.mubr.msk.f32.vlgmr.msra.gmra.mxu1 %vm1942_vm5, %v4007_v60  ;;  %v5204_v60 = vld [vmem:[%s6762_s19 + $0x1] ss:$0 sm:$0xff] }
0x1c8b   : > { %5638 = vmatprep.mubr.msk.f32.mxu1 %vm5828_vm1, %v5827_v8 }
0x1ceb   : > { %v4171_v61 = vpop.xlane.xlu0 %4170 }
0x1cec   : > { %5807 = vrcp.f32 %v4171_v61 }
0x1cf2   : > { %v4337_v62 = vpop.xlane.xlu1 %4336 }
0x1cf3   : > { %5809 = vrcp.f32 %v4337_v62 }
0x1cf6   : > { %v4503_v63 = vpop.xlane.xlu0 %4502  ;;  %v4341_v4 = vpop.permute.xlu1 %4340 }
0x1cf7   : > { %5811 = vrcp.f32 %v4503_v63 }
0x1cf9   : > { %v5808_v1 = vpop.eup %5807 }
0x1cfa   : > { %v4175_v2 = vpop.permute.xlu0 %4174  ;;  %v4173_v3 = vmul.f32 %v5808_v1, %v5800_v53  ;;  %v4507_v51 = vpop.permute.xlu1 %4506  ;;  %v5213_v53 = vld [vmem:[%s6763_s20 + $0x78] sm:$0xff] }
0x1cfb   : > { %5637 = vmatpush3.msk.msra.mxu1 %vm1959_vm6, %v4175_v2 }
0x1cfc   : > { %5639 = vmatmul.mubr.msk.f32.vlgmr.msra.gmra.mxu1 %vm1942_vm5, %v4173_v3  ;;  %5646 = vmatprep.subr.mxu1 %v5827_v8 }
0x1cfd   : > { %5647 = vmatpush3.msk.msra.mxu1 %vm1959_vm6, %v4341_v4  ;;  %5648 = vmatprep.mubr.msk.f32.mxu1 %vm5828_vm1, %v5827_v8 }
0x1cfe   : > { %5656 = vmatprep.subr.mxu1 %v5827_v8 }
0x1d00   : > { %v5810_v5 = vpop.eup %5809 }
0x1d01   : > { %v4339_v6 = vmul.f32 %v5810_v5, %v5802_v55  ;;  %v5211_v55 = vld [vmem:[%s6763_s20 + $0x68] sm:$0xff] }
0x1d03   : > { %5649 = vmatmul.mubr.msk.f32.vlgmr.msra.gmra.mxu1 %vm1942_vm5, %v4339_v6 }
0x1d04   : > { %v5812_v7 = vpop.eup %5811  ;;  %5657 = vmatpush3.msk.msra.mxu1 %vm1959_vm6, %v4507_v51  ;;  %5658 = vmatprep.mubr.msk.f32.mxu1 %vm5828_vm1, %v5827_v8 }
0x1d05   : > { %v4505_v10 = vmul.f32 %v5812_v7, %v5804_v57  ;;  %5672 = vmatprep.subr.mxu1 %v5827_v8  ;;  %v5209_v57 = vld [vmem:[%s6763_s20 + $0x58] sm:$0xff] }
0x1d07   : > { %5659 = vmatmul.mubr.msk.f32.vlgmr.msra.gmra.mxu1 %vm1942_vm5, %v4505_v10 }
0x1d08   : > { %5680 = vmatprep.mubr.msk.f32.mxu1 %vm5828_vm1, %v5827_v8  ;;  %5673 = vmatpush3.msra.mxu1 %v5202_v41 }
0x1d09   : > { %5674 = vmatprep.subr.mxu1 %v5827_v8 }
0x1d0a   : > { %5675 = vmatpush3.msra.mxu1 %v5201_v42 }
0x1d0b   : > { %5676 = vmatprep.subr.mxu1 %v5827_v8 }
0x1d4a   : > { %v4081_v11 = vpop.f32.mrf.mxu1 }
0x1d4c   : > { %v5630_v12 = vpop.f32.mrf.mxu1 }
0x1dbc   : > { %v4247_v17 = vpop.f32.mrf.mxu1 }
0x1dbd   : > { %4584 = vrot.lane.b32.xlu1 %v4247_v17, %s6851_s25  ;;  %s786_s25 = scalar_lea.vmem %s6870_s5, %s6869_s1 }
0x1dbe   : > { %v5640_v18 = vpop.f32.mrf.mxu1 }
0x1dc3   : > { %v4413_v19 = vpop.f32.mrf.mxu1 }
0x1dc4   : > { %4588 = vrot.lane.b32.xlu0 %v4413_v19, %s6852_s24 }
0x1dc5   : > { %v5650_v21 = vpop.f32.mrf.mxu1 }
0x1dc7   : > { %v4579_v22 = vpop.f32.mrf.mxu1 }
0x1dc8   : > { %4592 = vrot.lane.b32.xlu1 %v4579_v22, %s6853_s11 }
0x1dc9   : > { %v5660_v23 = vpop.f32.mrf.mxu1 }
0x1dca   : > { %v4936_v23 = vld [vmem:[%s6866_s13 + $0x18] sm:$0xff] }
0x1e2f   : > { %v4585_v24 = vpop.permute.xlu1 %4584 }
0x1e30   : > { %v4595_v26 = vsel %vm908_vm2, %v4081_v11, %v4585_v24  ;;  %v5215_v11 = vld [vmem:[%s6764_s21 + $0x1] ss:$0 sm:$0xff]  ;;  %v4935_v24 = vld [vmem:[%s6866_s13 + $0x10] sm:$0xff] }
0x1e36   : > { %v4589_v25 = vpop.permute.xlu0 %4588 }
0x1e37   : > { %v4596_v27 = vsel %vm1579_vm3, %v4595_v26, %v4589_v25  ;;  %v4934_v25 = vld [vmem:[%s6866_s13 + $0x8] sm:$0xff]  ;;  %v4933_v26 = vld [vmem:[%s6866_s13] sm:$0xff] }
0x1e3a   : > { %v4593_v28 = vpop.permute.xlu1 %4592 }
0x1e3b   : > { %v4597_v30 = vsel %vm1581_vm4, %v4596_v27, %v4593_v28 }
0x1e3c   : > { %5670 = vmatmul.mubr.msk.f32.vlgmr.msra.gmra.mxu0 %vm791_vm0, %v4597_v30 }
0x1e3d   : > { %5699 = vmatprep.mubr.msk.f32.mxu0 %vm5828_vm1, %v5827_v8  ;;  %5684 = vmatpush3.msra.mxu0 %v5213_v53 }
0x1e3e   : > { %5685 = vmatprep.subr.mxu0 %v5827_v8 }
0x1e3f   : > { %5686 = vmatpush3.msra.mxu0 %v5212_v54 }
0x1e40   : > { %5687 = vmatprep.subr.mxu0 %v5827_v8 }
0x1e41   : > { %5688 = vmatpush3.msra.mxu0 %v5211_v55 }
0x1e42   : > { %5689 = vmatprep.subr.mxu0 %v5827_v8 }
0x1e43   : > { %5690 = vmatpush3.msra.mxu0 %v5210_v56 }
0x1e44   : > { %5691 = vmatprep.subr.mxu0 %v5827_v8 }
0x1e45   : > { %5692 = vmatpush3.msra.mxu0 %v5209_v57 }
0x1e46   : > { %5693 = vmatprep.subr.mxu0 %v5827_v8 }
0x1e47   : > { %5694 = vmatpush3.msra.mxu0 %v5208_v29 }
0x1e48   : > { %5695 = vmatprep.subr.mxu0 %v5827_v8 }
0x1e49   : > { %5696 = vmatpush3.msra.mxu0 %v5207_v58 }
0x1e4a   : > { %5697 = vmatprep.subr.mxu0 %v5827_v8 }
0x1e4b   : > { %5698 = vmatpush3.msra.mxu0 %v5206_v59 }
0x1efc   : > { %v4680_v32 = vpop.f32.mrf.mxu0 }
0x1efd   : > { %v4681_v33 = vadd.f32 %v5193_v31, %v4680_v32  ;;  %v5219_v32 = vld [vmem:[%s6765_s22 + $0x1] ss:$0 sm:$0xff] }
0x1efe   : > { %v5671_v34 = vpop.f32.mrf.mxu0 }
0x1eff   : > { %v4684_v35 = vadd.f32 %v4681_v33, %v6533_v9  ;;  %v5200_v9 = vld [vmem:[%s6761_s18 + $0x28] sm:$0xff]  ;;  %v5220_v34 = vld [vmem:[%s6766_s23 + $0x1] ss:$0 sm:$0xff] }
0x1f00   : > { %5677 = vmatpush3.msra.mxu1 %v5200_v9 }
0x1f01   : > { %v4689_v0 = vsel %vm791_vm0, %v4684_v35, 0.0  ;;  %5678 = vmatprep.subr.mxu1 %v5827_v8 }
0x1f02   : > { %4690 = vadd.xlane.f32.xlu0 %v4689_v0  ;;  %5679 = vmatpush3.msra.mxu1 %v5199_v43 }
0x1f03   : > { %5702 = vmatprep.subr.mxu1 %v5827_v8 }
0x1f8b   : > { %v4691_v36 = vpop.xlane.xlu0 %4690 }
0x1f8c   : > { %v4692_v37 = vmul.f32 0.03125, %v4691_v36 }
0x1f8e   : > { %v4693_v38 = vsub.f32 %v4684_v35, %v4692_v37 }
0x1f90   : > { %v4694_v39 = vmul.f32 %v4693_v38, %v4693_v38 }
0x1f92   : > { %v4695_v40 = vsel %vm791_vm0, %v4694_v39, 0.0 }
0x1f93   : > { %4696 = vadd.xlane.f32.xlu1 %v4695_v40 }
0x201c   : > { %v4697_v44 = vpop.xlane.xlu1 %4696 }
0x201d   : > { %v4698_v45 = vmul.f32 0.03125, %v4697_v44 }
0x201f   : > { %v4699_v46 = vadd.f32 1e-12, %v4698_v45 }
0x2021   : > { %5813 = vrsqrt.f32 %v4699_v46 }
0x202e   : > { %v5814_v47 = vpop.eup %5813 }
0x202f   : > { %v4701_v20 = vmul.f32 %v5814_v47, %v4693_v38 }
0x2031   : > { %v4708_v50 = vmul.f32 %v5197_v48, %v4701_v20 }
0x2033   : > { %v4715_v52 = vadd.f32 %v5198_v49, %v4708_v50 }
0x2035   : > { %5681 = vmatmul.mubr.msk.f32.vlgmr.msra.gmra.mxu1 %vm791_vm0, %v4715_v52 }
0x2036   : > { %5710 = vmatprep.mubr.msk.f32.mxu1 %vm5828_vm1, %v5827_v8  ;;  %5703 = vmatpush3.msra.mxu1 %v4936_v23 }
0x2037   : > { %5704 = vmatprep.subr.mxu1 %v5827_v8 }
0x2038   : > { %5705 = vmatpush3.msra.mxu1 %v4935_v24 }
0x2039   : > { %5706 = vmatprep.subr.mxu1 %v5827_v8 }
0x203a   : > { %5707 = vmatpush3.msra.mxu1 %v4934_v25 }
0x203b   : > { %5708 = vmatprep.subr.mxu1 %v5827_v8  ;;  %v5221_v8 = vld [vmem:[%s6868_s28] ss:$0 sm:$0xff] }
0x203c   : > { %5709 = vmatpush3.msra.mxu1 %v4933_v26 }
0x20f5   : > { %v4798_v61 = vpop.f32.mrf.mxu1 }
0x20f6   : > { %v4799_v62 = vadd.f32 %v5204_v60, %v4798_v61 }
0x20f7   : > { %v5682_v63 = vpop.f32.mrf.mxu1 }
0x20f8   : > { %v4803_v1 = vmul.f32 0.044715, %v4799_v62  ;;  %v4802_v51 = vmul.f32 0.5, %v4799_v62 }
0x20fa   : > { %v4804_v2 = vmul.f32 %v4803_v1, %v4799_v62 }
0x20fc   : > { %v4805_v3 = vmul.f32 %v4804_v2, %v4799_v62 }
0x20fe   : > { %v4806_v4 = vadd.f32 %v4805_v3, %v4799_v62 }
0x2100   : > { %v4807_v5 = vmul.f32 0.7978846, %v4806_v4 }
0x2102   : > { %5815 = vtanh.f32 %v4807_v5 }
0x210f   : > { %v5816_v6 = vpop.eup %5815 }
0x2110   : > { %v4809_v7 = vadd.f32 1.0, %v5816_v6 }
0x2112   : > { %v4810_v10 = vmul.f32 %v4809_v7, %v4802_v51 }
0x2114   : > { %5700 = vmatmul.mubr.msk.f32.vlgmr.msra.gmra.mxu0 %vm2767_vm7, %v4810_v10 }
0x21d4   : > { %v4897_v12 = vpop.f32.mrf.mxu0 }
0x21d5   : > { %v4898_v13 = vadd.f32 %v5215_v11, %v4897_v12 }
0x21d6   : > { %v5701_v14 = vpop.f32.mrf.mxu0 }
0x21d7   : > { %v4901_v15 = vadd.f32 %v4898_v13, %v4715_v52 }
0x21d9   : > { %v4906_v16 = vsel %vm791_vm0, %v4901_v15, 0.0 }
0x21da   : > { %4907 = vadd.xlane.f32.xlu0 %v4906_v16 }
0x2263   : > { %v4908_v17 = vpop.xlane.xlu0 %4907 }
0x2264   : > { %v4909_v18 = vmul.f32 0.03125, %v4908_v17 }
0x2266   : > { %v4910_v19 = vsub.f32 %v4901_v15, %v4909_v18 }
0x2268   : > { %v4911_v21 = vmul.f32 %v4910_v19, %v4910_v19 }
0x226a   : > { %v4912_v22 = vsel %vm791_vm0, %v4911_v21, 0.0 }
0x226b   : > { %4913 = vadd.xlane.f32.xlu0 %v4912_v22 }
0x22f4   : > { %v4914_v27 = vpop.xlane.xlu0 %4913 }
0x22f5   : > { %v4915_v28 = vmul.f32 0.03125, %v4914_v27 }
0x22f7   : > { %v4916_v30 = vadd.f32 1e-12, %v4915_v28 }
0x22f9   : > { %5817 = vrsqrt.f32 %v4916_v30 }
0x2306   : > { %v5818_v31 = vpop.eup %5817 }
0x2307   : > { %v4918_v33 = vmul.f32 %v5818_v31, %v4910_v19 }
0x2309   : > { %v4925_v35 = vmul.f32 %v5219_v32, %v4918_v33 }
0x230b   : > { %v4932_v0 = vadd.f32 %v5220_v34, %v4925_v35 }
0x230d   : > { %5711 = vmatmul.mubr.msk.f32.vlgmr.msra.gmra.mxu1 %vm791_vm0, %v4932_v0 }
0x23cd   : > { %v5013_v36 = vpop.f32.mrf.mxu1 }
0x23ce   : > { %v5014_v37 = vadd.f32 %v5221_v8, %v5013_v36 }
0x23cf   : > { %v5712_v38 = vpop.f32.mrf.mxu1 }
0x23d0   : > { %5017 = vst.msk [vmem:[%s786_s25] sm:$0xff] %vm791_vm0, %v5014_v37 }
0x23d1 PF: > { %s6871_s24 = sld [smem:[#allocation2_spill]] }
0x23d7   : > { %s36_s27 = sadd.s32 1, %s6871_s24  }
0x23d8   : > { %p33_p4 = scmp.ge.s32.totalorder %s36_s27, 4  }
0x23da   :  { %35 = sbr.rel (!%p33_p4) target bundleno = 19 (0x13), region = 174 }

// kernel: minigpt4_forward.5
= control target key start
LH: loop header
LB: loop body
LE: loop exit
PB: predicated region body
PF: predicated region fallthrough
CT: control target
= control target key end

     0   :  { %s5435_s21 = smov 0   ;;  %s7059_s0 = inlined_call_operand.vmem [shape: f32[2,20,32], index: 0, kind: input, shape index: {}]   ;;  %s7060_s1 = inlined_call_operand.vmem [shape: f32[2,1,20], index: 1, kind: input, shape index: {}]   ;;  %s7061_s2 = inlined_call_operand.vmem [shape: f32[20,8], index: 2, kind: input, shape index: {}]   ;;  %s7062_s3 = inlined_call_operand.vmem [shape: f32[20,8], index: 3, kind: input, shape index: {}]   ;;  %s7063_s4 = inlined_call_operand.vmem [shape: f32[2,1,32], index: 4, kind: input, shape index: {}]   ;;  %s7064_s5 = inlined_call_operand.vmem [shape: f32[2,32,96], index: 5, kind: input, shape index: {}]   ;;  %s7065_s6 = inlined_call_operand.vmem [shape: f32[2,32,32], index: 6, kind: input, shape index: {}]   ;;  %s7066_s7 = inlined_call_operand.vmem [shape: f32[2,1,32], index: 7, kind: input, shape index: {}]   ;;  %s7067_s8 = inlined_call_operand.vmem [shape: f32[2,32,128], index: 8, kind: input, shape index: {}]   ;;  %s7068_s9 = inlined_call_operand.vmem [shape: f32[2,64,32], index: 9, kind: input, shape index: {}]   ;;  %s7069_s10 = inlined_call_operand.vmem [shape: f32[1,32], index: 10, kind: input, shape index: {}]   ;;  %s7070_s11 = inlined_call_operand.vmem [shape: f32[32,128], index: 11, kind: input, shape index: {}]   ;;  %s7071_s12 = inlined_call_operand.vmem [shape: f32[2,20,128], index: 12, kind: output, shape index: {}]  }
   0x1 LB: > { %s4413_s22 = sadd.s32 4294967295, %s5340_s21   ;;  %p4417_p0 = scmp.ge.s32.totalorder %s5340_s21, 1  ;;  %s5340_s21 = sphi %s5435_s21, %s22_s21  }
   0x2   : > { %p370_p1 = scmp.lt.s32.totalorder %s5340_s21, 3 }
   0x4   : > { %p371_p2 = pnand %p4417_p0, %p370_p1 }
   0x5   : > { %p415_p3 = scmp.lt.s32.totalorder (!%p371_p2), %s4413_s22, 1  ;;  %s5344_s19 = smov (!%p371_p2), 100  }
   0x6   : > { %374 = sbr.rel (%p371_p2) target bundleno = 5425 (0x1531), region = 68  ;;  %s5345_s20 = smov (!%p371_p2), 92  }
   0x7   : > { %s5346_s24 = smov (!%p371_p2), 84   ;;  %s7105_s25 = smov (!%p371_p2), 124  }
   0x8   : > { %s7103_s27 = smov (!%p371_p2), 116   ;;  %s7101_s28 = smov (!%p371_p2), 76  }
   0x9   : > { %s7077_s29 = smov (!%p371_p2), 108   ;;  %s7075_s30 = smov (!%p371_p2), 68  }
   0xa   : > { %s7073_s15 = smov (!%p371_p2), 32   ;;  %s5353_s14 = smov (!%p371_p2), 8  }
   0xb   : > { %s7126_s22 = smov (!%p415_p3, %s4413_s22), 1  ;;  %vm464_vm0 = vcmask 261120   ;;  %vm471_vm1 = vcmask 257024   ;;  %v500_v9 = vld [vmem:[%s7064_s5 + $0x18] sm:$0xff]  ;;  %v5342_v10 = vmov 0.0   ;;  %v499_v11 = vld [vmem:[%s7064_s5 + $0x10] sm:$0xff] }
   0xc   : > { %s7072_s23 = smul.u32 24, %s7126_s22  ;;  %4729 = vmatprep.subr.mxu0 %v5342_v10  ;;  %vm5343_vm2 = vmmov 0   ;;  %4746 = vmatprep.subr.mxu1 %v5342_v10  ;;  %v498_v12 = vld [vmem:[%s7064_s5 + $0x8] sm:$0xff]  ;;  %v497_v13 = vld [vmem:[%s7064_s5] sm:$0xff]  ;;  %v5577_v42 = vld [vmem:[%s7061_s2 + $0x10] sm:$0xf] }
   0xd   : > { %4737 = vmatprep.mubr.msk.f32.mxu0 %vm5343_vm2, %v5342_v10  ;;  %4730 = vmatpush3.msra.mxu0 %v500_v9  ;;  %v4420_v24 = vld [vmem:[%s7063_s4] ss:$0 sm:$0xff]  ;;  %v5590_v43 = vld [vmem:[%s7061_s2 + $0x8] sm:$0xff]  ;;  %s7099_s16 = smov 40   ;;  %s7097_s17 = smov 48   ;;  %vm620_vm3 = vcmask 31744  }
   0xe   : > { %s5451_s26 = scalar_lea.vmem %s7059_s0, %s7072_s23  ;;  %4731 = vmatprep.subr.mxu0 %v5342_v10  ;;  %4752 = vmatprep.mubr.msk.f32.mxu1 %vm5343_vm2, %v5342_v10  ;;  %v5599_v44 = vld [vmem:[%s7061_s2] sm:$0xff]  ;;  %s7095_s23 = smov 56   ;;  %vm696_vm4 = vcmask 64512   ;;  %vm844_vm5 = vcmask 1043456   ;;  %vm792_vm12 = vcmask 162816   ;;  %vm799_vm15 = vcmask 158720  }
   0xf   : > { %v428_v0 = vld [vmem:[%s5451_s26] sm:$0xff]  ;;  %v429_v1 = vld [vmem:[%s5451_s26 + $0x8] sm:$0xff]  ;;  %v430_v2 = vld [vmem:[%s5451_s26 + $0x10] sm:$0xf]  ;;  %4732 = vmatpush3.msra.mxu0 %v499_v11  ;;  %s5357_s18 = smov 16   ;;  %s5358_s13 = smov 24  }
  0x10   : > { %v461_v3 = vmul.f32 %v428_v0, %v428_v0  ;;  %v462_v4 = vmul.f32 %v429_v1, %v429_v1  ;;  %v463_v5 = vmul.f32 %v430_v2, %v430_v2  ;;  %4733 = vmatprep.subr.mxu0 %v5342_v10  ;;  %v5628_v46 = vld [vmem:[%s7062_s3] sm:$0xff] }
  0x11   : > { %4734 = vmatpush3.msra.mxu0 %v498_v12 }
  0x12   : > { %v465_v6 = vsel %vm464_vm0, %v461_v3, 0.0  ;;  %v472_v7 = vsel %vm471_vm1, %v463_v5, 0.0  ;;  %v468_v8 = vsel %vm464_vm0, %v462_v4, 0.0  ;;  %4735 = vmatprep.subr.mxu0 %v5342_v10  ;;  %v5650_v3 = vld [vmem:[%s7062_s3 + $0x8] sm:$0xff] }
  0x13   : > { %466 = vadd.xlane.f32.xlu0 %v465_v6  ;;  %473 = vadd.xlane.f32.xlu1 %v472_v7 }
  0x14   : > { %4736 = vmatpush3.msra.mxu0 %v497_v13 }
  0x15   : > { %4761 = vmatprep.subr.mxu0 %v5342_v10 }
  0x17   : > { %469 = vadd.xlane.f32.xlu0 %v468_v8 }
  0x9c   : > { %v467_v14 = vpop.xlane.xlu0 %466  ;;  %v474_v15 = vpop.xlane.xlu1 %473 }
  0x9d   : > { %v476_v16 = vmul.f32 0.03125, %v467_v14  ;;  %v478_v17 = vmul.f32 0.03125, %v474_v15 }
  0x9f   : > { %v479_v18 = vadd.f32 1e-06, %v476_v16  ;;  %v481_v19 = vadd.f32 1e-06, %v478_v17 }
  0xa0   : > { %v470_v20 = vpop.xlane.xlu0 %469 }
  0xa1   : > { %5175 = vrsqrt.f32 %v479_v18  ;;  %v477_v21 = vmul.f32 0.03125, %v470_v20 }
  0xa2   : > { %5177 = vrsqrt.f32 %v481_v19 }
  0xa3   : > { %v480_v22 = vadd.f32 1e-06, %v477_v21 }
  0xa5   : > { %5179 = vrsqrt.f32 %v480_v22 }
  0xae   : > { %v5176_v23 = vpop.eup %5175 }
  0xaf   : > { %v485_v25 = vmul.f32 %v5176_v23, %v428_v0  ;;  %v5178_v26 = vpop.eup %5177 }
  0xb0   : > { %v487_v30 = vmul.f32 %v5178_v26, %v430_v2 }
  0xb1   : > { %v494_v27 = vmul.f32 %v4420_v24, %v485_v25  ;;  %v5671_v25 = vld [vmem:[%s7062_s3 + $0x10] sm:$0xf] }
  0xb2   : > { %v5180_v28 = vpop.eup %5179  ;;  %v496_v32 = vmul.f32 %v4420_v24, %v487_v30 }
  0xb3   : > { %4738 = vmatmul.mubr.msk.f32.vlgmr.msra.gmra.mxu0 %vm464_vm0, %v494_v27  ;;  %v486_v29 = vmul.f32 %v5180_v28, %v429_v1 }
  0xb4   : > { %4740 = vmatprep.mubr.msk.f32.mxu0 %vm5343_vm2, %v5342_v10 }
  0xb5   : > { %v495_v31 = vmul.f32 %v4420_v24, %v486_v29 }
  0xb7   : > { %4741 = vmatmul.mubr.msk.f32.gmra.mxu0 %vm464_vm0, %v495_v31 }
  0xb8   : > { %4743 = vmatprep.mubr.msk.f32.mxu0 %vm5343_vm2, %v5342_v10 }
  0xbb   : > { %4744 = vmatmul.mubr.msk.f32.gmra.mxu0 %vm464_vm0, %v496_v32 }
  0xbc   : > { %4767 = vmatprep.mubr.msk.f32.mxu0 %vm5343_vm2, %v5342_v10 }
 0x173   : > { %v5493_v33 = vpop.f32.mrf.mxu0 }
 0x174   : > { %654 = vrot.lane.b32.xlu0 %v5493_v33, %s5344_s19  ;;  %v5498_v34 = vsub.f32 0.0, %v5493_v33 }
 0x175   : > { %v4739_v35 = vpop.f32.mrf.mxu0 }
 0x176   : > { %645 = vrot.lane.b32.xlu1 %v5498_v34, %s5345_s20 }
 0x177   : > { %v5502_v36 = vpop.f32.mrf.mxu0 }
 0x178   : > { %999 = vrot.lane.b32.xlu0 %v5493_v33, %s5345_s20  ;;  %v5537_v40 = vsub.f32 0.0, %v5502_v36 }
 0x179   : > { %v4742_v37 = vpop.f32.mrf.mxu0 }
 0x17a   : > { %990 = vrot.lane.b32.xlu1 %v5498_v34, %s5346_s24 }
 0x17b   : > { %v5508_v38 = vpop.f32.mrf.mxu0 }
 0x17c   : > { %948 = vrot.lane.b32.xlu0 %v5493_v33, %s7105_s25  ;;  %v5562_v41 = vsub.f32 0.0, %v5508_v38 }
 0x17d   : > { %v4745_v39 = vpop.f32.mrf.mxu0 }
 0x17e   : > { %939 = vrot.lane.b32.xlu1 %v5498_v34, %s7103_s27 }
 0x180   : > { %1346 = vrot.lane.b32.xlu0 %v5493_v33, %s5346_s24 }
 0x182   : > { %1337 = vrot.lane.b32.xlu1 %v5498_v34, %s7101_s28 }
 0x184   : > { %1295 = vrot.lane.b32.xlu0 %v5493_v33, %s7103_s27 }
 0x186   : > { %1286 = vrot.lane.b32.xlu1 %v5498_v34, %s7077_s29 }
 0x188   : > { %1693 = vrot.lane.b32.xlu0 %v5493_v33, %s7101_s28 }
 0x18a   : > { %1684 = vrot.lane.b32.xlu1 %v5498_v34, %s7075_s30 }
 0x18c   : > { %1001 = vrot.lane.b32.xlu0 %v5502_v36, %s5345_s20 }
 0x18e   : > { %1633 = vrot.lane.b32.xlu1 %v5498_v34, %s5344_s19 }
 0x190   : > { %950 = vrot.lane.b32.xlu0 %v5502_v36, %s7105_s25 }
 0x192   : > { %656 = vrot.lane.b32.xlu1 %v5502_v36, %s5344_s19 }
 0x194   : > { %1348 = vrot.lane.b32.xlu0 %v5502_v36, %s5346_s24 }
 0x196   : > { %647 = vrot.lane.b32.xlu1 %v5537_v40, %s5345_s20 }
 0x198   : > { %1297 = vrot.lane.b32.xlu0 %v5502_v36, %s7103_s27 }
 0x19a   : > { %992 = vrot.lane.b32.xlu1 %v5537_v40, %s5346_s24 }
 0x19c   : > { %1695 = vrot.lane.b32.xlu0 %v5502_v36, %s7101_s28 }
 0x19e   : > { %941 = vrot.lane.b32.xlu1 %v5537_v40, %s7103_s27 }
 0x1a0   : > { %658 = vrot.lane.b32.xlu0 %v5508_v38, %s5344_s19 }
 0x1a2   : > { %1339 = vrot.lane.b32.xlu1 %v5537_v40, %s7101_s28 }
 0x1a4   : > { %1642 = vrot.lane.b32.xlu0 %v5493_v33, %s7077_s29 }
 0x1a6   : > { %1288 = vrot.lane.b32.xlu1 %v5537_v40, %s7077_s29 }
 0x1a8   : > { %1003 = vrot.lane.b32.xlu0 %v5508_v38, %s5345_s20 }
 0x1aa   : > { %1686 = vrot.lane.b32.xlu1 %v5537_v40, %s7075_s30 }
 0x1ac   : > { %1350 = vrot.lane.b32.xlu0 %v5508_v38, %s5346_s24 }
 0x1ae   : > { %649 = vrot.lane.b32.xlu1 %v5562_v41, %s5345_s20 }
 0x1b0   : > { %952 = vrot.lane.b32.xlu0 %v5508_v38, %s7105_s25 }
 0x1b2   : > { %1635 = vrot.lane.b32.xlu1 %v5537_v40, %s5344_s19 }
 0x1b4   : > { %1697 = vrot.lane.b32.xlu0 %v5508_v38, %s7101_s28 }
 0x1b6   : > { %637 = vrot.lane.b32.xlu1 %v5577_v42, %s7073_s15 }
 0x1b8   : > { %1299 = vrot.lane.b32.xlu0 %v5508_v38, %s7103_s27 }
 0x1ba   : > { %994 = vrot.lane.b32.xlu1 %v5562_v41, %s5346_s24 }
 0x1bc   : > { %1644 = vrot.lane.b32.xlu0 %v5502_v36, %s7077_s29 }
 0x1be   : > { %635 = vrot.lane.b32.xlu1 %v5590_v43, %s7073_s15 }
 0x1c0   : > { %1646 = vrot.lane.b32.xlu0 %v5508_v38, %s7077_s29 }
 0x1c2   : > { %633 = vrot.lane.b32.xlu1 %v5599_v44, %s7073_s15 }
 0x1c4   : > { %927 = vrot.lane.b32.xlu0 %v5599_v44, %s5353_s14 }
 0x1c6   : > { %1341 = vrot.lane.b32.xlu1 %v5562_v41, %s7101_s28  ;;  %s7109_s28 = smov 76  }
 0x1c8   : > { %929 = vrot.lane.b32.xlu0 %v5590_v43, %s5353_s14 }
 0x1ca   : > { %943 = vrot.lane.b32.xlu1 %v5562_v41, %s7103_s27  ;;  %s7108_s27 = smov 116  }
 0x1ce   : > { %982 = vrot.lane.b32.xlu1 %v5577_v42, %s7099_s16 }
 0x1d2   : > { %1688 = vrot.lane.b32.xlu1 %v5562_v41, %s7075_s30  ;;  %s7079_s30 = smov 96  }
 0x1d6   : > { %1290 = vrot.lane.b32.xlu1 %v5562_v41, %s7077_s29  ;;  %s7081_s29 = smov 88  }
 0x1da   : > { %980 = vrot.lane.b32.xlu1 %v5590_v43, %s7099_s16 }
 0x1de   : > { %978 = vrot.lane.b32.xlu1 %v5599_v44, %s7099_s16 }
 0x1e2   : > { %1637 = vrot.lane.b32.xlu1 %v5562_v41, %s5344_s19 }
 0x1e6   : > { %1329 = vrot.lane.b32.xlu1 %v5577_v42, %s7097_s17  ;;  %v655_v45 = vpop.permute.xlu0 %654 }
 0x1e8   : > { %v646_v47 = vpop.permute.xlu1 %645 }
 0x1e9   : > { %v663_v48 = vsel %vm620_vm3, %v646_v47, %v655_v45 }
 0x1ea   : > { %v666_v49 = vmul.f32 %v663_v48, %v5628_v46  ;;  %1327 = vrot.lane.b32.xlu1 %v5590_v43, %s7097_s17  ;;  %v1000_v50 = vpop.permute.xlu0 %999 }
 0x1ec   : > { %v991_v51 = vpop.permute.xlu1 %990  ;;  %672 = vrot.lane.b32.xlu0 %v666_v49, %s7073_s15 }
 0x1ed   : > { %v1008_v52 = vsel %vm620_vm3, %v991_v51, %v1000_v50 }
 0x1ee   : > { %v1011_v53 = vmul.f32 %v1008_v52, %v5628_v46  ;;  %v949_v54 = vpop.permute.xlu0 %948 }
 0x1f0   : > { %v940_v55 = vpop.permute.xlu1 %939  ;;  %1017 = vrot.lane.b32.xlu1 %v1011_v53, %s7099_s16 }
 0x1f1   : > { %v957_v56 = vsel %vm620_vm3, %v940_v55, %v949_v54 }
 0x1f2   : > { %v960_v57 = vmul.f32 %v957_v56, %v5628_v46  ;;  %v1347_v58 = vpop.permute.xlu0 %1346 }
 0x1f4   : > { %v1338_v59 = vpop.permute.xlu1 %1337  ;;  %966 = vrot.lane.b32.xlu0 %v960_v57, %s5353_s14 }
 0x1f5   : > { %v1355_v22 = vsel %vm620_vm3, %v1338_v59, %v1347_v58 }
 0x1f6   : > { %v1296_v60 = vpop.permute.xlu0 %1295  ;;  %v1358_v24 = vmul.f32 %v1355_v22, %v5628_v46 }
 0x1f8   : > { %v1287_v61 = vpop.permute.xlu1 %1286 }
 0x1f9   : > { %v1304_v47 = vsel %vm620_vm3, %v1287_v61, %v1296_v60 }
 0x1fa   : > { %v5641_v62 = vpop.permute.xlu0 %1693  ;;  %v1307_v49 = vmul.f32 %v1304_v47, %v5628_v46 }
 0x1fc   : > { %v5643_v63 = vpop.permute.xlu1 %1684 }
 0x1fe   : > { %v1002_v1 = vpop.permute.xlu0 %1001 }
 0x200   : > { %v5645_v0 = vpop.permute.xlu1 %1633 }
 0x202   : > { %v951_v4 = vpop.permute.xlu0 %950 }
 0x204   : > { %v657_v2 = vpop.permute.xlu1 %656 }
 0x206   : > { %v1349_v11 = vpop.permute.xlu0 %1348 }
 0x208   : > { %v648_v5 = vpop.permute.xlu1 %647 }
 0x209   : > { %v664_v6 = vsel %vm620_vm3, %v648_v5, %v657_v2 }
 0x20a   : > { %v667_v7 = vmul.f32 %v664_v6, %v5650_v3  ;;  %v1298_v16 = vpop.permute.xlu0 %1297 }
 0x20c   : > { %v993_v8 = vpop.permute.xlu1 %992  ;;  %674 = vrot.lane.b32.xlu0 %v667_v7, %s7073_s15 }
 0x20d   : > { %v1009_v9 = vsel %vm620_vm3, %v993_v8, %v1002_v1 }
 0x20e   : > { %v1012_v12 = vmul.f32 %v1009_v9, %v5650_v3  ;;  %v1696_v21 = vpop.permute.xlu0 %1695 }
 0x210   : > { %v942_v13 = vpop.permute.xlu1 %941  ;;  %1019 = vrot.lane.b32.xlu0 %v1012_v12, %s7099_s16 }
 0x211   : > { %v958_v14 = vsel %vm620_vm3, %v942_v13, %v951_v4  ;;  %v1702_v13 = vsel %vm620_vm3, %v5643_v63, %v5641_v62 }
 0x212   : > { %v961_v15 = vmul.f32 %v958_v14, %v5650_v3  ;;  %v659_v26 = vpop.permute.xlu0 %658 }
 0x214   : > { %v1340_v17 = vpop.permute.xlu1 %1339  ;;  %968 = vrot.lane.b32.xlu0 %v961_v15, %s5353_s14 }
 0x215   : > { %v1356_v18 = vsel %vm620_vm3, %v1340_v17, %v1349_v11  ;;  %v1705_v17 = vmul.f32 %v1702_v13, %v5628_v46 }
 0x216   : > { %v1359_v19 = vmul.f32 %v1356_v18, %v5650_v3  ;;  %v1643_v31 = vpop.permute.xlu0 %1642 }
 0x217   : > { %v1651_v14 = vsel %vm620_vm3, %v5645_v0, %v1643_v31 }
 0x218   : > { %v1289_v20 = vpop.permute.xlu1 %1288  ;;  %1366 = vrot.lane.b32.xlu1 %v1359_v19, %s7097_s17  ;;  %v1654_v18 = vmul.f32 %v1651_v14, %v5628_v46 }
 0x219   : > { %v1305_v52 = vsel %vm620_vm3, %v1289_v20, %v1298_v16 }
 0x21a   : > { %v1004_v35 = vpop.permute.xlu0 %1003  ;;  %v1308_v55 = vmul.f32 %v1305_v52, %v5650_v3 }
 0x21c   : > { %v1687_v23 = vpop.permute.xlu1 %1686  ;;  %1325 = vrot.lane.b32.xlu1 %v5599_v44, %s7097_s17 }
 0x21d   : > { %v1703_v61 = vsel %vm620_vm3, %v1687_v23, %v1696_v21 }
 0x21e   : > { %v1351_v50 = vpop.permute.xlu0 %1350  ;;  %v1706_v4 = vmul.f32 %v1703_v61, %v5650_v3 }
 0x220   : > { %v650_v27 = vpop.permute.xlu1 %649  ;;  %1364 = vrot.lane.b32.xlu1 %v1358_v24, %s7097_s17 }
 0x221   : > { %v665_v28 = vsel %vm620_vm3, %v650_v27, %v659_v26 }
 0x222   : > { %v668_v29 = vmul.f32 %v665_v28, %v5671_v25  ;;  %v953_v56 = vpop.permute.xlu0 %952 }
 0x224   : > { %v1636_v30 = vpop.permute.xlu1 %1635  ;;  %1676 = vrot.lane.b32.xlu1 %v5577_v42, %s7095_s23  ;;  %676 = vrot.lane.b32.xlu0 %v668_v29, %s7073_s15  ;;  %s7083_s15 = smov 4  }
 0x226   : > { %v1698_v1 = vpop.permute.xlu0 %1697 }
 0x228   : > { %v5679_v32 = vpop.permute.xlu1 %637  ;;  %931 = vrot.lane.b32.xlu0 %v5577_v42, %s5353_s14 }
 0x22a   : > { %v1300_v7 = vpop.permute.xlu0 %1299 }
 0x22c   : > { %v995_v37 = vpop.permute.xlu1 %994  ;;  %1274 = vrot.lane.b32.xlu0 %v5599_v44, %s5357_s18 }
 0x22d   : > { %v1010_v39 = vsel %vm620_vm3, %v995_v37, %v1004_v35 }
 0x22e   : > { %v1013_v45 = vmul.f32 %v1010_v39, %v5671_v25  ;;  %v1645_v15 = vpop.permute.xlu0 %1644 }
 0x22f   : > { %v1652_v19 = vsel %vm620_vm3, %v1636_v30, %v1645_v15 }
 0x230   : > { %v5688_v48 = vpop.permute.xlu1 %635  ;;  %1021 = vrot.lane.b32.xlu0 %v1013_v45, %s7099_s16  ;;  %v1655_v62 = vmul.f32 %v1652_v19, %v5650_v3  ;;  %v644_v45 = vmul.f32 %v5679_v32, %v5508_v38 }
 0x231   : > { %v643_v28 = vmul.f32 %v5688_v48, %v5502_v36 }
 0x232   : > { %v1647_v63 = vpop.permute.xlu0 %1646 }
 0x234   : > { %v5692_v51 = vpop.permute.xlu1 %633  ;;  %1313 = vrot.lane.b32.xlu0 %v1307_v49, %s5357_s18 }
 0x236   : > { %v5752_v23 = vpop.permute.xlu0 %927 }
 0x238   : > { %v1342_v53 = vpop.permute.xlu1 %1341  ;;  %1276 = vrot.lane.b32.xlu0 %v5590_v43, %s5357_s18 }
 0x239   : > { %v1357_v54 = vsel %vm620_vm3, %v1342_v53, %v1351_v50 }
 0x23a   : > { %v1360_v57 = vmul.f32 %v1357_v54, %v5671_v25  ;;  %v5754_v24 = vpop.permute.xlu0 %929 }
 0x23c   : > { %v944_v58 = vpop.permute.xlu1 %943  ;;  %1315 = vrot.lane.b32.xlu0 %v1308_v55, %s5357_s18  ;;  %1368 = vrot.lane.b32.xlu1 %v1360_v57, %s7097_s17 }
 0x23d   : > { %v959_v59 = vsel %vm620_vm3, %v944_v58, %v953_v56 }
 0x23e   : > { %v962_v60 = vmul.f32 %v959_v59, %v5671_v25 }
 0x240   : > { %v5706_v2 = vpop.permute.xlu1 %982  ;;  %1674 = vrot.lane.b32.xlu1 %v5590_v43, %s7095_s23  ;;  %970 = vrot.lane.b32.xlu0 %v962_v60, %s5353_s14  ;;  %v936_v60 = vmul.f32 %v5752_v23, %v5493_v33 }
 0x241   : > { %v989_v56 = vmul.f32 %v5706_v2, %v5508_v38 }
 0x244   : > { %v1689_v5 = vpop.permute.xlu1 %1688  ;;  %1713 = vrot.lane.b32.xlu1 %v1706_v4, %s7095_s23  ;;  %1278 = vrot.lane.b32.xlu0 %v5577_v42, %s5357_s18 }
 0x245   : > { %v1704_v6 = vsel %vm620_vm3, %v1689_v5, %v1698_v1 }
 0x246   : > { %v1707_v8 = vmul.f32 %v1704_v6, %v5671_v25 }
 0x248   : > { %v1291_v9 = vpop.permute.xlu1 %1290  ;;  %1621 = vrot.lane.b32.xlu0 %v5599_v44, %s5358_s13  ;;  %1715 = vrot.lane.b32.xlu1 %v1707_v8, %s7095_s23 }
 0x249   : > { %v1306_v11 = vsel %vm620_vm3, %v1291_v9, %v1300_v7  ;;  %v937_v7 = vmul.f32 %v5754_v24, %v5502_v36 }
 0x24a   : > { %v1309_v12 = vmul.f32 %v1306_v11, %v5671_v25 }
 0x24c   : > { %v5727_v16 = vpop.permute.xlu1 %980  ;;  %1672 = vrot.lane.b32.xlu1 %v5599_v44, %s7095_s23  ;;  %1317 = vrot.lane.b32.xlu0 %v1309_v12, %s5357_s18 }
 0x24d   : > { %v988_v61 = vmul.f32 %v5727_v16, %v5502_v36 }
 0x250   : > { %v5735_v20 = vpop.permute.xlu1 %978  ;;  %1711 = vrot.lane.b32.xlu1 %v1705_v17, %s7095_s23  ;;  %1660 = vrot.lane.b32.xlu0 %v1654_v18, %s5358_s13 }
 0x254   : > { %v1638_v0 = vpop.permute.xlu1 %1637  ;;  %1623 = vrot.lane.b32.xlu1 %v5590_v43, %s5358_s13  ;;  %1662 = vrot.lane.b32.xlu0 %v1655_v62, %s5358_s13 }
 0x255   : > { %v1653_v21 = vsel %vm620_vm3, %v1638_v0, %v1647_v63 }
 0x256   : > { %v1656_v22 = vmul.f32 %v1653_v21, %v5671_v25 }
 0x258   : > { %1625 = vrot.lane.b32.xlu1 %v5577_v42, %s5358_s13  ;;  %1664 = vrot.lane.b32.xlu0 %v1656_v22, %s5358_s13 }
 0x25c   : > { %611 = vrot.lane.b32.xlu1 %v5493_v33, %s7083_s15  ;;  %599 = vrot.lane.b32.xlu0 %v5498_v34, %s7105_s25  ;;  %v5763_v34 = vpop.permute.xlu1 %1329 }
 0x25d   : > { %v1336_v13 = vmul.f32 %v5763_v34, %v5508_v38 }
 0x25e   : > { %v673_v26 = vpop.permute.xlu0 %672 }
 0x260   : > { %v5765_v35 = vpop.permute.xlu1 %1327 }
 0x261   : > { %v1335_v19 = vmul.f32 %v5765_v35, %v5502_v36 }
 0x264   : > { %v1018_v39 = vpop.permute.xlu1 %1017 }
 0x266   : > { %v967_v27 = vpop.permute.xlu0 %966 }
 0x267   : > { %v975_v5 = vadd.f32 %v967_v27, %v936_v60 }
 0x269   : > { %v1029_v11 = vmul.f32 0.35355338, %v975_v5 }
 0x27e   : > { %v675_v29 = vpop.permute.xlu0 %674 }
 0x27f   : > { %v682_v30 = vadd.f32 %v675_v29, %v643_v28 }
 0x281   : > { %692 = vrot.lane.b32.xlu0 %v682_v30, %s7079_s30 }
 0x282   : > { %v1020_v31 = vpop.permute.xlu0 %1019 }
 0x283   : > { %v1027_v6 = vadd.f32 %v1020_v31, %v988_v61 }
 0x285   : > { %613 = vrot.lane.b32.xlu0 %v5502_v36, %s7083_s15 }
 0x286   : > { %v969_v37 = vpop.permute.xlu0 %968 }
 0x287   : > { %v976_v12 = vadd.f32 %v969_v37, %v937_v7 }
 0x289   : > { %603 = vrot.lane.b32.xlu0 %v5562_v41, %s7105_s25  ;;  %v642_v41 = vmul.f32 %v5692_v51, %v5493_v33  ;;  %v1030_v17 = vmul.f32 0.35355338, %v976_v12 }
 0x28a   : > { %v1367_v50 = vpop.permute.xlu1 %1366 }
 0x28b   : > { %v681_v55 = vadd.f32 %v673_v26, %v642_v41  ;;  %v1374_v21 = vadd.f32 %v1367_v50, %v1335_v19 }
 0x28e   : > { %v5776_v53 = vpop.permute.xlu1 %1325 }
 0x28f   : > { %v1334_v27 = vmul.f32 %v5776_v53, %v5493_v33 }
 0x292   : > { %v1365_v59 = vpop.permute.xlu1 %1364 }
 0x293   : > { %v1373_v37 = vadd.f32 %v1365_v59, %v1334_v27 }
 0x296   : > { %v677_v47 = vpop.permute.xlu0 %676  ;;  %v5796_v8 = vpop.permute.xlu1 %1676 }
 0x297   : > { %v683_v49 = vadd.f32 %v677_v47, %v644_v45  ;;  %v1683_v45 = vmul.f32 %v5796_v8, %v5508_v38 }
 0x299   : > { %694 = vrot.lane.b32.xlu1 %v683_v49, %s7079_s30 }
 0x29a   : > { %v5770_v52 = vpop.permute.xlu0 %931 }
 0x29b   : > { %v938_v62 = vmul.f32 %v5770_v52, %v5508_v38 }
 0x29d   : > { %601 = vrot.lane.b32.xlu1 %v5537_v40, %s7105_s25  ;;  %v987_v40 = vmul.f32 %v5735_v20, %v5493_v33  ;;  %s7107_s25 = smov 124  }
 0x29e   : > { %v5778_v54 = vpop.permute.xlu0 %1274 }
 0x29f   : > { %v1026_v4 = vadd.f32 %v1018_v39, %v987_v40  ;;  %v1283_v22 = vmul.f32 %v5778_v54, %v5493_v33 }
 0x2a1   : > { %690 = vrot.lane.b32.xlu1 %v681_v55, %s7079_s30  ;;  %s7085_s30 = smov 120  }
 0x2a2   : > { %v1022_v57 = vpop.permute.xlu0 %1021 }
 0x2a3   : > { %v1028_v58 = vadd.f32 %v1022_v57, %v989_v56 }
 0x2a5   : > { %615 = vrot.lane.b32.xlu1 %v5508_v38, %s7083_s15  ;;  %1048 = vrot.lane.b32.xlu0 %v1028_v58, %s7081_s29  ;;  %s7089_s15 = smov 112  }
 0x2a6   : > { %v1314_v1 = vpop.permute.xlu0 %1313 }
 0x2a7   : > { %v1322_v28 = vadd.f32 %v1314_v1, %v1283_v22 }
 0x2a9   : > { %1046 = vrot.lane.b32.xlu1 %v1027_v6, %s7081_s29  ;;  %1044 = vrot.lane.b32.xlu0 %v1026_v4, %s7081_s29  ;;  %s7087_s29 = smov 80   ;;  %v1376_v47 = vmul.f32 0.35355338, %v1322_v28 }
 0x2aa   : > { %v5798_v9 = vpop.permute.xlu0 %1276 }
 0x2ab   : > { %v1284_v39 = vmul.f32 %v5798_v9, %v5502_v36 }
 0x2ad   : > { %1035 = vrot.lane.b32.xlu1 %v1029_v11, %s7085_s30 }
 0x2ae   : > { %v1369_v14 = vpop.permute.xlu1 %1368  ;;  %v1316_v15 = vpop.permute.xlu0 %1315 }
 0x2af   : > { %v1375_v18 = vadd.f32 %v1369_v14, %v1336_v13  ;;  %v1323_v49 = vadd.f32 %v1316_v15, %v1284_v39 }
 0x2b1   : > { %1037 = vrot.lane.b32.xlu1 %v1030_v17, %s7085_s30  ;;  %1395 = vrot.lane.b32.xlu0 %v1375_v18, %s7087_s29  ;;  %v1377_v56 = vmul.f32 0.35355338, %v1323_v49 }
 0x2b2   : > { %v5809_v63 = vpop.permute.xlu1 %1674  ;;  %v971_v0 = vpop.permute.xlu0 %970 }
 0x2b3   : > { %v977_v26 = vadd.f32 %v971_v0, %v938_v62  ;;  %v1682_v57 = vmul.f32 %v5809_v63, %v5502_v36 }
 0x2b5   : > { %v1031_v29 = vmul.f32 0.35355338, %v977_v26  ;;  %1393 = vrot.lane.b32.xlu0 %v1374_v21, %s7087_s29 }
 0x2b6   : > { %v1714_v30 = vpop.permute.xlu1 %1713  ;;  %v5816_v31 = vpop.permute.xlu0 %1278 }
 0x2b7   : > { %1039 = vrot.lane.b32.xlu1 %v1031_v29, %s7085_s30  ;;  %v1285_v58 = vmul.f32 %v5816_v31, %v5508_v38  ;;  %s7093_s30 = smov 72   ;;  %v1721_v61 = vadd.f32 %v1714_v30, %v1682_v57 }
 0x2b9   : > { %1391 = vrot.lane.b32.xlu0 %v1373_v37, %s7087_s29  ;;  %s7091_s29 = smov 104  }
 0x2ba   : > { %v1716_v50 = vpop.permute.xlu1 %1715  ;;  %v5824_v41 = vpop.permute.xlu0 %1621 }
 0x2bb   : > { %v1722_v55 = vadd.f32 %v1716_v50, %v1683_v45  ;;  %1382 = vrot.lane.b32.xlu1 %v1376_v47, %s7089_s15  ;;  %v1630_v1 = vmul.f32 %v5824_v41, %v5493_v33  ;;  %v590_v47 = vmul.f32 %v5493_v33, %v5599_v44 }
 0x2bd   : > { %1742 = vrot.lane.b32.xlu0 %v1722_v55, %s7093_s30 }
 0x2be   : > { %v5832_v59 = vpop.permute.xlu1 %1672  ;;  %v1318_v60 = vpop.permute.xlu0 %1317 }
 0x2bf   : > { %v1324_v40 = vadd.f32 %v1318_v60, %v1285_v58  ;;  %1384 = vrot.lane.b32.xlu1 %v1377_v56, %s7089_s15  ;;  %v1681_v4 = vmul.f32 %v5832_v59, %v5493_v33 }
 0x2c1   : > { %v1378_v5 = vmul.f32 0.35355338, %v1324_v40  ;;  %1740 = vrot.lane.b32.xlu0 %v1721_v61, %s7093_s30 }
 0x2c2   : > { %v1712_v6 = vpop.permute.xlu1 %1711  ;;  %v1661_v7 = vpop.permute.xlu0 %1660 }
 0x2c3   : > { %v1720_v11 = vadd.f32 %v1712_v6, %v1681_v4  ;;  %v1669_v12 = vadd.f32 %v1661_v7, %v1630_v1  ;;  %1386 = vrot.lane.b32.xlu1 %v1378_v5, %s7089_s15  ;;  %s5367_s15 = smov 64  }
 0x2c5   : > { %v1723_v13 = vmul.f32 0.35355338, %v1669_v12  ;;  %1738 = vrot.lane.b32.xlu0 %v1720_v11, %s7093_s30 }
 0x2c6   : > { %v5842_v14 = vpop.permute.xlu1 %1623  ;;  %v1663_v15 = vpop.permute.xlu0 %1662 }
 0x2c7   : > { %v1631_v17 = vmul.f32 %v5842_v14, %v5502_v36  ;;  %1729 = vrot.lane.b32.xlu1 %v1723_v13, %s7091_s29 }
 0x2c9   : > { %v1670_v18 = vadd.f32 %v1663_v15, %v1631_v17 }
 0x2ca   : > { %v5847_v19 = vpop.permute.xlu1 %1625  ;;  %v1665_v21 = vpop.permute.xlu0 %1664 }
 0x2cb   : > { %v1724_v62 = vmul.f32 0.35355338, %v1670_v18  ;;  %v1632_v0 = vmul.f32 %v5847_v19, %v5508_v38 }
 0x2cd   : > { %v1671_v22 = vadd.f32 %v1665_v21, %v1632_v0  ;;  %1731 = vrot.lane.b32.xlu0 %v1724_v62, %s7091_s29 }
 0x2ce   : > { %v600_v27 = vpop.permute.xlu0 %599  ;;  %v612_v28 = vpop.permute.xlu1 %611 }
 0x2cf   : > { %v1725_v26 = vmul.f32 0.35355338, %v1671_v22  ;;  %v621_v30 = vsel %vm620_vm3, %v600_v27, %v612_v28 }
 0x2d0   : > { %v624_v39 = vmul.f32 %v621_v30, %v5628_v46  ;;  %v591_v46 = vmul.f32 %v5502_v36, %v5590_v43  ;;  %v592_v43 = vmul.f32 %v5508_v38, %v5577_v42 }
 0x2d1   : > { %831 = vrot.lane.b32.xlu0 %v5508_v38, %s5367_s15  ;;  %1733 = vrot.lane.b32.xlu1 %v1725_v26, %s7091_s29  ;;  %s7123_s29 = smov 104  }
 0x2d2   : > { %v627_v55 = vadd.f32 %v624_v39, %v590_v47 }
 0x2d4   : > { %v684_v60 = vmul.f32 0.35355338, %v627_v55  ;;  %v5368_v55 = vmov 0  }
 0x2d5   : > { %1179 = vrot.lane.b32.xlu0 %v5508_v38, %s7095_s23  ;;  %829 = vrot.lane.b32.xlu1 %v5502_v36, %s5367_s15 }
 0x2d9   : > { %1175 = vrot.lane.b32.xlu0 %v5493_v33, %s7095_s23  ;;  %827 = vrot.lane.b32.xlu1 %v5493_v33, %s5367_s15 }
 0x2dd   : > { %1177 = vrot.lane.b32.xlu1 %v5502_v36, %s7095_s23  ;;  %s422_s23 = scalar_lea.vmem %s7060_s1, %s7126_s22 }
 0x2de   : > { %v431_v47 = vld [vmem:[%s422_s23] sm:$0x1]  ;;  %s7122_s23 = smov 112  }
 0x2df   : > { %vm432_vm6 = vcmp.gt.f32.partialorder %v431_v47, 0.5 }
 0x2f3   : > { %v693_v29 = vpop.permute.xlu0 %692 }
 0x2f7   : > { %v614_v45 = vpop.permute.xlu0 %613 }
 0x2fb   : > { %v604_v57 = vpop.permute.xlu0 %603 }
 0x30b   : > { %v695_v37 = vpop.permute.xlu1 %694 }
 0x30c   : > { %4747 = vmatpush3.xpose.msk.msra.mxu1 %vm696_vm4, %v695_v37 }
 0x30d   : > { %4748 = vmatprep.subr.mxu1 %v5342_v10 }
 0x30f   : > { %v602_v49 = vpop.permute.xlu1 %601 }
 0x310   : > { %v622_v50 = vsel %vm620_vm3, %v602_v49, %v614_v45  ;;  %4749 = vmatpush3.xpose.msk.msra.mxu1 %vm696_vm4, %v693_v29  ;;  %v433_v45 = vlaneseq }
 0x311   : > { %v625_v56 = vmul.f32 %v622_v50, %v5650_v3  ;;  %4750 = vmatprep.subr.mxu1 %v5342_v10 }
 0x312   : > { %v434_v49 = vshrl.u32 %v433_v45, 7 }
 0x313   : > { %v691_v58 = vpop.permute.xlu1 %690  ;;  %v628_v61 = vadd.f32 %v625_v56, %v591_v46  ;;  %v442_v56 = vsel %vm432_vm6, 1, %v5368_v55  ;;  %v438_v46 = vand.u32 127, %v433_v45  ;;  %vm2007_vm6 = vcmask 130048  }
 0x314   : > { %4751 = vmatpush3.xpose.msk.msra.mxu1 %vm696_vm4, %v691_v58  ;;  %v445_v50 = vsub.s32 0, %v434_v49  ;;  %v435_v58 = vadd.s32 8, %v434_v49 }
 0x315   : > { %4776 = vmatprep.subr.mxu1 %v5342_v10  ;;  %v685_v3 = vmul.f32 0.35355338, %v628_v61  ;;  %vm439_vm8 = vcmp.le.s32.totalorder %v438_v46, %v434_v49  ;;  %v5369_v61 = vmov -1e+09  }
 0x316   : > { %vm440_vm10 = vcmp.le.s32.totalorder %v438_v46, %v435_v58 }
 0x317   : > { %v616_v44 = vpop.permute.xlu1 %615  ;;  %4753 = vmatmul.mubr.msk.f32.vlgmr.msra.gmra.mxu1 %vm696_vm4, %v684_v60  ;;  %v1049_v40 = vpop.permute.xlu0 %1048  ;;  %v436_v60 = vadd.s32 16, %v434_v49 }
 0x318   : > { %v623_v1 = vsel %vm620_vm3, %v604_v57, %v616_v44  ;;  %4777 = vmatpush3.xpose.msk.msra.mxu1 %vm696_vm4, %v1049_v40  ;;  %4755 = vmatprep.mubr.msk.f32.mxu1 %vm5343_vm2, %v5342_v10  ;;  %v446_v57 = vrot.slane %v442_v56, %v445_v50 }
 0x319   : > { %v626_v4 = vmul.f32 %v623_v1, %v5671_v25  ;;  %4778 = vmatprep.subr.mxu1 %v5342_v10  ;;  %vm441_vm13 = vcmp.le.s32.totalorder %v438_v46, %v436_v60 }
 0x31a   : > { %vm447_vm7 = vcmp.eq.s32.totalorder %v446_v57, 1 }
 0x31b   : > { %v629_v5 = vadd.f32 %v626_v4, %v592_v43  ;;  %v1047_v6 = vpop.permute.xlu1 %1046  ;;  %4756 = vmatmul.mubr.msk.f32.gmra.mxu1 %vm696_vm4, %v685_v3  ;;  %v1045_v11 = vpop.permute.xlu0 %1044  ;;  %vm448_vm9 = vmand %vm439_vm8, %vm447_vm7  ;;  %vm2282_vm8 = vcmask 523264  }
 0x31c   : > { %4779 = vmatpush3.xpose.msk.msra.mxu1 %vm696_vm4, %v1047_v6  ;;  %4758 = vmatprep.mubr.msk.f32.mxu1 %vm5343_vm2, %v5342_v10  ;;  %v5946_v44 = vsel %vm448_vm9, 0.0, %v5369_v61  ;;  %vm449_vm11 = vmand %vm440_vm10, %vm447_vm7 }
 0x31d   : > { %v686_v7 = vmul.f32 0.35355338, %v629_v5  ;;  %4780 = vmatprep.subr.mxu1 %v5342_v10  ;;  %v5952_v43 = vsel %vm449_vm11, 0.0, %v5369_v61  ;;  %vm450_vm14 = vmand %vm441_vm13, %vm447_vm7  ;;  %vm2011_vm7 = vcmask 195584  }
 0x31f   : > { %v1036_v12 = vpop.permute.xlu1 %1035  ;;  %4759 = vmatmul.mubr.msk.f32.gmra.mxu1 %vm696_vm4, %v686_v7 }
 0x320   : > { %4781 = vmatpush3.xpose.msk.msra.mxu1 %vm696_vm4, %v1045_v11  ;;  %4782 = vmatprep.mubr.msk.f32.mxu1 %vm5343_vm2, %v5342_v10  ;;  %v5960_v11 = vsel %vm450_vm14, 0.0, %v5369_v61 }
 0x321   : > { %4806 = vmatprep.subr.mxu1 %v5342_v10 }
 0x323   : > { %4783 = vmatmul.mubr.msk.f32.vlgmr.msra.gmra.mxu1 %vm696_vm4, %v1036_v12  ;;  %v1396_v42 = vpop.permute.xlu0 %1395  ;;  %v1038_v25 = vpop.permute.xlu1 %1037 }
 0x324   : > { %4807 = vmatpush3.xpose.msk.msra.mxu1 %vm696_vm4, %v1396_v42  ;;  %4785 = vmatprep.mubr.msk.f32.mxu1 %vm5343_vm2, %v5342_v10 }
 0x325   : > { %4808 = vmatprep.subr.mxu1 %v5342_v10 }
 0x327   : > { %4786 = vmatmul.mubr.msk.f32.gmra.mxu1 %vm696_vm4, %v1038_v25  ;;  %v1394_v13 = vpop.permute.xlu0 %1393 }
 0x328   : > { %4809 = vmatpush3.xpose.msk.msra.mxu1 %vm696_vm4, %v1394_v13  ;;  %4788 = vmatprep.mubr.msk.f32.mxu1 %vm5343_vm2, %v5342_v10 }
 0x329   : > { %v1040_v15 = vpop.permute.xlu1 %1039  ;;  %4810 = vmatprep.subr.mxu1 %v5342_v10 }
 0x32b   : > { %4789 = vmatmul.mubr.msk.f32.gmra.mxu1 %vm696_vm4, %v1040_v15  ;;  %v1392_v17 = vpop.permute.xlu0 %1391 }
 0x32c   : > { %4811 = vmatpush3.xpose.msk.msra.mxu1 %vm696_vm4, %v1392_v17  ;;  %4812 = vmatprep.mubr.msk.f32.mxu1 %vm5343_vm2, %v5342_v10 }
 0x32d   : > { %v1383_v18 = vpop.permute.xlu1 %1382  ;;  %4836 = vmatprep.subr.mxu1 %v5342_v10 }
 0x32f   : > { %4813 = vmatmul.mubr.msk.f32.vlgmr.msra.gmra.mxu1 %vm696_vm4, %v1383_v18  ;;  %v1743_v62 = vpop.permute.xlu0 %1742 }
 0x330   : > { %4837 = vmatpush3.xpose.msk.msra.mxu1 %vm696_vm4, %v1743_v62  ;;  %4815 = vmatprep.mubr.msk.f32.mxu1 %vm5343_vm2, %v5342_v10 }
 0x331   : > { %v1385_v0 = vpop.permute.xlu1 %1384  ;;  %4838 = vmatprep.subr.mxu1 %v5342_v10 }
 0x333   : > { %4816 = vmatmul.mubr.msk.f32.gmra.mxu1 %vm696_vm4, %v1385_v0  ;;  %v1741_v21 = vpop.permute.xlu0 %1740 }
 0x334   : > { %4839 = vmatpush3.xpose.msk.msra.mxu1 %vm696_vm4, %v1741_v21  ;;  %4818 = vmatprep.mubr.msk.f32.mxu1 %vm5343_vm2, %v5342_v10 }
 0x335   : > { %v1387_v22 = vpop.permute.xlu1 %1386  ;;  %4840 = vmatprep.subr.mxu1 %v5342_v10 }
 0x337   : > { %4819 = vmatmul.mubr.msk.f32.gmra.mxu1 %vm696_vm4, %v1387_v22  ;;  %v1739_v26 = vpop.permute.xlu0 %1738 }
 0x338   : > { %4841 = vmatpush3.xpose.msk.msra.mxu1 %vm696_vm4, %v1739_v26  ;;  %4842 = vmatprep.mubr.msk.f32.mxu1 %vm5343_vm2, %v5342_v10 }
 0x339   : > { %v1730_v27 = vpop.permute.xlu1 %1729  ;;  %4866 = vmatprep.subr.mxu1 %v5342_v10 }
 0x33b   : > { %4843 = vmatmul.mubr.msk.f32.vlgmr.msra.gmra.mxu1 %vm696_vm4, %v1730_v27 }
 0x33c   : > { %4845 = vmatprep.mubr.msk.f32.mxu1 %vm5343_vm2, %v5342_v10 }
 0x33f   : > { %v1732_v28 = vpop.permute.xlu0 %1731 }
 0x340   : > { %4846 = vmatmul.mubr.msk.f32.gmra.mxu1 %vm696_vm4, %v1732_v28 }
 0x341   : > { %4848 = vmatprep.mubr.msk.f32.mxu1 %vm5343_vm2, %v5342_v10 }
 0x343   : > { %v1734_v29 = vpop.permute.xlu1 %1733  ;;  %v832_v30 = vpop.permute.xlu0 %831 }
 0x344   : > { %4762 = vmatpush3.msk.msra.mxu0 %vm844_vm5, %v832_v30  ;;  %4849 = vmatmul.mubr.msk.f32.gmra.mxu1 %vm696_vm4, %v1734_v29 }
 0x345   : > { %4763 = vmatprep.subr.mxu0 %v5342_v10  ;;  %4874 = vmatprep.mubr.msk.f32.mxu1 %vm5343_vm2, %v5342_v10 }
 0x347   : > { %v830_v37 = vpop.permute.xlu1 %829 }
 0x348   : > { %4764 = vmatpush3.msra.mxu0 %v830_v37 }
 0x349   : > { %4765 = vmatprep.subr.mxu0 %v5342_v10 }
 0x34b   : > { %v828_v39 = vpop.permute.xlu1 %827 }
 0x34c   : > { %4766 = vmatpush3.msra.mxu0 %v828_v39 }
 0x34d   : > { %4791 = vmatprep.subr.mxu0 %v5342_v10 }
 0x3d7   : > { %v778_v40 = vpop.f32.mrf.mxu1 }
 0x3d8   : > { %v5950_v1 = vadd.f32 %v778_v40, %v5946_v44 }
 0x3d9   : > { %v4754_v3 = vpop.f32.mrf.mxu1 }
 0x3da   : > { %v793_v4 = vsel %vm792_vm12, %v5950_v1, -inf }
 0x3db   : > { %794 = vmax.xlane.f32.xlu0 %v793_v4  ;;  %v783_v5 = vpop.f32.mrf.mxu1 }
 0x3dc   : > { %v5958_v6 = vadd.f32 %v783_v5, %v5952_v43 }
 0x3dd   : > { %v4757_v7 = vpop.f32.mrf.mxu1 }
 0x3de   : > { %v796_v12 = vsel %vm792_vm12, %v5958_v6, -inf }
 0x3df   : > { %797 = vmax.xlane.f32.xlu1 %v796_v12  ;;  %v788_v42 = vpop.f32.mrf.mxu1 }
 0x3e0   : > { %v5965_v25 = vadd.f32 %v788_v42, %v5960_v11 }
 0x3e1   : > { %v4760_v13 = vpop.f32.mrf.mxu1 }
 0x3e2   : > { %v800_v15 = vsel %vm799_vm15, %v5965_v25, -inf }
 0x3e3   : > { %801 = vmax.xlane.f32.xlu0 %v800_v15  ;;  %v1128_v17 = vpop.f32.mrf.mxu1 }
 0x3e4   : > { %v5970_v18 = vadd.f32 %v1128_v17, %v5946_v44 }
 0x3e5   : > { %v4784_v62 = vpop.f32.mrf.mxu1 }
 0x3e6   : > { %v1142_v0 = vsel %vm792_vm12, %v5970_v18, -inf }
 0x3e7   : > { %1143 = vmax.xlane.f32.xlu0 %v1142_v0  ;;  %v1133_v21 = vpop.f32.mrf.mxu1 }
 0x3e8   : > { %v5975_v22 = vadd.f32 %v1133_v21, %v5952_v43  ;;  %v6018_v21 = vpop.permute.xlu0 %1179 }
 0x3e9   : > { %v4787_v26 = vpop.f32.mrf.mxu1 }
 0x3ea   : > { %v1145_v27 = vsel %vm792_vm12, %v5975_v22, -inf }
 0x3eb   : > { %1146 = vmax.xlane.f32.xlu0 %v1145_v27  ;;  %v1138_v28 = vpop.f32.mrf.mxu1  ;;  %v6022_v27 = vpop.permute.xlu1 %1177 }
 0x3ec   : > { %v5980_v29 = vadd.f32 %v1138_v28, %v5960_v11  ;;  %v6020_v26 = vpop.permute.xlu0 %1175 }
 0x3ed   : > { %v4790_v30 = vpop.f32.mrf.mxu1 }
 0x3ee   : > { %v1148_v37 = vsel %vm799_vm15, %v5980_v29, -inf }
 0x3ef   : > { %1149 = vmax.xlane.f32.xlu1 %v1148_v37  ;;  %v1475_v39 = vpop.f32.mrf.mxu1 }
 0x3f0   : > { %v5985_v45 = vadd.f32 %v1475_v39, %v5946_v44 }
 0x3f1   : > { %v4814_v47 = vpop.f32.mrf.mxu1 }
 0x3f2   : > { %v1489_v49 = vsel %vm792_vm12, %v5985_v45, -inf }
 0x3f3   : > { %1490 = vmax.xlane.f32.xlu0 %v1489_v49  ;;  %v1480_v50 = vpop.f32.mrf.mxu1 }
 0x3f4   : > { %v5990_v55 = vadd.f32 %v1480_v50, %v5952_v43 }
 0x3f5   : > { %v4817_v56 = vpop.f32.mrf.mxu1 }
 0x3f6   : > { %v1492_v57 = vsel %vm792_vm12, %v5990_v55, -inf }
 0x3f7   : > { %1493 = vmax.xlane.f32.xlu1 %v1492_v57  ;;  %v1485_v46 = vpop.f32.mrf.mxu1 }
 0x3f8   : > { %v5995_v58 = vadd.f32 %v1485_v46, %v5960_v11 }
 0x3f9   : > { %v4820_v60 = vpop.f32.mrf.mxu1 }
 0x3fa   : > { %v1495_v61 = vsel %vm799_vm15, %v5995_v58, -inf }
 0x3fb   : > { %1496 = vmax.xlane.f32.xlu0 %v1495_v61  ;;  %v1822_v40 = vpop.f32.mrf.mxu1 }
 0x3fc   : > { %v6000_v3 = vadd.f32 %v1822_v40, %v5946_v44 }
 0x3fd   : > { %v4844_v4 = vpop.f32.mrf.mxu1 }
 0x3fe   : > { %v1836_v5 = vsel %vm792_vm12, %v6000_v3, -inf }
 0x3ff   : > { %1837 = vmax.xlane.f32.xlu1 %v1836_v5 }
 0x400   : > { %v1827_v7 = vpop.f32.mrf.mxu1 }
 0x401   : > { %v6005_v12 = vadd.f32 %v1827_v7, %v5952_v43 }
 0x402   : > { %v4847_v42 = vpop.f32.mrf.mxu1 }
 0x403   : > { %v1839_v13 = vsel %vm792_vm12, %v6005_v12, -inf }
 0x404   : > { %1840 = vmax.xlane.f32.xlu0 %v1839_v13  ;;  %v1832_v15 = vpop.f32.mrf.mxu1 }
 0x405   : > { %v6014_v62 = vadd.f32 %v1832_v15, %v5960_v11 }
 0x406   : > { %v4850_v17 = vpop.f32.mrf.mxu1 }
 0x407   : > { %v1842_v0 = vsel %vm799_vm15, %v6014_v62, -inf }
 0x410   : > { %1524 = vrot.lane.b32.xlu1 %v5502_v36, %s7097_s17 }
 0x41a   : > { %1526 = vrot.lane.b32.xlu0 %v5508_v38, %s7097_s17 }
 0x434   : > { %1843 = vmax.xlane.f32.xlu1 %v1842_v0 }
 0x464   : > { %v795_v28 = vpop.xlane.xlu0 %794 }
 0x465   : > { %v803_v30 = vsub.f32 %v5950_v1, %v795_v28 }
 0x467   : > { %v806_v37 = vmul.f32 1.442695, %v803_v30 }
 0x468   : > { %v798_v39 = vpop.xlane.xlu1 %797 }
 0x469   : > { %5181 = vpow2.f32 %v806_v37  ;;  %v804_v47 = vsub.f32 %v5958_v6, %v798_v39 }
 0x46b   : > { %v808_v49 = vmul.f32 1.442695, %v804_v47 }
 0x46c   : > { %v802_v50 = vpop.xlane.xlu0 %801 }
 0x46d   : > { %5183 = vpow2.f32 %v808_v49  ;;  %v805_v56 = vsub.f32 %v5965_v25, %v802_v50 }
 0x46f   : > { %v810_v57 = vmul.f32 1.442695, %v805_v56 }
 0x470   : > { %v1144_v46 = vpop.xlane.xlu0 %1143 }
 0x471   : > { %5185 = vpow2.f32 %v810_v57  ;;  %v1151_v60 = vsub.f32 %v5970_v18, %v1144_v46 }
 0x473   : > { %v1154_v61 = vmul.f32 1.442695, %v1151_v60 }
 0x474   : > { %v1147_v40 = vpop.xlane.xlu0 %1146 }
 0x475   : > { %5187 = vpow2.f32 %v1154_v61  ;;  %v1152_v1 = vsub.f32 %v5975_v22, %v1147_v40 }
 0x476   : > { %v6029_v4 = vpop.eup %5181 }
 0x477   : > { %v1156_v5 = vmul.f32 1.442695, %v1152_v1  ;;  %v812_v6 = vsel %vm792_vm12, %v6029_v4, 0.0 }
 0x478   : > { %813 = vadd.xlane.f32.xlu0 %v812_v6  ;;  %v1150_v0 = vpop.xlane.xlu1 %1149 }
 0x479   : > { %5189 = vpow2.f32 %v1156_v5  ;;  %v1153_v30 = vsub.f32 %v5980_v29, %v1150_v0 }
 0x47a   : > { %v6033_v7 = vpop.eup %5183 }
 0x47b   : > { %v815_v25 = vsel %vm792_vm12, %v6033_v7, 0.0  ;;  %v1158_v49 = vmul.f32 1.442695, %v1153_v30 }
 0x47c   : > { %816 = vadd.xlane.f32.xlu1 %v815_v25  ;;  %v1491_v28 = vpop.xlane.xlu0 %1490 }
 0x47d   : > { %v1498_v47 = vsub.f32 %v5985_v45, %v1491_v28  ;;  %5191 = vpow2.f32 %v1158_v49 }
 0x47e   : > { %v6037_v18 = vpop.eup %5185 }
 0x47f   : > { %v818_v42 = vsel %vm799_vm15, %v6037_v18, 0.0  ;;  %v1501_v57 = vmul.f32 1.442695, %v1498_v47 }
 0x480   : > { %819 = vadd.xlane.f32.xlu0 %v818_v42  ;;  %v1494_v37 = vpop.xlane.xlu1 %1493 }
 0x481   : > { %v1499_v50 = vsub.f32 %v5990_v55, %v1494_v37  ;;  %5193 = vpow2.f32 %v1501_v57 }
 0x482   : > { %v6041_v22 = vpop.eup %5187 }
 0x483   : > { %v1160_v13 = vsel %vm792_vm12, %v6041_v22, 0.0 }
 0x484   : > { %1161 = vadd.xlane.f32.xlu1 %v1160_v13  ;;  %v1497_v39 = vpop.xlane.xlu0 %1496 }
 0x485   : > { %v1500_v46 = vsub.f32 %v5995_v58, %v1497_v39 }
 0x486   : > { %v6045_v15 = vpop.eup %5189 }
 0x487   : > { %v1163_v17 = vsel %vm792_vm12, %v6045_v15, 0.0  ;;  %v1505_v40 = vmul.f32 1.442695, %v1500_v46 }
 0x488   : > { %1164 = vadd.xlane.f32.xlu0 %v1163_v17  ;;  %v1838_v61 = vpop.xlane.xlu1 %1837 }
 0x489   : > { %v1845_v29 = vsub.f32 %v6000_v3, %v1838_v61 }
 0x48a   : > { %v6059_v55 = vpop.eup %5191 }
 0x48b   : > { %v1848_v45 = vmul.f32 1.442695, %v1845_v29  ;;  %v1166_v58 = vsel %vm799_vm15, %v6059_v55, 0.0 }
 0x48d   : > { %v1841_v56 = vpop.xlane.xlu0 %1840 }
 0x48e   : > { %v1846_v60 = vsub.f32 %v6005_v12, %v1841_v56  ;;  %v6061_v5 = vpop.eup %5193  ;;  %v1525_v12 = vpop.permute.xlu1 %1524 }
 0x48f   : > { %v1507_v42 = vsel %vm792_vm12, %v6061_v5, 0.0 }
 0x490   : > { %v1850_v1 = vmul.f32 1.442695, %v1846_v60 }
 0x495   : > { %1873 = vrot.lane.b32.xlu1 %v5508_v38, %s7099_s16  ;;  %v1503_v38 = vmul.f32 1.442695, %v1499_v50  ;;  %v1527_v50 = vpop.permute.xlu0 %1526 }
 0x497   : > { %5195 = vpow2.f32 %v1503_v38 }
 0x498   : > { %5197 = vpow2.f32 %v1505_v40 }
 0x499   : > { %5199 = vpow2.f32 %v1850_v1 }
 0x49a   : > { %5201 = vpow2.f32 %v1848_v45 }
 0x49e   : > { %1522 = vrot.lane.b32.xlu0 %v5493_v33, %s7097_s17  ;;  %s7121_s17 = smov 72  }
 0x4a4   : > { %v6065_v6 = vpop.eup %5195 }
 0x4a5   : > { %v6067_v25 = vpop.eup %5197  ;;  %v1510_v3 = vsel %vm792_vm12, %v6065_v6, 0.0 }
 0x4a6   : > { %v6073_v13 = vpop.eup %5199  ;;  %v1513_v30 = vsel %vm799_vm15, %v6067_v25, 0.0 }
 0x4a7   : > { %v1857_v37 = vsel %vm792_vm12, %v6073_v13, 0.0  ;;  %v6080_v39 = vpop.eup %5201 }
 0x4a8   : > { %v1854_v47 = vsel %vm792_vm12, %v6080_v39, 0.0 }
 0x4b9   : > { %1167 = vadd.xlane.f32.xlu1 %v1166_v58 }
 0x4bd   : > { %v1844_v17 = vpop.xlane.xlu1 %1843  ;;  %1511 = vadd.xlane.f32.xlu0 %v1510_v3  ;;  %1508 = vadd.xlane.f32.xlu1 %v1507_v42 }
 0x4be   : > { %v1847_v0 = vsub.f32 %v6014_v62, %v1844_v17 }
 0x4c0   : > { %v1852_v28 = vmul.f32 1.442695, %v1847_v0 }
 0x4c1   : > { %1514 = vadd.xlane.f32.xlu1 %v1513_v30  ;;  %1858 = vadd.xlane.f32.xlu0 %v1857_v37 }
 0x4c2   : > { %5203 = vpow2.f32 %v1852_v28 }
 0x4c5   : > { %1855 = vadd.xlane.f32.xlu1 %v1854_v47 }
 0x4cf   : > { %v6084_v49 = vpop.eup %5203 }
 0x4d0   : > { %v1860_v62 = vsel %vm799_vm15, %v6084_v49, 0.0 }
 0x4d1   : > { %1861 = vadd.xlane.f32.xlu1 %v1860_v62 }
 0x4d7   : > { %1871 = vrot.lane.b32.xlu0 %v5502_v36, %s7099_s16 }
 0x4e2   : > { %1869 = vrot.lane.b32.xlu1 %v5493_v33, %s7099_s16  ;;  %s7110_s16 = smov 108  }
 0x501   : > { %v814_v56 = vpop.xlane.xlu0 %813 }
 0x502   : > { %5205 = vrcp.f32 %v814_v56 }
 0x505   : > { %v817_v57 = vpop.xlane.xlu1 %816 }
 0x506   : > { %5207 = vrcp.f32 %v817_v57 }
 0x509   : > { %v820_v46 = vpop.xlane.xlu0 %819 }
 0x50a   : > { %5209 = vrcp.f32 %v820_v46 }
 0x50d   : > { %v1162_v38 = vpop.xlane.xlu1 %1161 }
 0x50e   : > { %5211 = vrcp.f32 %v1162_v38 }
 0x50f   : > { %v5206_v60 = vpop.eup %5205 }
 0x510   : > { %v824_v61 = vmul.f32 %v5206_v60, %v6029_v4 }
 0x511   : > { %v1165_v40 = vpop.xlane.xlu0 %1164 }
 0x512   : > { %5213 = vrcp.f32 %v1165_v40  ;;  %4768 = vmatmul.mubr.msk.f32.vlgmr.msra.gmra.mxu0 %vm792_vm12, %v824_v61 }
 0x513   : > { %v5208_v36 = vpop.eup %5207  ;;  %4792 = vmatpush3.msk.msra.mxu0 %vm844_vm5, %v6018_v21  ;;  %4770 = vmatprep.mubr.msk.f32.mxu0 %vm5343_vm2, %v5342_v10 }
 0x514   : > { %4793 = vmatprep.subr.mxu0 %v5342_v10  ;;  %v825_v33 = vmul.f32 %v5208_v36, %v6033_v7 }
 0x515   : > { %4794 = vmatpush3.msra.mxu0 %v6022_v27 }
 0x516   : > { %4795 = vmatprep.subr.mxu0 %v5342_v10  ;;  %4771 = vmatmul.mubr.msk.f32.gmra.mxu0 %vm792_vm12, %v825_v33 }
 0x517   : > { %v5210_v4 = vpop.eup %5209  ;;  %4796 = vmatpush3.msra.mxu0 %v6020_v26  ;;  %4773 = vmatprep.mubr.msk.f32.mxu0 %vm5343_vm2, %v5342_v10 }
 0x518   : > { %v826_v21 = vmul.f32 %v5210_v4, %v6037_v18  ;;  %4821 = vmatprep.subr.mxu0 %v5342_v10  ;;  %v1523_v18 = vpop.permute.xlu0 %1522 }
 0x51a   : > { %4774 = vmatmul.mubr.msk.f32.gmra.mxu0 %vm792_vm12, %v826_v21 }
 0x51b   : > { %v5212_v29 = vpop.eup %5211  ;;  %4797 = vmatprep.mubr.msk.f32.mxu0 %vm5343_vm2, %v5342_v10 }
 0x51c   : > { %v1172_v27 = vmul.f32 %v5212_v29, %v6041_v22  ;;  %v1874_v22 = vpop.permute.xlu1 %1873 }
 0x51e   : > { %4798 = vmatmul.mubr.msk.f32.vlgmr.msra.gmra.mxu0 %vm792_vm12, %v1172_v27  ;;  %v2017_v27 = vld [vmem:[%s7065_s6 + $0x10] sm:$0xff] }
 0x51f   : > { %v5214_v7 = vpop.eup %5213  ;;  %4822 = vmatpush3.msk.msra.mxu0 %vm844_vm5, %v1527_v50  ;;  %4800 = vmatprep.mubr.msk.f32.mxu0 %vm5343_vm2, %v5342_v10 }
 0x520   : > { %4823 = vmatprep.subr.mxu0 %v5342_v10  ;;  %v1173_v26 = vmul.f32 %v5214_v7, %v6045_v15  ;;  %v2016_v7 = vld [vmem:[%s7065_s6 + $0x8] sm:$0xff] }
 0x521   : > { %4824 = vmatpush3.msra.mxu0 %v1525_v12 }
 0x522   : > { %4825 = vmatprep.subr.mxu0 %v5342_v10  ;;  %4801 = vmatmul.mubr.msk.f32.gmra.mxu0 %vm792_vm12, %v1173_v26  ;;  %v2015_v26 = vld [vmem:[%s7065_s6] sm:$0xff] }
 0x523   : > { %4826 = vmatpush3.msra.mxu0 %v1523_v18  ;;  %4803 = vmatprep.mubr.msk.f32.mxu0 %vm5343_vm2, %v5342_v10 }
 0x524   : > { %4851 = vmatprep.subr.mxu0 %v5342_v10 }
 0x542   : > { %v1168_v1 = vpop.xlane.xlu1 %1167 }
 0x543   : > { %5215 = vrcp.f32 %v1168_v1 }
 0x546   : > { %v1509_v45 = vpop.xlane.xlu1 %1508  ;;  %v1512_v58 = vpop.xlane.xlu0 %1511 }
 0x547   : > { %5217 = vrcp.f32 %v1509_v45 }
 0x548   : > { %5219 = vrcp.f32 %v1512_v58 }
 0x54a   : > { %v1515_v15 = vpop.xlane.xlu1 %1514  ;;  %v1859_v17 = vpop.xlane.xlu0 %1858 }
 0x54b   : > { %5221 = vrcp.f32 %v1515_v15 }
 0x54e   : > { %v1856_v12 = vpop.xlane.xlu1 %1855  ;;  %v1872_v37 = vpop.permute.xlu0 %1871 }
 0x54f   : > { %5223 = vrcp.f32 %v1856_v12 }
 0x550   : > { %v5216_v3 = vpop.eup %5215  ;;  %5225 = vrcp.f32 %v1859_v17 }
 0x551   : > { %v1174_v42 = vmul.f32 %v5216_v3, %v6059_v55 }
 0x553   : > { %4804 = vmatmul.mubr.msk.f32.gmra.mxu0 %vm792_vm12, %v1174_v42 }
 0x554   : > { %v5218_v0 = vpop.eup %5217  ;;  %4827 = vmatprep.mubr.msk.f32.mxu0 %vm5343_vm2, %v5342_v10 }
 0x555   : > { %v1519_v28 = vmul.f32 %v5218_v0, %v6061_v5  ;;  %v5220_v30 = vpop.eup %5219 }
 0x556   : > { %v1520_v55 = vmul.f32 %v5220_v30, %v6065_v6 }
 0x557   : > { %4828 = vmatmul.mubr.msk.f32.vlgmr.msra.gmra.mxu0 %vm792_vm12, %v1519_v28 }
 0x558   : > { %4852 = vmatpush3.msk.msra.mxu0 %vm844_vm5, %v1874_v22  ;;  %4830 = vmatprep.mubr.msk.f32.mxu0 %vm5343_vm2, %v5342_v10  ;;  %v5222_v47 = vpop.eup %5221 }
 0x559   : > { %4853 = vmatprep.subr.mxu0 %v5342_v10  ;;  %v1521_v5 = vmul.f32 %v5222_v47, %v6067_v25 }
 0x55a   : > { %4854 = vmatpush3.msra.mxu0 %v1872_v37  ;;  %v1862_v62 = vpop.xlane.xlu1 %1861 }
 0x55b   : > { %5227 = vrcp.f32 %v1862_v62  ;;  %4831 = vmatmul.mubr.msk.f32.gmra.mxu0 %vm792_vm12, %v1520_v55  ;;  %4855 = vmatprep.subr.mxu0 %v5342_v10 }
 0x55c   : > { %4833 = vmatprep.mubr.msk.f32.mxu0 %vm5343_vm2, %v5342_v10  ;;  %v5224_v50 = vpop.eup %5223 }
 0x55d   : > { %v1866_v6 = vmul.f32 %v5224_v50, %v6080_v39  ;;  %v5226_v57 = vpop.eup %5225 }
 0x55e   : > { %v1870_v56 = vpop.permute.xlu1 %1869  ;;  %v1867_v25 = vmul.f32 %v5226_v57, %v6073_v13 }
 0x55f   : > { %4834 = vmatmul.mubr.msk.f32.gmra.mxu0 %vm792_vm12, %v1521_v5 }
 0x560   : > { %4856 = vmatpush3.msra.mxu0 %v1870_v56  ;;  %4857 = vmatprep.mubr.msk.f32.mxu0 %vm5343_vm2, %v5342_v10 }
 0x561   : > { %4883 = vmatprep.subr.mxu0 %v5342_v10 }
 0x563   : > { %4858 = vmatmul.mubr.msk.f32.vlgmr.msra.gmra.mxu0 %vm792_vm12, %v1866_v6 }
 0x564   : > { %4860 = vmatprep.mubr.msk.f32.mxu0 %vm5343_vm2, %v5342_v10 }
 0x567   : > { %4861 = vmatmul.mubr.msk.f32.gmra.mxu0 %vm792_vm12, %v1867_v25 }
 0x568   : > { %v5228_v46 = vpop.eup %5227  ;;  %4863 = vmatprep.mubr.msk.f32.mxu0 %vm5343_vm2, %v5342_v10 }
 0x569   : > { %v1868_v38 = vmul.f32 %v5228_v46, %v6084_v49  ;;  %v2018_v49 = vld [vmem:[%s7065_s6 + $0x18] sm:$0xff] }
 0x56a   : > { %4867 = vmatpush3.msra.mxu1 %v2018_v49 }
 0x56b   : > { %4864 = vmatmul.mubr.msk.f32.gmra.mxu0 %vm792_vm12, %v1868_v38  ;;  %4868 = vmatprep.subr.mxu1 %v5342_v10 }
 0x56c   : > { %4891 = vmatprep.mubr.msk.f32.mxu0 %vm5343_vm2, %v5342_v10  ;;  %4869 = vmatpush3.msra.mxu1 %v2017_v27 }
 0x56d   : > { %4870 = vmatprep.subr.mxu1 %v5342_v10 }
 0x56e   : > { %4871 = vmatpush3.msra.mxu1 %v2016_v7 }
 0x56f   : > { %4872 = vmatprep.subr.mxu1 %v5342_v10 }
 0x570   : > { %4873 = vmatpush3.msra.mxu1 %v2015_v26  ;;  %v5326_v26 = vld [vmem:[%s5451_s26 + $0x8] sm:$0xff] }
 0x571   : > { %4900 = vmatprep.subr.mxu1 %v5342_v10 }
 0x5d2   : > { %v913_v39 = vpop.f32.mrf.mxu0 }
 0x5d4   : > { %v4769_v60 = vpop.f32.mrf.mxu0 }
 0x5d6   : > { %v918_v61 = vpop.f32.mrf.mxu0 }
 0x5d8   : > { %v4772_v40 = vpop.f32.mrf.mxu0 }
 0x5da   : > { %v923_v36 = vpop.f32.mrf.mxu0 }
 0x5dc   : > { %v4775_v33 = vpop.f32.mrf.mxu0 }
 0x5de   : > { %v1260_v13 = vpop.f32.mrf.mxu0 }
 0x5df   : > { %1971 = vrot.lane.b32.xlu0 %v1260_v13, %s5353_s14 }
 0x5e0   : > { %v4799_v4 = vpop.f32.mrf.mxu0 }
 0x5e2   : > { %v1265_v21 = vpop.f32.mrf.mxu0 }
 0x5e3   : > { %1973 = vrot.lane.b32.xlu1 %v1265_v21, %s5353_s14 }
 0x5e4   : > { %v4802_v29 = vpop.f32.mrf.mxu0 }
 0x5e5   : > { %v5325_v29 = vld [vmem:[%s5451_s26] sm:$0xff] }
 0x613   : > { %v1270_v18 = vpop.f32.mrf.mxu0 }
 0x615   : > { %v4805_v22 = vpop.f32.mrf.mxu0 }
 0x617   : > { %v1607_v1 = vpop.f32.mrf.mxu0 }
 0x618   : > { %1983 = vrot.lane.b32.xlu1 %v1607_v1, %s5357_s18 }
 0x619   : > { %v4829_v45 = vpop.f32.mrf.mxu0 }
 0x61b   : > { %v1612_v58 = vpop.f32.mrf.mxu0 }
 0x61c   : > { %1985 = vrot.lane.b32.xlu0 %v1612_v58, %s5357_s18 }
 0x61d   : > { %v4832_v15 = vpop.f32.mrf.mxu0 }
 0x61f   : > { %v1617_v12 = vpop.f32.mrf.mxu0 }
 0x621   : > { %v4835_v3 = vpop.f32.mrf.mxu0 }
 0x623   : > { %v1954_v42 = vpop.f32.mrf.mxu0 }
 0x624   : > { %1995 = vrot.lane.b32.xlu0 %v1954_v42, %s5358_s13 }
 0x625   : > { %v4859_v17 = vpop.f32.mrf.mxu0 }
 0x627   : > { %v1959_v0 = vpop.f32.mrf.mxu0 }
 0x628   : > { %1975 = vrot.lane.b32.xlu0 %v1270_v18, %s5353_s14  ;;  %1997 = vrot.lane.b32.xlu1 %v1959_v0, %s5358_s13 }
 0x629   : > { %v4862_v28 = vpop.f32.mrf.mxu0 }
 0x62a   : > { %v2148_v28 = vld [vmem:[%s7067_s8 + $0x18] sm:$0xff] }
 0x62b   : > { %v1964_v30 = vpop.f32.mrf.mxu0  ;;  %4884 = vmatpush3.msra.mxu0 %v2148_v28 }
 0x62c   : > { %1987 = vrot.lane.b32.xlu1 %v1617_v12, %s5357_s18  ;;  %1999 = vrot.lane.b32.xlu0 %v1964_v30, %s5358_s13  ;;  %v5327_v12 = vld [vmem:[%s5451_s26 + $0x10] sm:$0xf]  ;;  %s7112_s26 = smov 32  }
 0x62d   : > { %v4865_v37 = vpop.f32.mrf.mxu0  ;;  %4885 = vmatprep.subr.mxu0 %v5342_v10  ;;  %v2147_v30 = vld [vmem:[%s7067_s8 + $0x10] sm:$0xff] }
 0x62e   : > { %4886 = vmatpush3.msra.mxu0 %v2147_v30  ;;  %v2146_v37 = vld [vmem:[%s7067_s8 + $0x8] sm:$0xff] }
 0x62f   : > { %4887 = vmatprep.subr.mxu0 %v5342_v10 }
 0x630   : > { %4888 = vmatpush3.msra.mxu0 %v2146_v37 }
 0x631   : > { %4889 = vmatprep.subr.mxu0 %v5342_v10 }
 0x651   : > { %v1972_v55 = vpop.permute.xlu0 %1971 }
 0x652   : > { %v2004_v50 = vsel %vm696_vm4, %v913_v39, %v1972_v55  ;;  %v2145_v55 = vld [vmem:[%s7067_s8] sm:$0xff] }
 0x653   : > { %4890 = vmatpush3.msra.mxu0 %v2145_v55 }
 0x654   : > { %4925 = vmatprep.subr.mxu0 %v5342_v10 }
 0x655   : > { %v1974_v47 = vpop.permute.xlu1 %1973 }
 0x656   : > { %v2005_v25 = vsel %vm696_vm4, %v918_v61, %v1974_v47 }
 0x68a   : > { %v1984_v5 = vpop.permute.xlu1 %1983 }
 0x68b   : > { %v2008_v56 = vsel %vm2007_vm6, %v2004_v50, %v1984_v5 }
 0x68e   : > { %v1986_v62 = vpop.permute.xlu0 %1985 }
 0x68f   : > { %v2009_v46 = vsel %vm2007_vm6, %v2005_v25, %v1986_v62 }
 0x696   : > { %v1996_v6 = vpop.permute.xlu0 %1995 }
 0x697   : > { %v2012_v57 = vsel %vm2011_vm7, %v2008_v56, %v1996_v6 }
 0x698   : > { %4875 = vmatmul.mubr.msk.f32.vlgmr.msra.gmra.mxu1 %vm464_vm0, %v2012_v57 }
 0x699   : > { %4877 = vmatprep.mubr.msk.f32.mxu1 %vm5343_vm2, %v5342_v10 }
 0x69a   : > { %v1998_v38 = vpop.permute.xlu1 %1997  ;;  %v1976_v60 = vpop.permute.xlu0 %1975 }
 0x69b   : > { %v2013_v40 = vsel %vm2011_vm7, %v2009_v46, %v1998_v38  ;;  %v2006_v39 = vsel %vm696_vm4, %v923_v36, %v1976_v60  ;;  %v4467_v60 = vld [vmem:[%s7066_s7] ss:$0 sm:$0xff] }
 0x69c   : > { %4878 = vmatmul.mubr.msk.f32.gmra.mxu1 %vm464_vm0, %v2013_v40 }
 0x69d   : > { %4880 = vmatprep.mubr.msk.f32.mxu1 %vm5343_vm2, %v5342_v10 }
 0x69e   : > { %v1988_v33 = vpop.permute.xlu1 %1987  ;;  %v2000_v61 = vpop.permute.xlu0 %1999 }
 0x69f   : > { %v2010_v13 = vsel %vm2007_vm6, %v2006_v39, %v1988_v33 }
 0x6a0   : > { %v2014_v4 = vsel %vm2011_vm7, %v2010_v13, %v2000_v61 }
 0x6a1   : > { %4881 = vmatmul.mubr.msk.f32.gmra.mxu1 %vm464_vm0, %v2014_v4 }
 0x6a2   : > { %4916 = vmatprep.mubr.msk.f32.mxu1 %vm5343_vm2, %v5342_v10 }
 0x758   : > { %v2094_v21 = vpop.f32.mrf.mxu1 }
 0x759   : > { %v6199_v49 = vadd.f32 %v5325_v29, %v2094_v21 }
 0x75a   : > { %v4876_v27 = vpop.f32.mrf.mxu1 }
 0x75b   : > { %v2112_v36 = vmul.f32 %v6199_v49, %v6199_v49  ;;  %v2281_v27 = vld [vmem:[%s7068_s9 + $0x38] sm:$0xff] }
 0x75c   : > { %v2099_v7 = vpop.f32.mrf.mxu1  ;;  %4901 = vmatpush3.msra.mxu1 %v2281_v27 }
 0x75d   : > { %v6204_v18 = vadd.f32 %v5326_v26, %v2099_v7  ;;  %v2115_v22 = vsel %vm464_vm0, %v2112_v36, 0.0  ;;  %v2280_v36 = vld [vmem:[%s7068_s9 + $0x30] sm:$0xff]  ;;  %4902 = vmatprep.subr.mxu1 %v5342_v10  ;;  %v2279_v7 = vld [vmem:[%s7068_s9 + $0x28] sm:$0xff]  ;;  %v2278_v26 = vld [vmem:[%s7068_s9 + $0x20] sm:$0xff] }
 0x75e   : > { %2116 = vadd.xlane.f32.xlu1 %v2115_v22  ;;  %v4879_v1 = vpop.f32.mrf.mxu1  ;;  %4903 = vmatpush3.msra.mxu1 %v2280_v36  ;;  %v2277_v22 = vld [vmem:[%s7068_s9 + $0x18] sm:$0xff] }
 0x75f   : > { %v2113_v45 = vmul.f32 %v6204_v18, %v6204_v18  ;;  %4904 = vmatprep.subr.mxu1 %v5342_v10  ;;  %v2276_v1 = vld [vmem:[%s7068_s9 + $0x10] sm:$0xff] }
 0x760   : > { %4905 = vmatpush3.msra.mxu1 %v2279_v7 }
 0x761   : > { %v2104_v58 = vpop.f32.mrf.mxu1  ;;  %v2118_v15 = vsel %vm464_vm0, %v2113_v45, 0.0  ;;  %4906 = vmatprep.subr.mxu1 %v5342_v10  ;;  %v2275_v45 = vld [vmem:[%s7068_s9 + $0x8] sm:$0xff] }
 0x762   : > { %v6211_v3 = vadd.f32 %v5327_v12, %v2104_v58  ;;  %2119 = vadd.xlane.f32.xlu0 %v2118_v15  ;;  %4907 = vmatpush3.msra.mxu1 %v2278_v26  ;;  %v2274_v58 = vld [vmem:[%s7068_s9] sm:$0xff] }
 0x763   : > { %v4882_v42 = vpop.f32.mrf.mxu1  ;;  %4908 = vmatprep.subr.mxu1 %v5342_v10 }
 0x764   : > { %v2114_v17 = vmul.f32 %v6211_v3, %v6211_v3  ;;  %4909 = vmatpush3.msra.mxu1 %v2277_v22 }
 0x765   : > { %4910 = vmatprep.subr.mxu1 %v5342_v10 }
 0x766   : > { %v2121_v0 = vsel %vm471_vm1, %v2114_v17, 0.0  ;;  %4911 = vmatpush3.msra.mxu1 %v2276_v1 }
 0x767   : > { %2122 = vadd.xlane.f32.xlu0 %v2121_v0  ;;  %4912 = vmatprep.subr.mxu1 %v5342_v10 }
 0x768   : > { %4913 = vmatpush3.msra.mxu1 %v2275_v45 }
 0x769   : > { %4914 = vmatprep.subr.mxu1 %v5342_v10 }
 0x76a   : > { %4915 = vmatpush3.msra.mxu1 %v2274_v58 }
 0x76b   : > { %4942 = vmatprep.subr.mxu1 %v5342_v10 }
 0x7e7   : > { %v2117_v47 = vpop.xlane.xlu1 %2116 }
 0x7e8   : > { %v2124_v62 = vmul.f32 0.03125, %v2117_v47 }
 0x7ea   : > { %v2127_v5 = vadd.f32 1e-06, %v2124_v62 }
 0x7eb   : > { %v2120_v50 = vpop.xlane.xlu0 %2119 }
 0x7ec   : > { %5229 = vrsqrt.f32 %v2127_v5  ;;  %v2125_v56 = vmul.f32 0.03125, %v2120_v50 }
 0x7ee   : > { %v2128_v6 = vadd.f32 1e-06, %v2125_v56 }
 0x7f0   : > { %5231 = vrsqrt.f32 %v2128_v6  ;;  %v2123_v57 = vpop.xlane.xlu0 %2122 }
 0x7f1   : > { %v2126_v25 = vmul.f32 0.03125, %v2123_v57 }
 0x7f3   : > { %v2129_v46 = vadd.f32 1e-06, %v2126_v25 }
 0x7f5   : > { %5233 = vrsqrt.f32 %v2129_v46 }
 0x7f9   : > { %v5230_v38 = vpop.eup %5229 }
 0x7fa   : > { %v2133_v40 = vmul.f32 %v5230_v38, %v6199_v49 }
 0x7fc   : > { %v2142_v39 = vmul.f32 %v4467_v60, %v2133_v40 }
 0x7fd   : > { %v5232_v33 = vpop.eup %5231 }
 0x7fe   : > { %4892 = vmatmul.mubr.msk.f32.vlgmr.msra.gmra.mxu0 %vm464_vm0, %v2142_v39  ;;  %v2134_v61 = vmul.f32 %v5232_v33, %v6204_v18 }
 0x7ff   : > { %4894 = vmatprep.mubr.msk.f32.mxu0 %vm5343_vm2, %v5342_v10 }
 0x800   : > { %v2143_v13 = vmul.f32 %v4467_v60, %v2134_v61 }
 0x802   : > { %v5234_v4 = vpop.eup %5233  ;;  %4895 = vmatmul.mubr.msk.f32.gmra.mxu0 %vm464_vm0, %v2143_v13 }
 0x803   : > { %4897 = vmatprep.mubr.msk.f32.mxu0 %vm5343_vm2, %v5342_v10  ;;  %v2135_v21 = vmul.f32 %v5234_v4, %v6211_v3 }
 0x805   : > { %v2144_v29 = vmul.f32 %v4467_v60, %v2135_v21 }
 0x807   : > { %4898 = vmatmul.mubr.msk.f32.gmra.mxu0 %vm464_vm0, %v2144_v29 }
 0x808   : > { %4933 = vmatprep.mubr.msk.f32.mxu0 %vm5343_vm2, %v5342_v10 }
 0x8be   : > { %v2224_v15 = vpop.f32.mrf.mxu0 }
 0x8bf   : > { %2262 = vrot.lane.b32.xlu0 %v2224_v15, %s5367_s15  ;;  %v4471_v30 = vmul.f32 -1.442695, %v2224_v15 }
 0x8c0   : > { %v4893_v12 = vpop.f32.mrf.mxu0 }
 0x8c1   : > { %5235 = vpow2.f32 %v4471_v30  ;;  %v4479_v30 = vld [vmem:[%s7064_s5 + $0x20] sm:$0xff] }
 0x8c2   : > { %v2229_v42 = vpop.f32.mrf.mxu0 }
 0x8c3   : > { %2264 = vrot.lane.b32.xlu1 %v2229_v42, %s5367_s15  ;;  %v4472_v37 = vmul.f32 -1.442695, %v2229_v42 }
 0x8c4   : > { %v4896_v17 = vpop.f32.mrf.mxu0 }
 0x8c5   : > { %5237 = vpow2.f32 %v4472_v37 }
 0x8c7   : > { %v2234_v0 = vpop.f32.mrf.mxu0 }
 0x8c8   : > { %2266 = vrot.lane.b32.xlu1 %v2234_v0, %s5367_s15  ;;  %v4473_v55 = vmul.f32 -1.442695, %v2234_v0 }
 0x8c9   : > { %v4899_v28 = vpop.f32.mrf.mxu0 }
 0x8ca   : > { %5239 = vpow2.f32 %v4473_v55  ;;  %v4480_v28 = vld [vmem:[%s7064_s5 + $0x28] sm:$0xff] }
 0x8ce   : > { %v5236_v47 = vpop.eup %5235 }
 0x8cf   : > { %v2247_v62 = vadd.f32 1.0, %v5236_v47 }
 0x8d1   : > { %5241 = vrcp.f32 %v2247_v62 }
 0x8d2   : > { %v5238_v5 = vpop.eup %5237 }
 0x8d3   : > { %v2248_v50 = vadd.f32 1.0, %v5238_v5 }
 0x8d5   : > { %5243 = vrcp.f32 %v2248_v50 }
 0x8d7   : > { %v5240_v56 = vpop.eup %5239 }
 0x8d8   : > { %v2249_v6 = vadd.f32 1.0, %v5240_v56 }
 0x8da   : > { %5245 = vrcp.f32 %v2249_v6 }
 0x8de   : > { %v5242_v57 = vpop.eup %5241 }
 0x8df   : > { %v2256_v25 = vmul.f32 %v5242_v57, %v2224_v15 }
 0x8e2   : > { %v5244_v46 = vpop.eup %5243 }
 0x8e3   : > { %v2257_v40 = vmul.f32 %v5244_v46, %v2229_v42  ;;  %v4478_v46 = vld [vmem:[%s7063_s4 + $0x1] ss:$0 sm:$0xff] }
 0x8e7   : > { %v5246_v33 = vpop.eup %5245 }
 0x8e8   : > { %v2258_v13 = vmul.f32 %v5246_v33, %v2234_v0  ;;  %v4482_v0 = vld [vmem:[%s7064_s5 + $0x38] sm:$0xff] }
 0x8e9   : > { %4926 = vmatpush3.msra.mxu0 %v4482_v0 }
 0x8ea   : > { %4927 = vmatprep.subr.mxu0 %v5342_v10 }
 0x931   : > { %v2263_v38 = vpop.permute.xlu0 %2262 }
 0x932   : > { %v2271_v60 = vmul.f32 %v2263_v38, %v2256_v25 }
 0x934   : > { %4917 = vmatmul.mubr.msk.f32.vlgmr.msra.gmra.mxu1 %vm2282_vm8, %v2271_v60 }
 0x935   : > { %v2265_v39 = vpop.permute.xlu1 %2264  ;;  %4919 = vmatprep.mubr.msk.f32.mxu1 %vm5343_vm2, %v5342_v10 }
 0x936   : > { %v2272_v61 = vmul.f32 %v2265_v39, %v2257_v40 }
 0x938   : > { %4920 = vmatmul.mubr.msk.f32.gmra.mxu1 %vm2282_vm8, %v2272_v61 }
 0x939   : > { %4922 = vmatprep.mubr.msk.f32.mxu1 %vm5343_vm2, %v5342_v10 }
 0x93a   : > { %v2267_v4 = vpop.permute.xlu1 %2266 }
 0x93b   : > { %v2273_v21 = vmul.f32 %v2267_v4, %v2258_v13 }
 0x93d   : > { %4923 = vmatmul.mubr.msk.f32.gmra.mxu1 %vm2282_vm8, %v2273_v21 }
 0x93e   : > { %4948 = vmatprep.mubr.msk.f32.mxu1 %vm5343_vm2, %v5342_v10 }
 0x9f4   : > { %v2358_v29 = vpop.f32.mrf.mxu1 }
 0x9f5   : > { %v6292_v27 = vadd.f32 %v2358_v29, %v6199_v49 }
 0x9f6   : > { %v4918_v36 = vpop.f32.mrf.mxu1 }
 0x9f7   : > { %v2377_v7 = vmul.f32 %v6292_v27, %v6292_v27 }
 0x9f8   : > { %v2363_v26 = vpop.f32.mrf.mxu1 }
 0x9f9   : > { %v6297_v22 = vadd.f32 %v2363_v26, %v6204_v18  ;;  %v2380_v1 = vsel %vm464_vm0, %v2377_v7, 0.0 }
 0x9fa   : > { %2381 = vadd.xlane.f32.xlu1 %v2380_v1  ;;  %v4921_v45 = vpop.f32.mrf.mxu1 }
 0x9fb   : > { %v2378_v58 = vmul.f32 %v6297_v22, %v6297_v22 }
 0x9fd   : > { %v2368_v15 = vpop.f32.mrf.mxu1  ;;  %v2383_v12 = vsel %vm464_vm0, %v2378_v58, 0.0 }
 0x9fe   : > { %v6304_v49 = vadd.f32 %v2368_v15, %v6211_v3  ;;  %2384 = vadd.xlane.f32.xlu0 %v2383_v12  ;;  %v4481_v3 = vld [vmem:[%s7064_s5 + $0x30] sm:$0xff] }
 0x9ff   : > { %v4924_v42 = vpop.f32.mrf.mxu1  ;;  %4928 = vmatpush3.msra.mxu0 %v4481_v3 }
 0xa00   : > { %v2379_v17 = vmul.f32 %v6304_v49, %v6304_v49  ;;  %4929 = vmatprep.subr.mxu0 %v5342_v10 }
 0xa01   : > { %4930 = vmatpush3.msra.mxu0 %v4480_v28 }
 0xa02   : > { %v2386_v18 = vsel %vm471_vm1, %v2379_v17, 0.0  ;;  %4931 = vmatprep.subr.mxu0 %v5342_v10 }
 0xa03   : > { %2387 = vadd.xlane.f32.xlu0 %v2386_v18  ;;  %4932 = vmatpush3.msra.mxu0 %v4479_v30 }
 0xa04   : > { %4957 = vmatprep.subr.mxu0 %v5342_v10 }
 0xa83   : > { %v2382_v37 = vpop.xlane.xlu1 %2381 }
 0xa84   : > { %v2389_v55 = vmul.f32 0.03125, %v2382_v37 }
 0xa86   : > { %v2392_v47 = vadd.f32 1e-06, %v2389_v55 }
 0xa87   : > { %v2385_v62 = vpop.xlane.xlu0 %2384 }
 0xa88   : > { %5247 = vrsqrt.f32 %v2392_v47  ;;  %v2390_v5 = vmul.f32 0.03125, %v2385_v62 }
 0xa8a   : > { %v2393_v50 = vadd.f32 1e-06, %v2390_v5 }
 0xa8c   : > { %5249 = vrsqrt.f32 %v2393_v50  ;;  %v2388_v56 = vpop.xlane.xlu0 %2387 }
 0xa8d   : > { %v2391_v6 = vmul.f32 0.03125, %v2388_v56  ;;  %v6443_v56 = vld [vmem:[%s7062_s3 + $0x8] sm:$0xff] }
 0xa8f   : > { %v2394_v57 = vadd.f32 1e-06, %v2391_v6 }
 0xa91   : > { %5251 = vrsqrt.f32 %v2394_v57 }
 0xa95   : > { %v5248_v25 = vpop.eup %5247 }
 0xa96   : > { %v2398_v38 = vmul.f32 %v5248_v25, %v6292_v27 }
 0xa98   : > { %v2407_v60 = vmul.f32 %v4478_v46, %v2398_v38  ;;  %v6451_v38 = vld [vmem:[%s7062_s3 + $0x10] sm:$0xf] }
 0xa99   : > { %v5250_v40 = vpop.eup %5249 }
 0xa9a   : > { %4934 = vmatmul.mubr.msk.f32.vlgmr.msra.gmra.mxu0 %vm464_vm0, %v2407_v60  ;;  %v2399_v39 = vmul.f32 %v5250_v40, %v6297_v22 }
 0xa9b   : > { %4936 = vmatprep.mubr.msk.f32.mxu0 %vm5343_vm2, %v5342_v10 }
 0xa9c   : > { %v2408_v33 = vmul.f32 %v4478_v46, %v2399_v39 }
 0xa9e   : > { %v5252_v61 = vpop.eup %5251  ;;  %4937 = vmatmul.mubr.msk.f32.gmra.mxu0 %vm464_vm0, %v2408_v33 }
 0xa9f   : > { %4939 = vmatprep.mubr.msk.f32.mxu0 %vm5343_vm2, %v5342_v10  ;;  %v2400_v13 = vmul.f32 %v5252_v61, %v6304_v49  ;;  %v6459_v61 = vld [vmem:[%s7062_s3] sm:$0xff] }
 0xaa1   : > { %v2409_v4 = vmul.f32 %v4478_v46, %v2400_v13 }
 0xaa3   : > { %4940 = vmatmul.mubr.msk.f32.gmra.mxu0 %vm464_vm0, %v2409_v4 }
 0xaa4   : > { %4963 = vmatprep.mubr.msk.f32.mxu0 %vm5343_vm2, %v5342_v10 }
 0xb5a   : > { %v6340_v21 = vpop.f32.mrf.mxu0 }
 0xb5b   : > { %2555 = vrot.lane.b32.xlu1 %v6340_v21, %s5344_s19  ;;  %v6345_v29 = vsub.f32 0.0, %v6340_v21 }
 0xb5c   : > { %v4935_v36 = vpop.f32.mrf.mxu0 }
 0xb5d   : > { %2546 = vrot.lane.b32.xlu0 %v6345_v29, %s5345_s20 }
 0xb5e   : > { %v6349_v7 = vpop.f32.mrf.mxu0 }
 0xb5f   : > { %2878 = vrot.lane.b32.xlu1 %v6340_v21, %s5345_s20  ;;  %v6364_v58 = vsub.f32 0.0, %v6349_v7 }
 0xb60   : > { %v4938_v26 = vpop.f32.mrf.mxu0 }
 0xb61   : > { %2869 = vrot.lane.b32.xlu0 %v6345_v29, %s5346_s24 }
 0xb63   : > { %2836 = vrot.lane.b32.xlu1 %v6340_v21, %s7107_s25  ;;  %v6357_v1 = vpop.f32.mrf.mxu0 }
 0xb64   : > { %v6375_v15 = vsub.f32 0.0, %v6357_v1 }
 0xb65   : > { %2827 = vrot.lane.b32.xlu0 %v6345_v29, %s7108_s27  ;;  %v4941_v45 = vpop.f32.mrf.mxu0 }
 0xb67   : > { %2557 = vrot.lane.b32.xlu1 %v6349_v7, %s5344_s19 }
 0xb69   : > { %2871 = vrot.lane.b32.xlu0 %v6364_v58, %s5346_s24 }
 0xb6b   : > { %2880 = vrot.lane.b32.xlu1 %v6349_v7, %s5345_s20 }
 0xb6d   : > { %2829 = vrot.lane.b32.xlu0 %v6364_v58, %s7108_s27 }
 0xb6f   : > { %2838 = vrot.lane.b32.xlu1 %v6349_v7, %s7107_s25 }
 0xb71   : > { %2550 = vrot.lane.b32.xlu0 %v6375_v15, %s5345_s20 }
 0xb73   : > { %2548 = vrot.lane.b32.xlu1 %v6364_v58, %s5345_s20 }
 0xb75   : > { %3200 = vrot.lane.b32.xlu0 %v6364_v58, %s7109_s28 }
 0xb77   : > { %2559 = vrot.lane.b32.xlu1 %v6357_v1, %s5344_s19 }
 0xb79   : > { %3198 = vrot.lane.b32.xlu0 %v6345_v29, %s7109_s28 }
 0xb7b   : > { %2882 = vrot.lane.b32.xlu1 %v6357_v1, %s5345_s20  ;;  %s7111_s20 = smov 68  }
 0xb7d   : > { %2873 = vrot.lane.b32.xlu0 %v6375_v15, %s5346_s24 }
 0xb7f   : > { %3211 = vrot.lane.b32.xlu1 %v6357_v1, %s5346_s24 }
 0xb81   : > { %3156 = vrot.lane.b32.xlu0 %v6345_v29, %s7110_s16 }
 0xb83   : > { %3209 = vrot.lane.b32.xlu1 %v6349_v7, %s5346_s24 }
 0xb85   : > { %3158 = vrot.lane.b32.xlu0 %v6364_v58, %s7110_s16 }
 0xb87   : > { %2840 = vrot.lane.b32.xlu1 %v6357_v1, %s7107_s25 }
 0xb89   : > { %3202 = vrot.lane.b32.xlu0 %v6375_v15, %s7109_s28 }
 0xb8b   : > { %3207 = vrot.lane.b32.xlu1 %v6340_v21, %s5346_s24  ;;  %s7118_s24 = smov 88  }
 0xb8d   : > { %3529 = vrot.lane.b32.xlu0 %v6364_v58, %s7111_s20 }
 0xb8f   : > { %3165 = vrot.lane.b32.xlu1 %v6340_v21, %s7108_s27 }
 0xb91   : > { %2831 = vrot.lane.b32.xlu0 %v6375_v15, %s7108_s27 }
 0xb93   : > { %3540 = vrot.lane.b32.xlu1 %v6357_v1, %s7109_s28 }
 0xb95   : > { %3531 = vrot.lane.b32.xlu0 %v6375_v15, %s7111_s20 }
 0xb97   : > { %3167 = vrot.lane.b32.xlu1 %v6349_v7, %s7108_s27 }
 0xb99   : > { %3527 = vrot.lane.b32.xlu0 %v6345_v29, %s7111_s20  ;;  %s7116_s20 = smov 4  }
 0xb9b   : > { %3538 = vrot.lane.b32.xlu1 %v6349_v7, %s7109_s28 }
 0xb9d   : > { %3160 = vrot.lane.b32.xlu0 %v6375_v15, %s7110_s16 }
 0xb9f   : > { %3169 = vrot.lane.b32.xlu1 %v6357_v1, %s7108_s27  ;;  %s7113_s27 = smov 40  }
 0xba1   : > { %3485 = vrot.lane.b32.xlu0 %v6345_v29, %s5344_s19 }
 0xba3   : > { %3536 = vrot.lane.b32.xlu1 %v6340_v21, %s7109_s28  ;;  %s7114_s28 = smov 48  }
 0xba5   : > { %3487 = vrot.lane.b32.xlu0 %v6364_v58, %s5344_s19 }
 0xba7   : > { %3494 = vrot.lane.b32.xlu1 %v6340_v21, %s7110_s16 }
 0xba9   : > { %3489 = vrot.lane.b32.xlu0 %v6375_v15, %s5344_s19  ;;  %s7117_s19 = smov 96  }
 0xbab   : > { %3496 = vrot.lane.b32.xlu1 %v6349_v7, %s7110_s16 }
 0xbaf   : > { %3498 = vrot.lane.b32.xlu1 %v6357_v1, %s7110_s16  ;;  %s7115_s16 = smov 56  }
 0xbcd   : > { %v2556_v12 = vpop.permute.xlu1 %2555 }
 0xbcf   : > { %v2547_v42 = vpop.permute.xlu0 %2546 }
 0xbd0   : > { %v2564_v39 = vsel %vm620_vm3, %v2547_v42, %v2556_v12 }
 0xbd1   : > { %v2879_v17 = vpop.permute.xlu1 %2878  ;;  %v2567_v13 = vmul.f32 %v6459_v61, %v2564_v39 }
 0xbd3   : > { %v2870_v18 = vpop.permute.xlu0 %2869 }
 0xbd4   : > { %v2887_v12 = vsel %vm620_vm3, %v2870_v18, %v2879_v17 }
 0xbd5   : > { %v2837_v0 = vpop.permute.xlu1 %2836 }
 0xbd7   : > { %v2828_v3 = vpop.permute.xlu0 %2827 }
 0xbd9   : > { %v2558_v28 = vpop.permute.xlu1 %2557 }
 0xbdb   : > { %v2872_v30 = vpop.permute.xlu0 %2871 }
 0xbdd   : > { %v2881_v37 = vpop.permute.xlu1 %2880 }
 0xbde   : > { %v2888_v36 = vsel %vm620_vm3, %v2872_v30, %v2881_v37 }
 0xbdf   : > { %v2830_v55 = vpop.permute.xlu0 %2829  ;;  %v2891_v42 = vmul.f32 %v6443_v56, %v2888_v36 }
 0xbe1   : > { %v2839_v47 = vpop.permute.xlu1 %2838 }
 0xbe3   : > { %v2551_v62 = vpop.permute.xlu0 %2550 }
 0xbe5   : > { %v2549_v5 = vpop.permute.xlu1 %2548 }
 0xbe6   : > { %v2565_v50 = vsel %vm620_vm3, %v2549_v5, %v2558_v28  ;;  %v2845_v5 = vsel %vm620_vm3, %v2828_v3, %v2837_v0 }
 0xbe7   : > { %v2568_v6 = vmul.f32 %v6443_v56, %v2565_v50  ;;  %v3201_v57 = vpop.permute.xlu0 %3200  ;;  %v2890_v50 = vmul.f32 %v6459_v61, %v2887_v12  ;;  %v2848_v30 = vmul.f32 %v6459_v61, %v2845_v5 }
 0xbe9   : > { %2575 = vrot.lane.b32.xlu1 %v2568_v6, %s7112_s26  ;;  %v2560_v25 = vpop.permute.xlu1 %2559 }
 0xbea   : > { %v2566_v46 = vsel %vm620_vm3, %v2551_v62, %v2560_v25  ;;  %v2846_v25 = vsel %vm620_vm3, %v2830_v55, %v2839_v47 }
 0xbeb   : > { %v2569_v60 = vmul.f32 %v6451_v38, %v2566_v46  ;;  %v3199_v40 = vpop.permute.xlu0 %3198  ;;  %v2849_v18 = vmul.f32 %v6443_v56, %v2846_v25 }
 0xbed   : > { %v2883_v33 = vpop.permute.xlu1 %2882  ;;  %2577 = vrot.lane.b32.xlu0 %v2569_v60, %s7112_s26 }
 0xbef   : > { %v2874_v4 = vpop.permute.xlu0 %2873 }
 0xbf0   : > { %v2889_v26 = vsel %vm620_vm3, %v2874_v4, %v2883_v33 }
 0xbf1   : > { %v2892_v45 = vmul.f32 %v6451_v38, %v2889_v26  ;;  %v3212_v28 = vpop.permute.xlu1 %3211  ;;  %2573 = vrot.lane.b32.xlu0 %v2567_v13, %s7112_s26  ;;  %s7120_s26 = smov 120  }
 0xbf3   : > { %2900 = vrot.lane.b32.xlu1 %v2892_v45, %s7113_s27  ;;  %v3157_v62 = vpop.permute.xlu0 %3156 }
 0xbf5   : > { %v3210_v6 = vpop.permute.xlu1 %3209  ;;  %2898 = vrot.lane.b32.xlu0 %v2891_v42, %s7113_s27 }
 0xbf6   : > { %v3217_v39 = vsel %vm620_vm3, %v3201_v57, %v3210_v6 }
 0xbf7   : > { %2896 = vrot.lane.b32.xlu1 %v2890_v50, %s7113_s27  ;;  %v3159_v37 = vpop.permute.xlu0 %3158  ;;  %v3220_v55 = vmul.f32 %v6443_v56, %v3217_v39 }
 0xbf9   : > { %v2841_v17 = vpop.permute.xlu1 %2840  ;;  %2854 = vrot.lane.b32.xlu0 %v2848_v30, %s5353_s14 }
 0xbfb   : > { %v3203_v46 = vpop.permute.xlu0 %3202 }
 0xbfc   : > { %v3218_v0 = vsel %vm620_vm3, %v3203_v46, %v3212_v28 }
 0xbfd   : > { %v3221_v3 = vmul.f32 %v6451_v38, %v3218_v0  ;;  %v3208_v60 = vpop.permute.xlu1 %3207  ;;  %2856 = vrot.lane.b32.xlu0 %v2849_v18, %s5353_s14 }
 0xbfe   : > { %v3216_v13 = vsel %vm620_vm3, %v3199_v40, %v3208_v60 }
 0xbff   : > { %3229 = vrot.lane.b32.xlu1 %v3221_v3, %s7114_s28  ;;  %v3530_v33 = vpop.permute.xlu0 %3529  ;;  %v3219_v26 = vmul.f32 %v6459_v61, %v3216_v13 }
 0xc01   : > { %v3166_v47 = vpop.permute.xlu1 %3165 }
 0xc02   : > { %v3174_v57 = vsel %vm620_vm3, %v3157_v62, %v3166_v47 }
 0xc03   : > { %3227 = vrot.lane.b32.xlu1 %v3220_v55, %s7114_s28  ;;  %v2832_v4 = vpop.permute.xlu0 %2831  ;;  %v3177_v40 = vmul.f32 %v6459_v61, %v3174_v57 }
 0xc04   : > { %v2847_v36 = vsel %vm620_vm3, %v2832_v4, %v2841_v17 }
 0xc05   : > { %v2850_v45 = vmul.f32 %v6451_v38, %v2847_v36  ;;  %v3541_v28 = vpop.permute.xlu1 %3540 }
 0xc07   : > { %3225 = vrot.lane.b32.xlu1 %v3219_v26, %s7114_s28  ;;  %2858 = vrot.lane.b32.xlu0 %v2850_v45, %s5353_s14  ;;  %v3532_v12 = vpop.permute.xlu0 %3531 }
 0xc08   : > { %v3547_v42 = vsel %vm620_vm3, %v3532_v12, %v3541_v28 }
 0xc09   : > { %v3550_v5 = vmul.f32 %v6451_v38, %v3547_v42  ;;  %v3168_v50 = vpop.permute.xlu1 %3167 }
 0xc0a   : > { %v3175_v6 = vsel %vm620_vm3, %v3159_v37, %v3168_v50 }
 0xc0b   : > { %3183 = vrot.lane.b32.xlu0 %v3177_v40, %s5357_s18  ;;  %3558 = vrot.lane.b32.xlu1 %v3550_v5, %s7115_s16  ;;  %v3528_v30 = vpop.permute.xlu0 %3527  ;;  %v3178_v62 = vmul.f32 %v6443_v56, %v3175_v6  ;;  %v2544_v5 = vmul.f32 %v6349_v7, %v5688_v48  ;;  %v2868_v48 = vmul.f32 %v6357_v1, %v5706_v2 }
 0xc0c   : > { %v2867_v2 = vmul.f32 %v6349_v7, %v5727_v16 }
 0xc0d   : > { %v3539_v25 = vpop.permute.xlu1 %3538 }
 0xc0e   : > { %v3546_v17 = vsel %vm620_vm3, %v3530_v33, %v3539_v25 }
 0xc0f   : > { %v3549_v18 = vmul.f32 %v6443_v56, %v3546_v17  ;;  %3185 = vrot.lane.b32.xlu0 %v3178_v62, %s5357_s18  ;;  %v3161_v46 = vpop.permute.xlu0 %3160 }
 0xc11   : > { %v3170_v0 = vpop.permute.xlu1 %3169  ;;  %3556 = vrot.lane.b32.xlu1 %v3549_v18, %s7115_s16 }
 0xc12   : > { %v3176_v37 = vsel %vm620_vm3, %v3161_v46, %v3170_v0 }
 0xc13   : > { %v3179_v3 = vmul.f32 %v6451_v38, %v3176_v37  ;;  %v3486_v60 = vpop.permute.xlu0 %3485 }
 0xc15   : > { %v3537_v39 = vpop.permute.xlu1 %3536  ;;  %3187 = vrot.lane.b32.xlu0 %v3179_v3, %s5357_s18  ;;  %v2866_v3 = vmul.f32 %v6340_v21, %v5735_v20  ;;  %v3197_v20 = vmul.f32 %v6357_v1, %v5763_v34 }
 0xc16   : > { %v3545_v55 = vsel %vm620_vm3, %v3528_v30, %v3537_v39  ;;  %v2545_v30 = vmul.f32 %v6357_v1, %v5679_v32 }
 0xc17   : > { %v3548_v33 = vmul.f32 %v6459_v61, %v3545_v55  ;;  %v3488_v4 = vpop.permute.xlu0 %3487 }
 0xc19   : > { %v3495_v47 = vpop.permute.xlu1 %3494  ;;  %3554 = vrot.lane.b32.xlu1 %v3548_v33, %s7115_s16 }
 0xc1a   : > { %v3503_v13 = vsel %vm620_vm3, %v3486_v60, %v3495_v47  ;;  %v2825_v47 = vmul.f32 %v6349_v7, %v5754_v24  ;;  %v3195_v24 = vmul.f32 %v6340_v21, %v5776_v53 }
 0xc1b   : > { %v3506_v36 = vmul.f32 %v6459_v61, %v3503_v13  ;;  %v3490_v57 = vpop.permute.xlu0 %3489 }
 0xc1d   : > { %v3497_v26 = vpop.permute.xlu1 %3496  ;;  %3512 = vrot.lane.b32.xlu0 %v3506_v36, %s5358_s13 }
 0xc1e   : > { %v3504_v45 = vsel %vm620_vm3, %v3488_v4, %v3497_v26  ;;  %v3196_v4 = vmul.f32 %v6349_v7, %v5765_v35 }
 0xc1f   : > { %v3507_v28 = vmul.f32 %v6443_v56, %v3504_v45  ;;  %v2826_v45 = vmul.f32 %v6357_v1, %v5770_v52 }
 0xc21   : > { %v3499_v12 = vpop.permute.xlu1 %3498  ;;  %3514 = vrot.lane.b32.xlu1 %v3507_v28, %s5358_s13 }
 0xc22   : > { %v3505_v42 = vsel %vm620_vm3, %v3490_v57, %v3499_v12 }
 0xc23   : > { %v3508_v40 = vmul.f32 %v6451_v38, %v3505_v42 }
 0xc25   : > { %2525 = vrot.lane.b32.xlu1 %v6340_v21, %s7116_s20  ;;  %3516 = vrot.lane.b32.xlu0 %v3508_v40, %s5358_s13  ;;  %v3526_v40 = vmul.f32 %v6357_v1, %v5796_v8  ;;  %v3525_v8 = vmul.f32 %v6349_v7, %v5809_v63  ;;  %v3482_v63 = vmul.f32 %v6340_v21, %v5824_v41 }
 0xc29   : > { %2513 = vrot.lane.b32.xlu0 %v6345_v29, %s7107_s25  ;;  %v2543_v29 = vmul.f32 %v6340_v21, %v5692_v51 }
 0xc5b   : > { %v2576_v50 = vpop.permute.xlu1 %2575 }
 0xc5c   : > { %v2583_v6 = vadd.f32 %v2576_v50, %v2544_v5  ;;  %v3153_v5 = vmul.f32 %v6340_v21, %v5778_v54 }
 0xc5e   : > { %2593 = vrot.lane.b32.xlu0 %v2583_v6, %s7117_s19 }
 0xc5f   : > { %v2578_v62 = vpop.permute.xlu0 %2577 }
 0xc60   : > { %v2584_v25 = vadd.f32 %v2578_v62, %v2545_v30  ;;  %v3154_v62 = vmul.f32 %v6349_v7, %v5798_v9 }
 0xc62   : > { %2527 = vrot.lane.b32.xlu0 %v6349_v7, %s7116_s20  ;;  %2595 = vrot.lane.b32.xlu1 %v2584_v25, %s7117_s19 }
 0xc63   : > { %v2574_v17 = vpop.permute.xlu0 %2573 }
 0xc64   : > { %v2582_v46 = vadd.f32 %v2574_v17, %v2543_v29 }
 0xc65   : > { %v2901_v18 = vpop.permute.xlu1 %2900 }
 0xc66   : > { %2517 = vrot.lane.b32.xlu0 %v6375_v15, %s7107_s25  ;;  %2515 = vrot.lane.b32.xlu1 %v6364_v58, %s7107_s25  ;;  %v2907_v0 = vadd.f32 %v2901_v18, %v2868_v48  ;;  %v2824_v15 = vmul.f32 %v6340_v21, %v5752_v23  ;;  %s7119_s25 = smov 80   ;;  %v3155_v48 = vmul.f32 %v6357_v1, %v5816_v31 }
 0xc67   : > { %v2899_v32 = vpop.permute.xlu0 %2898  ;;  %v3483_v31 = vmul.f32 %v6349_v7, %v5842_v14 }
 0xc68   : > { %v2906_v58 = vadd.f32 %v2899_v32, %v2867_v2 }
 0xc69   : > { %v2897_v37 = vpop.permute.xlu1 %2896 }
 0xc6a   : > { %2927 = vrot.lane.b32.xlu0 %v2907_v0, %s7118_s24  ;;  %2591 = vrot.lane.b32.xlu1 %v2582_v46, %s7117_s19  ;;  %v2905_v60 = vadd.f32 %v2897_v37, %v2866_v3  ;;  %v3524_v0 = vmul.f32 %v6340_v21, %v5832_v59 }
 0xc6b   : > { %v2855_v51 = vpop.permute.xlu0 %2854 }
 0xc6c   : > { %v2863_v39 = vadd.f32 %v2855_v51, %v2824_v15 }
 0xc6e   : > { %2923 = vrot.lane.b32.xlu0 %v2905_v60, %s7118_s24  ;;  %2529 = vrot.lane.b32.xlu1 %v6357_v1, %s7116_s20  ;;  %v2908_v16 = vmul.f32 0.35355338, %v2863_v39  ;;  %v3484_v39 = vmul.f32 %v6357_v1, %v5847_v19 }
 0xc6f   : > { %v2857_v55 = vpop.permute.xlu0 %2856 }
 0xc70   : > { %v2864_v23 = vadd.f32 %v2857_v55, %v2825_v47 }
 0xc71   : > { %v3230_v33 = vpop.permute.xlu1 %3229 }
 0xc72   : > { %v3236_v13 = vadd.f32 %v3230_v33, %v3197_v20  ;;  %2925 = vrot.lane.b32.xlu1 %v2906_v58, %s7118_s24  ;;  %v2909_v34 = vmul.f32 0.35355338, %v2864_v23  ;;  %s7124_s24 = smul.u32 24, %s7126_s22 }
 0xc74   : > { %3256 = vrot.lane.b32.xlu0 %v3236_v13, %s7119_s25 }
 0xc75   : > { %v3228_v36 = vpop.permute.xlu1 %3227 }
 0xc76   : > { %v3235_v26 = vadd.f32 %v3228_v36, %v3196_v4  ;;  %2914 = vrot.lane.b32.xlu1 %v2908_v16, %s7120_s26  ;;  %v5331_v4 = vld [vmem:[%s7061_s2] sm:$0xff] }
 0xc77   : > { %v2504_v36 = vmul.f32 %v5331_v4, %v6340_v21 }
 0xc78   : > { %3254 = vrot.lane.b32.xlu0 %v3235_v26, %s7119_s25 }
 0xc79   : > { %v3226_v28 = vpop.permute.xlu1 %3225  ;;  %v2859_v57 = vpop.permute.xlu0 %2858 }
 0xc7a   : > { %v3234_v12 = vadd.f32 %v3226_v28, %v3195_v24  ;;  %v2865_v42 = vadd.f32 %v2859_v57, %v2826_v45  ;;  %2916 = vrot.lane.b32.xlu1 %v2909_v34, %s7120_s26 }
 0xc7c   : > { %v2910_v35 = vmul.f32 0.35355338, %v2865_v42  ;;  %3252 = vrot.lane.b32.xlu0 %v3234_v12, %s7119_s25 }
 0xc7d   : > { %v3559_v50 = vpop.permute.xlu1 %3558  ;;  %v3184_v53 = vpop.permute.xlu0 %3183 }
 0xc7e   : > { %v3565_v6 = vadd.f32 %v3559_v50, %v3526_v40  ;;  %v3192_v30 = vadd.f32 %v3184_v53, %v3153_v5  ;;  %2918 = vrot.lane.b32.xlu1 %v2910_v35, %s7120_s26  ;;  %v5333_v53 = vld [vmem:[%s7061_s2 + $0x10] sm:$0xf] }
 0xc80   : > { %v3237_v52 = vmul.f32 0.35355338, %v3192_v30  ;;  %3585 = vrot.lane.b32.xlu0 %v3565_v6, %s7121_s17  ;;  %v2506_v6 = vmul.f32 %v5333_v53, %v6357_v1 }
 0xc81   : > { %v3186_v25 = vpop.permute.xlu0 %3185 }
 0xc82   : > { %v3193_v17 = vadd.f32 %v3186_v25, %v3154_v62  ;;  %3243 = vrot.lane.b32.xlu1 %v3237_v52, %s7122_s23 }
 0xc83   : > { %v3557_v54 = vpop.permute.xlu1 %3556 }
 0xc84   : > { %v3238_v18 = vmul.f32 0.35355338, %v3193_v17  ;;  %v3564_v29 = vadd.f32 %v3557_v54, %v3525_v8 }
 0xc86   : > { %3583 = vrot.lane.b32.xlu0 %v3564_v29, %s7121_s17  ;;  %3245 = vrot.lane.b32.xlu1 %v3238_v18, %s7122_s23 }
 0xc87   : > { %v3188_v32 = vpop.permute.xlu0 %3187 }
 0xc88   : > { %v3194_v46 = vadd.f32 %v3188_v32, %v3155_v48 }
 0xc8a   : > { %v3239_v9 = vmul.f32 0.35355338, %v3194_v46 }
 0xc8b   : > { %v3555_v37 = vpop.permute.xlu1 %3554 }
 0xc8c   : > { %v3563_v3 = vadd.f32 %v3555_v37, %v3524_v0  ;;  %3247 = vrot.lane.b32.xlu1 %v3239_v9, %s7122_s23 }
 0xc8e   : > { %3581 = vrot.lane.b32.xlu0 %v3563_v3, %s7121_s17 }
 0xc8f   : > { %v3513_v51 = vpop.permute.xlu0 %3512 }
 0xc90   : > { %v3521_v60 = vadd.f32 %v3513_v51, %v3482_v63 }
 0xc92   : > { %v3566_v2 = vmul.f32 0.35355338, %v3521_v60 }
 0xc93   : > { %v3515_v15 = vpop.permute.xlu1 %3514 }
 0xc94   : > { %v3522_v58 = vadd.f32 %v3515_v15, %v3483_v31  ;;  %3572 = vrot.lane.b32.xlu1 %v3566_v2, %s7123_s29 }
 0xc96   : > { %v3567_v59 = vmul.f32 0.35355338, %v3522_v58 }
 0xc97   : > { %v3517_v20 = vpop.permute.xlu0 %3516  ;;  %v2526_v14 = vpop.permute.xlu1 %2525 }
 0xc98   : > { %v3523_v55 = vadd.f32 %v3517_v20, %v3484_v39  ;;  %3574 = vrot.lane.b32.xlu0 %v3567_v59, %s7123_s29 }
 0xc9a   : > { %v3568_v33 = vmul.f32 0.35355338, %v3523_v55 }
 0xc9b   : > { %v2514_v41 = vpop.permute.xlu0 %2513 }
 0xc9c   : > { %2729 = vrot.lane.b32.xlu0 %v6357_v1, %s5367_s15  ;;  %3576 = vrot.lane.b32.xlu1 %v3568_v33, %s7123_s29  ;;  %v2534_v47 = vsel %vm620_vm3, %v2514_v41, %v2526_v14 }
 0xc9d   : > { %v2537_v23 = vmul.f32 %v6459_v61, %v2534_v47  ;;  %v5332_v61 = vld [vmem:[%s7061_s2 + $0x8] sm:$0xff] }
 0xc9e   : > { %v2505_v57 = vmul.f32 %v5332_v61, %v6349_v7 }
 0xc9f   : > { %v2540_v45 = vadd.f32 %v2537_v23, %v2504_v36 }
 0xca0   : > { %3058 = vrot.lane.b32.xlu0 %v6357_v1, %s7115_s16  ;;  %2727 = vrot.lane.b32.xlu1 %v6349_v7, %s5367_s15 }
 0xca1   : > { %v2585_v35 = vmul.f32 0.35355338, %v2540_v45 }
 0xca4   : > { %3054 = vrot.lane.b32.xlu0 %v6340_v21, %s7115_s16  ;;  %2725 = vrot.lane.b32.xlu1 %v6340_v21, %s5367_s15 }
 0xca8   : > { %3056 = vrot.lane.b32.xlu1 %v6349_v7, %s7115_s16 }
 0xcd0   : > { %v2594_v19 = vpop.permute.xlu0 %2593 }
 0xcd4   : > { %v2596_v13 = vpop.permute.xlu1 %2595  ;;  %v2528_v16 = vpop.permute.xlu0 %2527 }
 0xcd5   : > { %4943 = vmatpush3.xpose.msk.msra.mxu1 %vm696_vm4, %v2596_v13 }
 0xcd6   : > { %4944 = vmatprep.subr.mxu1 %v5342_v10 }
 0xcd8   : > { %v2516_v26 = vpop.permute.xlu1 %2515  ;;  %v2518_v34 = vpop.permute.xlu0 %2517 }
 0xcd9   : > { %v2535_v24 = vsel %vm620_vm3, %v2516_v26, %v2528_v16  ;;  %4945 = vmatpush3.xpose.msk.msra.mxu1 %vm696_vm4, %v2594_v19 }
 0xcda   : > { %v2538_v28 = vmul.f32 %v6443_v56, %v2535_v24  ;;  %4946 = vmatprep.subr.mxu1 %v5342_v10 }
 0xcdc   : > { %v2592_v12 = vpop.permute.xlu1 %2591  ;;  %v2928_v42 = vpop.permute.xlu0 %2927  ;;  %v2541_v40 = vadd.f32 %v2538_v28, %v2505_v57 }
 0xcdd   : > { %4947 = vmatpush3.xpose.msk.msra.mxu1 %vm696_vm4, %v2592_v12 }
 0xcde   : > { %4972 = vmatprep.subr.mxu1 %v5342_v10  ;;  %v2586_v50 = vmul.f32 0.35355338, %v2541_v40 }
 0xce0   : > { %v2530_v5 = vpop.permute.xlu1 %2529  ;;  %4949 = vmatmul.mubr.msk.f32.vlgmr.msra.gmra.mxu1 %vm696_vm4, %v2585_v35  ;;  %v2924_v52 = vpop.permute.xlu0 %2923 }
 0xce1   : > { %v2536_v56 = vsel %vm620_vm3, %v2518_v34, %v2530_v5  ;;  %4973 = vmatpush3.xpose.msk.msra.mxu1 %vm696_vm4, %v2928_v42  ;;  %4951 = vmatprep.mubr.msk.f32.mxu1 %vm5343_vm2, %v5342_v10 }
 0xce2   : > { %v2539_v30 = vmul.f32 %v6451_v38, %v2536_v56  ;;  %4974 = vmatprep.subr.mxu1 %v5342_v10 }
 0xce4   : > { %v2542_v62 = vadd.f32 %v2539_v30, %v2506_v6  ;;  %v2926_v25 = vpop.permute.xlu1 %2925  ;;  %4952 = vmatmul.mubr.msk.f32.gmra.mxu1 %vm696_vm4, %v2586_v50 }
 0xce5   : > { %4975 = vmatpush3.xpose.msk.msra.mxu1 %vm696_vm4, %v2926_v25  ;;  %4954 = vmatprep.mubr.msk.f32.mxu1 %vm5343_vm2, %v5342_v10 }
 0xce6   : > { %v2587_v17 = vmul.f32 0.35355338, %v2542_v62  ;;  %v3257_v8 = vpop.permute.xlu0 %3256  ;;  %4976 = vmatprep.subr.mxu1 %v5342_v10 }
 0xce8   : > { %v2915_v54 = vpop.permute.xlu1 %2914  ;;  %4955 = vmatmul.mubr.msk.f32.gmra.mxu1 %vm696_vm4, %v2587_v17 }
 0xce9   : > { %4977 = vmatpush3.xpose.msk.msra.mxu1 %vm696_vm4, %v2924_v52  ;;  %4978 = vmatprep.mubr.msk.f32.mxu1 %vm5343_vm2, %v5342_v10 }
 0xcea   : > { %5002 = vmatprep.subr.mxu1 %v5342_v10  ;;  %v3255_v38 = vpop.permute.xlu0 %3254 }
 0xcec   : > { %v2917_v18 = vpop.permute.xlu1 %2916  ;;  %4979 = vmatmul.mubr.msk.f32.vlgmr.msra.gmra.mxu1 %vm696_vm4, %v2915_v54 }
 0xced   : > { %5003 = vmatpush3.xpose.msk.msra.mxu1 %vm696_vm4, %v3257_v8  ;;  %4981 = vmatprep.mubr.msk.f32.mxu1 %vm5343_vm2, %v5342_v10 }
 0xcee   : > { %5004 = vmatprep.subr.mxu1 %v5342_v10  ;;  %v3253_v48 = vpop.permute.xlu0 %3252 }
 0xcf0   : > { %v2919_v29 = vpop.permute.xlu1 %2918  ;;  %4982 = vmatmul.mubr.msk.f32.gmra.mxu1 %vm696_vm4, %v2917_v18 }
 0xcf1   : > { %5005 = vmatpush3.xpose.msk.msra.mxu1 %vm696_vm4, %v3255_v38  ;;  %4984 = vmatprep.mubr.msk.f32.mxu1 %vm5343_vm2, %v5342_v10 }
 0xcf2   : > { %5006 = vmatprep.subr.mxu1 %v5342_v10  ;;  %v3586_v46 = vpop.permute.xlu0 %3585 }
 0xcf4   : > { %v3244_v32 = vpop.permute.xlu1 %3243  ;;  %4985 = vmatmul.mubr.msk.f32.gmra.mxu1 %vm696_vm4, %v2919_v29 }
 0xcf5   : > { %5007 = vmatpush3.xpose.msk.msra.mxu1 %vm696_vm4, %v3253_v48  ;;  %5008 = vmatprep.mubr.msk.f32.mxu1 %vm5343_vm2, %v5342_v10 }
 0xcf6   : > { %5032 = vmatprep.subr.mxu1 %v5342_v10 }
 0xcf8   : > { %5009 = vmatmul.mubr.msk.f32.vlgmr.msra.gmra.mxu1 %vm696_vm4, %v3244_v32  ;;  %v3246_v9 = vpop.permute.xlu1 %3245  ;;  %v3584_v0 = vpop.permute.xlu0 %3583 }
 0xcf9   : > { %5033 = vmatpush3.xpose.msk.msra.mxu1 %vm696_vm4, %v3586_v46  ;;  %5011 = vmatprep.mubr.msk.f32.mxu1 %vm5343_vm2, %v5342_v10 }
 0xcfa   : > { %5034 = vmatprep.subr.mxu1 %v5342_v10 }
 0xcfc   : > { %5012 = vmatmul.mubr.msk.f32.gmra.mxu1 %vm696_vm4, %v3246_v9 }
 0xcfd   : > { %5035 = vmatpush3.xpose.msk.msra.mxu1 %vm696_vm4, %v3584_v0  ;;  %5014 = vmatprep.mubr.msk.f32.mxu1 %vm5343_vm2, %v5342_v10 }
 0xcfe   : > { %v3248_v37 = vpop.permute.xlu1 %3247  ;;  %5036 = vmatprep.subr.mxu1 %v5342_v10 }
 0xd00   : > { %5015 = vmatmul.mubr.msk.f32.gmra.mxu1 %vm696_vm4, %v3248_v37  ;;  %v3582_v3 = vpop.permute.xlu0 %3581 }
 0xd01   : > { %5037 = vmatpush3.xpose.msk.msra.mxu1 %vm696_vm4, %v3582_v3  ;;  %5038 = vmatprep.mubr.msk.f32.mxu1 %vm5343_vm2, %v5342_v10 }
 0xd02   : > { %5062 = vmatprep.subr.mxu1 %v5342_v10 }
 0xd06   : > { %v3573_v63 = vpop.permute.xlu1 %3572 }
 0xd07   : > { %5039 = vmatmul.mubr.msk.f32.vlgmr.msra.gmra.mxu1 %vm696_vm4, %v3573_v63 }
 0xd08   : > { %5041 = vmatprep.mubr.msk.f32.mxu1 %vm5343_vm2, %v5342_v10 }
 0xd0a   : > { %v3575_v51 = vpop.permute.xlu0 %3574 }
 0xd0b   : > { %5042 = vmatmul.mubr.msk.f32.gmra.mxu1 %vm696_vm4, %v3575_v51 }
 0xd0c   : > { %5044 = vmatprep.mubr.msk.f32.mxu1 %vm5343_vm2, %v5342_v10 }
 0xd0e   : > { %v3577_v60 = vpop.permute.xlu1 %3576  ;;  %v2730_v2 = vpop.permute.xlu0 %2729 }
 0xd0f   : > { %4958 = vmatpush3.msk.msra.mxu0 %vm844_vm5, %v2730_v2  ;;  %5045 = vmatmul.mubr.msk.f32.gmra.mxu1 %vm696_vm4, %v3577_v60 }
 0xd10   : > { %4959 = vmatprep.subr.mxu0 %v5342_v10  ;;  %5070 = vmatprep.mubr.msk.f32.mxu1 %vm5343_vm2, %v5342_v10 }
 0xd12   : > { %v2728_v31 = vpop.permute.xlu1 %2727  ;;  %v6750_v37 = vpop.permute.xlu0 %3058 }
 0xd13   : > { %4960 = vmatpush3.msra.mxu0 %v2728_v31 }
 0xd14   : > { %4961 = vmatprep.subr.mxu0 %v5342_v10 }
 0xd16   : > { %v2726_v15 = vpop.permute.xlu1 %2725  ;;  %v6752_v3 = vpop.permute.xlu0 %3054 }
 0xd17   : > { %4962 = vmatpush3.msra.mxu0 %v2726_v15 }
 0xd18   : > { %4987 = vmatprep.subr.mxu0 %v5342_v10 }
 0xd1a   : > { %v6754_v63 = vpop.permute.xlu1 %3056 }
 0xda0   : > { %v2678_v58 = vpop.f32.mrf.mxu1 }
 0xda1   : > { %v6687_v59 = vadd.f32 %v2678_v58, %v5946_v44 }
 0xda2   : > { %v4950_v39 = vpop.f32.mrf.mxu1 }
 0xda3   : > { %v2692_v20 = vsel %vm792_vm12, %v6687_v59, -inf }
 0xda4   : > { %2693 = vmax.xlane.f32.xlu0 %v2692_v20  ;;  %v2683_v55 = vpop.f32.mrf.mxu1 }
 0xda5   : > { %v6692_v33 = vadd.f32 %v2683_v55, %v5952_v43 }
 0xda6   : > { %v4953_v41 = vpop.f32.mrf.mxu1 }
 0xda7   : > { %v2695_v14 = vsel %vm792_vm12, %v6692_v33, -inf }
 0xda8   : > { %2696 = vmax.xlane.f32.xlu1 %v2695_v14  ;;  %v2688_v19 = vpop.f32.mrf.mxu1 }
 0xda9   : > { %v6697_v47 = vadd.f32 %v2688_v19, %v5960_v11 }
 0xdaa   : > { %v4956_v13 = vpop.f32.mrf.mxu1 }
 0xdab   : > { %v2698_v16 = vsel %vm799_vm15, %v6697_v47, -inf }
 0xdac   : > { %2699 = vmax.xlane.f32.xlu0 %v2698_v16  ;;  %v3007_v23 = vpop.f32.mrf.mxu1 }
 0xdad   : > { %v6702_v4 = vadd.f32 %v3007_v23, %v5946_v44 }
 0xdae   : > { %v4980_v36 = vpop.f32.mrf.mxu1 }
 0xdaf   : > { %v3021_v26 = vsel %vm792_vm12, %v6702_v4, -inf }
 0xdb0   : > { %3022 = vmax.xlane.f32.xlu0 %v3021_v26  ;;  %v3012_v34 = vpop.f32.mrf.mxu1 }
 0xdb1   : > { %v6707_v24 = vadd.f32 %v3012_v34, %v5952_v43 }
 0xdb2   : > { %v4983_v45 = vpop.f32.mrf.mxu1 }
 0xdb3   : > { %v3024_v28 = vsel %vm792_vm12, %v6707_v24, -inf }
 0xdb4   : > { %3025 = vmax.xlane.f32.xlu0 %v3024_v28  ;;  %v3017_v61 = vpop.f32.mrf.mxu1 }
 0xdb5   : > { %v6712_v57 = vadd.f32 %v3017_v61, %v5960_v11 }
 0xdb6   : > { %v4986_v12 = vpop.f32.mrf.mxu1 }
 0xdb7   : > { %v3027_v42 = vsel %vm799_vm15, %v6712_v57, -inf }
 0xdb8   : > { %3028 = vmax.xlane.f32.xlu1 %v3027_v42  ;;  %v3336_v35 = vpop.f32.mrf.mxu1 }
 0xdb9   : > { %v6717_v40 = vadd.f32 %v3336_v35, %v5946_v44 }
 0xdba   : > { %v5010_v5 = vpop.f32.mrf.mxu1 }
 0xdbb   : > { %v3350_v56 = vsel %vm792_vm12, %v6717_v40, -inf }
 0xdbc   : > { %3351 = vmax.xlane.f32.xlu0 %v3350_v56  ;;  %v3341_v50 = vpop.f32.mrf.mxu1 }
 0xdbd   : > { %v6722_v53 = vadd.f32 %v3341_v50, %v5952_v43 }
 0xdbe   : > { %v5013_v6 = vpop.f32.mrf.mxu1 }
 0xdbf   : > { %v3353_v30 = vsel %vm792_vm12, %v6722_v53, -inf }
 0xdc0   : > { %3354 = vmax.xlane.f32.xlu1 %v3353_v30  ;;  %v3346_v52 = vpop.f32.mrf.mxu1 }
 0xdc1   : > { %v6727_v62 = vadd.f32 %v3346_v52, %v5960_v11 }
 0xdc2   : > { %v5016_v25 = vpop.f32.mrf.mxu1 }
 0xdc3   : > { %v3356_v17 = vsel %vm799_vm15, %v6727_v62, -inf }
 0xdc4   : > { %3357 = vmax.xlane.f32.xlu0 %v3356_v17 }
 0xdc7   : > { %v3665_v8 = vpop.f32.mrf.mxu1 }
 0xdc8   : > { %v6732_v54 = vadd.f32 %v3665_v8, %v5946_v44 }
 0xdc9   : > { %v5040_v38 = vpop.f32.mrf.mxu1 }
 0xdca   : > { %v3679_v18 = vsel %vm792_vm12, %v6732_v54, -inf }
 0xdcb   : > { %3680 = vmax.xlane.f32.xlu1 %v3679_v18  ;;  %v3670_v29 = vpop.f32.mrf.mxu1 }
 0xdcc   : > { %v6737_v48 = vadd.f32 %v3670_v29, %v5952_v43 }
 0xdcd   : > { %v5043_v32 = vpop.f32.mrf.mxu1 }
 0xdce   : > { %v3682_v46 = vsel %vm792_vm12, %v6737_v48, -inf }
 0xdcf   : > { %3683 = vmax.xlane.f32.xlu0 %v3682_v46  ;;  %v3675_v9 = vpop.f32.mrf.mxu1 }
 0xdd0   : > { %v6746_v44 = vadd.f32 %v3675_v9, %v5960_v11 }
 0xdd1   : > { %v5046_v0 = vpop.f32.mrf.mxu1 }
 0xdd2   : > { %v3685_v43 = vsel %vm799_vm15, %v6746_v44, -inf }
 0xddc   : > { %3385 = vrot.lane.b32.xlu1 %v6349_v7, %s7114_s28 }
 0xde5   : > { %3387 = vrot.lane.b32.xlu0 %v6357_v1, %s7114_s28 }
 0xe00   : > { %3686 = vmax.xlane.f32.xlu1 %v3685_v43 }
 0xe2d   : > { %v2694_v51 = vpop.xlane.xlu0 %2693 }
 0xe2e   : > { %v2701_v60 = vsub.f32 %v6687_v59, %v2694_v51 }
 0xe30   : > { %v2704_v2 = vmul.f32 1.442695, %v2701_v60 }
 0xe31   : > { %v2697_v31 = vpop.xlane.xlu1 %2696 }
 0xe32   : > { %5253 = vpow2.f32 %v2704_v2  ;;  %v2702_v15 = vsub.f32 %v6692_v33, %v2697_v31 }
 0xe34   : > { %v2706_v11 = vmul.f32 1.442695, %v2702_v15 }
 0xe35   : > { %v2700_v58 = vpop.xlane.xlu0 %2699 }
 0xe36   : > { %5255 = vpow2.f32 %v2706_v11  ;;  %v2703_v39 = vsub.f32 %v6697_v47, %v2700_v58 }
 0xe38   : > { %v2708_v20 = vmul.f32 1.442695, %v2703_v39 }
 0xe39   : > { %v3023_v55 = vpop.xlane.xlu0 %3022 }
 0xe3a   : > { %5257 = vpow2.f32 %v2708_v20  ;;  %v3030_v41 = vsub.f32 %v6702_v4, %v3023_v55 }
 0xe3c   : > { %v3033_v14 = vmul.f32 1.442695, %v3030_v41 }
 0xe3d   : > { %v3026_v19 = vpop.xlane.xlu0 %3025 }
 0xe3e   : > { %5259 = vpow2.f32 %v3033_v14  ;;  %v3031_v59 = vsub.f32 %v6707_v24, %v3026_v19 }
 0xe3f   : > { %v6761_v13 = vpop.eup %5253 }
 0xe40   : > { %v3035_v16 = vmul.f32 1.442695, %v3031_v59  ;;  %v2710_v33 = vsel %vm792_vm12, %v6761_v13, 0.0 }
 0xe41   : > { %2711 = vadd.xlane.f32.xlu0 %v2710_v33  ;;  %v3029_v28 = vpop.xlane.xlu1 %3028 }
 0xe42   : > { %5261 = vpow2.f32 %v3035_v16  ;;  %v3032_v12 = vsub.f32 %v6712_v57, %v3029_v28 }
 0xe43   : > { %v6765_v23 = vpop.eup %5255 }
 0xe44   : > { %v2713_v47 = vsel %vm792_vm12, %v6765_v23, 0.0  ;;  %v3037_v56 = vmul.f32 1.442695, %v3032_v12 }
 0xe45   : > { %2714 = vadd.xlane.f32.xlu1 %v2713_v47  ;;  %v3352_v61 = vpop.xlane.xlu0 %3351 }
 0xe46   : > { %v3359_v5 = vsub.f32 %v6717_v40, %v3352_v61  ;;  %5263 = vpow2.f32 %v3037_v56 }
 0xe47   : > { %v6769_v4 = vpop.eup %5257 }
 0xe48   : > { %v2716_v36 = vsel %vm799_vm15, %v6769_v4, 0.0  ;;  %v3362_v30 = vmul.f32 1.442695, %v3359_v5 }
 0xe49   : > { %2717 = vadd.xlane.f32.xlu0 %v2716_v36  ;;  %v3355_v42 = vpop.xlane.xlu1 %3354 }
 0xe4a   : > { %v3360_v50 = vsub.f32 %v6722_v53, %v3355_v42  ;;  %5265 = vpow2.f32 %v3362_v30 }
 0xe4b   : > { %v6773_v26 = vpop.eup %5259 }
 0xe4c   : > { %v3039_v34 = vsel %vm792_vm12, %v6773_v26, 0.0 }
 0xe4d   : > { %3040 = vadd.xlane.f32.xlu1 %v3039_v34  ;;  %v3358_v35 = vpop.xlane.xlu0 %3357 }
 0xe4e   : > { %v3361_v52 = vsub.f32 %v6727_v62, %v3358_v35 }
 0xe4f   : > { %v6777_v24 = vpop.eup %5261 }
 0xe50   : > { %v3042_v45 = vsel %vm792_vm12, %v6777_v24, 0.0  ;;  %v3366_v8 = vmul.f32 1.442695, %v3361_v52 }
 0xe51   : > { %3043 = vadd.xlane.f32.xlu0 %v3042_v45 }
 0xe53   : > { %v6791_v53 = vpop.eup %5263 }
 0xe54   : > { %v3681_v17 = vpop.xlane.xlu1 %3680  ;;  %v3045_v62 = vsel %vm799_vm15, %v6791_v53, 0.0 }
 0xe55   : > { %v3688_v57 = vsub.f32 %v6732_v54, %v3681_v17 }
 0xe57   : > { %v3691_v40 = vmul.f32 1.442695, %v3688_v57  ;;  %v6793_v18 = vpop.eup %5265 }
 0xe58   : > { %v3684_v6 = vpop.xlane.xlu0 %3683  ;;  %v3386_v32 = vpop.permute.xlu1 %3385  ;;  %v3368_v46 = vsel %vm792_vm12, %v6793_v18, 0.0 }
 0xe59   : > { %v3689_v25 = vsub.f32 %v6737_v48, %v3684_v6 }
 0xe5b   : > { %v3693_v38 = vmul.f32 1.442695, %v3689_v25 }
 0xe5e   : > { %3716 = vrot.lane.b32.xlu1 %v6357_v1, %s7113_s27  ;;  %v3364_v1 = vmul.f32 1.442695, %v3360_v50 }
 0xe60   : > { %5267 = vpow2.f32 %v3364_v1 }
 0xe61   : > { %5269 = vpow2.f32 %v3366_v8 }
 0xe62   : > { %5271 = vpow2.f32 %v3693_v38 }
 0xe63   : > { %5273 = vpow2.f32 %v3691_v40 }
 0xe67   : > { %3383 = vrot.lane.b32.xlu0 %v6340_v21, %s7114_s28  ;;  %s427_s28 = scalar_lea.vmem %s7071_s12, %s7124_s24 }
 0xe6d   : > { %v6797_v29 = vpop.eup %5267 }
 0xe6e   : > { %v6799_v48 = vpop.eup %5269  ;;  %v3371_v54 = vsel %vm792_vm12, %v6797_v29, 0.0 }
 0xe6f   : > { %v6805_v9 = vpop.eup %5271  ;;  %v3374_v51 = vsel %vm799_vm15, %v6799_v48, 0.0 }
 0xe70   : > { %v3700_v43 = vsel %vm792_vm12, %v6805_v9, 0.0  ;;  %v6811_v60 = vpop.eup %5273 }
 0xe71   : > { %v3697_v15 = vsel %vm792_vm12, %v6811_v60, 0.0 }
 0xe82   : > { %3046 = vadd.xlane.f32.xlu1 %v3045_v62 }
 0xe86   : > { %3372 = vadd.xlane.f32.xlu0 %v3371_v54  ;;  %3369 = vadd.xlane.f32.xlu1 %v3368_v46 }
 0xe89   : > { %v3687_v0 = vpop.xlane.xlu1 %3686 }
 0xe8a   : > { %v3690_v2 = vsub.f32 %v6746_v44, %v3687_v0  ;;  %3701 = vadd.xlane.f32.xlu0 %v3700_v43  ;;  %3375 = vadd.xlane.f32.xlu1 %v3374_v51  ;;  %v3388_v44 = vpop.permute.xlu0 %3387  ;;  %v4529_v0 = vld [vmem:[%s7065_s6 + $0x38] sm:$0xff]  ;;  %v4528_v43 = vld [vmem:[%s7065_s6 + $0x30] sm:$0xff]  ;;  %v4527_v51 = vld [vmem:[%s7065_s6 + $0x28] sm:$0xff] }
 0xe8b   : > { %5063 = vmatpush3.msra.mxu1 %v4529_v0 }
 0xe8c   : > { %v3695_v31 = vmul.f32 1.442695, %v3690_v2  ;;  %5064 = vmatprep.subr.mxu1 %v5342_v10 }
 0xe8d   : > { %5065 = vmatpush3.msra.mxu1 %v4528_v43 }
 0xe8e   : > { %5275 = vpow2.f32 %v3695_v31  ;;  %3698 = vadd.xlane.f32.xlu1 %v3697_v15  ;;  %5066 = vmatprep.subr.mxu1 %v5342_v10  ;;  %v4526_v15 = vld [vmem:[%s7065_s6 + $0x20] sm:$0xff] }
 0xe8f   : > { %5067 = vmatpush3.msra.mxu1 %v4527_v51  ;;  %v4534_v51 = vld [vmem:[%s7066_s7 + $0x1] ss:$0 sm:$0xff] }
 0xe90   : > { %5068 = vmatprep.subr.mxu1 %v5342_v10 }
 0xe91   : > { %5069 = vmatpush3.msra.mxu1 %v4526_v15 }
 0xe92   : > { %5096 = vmatprep.subr.mxu1 %v5342_v10 }
 0xe9b   : > { %v6816_v11 = vpop.eup %5275 }
 0xe9c   : > { %v3703_v58 = vsel %vm799_vm15, %v6816_v11, 0.0 }
 0xe9d   : > { %3704 = vadd.xlane.f32.xlu1 %v3703_v58 }
 0xea0   : > { %3714 = vrot.lane.b32.xlu0 %v6349_v7, %s7113_s27 }
 0xeae   : > { %3712 = vrot.lane.b32.xlu1 %v6340_v21, %s7113_s27 }
 0xeca   : > { %v2712_v39 = vpop.xlane.xlu0 %2711 }
 0xecb   : > { %5277 = vrcp.f32 %v2712_v39 }
 0xece   : > { %v2715_v20 = vpop.xlane.xlu1 %2714 }
 0xecf   : > { %5279 = vrcp.f32 %v2715_v20 }
 0xed2   : > { %v2718_v55 = vpop.xlane.xlu0 %2717 }
 0xed3   : > { %5281 = vrcp.f32 %v2718_v55 }
 0xed6   : > { %v3041_v41 = vpop.xlane.xlu1 %3040 }
 0xed7   : > { %5283 = vrcp.f32 %v3041_v41 }
 0xed8   : > { %v5278_v14 = vpop.eup %5277 }
 0xed9   : > { %v2722_v19 = vmul.f32 %v5278_v14, %v6761_v13 }
 0xeda   : > { %v3044_v59 = vpop.xlane.xlu0 %3043  ;;  %v3717_v47 = vpop.permute.xlu1 %3716 }
 0xedb   : > { %5285 = vrcp.f32 %v3044_v59  ;;  %4964 = vmatmul.mubr.msk.f32.vlgmr.msra.gmra.mxu0 %vm792_vm12, %v2722_v19 }
 0xedc   : > { %v5280_v7 = vpop.eup %5279  ;;  %4988 = vmatpush3.msk.msra.mxu0 %vm844_vm5, %v6750_v37  ;;  %4966 = vmatprep.mubr.msk.f32.mxu0 %vm5343_vm2, %v5342_v10 }
 0xedd   : > { %4989 = vmatprep.subr.mxu0 %v5342_v10  ;;  %v2723_v21 = vmul.f32 %v5280_v7, %v6765_v23 }
 0xede   : > { %4990 = vmatpush3.msra.mxu0 %v6754_v63  ;;  %v3384_v23 = vpop.permute.xlu0 %3383 }
 0xedf   : > { %4991 = vmatprep.subr.mxu0 %v5342_v10  ;;  %4967 = vmatmul.mubr.msk.f32.gmra.mxu0 %vm792_vm12, %v2723_v21 }
 0xee0   : > { %v5282_v13 = vpop.eup %5281  ;;  %4992 = vmatpush3.msra.mxu0 %v6752_v3  ;;  %4969 = vmatprep.mubr.msk.f32.mxu0 %vm5343_vm2, %v5342_v10 }
 0xee1   : > { %v2724_v37 = vmul.f32 %v5282_v13, %v6769_v4  ;;  %5017 = vmatprep.subr.mxu0 %v5342_v10 }
 0xee3   : > { %4970 = vmatmul.mubr.msk.f32.gmra.mxu0 %vm792_vm12, %v2724_v37 }
 0xee4   : > { %v5284_v16 = vpop.eup %5283  ;;  %4993 = vmatprep.mubr.msk.f32.mxu0 %vm5343_vm2, %v5342_v10 }
 0xee5   : > { %v3051_v63 = vmul.f32 %v5284_v16, %v6773_v26 }
 0xee7   : > { %4994 = vmatmul.mubr.msk.f32.vlgmr.msra.gmra.mxu0 %vm792_vm12, %v3051_v63 }
 0xee8   : > { %v5286_v33 = vpop.eup %5285  ;;  %5018 = vmatpush3.msk.msra.mxu0 %vm844_vm5, %v3388_v44  ;;  %4996 = vmatprep.mubr.msk.f32.mxu0 %vm5343_vm2, %v5342_v10 }
 0xee9   : > { %5019 = vmatprep.subr.mxu0 %v5342_v10  ;;  %v3052_v3 = vmul.f32 %v5286_v33, %v6777_v24 }
 0xeea   : > { %5020 = vmatpush3.msra.mxu0 %v3386_v32 }
 0xeeb   : > { %5021 = vmatprep.subr.mxu0 %v5342_v10  ;;  %4997 = vmatmul.mubr.msk.f32.gmra.mxu0 %vm792_vm12, %v3052_v3 }
 0xeec   : > { %5022 = vmatpush3.msra.mxu0 %v3384_v23  ;;  %4999 = vmatprep.mubr.msk.f32.mxu0 %vm5343_vm2, %v5342_v10 }
 0xeed   : > { %5047 = vmatprep.subr.mxu0 %v5342_v10 }
 0xf0b   : > { %v3047_v4 = vpop.xlane.xlu1 %3046 }
 0xf0c   : > { %5287 = vrcp.f32 %v3047_v4 }
 0xf0f   : > { %v3370_v36 = vpop.xlane.xlu1 %3369  ;;  %v3373_v26 = vpop.xlane.xlu0 %3372 }
 0xf10   : > { %5289 = vrcp.f32 %v3370_v36 }
 0xf11   : > { %5291 = vrcp.f32 %v3373_v26 }
 0xf13   : > { %v3376_v34 = vpop.xlane.xlu1 %3375  ;;  %v3702_v61 = vpop.xlane.xlu0 %3701 }
 0xf14   : > { %5293 = vrcp.f32 %v3376_v34 }
 0xf17   : > { %v3699_v24 = vpop.xlane.xlu1 %3698  ;;  %v3715_v5 = vpop.permute.xlu0 %3714 }
 0xf18   : > { %5295 = vrcp.f32 %v3699_v24 }
 0xf19   : > { %v5288_v45 = vpop.eup %5287  ;;  %5297 = vrcp.f32 %v3702_v61 }
 0xf1a   : > { %v3053_v28 = vmul.f32 %v5288_v45, %v6791_v53 }
 0xf1c   : > { %5000 = vmatmul.mubr.msk.f32.gmra.mxu0 %vm792_vm12, %v3053_v28 }
 0xf1d   : > { %5023 = vmatprep.mubr.msk.f32.mxu0 %vm5343_vm2, %v5342_v10  ;;  %v5290_v12 = vpop.eup %5289 }
 0xf1e   : > { %v3380_v42 = vmul.f32 %v5290_v12, %v6793_v18  ;;  %v5292_v35 = vpop.eup %5291 }
 0xf1f   : > { %v3381_v56 = vmul.f32 %v5292_v35, %v6797_v29 }
 0xf20   : > { %5024 = vmatmul.mubr.msk.f32.vlgmr.msra.gmra.mxu0 %vm792_vm12, %v3380_v42 }
 0xf21   : > { %5048 = vmatpush3.msk.msra.mxu0 %vm844_vm5, %v3717_v47  ;;  %5026 = vmatprep.mubr.msk.f32.mxu0 %vm5343_vm2, %v5342_v10  ;;  %v5294_v50 = vpop.eup %5293 }
 0xf22   : > { %5049 = vmatprep.subr.mxu0 %v5342_v10  ;;  %v3382_v30 = vmul.f32 %v5294_v50, %v6799_v48 }
 0xf23   : > { %5050 = vmatpush3.msra.mxu0 %v3715_v5 }
 0xf24   : > { %5027 = vmatmul.mubr.msk.f32.gmra.mxu0 %vm792_vm12, %v3381_v56  ;;  %5051 = vmatprep.subr.mxu0 %v5342_v10 }
 0xf25   : > { %5029 = vmatprep.mubr.msk.f32.mxu0 %vm5343_vm2, %v5342_v10  ;;  %v5296_v52 = vpop.eup %5295 }
 0xf26   : > { %v3705_v6 = vpop.xlane.xlu1 %3704  ;;  %v3709_v25 = vmul.f32 %v5296_v52, %v6811_v60  ;;  %v5298_v17 = vpop.eup %5297 }
 0xf27   : > { %5299 = vrcp.f32 %v3705_v6  ;;  %v3710_v8 = vmul.f32 %v5298_v17, %v6805_v9 }
 0xf28   : > { %5030 = vmatmul.mubr.msk.f32.gmra.mxu0 %vm792_vm12, %v3382_v30 }
 0xf29   : > { %5053 = vmatprep.mubr.msk.f32.mxu0 %vm5343_vm2, %v5342_v10 }
 0xf2a   : > { %v3713_v1 = vpop.permute.xlu1 %3712 }
 0xf2b   : > { %5052 = vmatpush3.msra.mxu0 %v3713_v1 }
 0xf2c   : > { %5079 = vmatprep.subr.mxu0 %v5342_v10  ;;  %5054 = vmatmul.mubr.msk.f32.vlgmr.msra.gmra.mxu0 %vm792_vm12, %v3709_v25 }
 0xf2d   : > { %5056 = vmatprep.mubr.msk.f32.mxu0 %vm5343_vm2, %v5342_v10 }
 0xf30   : > { %5057 = vmatmul.mubr.msk.f32.gmra.mxu0 %vm792_vm12, %v3710_v8 }
 0xf31   : > { %5059 = vmatprep.mubr.msk.f32.mxu0 %vm5343_vm2, %v5342_v10 }
 0xf34   : > { %v5300_v57 = vpop.eup %5299 }
 0xf35   : > { %v3711_v38 = vmul.f32 %v5300_v57, %v6816_v11 }
 0xf37   : > { %5060 = vmatmul.mubr.msk.f32.gmra.mxu0 %vm792_vm12, %v3711_v38  ;;  %v4538_v38 = vld [vmem:[%s7067_s8 + $0x38] sm:$0xff] }
 0xf38   : > { %5087 = vmatprep.mubr.msk.f32.mxu0 %vm5343_vm2, %v5342_v10  ;;  %5080 = vmatpush3.msra.mxu0 %v4538_v38 }
 0xf39   : > { %5081 = vmatprep.subr.mxu0 %v5342_v10 }
 0xf9b   : > { %v2810_v40 = vpop.f32.mrf.mxu0 }
 0xf9d   : > { %v4965_v53 = vpop.f32.mrf.mxu0 }
 0xf9e   : > { %v4535_v53 = vld [vmem:[%s7067_s8 + $0x20] sm:$0xff] }
 0xf9f   : > { %v2815_v18 = vpop.f32.mrf.mxu0 }
 0xfa1   : > { %v4968_v62 = vpop.f32.mrf.mxu0 }
 0xfa3   : > { %v2820_v29 = vpop.f32.mrf.mxu0 }
 0xfa5   : > { %v4971_v48 = vpop.f32.mrf.mxu0 }
 0xfa7   : > { %v3139_v32 = vpop.f32.mrf.mxu0 }
 0xfa8   : > { %3814 = vrot.lane.b32.xlu0 %v3139_v32, %s5353_s14 }
 0xfa9   : > { %v4995_v54 = vpop.f32.mrf.mxu0 }
 0xfab   : > { %v3144_v46 = vpop.f32.mrf.mxu0 }
 0xfac   : > { %3816 = vrot.lane.b32.xlu1 %v3144_v46, %s5353_s14 }
 0xfad   : > { %v4998_v9 = vpop.f32.mrf.mxu0 }
 0xfdc   : > { %v3149_v60 = vpop.f32.mrf.mxu0 }
 0xfde   : > { %v5001_v2 = vpop.f32.mrf.mxu0 }
 0xfe0   : > { %v3468_v31 = vpop.f32.mrf.mxu0 }
 0xfe1   : > { %3826 = vrot.lane.b32.xlu1 %v3468_v31, %s5357_s18 }
 0xfe2   : > { %v5025_v11 = vpop.f32.mrf.mxu0 }
 0xfe4   : > { %v3473_v58 = vpop.f32.mrf.mxu0 }
 0xfe5   : > { %3828 = vrot.lane.b32.xlu0 %v3473_v58, %s5357_s18 }
 0xfe6   : > { %v5028_v44 = vpop.f32.mrf.mxu0 }
 0xfe8   : > { %v3478_v39 = vpop.f32.mrf.mxu0 }
 0xfea   : > { %v5031_v20 = vpop.f32.mrf.mxu0 }
 0xfeb   : > { %v4552_v20 = vld [vmem:[%s7068_s9 + $0x78] sm:$0xff] }
 0xfec   : > { %v3797_v55 = vpop.f32.mrf.mxu0 }
 0xfed   : > { %3838 = vrot.lane.b32.xlu0 %v3797_v55, %s5358_s13  ;;  %v4551_v55 = vld [vmem:[%s7068_s9 + $0x70] sm:$0xff] }
 0xfee   : > { %v5055_v41 = vpop.f32.mrf.mxu0 }
 0xfef   : > { %v4550_v41 = vld [vmem:[%s7068_s9 + $0x68] sm:$0xff] }
 0xff0   : > { %v3802_v14 = vpop.f32.mrf.mxu0 }
 0xff1   : > { %3818 = vrot.lane.b32.xlu0 %v3149_v60, %s5353_s14  ;;  %3840 = vrot.lane.b32.xlu1 %v3802_v14, %s5358_s13  ;;  %v4549_v14 = vld [vmem:[%s7068_s9 + $0x60] sm:$0xff] }
 0xff2   : > { %v5058_v19 = vpop.f32.mrf.mxu0 }
 0xff3   : > { %v4548_v19 = vld [vmem:[%s7068_s9 + $0x58] sm:$0xff] }
 0xff5   : > { %3830 = vrot.lane.b32.xlu1 %v3478_v39, %s5357_s18 }
 0xff7   : > { %v3807_v59 = vpop.f32.mrf.mxu0 }
 0xff8   : > { %3842 = vrot.lane.b32.xlu0 %v3807_v59, %s5358_s13  ;;  %v4547_v59 = vld [vmem:[%s7068_s9 + $0x50] sm:$0xff] }
 0xff9   : > { %v5061_v7 = vpop.f32.mrf.mxu0 }
 0xffa   : > { %v4546_v7 = vld [vmem:[%s7068_s9 + $0x48] sm:$0xff] }
0x101a   : > { %v3815_v21 = vpop.permute.xlu0 %3814 }
0x101b   : > { %v3847_v63 = vsel %vm696_vm4, %v2810_v40, %v3815_v21  ;;  %v4537_v40 = vld [vmem:[%s7067_s8 + $0x30] sm:$0xff]  ;;  %v4545_v21 = vld [vmem:[%s7068_s9 + $0x40] sm:$0xff] }
0x101c   : > { %5082 = vmatpush3.msra.mxu0 %v4537_v40 }
0x101d   : > { %5083 = vmatprep.subr.mxu0 %v5342_v10 }
0x101e   : > { %v3817_v13 = vpop.permute.xlu1 %3816 }
0x101f   : > { %v3848_v47 = vsel %vm696_vm4, %v2815_v18, %v3817_v13 }
0x1053   : > { %v3827_v16 = vpop.permute.xlu1 %3826 }
0x1054   : > { %v3850_v33 = vsel %vm2007_vm6, %v3847_v63, %v3827_v16 }
0x1057   : > { %v3829_v37 = vpop.permute.xlu0 %3828 }
0x1058   : > { %v3851_v4 = vsel %vm2007_vm6, %v3848_v47, %v3829_v37 }
0x105f   : > { %v3839_v3 = vpop.permute.xlu0 %3838 }
0x1060   : > { %v3853_v23 = vsel %vm2011_vm7, %v3850_v33, %v3839_v3 }
0x1061   : > { %5071 = vmatmul.mubr.msk.f32.vlgmr.msra.gmra.mxu1 %vm464_vm0, %v3853_v23 }
0x1062   : > { %5073 = vmatprep.mubr.msk.f32.mxu1 %vm5343_vm2, %v5342_v10  ;;  %5097 = vmatpush3.msra.mxu1 %v4552_v20 }
0x1063   : > { %v3841_v36 = vpop.permute.xlu1 %3840  ;;  %v3819_v34 = vpop.permute.xlu0 %3818  ;;  %5098 = vmatprep.subr.mxu1 %v5342_v10 }
0x1064   : > { %v3854_v26 = vsel %vm2011_vm7, %v3851_v4, %v3841_v36  ;;  %v3849_v45 = vsel %vm696_vm4, %v2820_v29, %v3819_v34  ;;  %5099 = vmatpush3.msra.mxu1 %v4551_v55  ;;  %v4556_v55 = vld [vmem:[%s7069_s10] ss:$0 sm:$0xff] }
0x1065   : > { %5074 = vmatmul.mubr.msk.f32.gmra.mxu1 %vm464_vm0, %v3854_v26  ;;  %5100 = vmatprep.subr.mxu1 %v5342_v10 }
0x1066   : > { %5076 = vmatprep.mubr.msk.f32.mxu1 %vm5343_vm2, %v5342_v10  ;;  %5101 = vmatpush3.msra.mxu1 %v4550_v41 }
0x1067   : > { %v3831_v24 = vpop.permute.xlu1 %3830  ;;  %5102 = vmatprep.subr.mxu1 %v5342_v10 }
0x1068   : > { %v3852_v28 = vsel %vm2007_vm6, %v3849_v45, %v3831_v24  ;;  %5103 = vmatpush3.msra.mxu1 %v4549_v14 }
0x1069   : > { %5104 = vmatprep.subr.mxu1 %v5342_v10 }
0x106a   : > { %v3843_v61 = vpop.permute.xlu0 %3842  ;;  %5105 = vmatpush3.msra.mxu1 %v4548_v19 }
0x106b   : > { %v3855_v12 = vsel %vm2011_vm7, %v3852_v28, %v3843_v61  ;;  %5106 = vmatprep.subr.mxu1 %v5342_v10 }
0x106c   : > { %5077 = vmatmul.mubr.msk.f32.gmra.mxu1 %vm464_vm0, %v3855_v12 }
0x106d   : > { %5112 = vmatprep.mubr.msk.f32.mxu1 %vm5343_vm2, %v5342_v10  ;;  %5107 = vmatpush3.msra.mxu1 %v4547_v59 }
0x106e   : > { %5108 = vmatprep.subr.mxu1 %v5342_v10 }
0x106f   : > { %5109 = vmatpush3.msra.mxu1 %v4546_v7 }
0x1070   : > { %5110 = vmatprep.subr.mxu1 %v5342_v10 }
0x1071   : > { %5111 = vmatpush3.msra.mxu1 %v4545_v21 }
0x1121   : > { %v3936_v42 = vpop.f32.mrf.mxu1 }
0x1122   : > { %v6931_v35 = vadd.f32 %v3936_v42, %v6292_v27 }
0x1123   : > { %v5072_v5 = vpop.f32.mrf.mxu1 }
0x1124   : > { %v3955_v56 = vmul.f32 %v6931_v35, %v6931_v35 }
0x1125   : > { %v3941_v50 = vpop.f32.mrf.mxu1 }
0x1126   : > { %v6936_v6 = vadd.f32 %v3941_v50, %v6297_v22  ;;  %v3958_v30 = vsel %vm464_vm0, %v3955_v56, 0.0 }
0x1127   : > { %3959 = vadd.xlane.f32.xlu1 %v3958_v30  ;;  %v5075_v52 = vpop.f32.mrf.mxu1 }
0x1128   : > { %v3956_v1 = vmul.f32 %v6936_v6, %v6936_v6 }
0x112a   : > { %v3961_v25 = vsel %vm464_vm0, %v3956_v1, 0.0 }
0x112b   : > { %3962 = vadd.xlane.f32.xlu0 %v3961_v25 }
0x112c   : > { %v3946_v27 = vpop.f32.mrf.mxu1 }
0x112d   : > { %v6943_v17 = vadd.f32 %v3946_v27, %v6304_v49  ;;  %v4536_v49 = vld [vmem:[%s7067_s8 + $0x28] sm:$0xff] }
0x112e   : > { %v5078_v8 = vpop.f32.mrf.mxu1  ;;  %5084 = vmatpush3.msra.mxu0 %v4536_v49 }
0x112f   : > { %v3957_v57 = vmul.f32 %v6943_v17, %v6943_v17  ;;  %5085 = vmatprep.subr.mxu0 %v5342_v10 }
0x1130   : > { %5086 = vmatpush3.msra.mxu0 %v4535_v53 }
0x1131   : > { %v3964_v22 = vsel %vm471_vm1, %v3957_v57, 0.0  ;;  %5121 = vmatprep.subr.mxu0 %v5342_v10 }
0x1132   : > { %3965 = vadd.xlane.f32.xlu0 %v3964_v22 }
0x11b0   : > { %v3960_v18 = vpop.xlane.xlu1 %3959 }
0x11b1   : > { %v3967_v62 = vmul.f32 0.03125, %v3960_v18 }
0x11b3   : > { %v3970_v29 = vadd.f32 1e-06, %v3967_v62 }
0x11b4   : > { %v3963_v48 = vpop.xlane.xlu0 %3962 }
0x11b5   : > { %5301 = vrsqrt.f32 %v3970_v29  ;;  %v3968_v32 = vmul.f32 0.03125, %v3963_v48 }
0x11b7   : > { %v3971_v54 = vadd.f32 1e-06, %v3968_v32 }
0x11b9   : > { %5303 = vrsqrt.f32 %v3971_v54 }
0x11bb   : > { %v3966_v46 = vpop.xlane.xlu0 %3965 }
0x11bc   : > { %v3969_v9 = vmul.f32 0.03125, %v3966_v46 }
0x11be   : > { %v3972_v0 = vadd.f32 1e-06, %v3969_v9 }
0x11c0   : > { %5305 = vrsqrt.f32 %v3972_v0  ;;  %v4255_v0 = vld [vmem:[%s7070_s11 + $0x10] sm:$0xff] }
0x11c2   : > { %v5302_v43 = vpop.eup %5301 }
0x11c3   : > { %v3976_v60 = vmul.f32 %v5302_v43, %v6931_v35  ;;  %v4253_v43 = vld [vmem:[%s7070_s11] sm:$0xff] }
0x11c5   : > { %v3985_v2 = vmul.f32 %v4534_v51, %v3976_v60 }
0x11c6   : > { %v5304_v31 = vpop.eup %5303 }
0x11c7   : > { %5088 = vmatmul.mubr.msk.f32.vlgmr.msra.gmra.mxu0 %vm464_vm0, %v3985_v2  ;;  %v3977_v15 = vmul.f32 %v5304_v31, %v6936_v6 }
0x11c8   : > { %5090 = vmatprep.mubr.msk.f32.mxu0 %vm5343_vm2, %v5342_v10 }
0x11c9   : > { %v3986_v11 = vmul.f32 %v4534_v51, %v3977_v15 }
0x11cb   : > { %5091 = vmatmul.mubr.msk.f32.gmra.mxu0 %vm464_vm0, %v3986_v11 }
0x11cc   : > { %5093 = vmatprep.mubr.msk.f32.mxu0 %vm5343_vm2, %v5342_v10 }
0x11cd   : > { %v5306_v58 = vpop.eup %5305 }
0x11ce   : > { %v3978_v44 = vmul.f32 %v5306_v58, %v6943_v17 }
0x11d0   : > { %v3987_v39 = vmul.f32 %v4534_v51, %v3978_v44 }
0x11d2   : > { %5094 = vmatmul.mubr.msk.f32.gmra.mxu0 %vm464_vm0, %v3987_v39 }
0x11d3   : > { %5129 = vmatprep.mubr.msk.f32.mxu0 %vm5343_vm2, %v5342_v10 }
0x1287   : > { %v4068_v13 = vpop.f32.mrf.mxu0 }
0x1288   : > { %4106 = vrot.lane.b32.xlu0 %v4068_v13, %s5367_s15  ;;  %v4542_v23 = vmul.f32 -1.442695, %v4068_v13 }
0x1289   : > { %v5089_v37 = vpop.f32.mrf.mxu0 }
0x128a   : > { %5307 = vpow2.f32 %v4542_v23 }
0x128b   : > { %v4073_v16 = vpop.f32.mrf.mxu0 }
0x128c   : > { %4108 = vrot.lane.b32.xlu1 %v4073_v16, %s5367_s15  ;;  %v4543_v47 = vmul.f32 -1.442695, %v4073_v16 }
0x128d   : > { %v5092_v63 = vpop.f32.mrf.mxu0 }
0x128e   : > { %5309 = vpow2.f32 %v4543_v47 }
0x1292   : > { %v4078_v33 = vpop.f32.mrf.mxu0 }
0x1293   : > { %4110 = vrot.lane.b32.xlu1 %v4078_v33, %s5367_s15  ;;  %v4544_v4 = vmul.f32 -1.442695, %v4078_v33 }
0x1294   : > { %v5095_v3 = vpop.f32.mrf.mxu0 }
0x1295   : > { %5311 = vpow2.f32 %v4544_v4 }
0x1297   : > { %v5308_v36 = vpop.eup %5307 }
0x1298   : > { %v4091_v26 = vadd.f32 1.0, %v5308_v36 }
0x129a   : > { %5313 = vrcp.f32 %v4091_v26 }
0x129b   : > { %v5310_v34 = vpop.eup %5309 }
0x129c   : > { %v4092_v24 = vadd.f32 1.0, %v5310_v34 }
0x129e   : > { %5315 = vrcp.f32 %v4092_v24 }
0x12a2   : > { %v5312_v45 = vpop.eup %5311 }
0x12a3   : > { %v4093_v28 = vadd.f32 1.0, %v5312_v45 }
0x12a5   : > { %5317 = vrcp.f32 %v4093_v28 }
0x12a7   : > { %v5314_v61 = vpop.eup %5313 }
0x12a8   : > { %v4100_v12 = vmul.f32 %v5314_v61, %v4068_v13 }
0x12ab   : > { %v5316_v42 = vpop.eup %5315 }
0x12ac   : > { %v4101_v50 = vmul.f32 %v5316_v42, %v4073_v16 }
0x12b2   : > { %v5318_v1 = vpop.eup %5317 }
0x12b3   : > { %v4102_v25 = vmul.f32 %v5318_v1, %v4078_v33 }
0x12fa   : > { %v4107_v5 = vpop.permute.xlu0 %4106 }
0x12fb   : > { %v4115_v56 = vmul.f32 %v4107_v5, %v4100_v12 }
0x12fd   : > { %5113 = vmatmul.mubr.msk.f32.vlgmr.msra.gmra.mxu1 %vm2282_vm8, %v4115_v56 }
0x12fe   : > { %v4109_v30 = vpop.permute.xlu1 %4108  ;;  %5115 = vmatprep.mubr.msk.f32.mxu1 %vm5343_vm2, %v5342_v10 }
0x12ff   : > { %v4116_v52 = vmul.f32 %v4109_v30, %v4101_v50 }
0x1301   : > { %5116 = vmatmul.mubr.msk.f32.gmra.mxu1 %vm2282_vm8, %v4116_v52 }
0x1302   : > { %5118 = vmatprep.mubr.msk.f32.mxu1 %vm5343_vm2, %v5342_v10 }
0x1305   : > { %v4111_v27 = vpop.permute.xlu1 %4110 }
0x1306   : > { %v4117_v8 = vmul.f32 %v4111_v27, %v4102_v25 }
0x1308   : > { %5119 = vmatmul.mubr.msk.f32.gmra.mxu1 %vm2282_vm8, %v4117_v8 }
0x13bd   : > { %v4202_v57 = vpop.f32.mrf.mxu1 }
0x13be   : > { %v4216_v22 = vadd.f32 %v4202_v57, %v6931_v35 }
0x13bf   : > { %v5114_v38 = vpop.f32.mrf.mxu1 }
0x13c0   : > { %v4220_v40 = vmul.f32 %v4216_v22, %v4216_v22 }
0x13c1   : > { %v4207_v49 = vpop.f32.mrf.mxu1 }
0x13c2   : > { %v4217_v53 = vadd.f32 %v4207_v49, %v6936_v6  ;;  %v4223_v18 = vsel %vm464_vm0, %v4220_v40, 0.0  ;;  %v4256_v6 = vld [vmem:[%s7070_s11 + $0x18] sm:$0xff] }
0x13c3   : > { %4224 = vadd.xlane.f32.xlu1 %v4223_v18  ;;  %v5117_v62 = vpop.f32.mrf.mxu1  ;;  %5122 = vmatpush3.msra.mxu0 %v4256_v6 }
0x13c4   : > { %v4221_v29 = vmul.f32 %v4217_v53, %v4217_v53  ;;  %5123 = vmatprep.subr.mxu0 %v5342_v10 }
0x13c5   : > { %5124 = vmatpush3.msra.mxu0 %v4255_v0 }
0x13c6   : > { %v4226_v48 = vsel %vm464_vm0, %v4221_v29, 0.0  ;;  %5125 = vmatprep.subr.mxu0 %v5342_v10 }
0x13c7   : > { %4227 = vadd.xlane.f32.xlu0 %v4226_v48 }
0x13c8   : > { %v4212_v32 = vpop.f32.mrf.mxu1 }
0x13c9   : > { %v4218_v54 = vadd.f32 %v4212_v32, %v6943_v17  ;;  %v4254_v17 = vld [vmem:[%s7070_s11 + $0x8] sm:$0xff] }
0x13ca   : > { %v5120_v46 = vpop.f32.mrf.mxu1  ;;  %5126 = vmatpush3.msra.mxu0 %v4254_v17 }
0x13cb   : > { %v4222_v9 = vmul.f32 %v4218_v54, %v4218_v54  ;;  %5127 = vmatprep.subr.mxu0 %v5342_v10 }
0x13cc   : > { %5128 = vmatpush3.msra.mxu0 %v4253_v43 }
0x13cd   : > { %v4229_v35 = vsel %vm471_vm1, %v4222_v9, 0.0 }
0x13ce   : > { %4230 = vadd.xlane.f32.xlu0 %v4229_v35 }
0x144c   : > { %v4225_v51 = vpop.xlane.xlu1 %4224 }
0x144d   : > { %v4232_v60 = vmul.f32 0.03125, %v4225_v51 }
0x144f   : > { %v4235_v2 = vadd.f32 1e-06, %v4232_v60 }
0x1450   : > { %v4228_v31 = vpop.xlane.xlu0 %4227 }
0x1451   : > { %5319 = vrsqrt.f32 %v4235_v2  ;;  %v4233_v15 = vmul.f32 0.03125, %v4228_v31 }
0x1453   : > { %v4236_v11 = vadd.f32 1e-06, %v4233_v15 }
0x1455   : > { %5321 = vrsqrt.f32 %v4236_v11 }
0x1457   : > { %v4231_v58 = vpop.xlane.xlu0 %4230 }
0x1458   : > { %v4234_v44 = vmul.f32 0.03125, %v4231_v58 }
0x145a   : > { %v4237_v39 = vadd.f32 1e-06, %v4234_v44 }
0x145c   : > { %5323 = vrsqrt.f32 %v4237_v39 }
0x145e   : > { %v5320_v20 = vpop.eup %5319 }
0x145f   : > { %v4241_v41 = vmul.f32 %v5320_v20, %v4216_v22 }
0x1461   : > { %v4250_v14 = vmul.f32 %v4556_v55, %v4241_v41 }
0x1462   : > { %v5322_v19 = vpop.eup %5321 }
0x1463   : > { %5130 = vmatmul.mubr.msk.f32.vlgmr.msra.gmra.mxu0 %vm464_vm0, %v4250_v14  ;;  %v4242_v59 = vmul.f32 %v5322_v19, %v4217_v53 }
0x1464   : > { %5132 = vmatprep.mubr.msk.f32.mxu0 %vm5343_vm2, %v5342_v10 }
0x1465   : > { %v4251_v7 = vmul.f32 %v4556_v55, %v4242_v59 }
0x1467   : > { %5133 = vmatmul.mubr.msk.f32.gmra.mxu0 %vm464_vm0, %v4251_v7 }
0x1468   : > { %5135 = vmatprep.mubr.msk.f32.mxu0 %vm5343_vm2, %v5342_v10 }
0x1469   : > { %v5324_v21 = vpop.eup %5323 }
0x146a   : > { %v4243_v13 = vmul.f32 %v5324_v21, %v4218_v54 }
0x146c   : > { %v4252_v37 = vmul.f32 %v4556_v55, %v4243_v13 }
0x146e   : > { %5136 = vmatmul.mubr.msk.f32.gmra.mxu0 %vm464_vm0, %v4252_v37 }
0x1523   : > { %v4332_v16 = vpop.f32.mrf.mxu0 }
0x1524   : > { %4346 = vst [vmem:[%s427_s28] sm:$0xff] %v4332_v16 }
0x1525   : > { %v5131_v63 = vpop.f32.mrf.mxu0 }
0x1527   : > { %v4337_v33 = vpop.f32.mrf.mxu0 }
0x1528   : > { %4347 = vst [vmem:[%s427_s28 + $0x8] sm:$0xff] %v4337_v33 }
0x1529   : > { %v5134_v3 = vpop.f32.mrf.mxu0 }
0x152e   : > { %v4342_v23 = vpop.f32.mrf.mxu0 }
0x152f   : > { %4348 = vst [vmem:[%s427_s28 + $0x10] sm:$0xf] %v4342_v23 }
0x1530   : > { %v5137_v47 = vpop.f32.mrf.mxu0 }
0x1531 PF: > { %s22_s21 = sadd.s32 1, %s5340_s21  }
0x1532   : > { %p19_p4 = scmp.ge.s32.totalorder %s22_s21, 4  }
0x1534   :  { %21 = sbr.rel (!%p19_p4) target bundleno = 1 (0x1), region = 107 }

</bundles_post_ra>
